<compile_context>
chip_gen: v7x
topology: tpu7x:2x2x1
jax: 0.10.0
libtpu: 0.0.40
codegen_flags: <defaults>
</compile_context>

<pallas_src>
import functools

import jax
import jax.numpy as jnp
from jax import lax
from jax.experimental import pallas as pl
from jax.experimental.pallas import tpu as pltpu


N_STEPS = 64        # self.N
DT = 0.05           # self.dt
N_X = 2             # state dimension  (xhat_data is (N, 2))
N_U = 1             # input dimension
HIDDEN = 32         # MLP hidden width
BLOCK_B = 8         # rollouts per grid step (f32 sublane count)
BATCH = 16          # example batch of independent rollouts (2 blocks)


def _forward_euler_kernel(dt, n_steps,
                          x0_ref, u_ref, w1x_ref, w1u_ref, b1_ref,
                          w2t_ref, b2_ref, out_ref):
    """Sequential forward-Euler rollout of BLOCK_B rollouts, VPU/XLU/EUP only."""
    # ---- one-time prologue (off the serial recurrence) ------------------
    w1x = w1x_ref[...]                         # (N_X, H)
    w1x0 = w1x[0:1, :]                         # (1, H)
    w1x1 = w1x[1:2, :]                         # (1, H)
    w1u = w1u_ref[...]                         # (1, H)   (n_u == 1)
    b1 = b1_ref[...]                           # (1, H)

    # Fold dt into the output layer once:  x_new = x + h @ (dt*w2) + dt*b2
    w2t_dt = dt * w2t_ref[...]                 # (N_X, H) (transposed in wrapper)
    w2t0 = w2t_dt[0:1, :]                      # (1, H)
    w2t1 = w2t_dt[1:2, :]                      # (1, H)
    b2_dt = dt * b2_ref[...]                   # (1, N_X)
    b2dt0 = b2_dt[:, 0:1]                      # (1, 1)
    b2dt1 = b2_dt[:, 1:2]                      # (1, 1)

    x_init = x0_ref[...]                       # (BLOCK_B, N_X)
    x0 = x_init[:, 0:1]                        # (BLOCK_B, 1) carried state cols
    x1 = x_init[:, 1:2]                        # (BLOCK_B, 1)
    u = u_ref[...]                             # (BLOCK_B, N) — fits in one vreg

    def step(q, x0, x1):
        # u-dependent affine term: independent of the state, so it sits OFF
        # the serial dependence chain (scheduler overlaps it with the chain).
        u_term = u[:, q:q + 1] * w1u + b1                     # (BLOCK_B, H)
        # hidden layer: lane-broadcast state * weight rows (VPU), tanh on EUP.
        h = jnp.tanh(x0 * w1x0 + x1 * w1x1 + u_term)          # (BLOCK_B, H)
        # output layer: elementwise mul (VPU) + lane reduction (XLU); the two
        # reductions are independent, so they issue on separate XLU units and
        # do not lengthen the chain.
        x0n = x0 + b2dt0 + jnp.sum(h * w2t0, axis=-1, keepdims=True)  # (B, 1)
        x1n = x1 + b2dt1 + jnp.sum(h * w2t1, axis=-1, keepdims=True)  # (B, 1)
        return x0n, x1n

    # Fully-unrolled recurrence (static trip count; live carry is only two
    # (BLOCK_B, 1) columns).  The per-step store is off the carried chain.
    for q in range(n_steps):
        x0, x1 = step(q, x0, x1)
        out_ref[q] = jnp.concatenate([x0, x1], axis=1)        # (BLOCK_B, N_X)


def forward_euler_pem(x0, u, w1x, w1u, b1, w2, b2, *, dt=DT):
    """Pallas wrapper for batched forward-Euler rollouts.

    Accepts either a single rollout (x0: (1, n_x), u: (N, n_u)) — matching the
    PyTorch module — and returns (N, n_x), or a batch (x0: (B, n_x),
    u: (B, N, n_u)) and returns (B, N, n_x).
    """
    x0 = jnp.asarray(x0, jnp.float32)
    u = jnp.asarray(u, jnp.float32)
    single = (u.ndim == 2)
    if single:
        u = u[None]                                    # (1, N, n_u)
    B, n_x = x0.shape
    _, n_steps, n_u = u.shape
    hidden = w1x.shape[1]
    assert n_u == 1, "this instantiation of the state-space MLP assumes n_u == 1"

    # Pad the batch to a multiple of BLOCK_B (padded rollouts are discarded).
    num_blocks = pl.cdiv(B, BLOCK_B)
    b_pad = num_blocks * BLOCK_B
    if b_pad != B:
        x0 = jnp.pad(x0, ((0, b_pad - B), (0, 0)))
        u = jnp.pad(u, ((0, b_pad - B), (0, 0), (0, 0)))
    u2 = u[..., 0]                                     # (b_pad, N); n_u == 1

    # Layout plumbing in the wrapper: output weight lane-major per state
    # component, (n_x, hidden), so the kernel does pure lane reductions.
    w2t = jnp.transpose(jnp.asarray(w2, jnp.float32))  # (n_x, hidden)

    kernel = functools.partial(_forward_euler_kernel, float(dt), n_steps)
    out = pl.pallas_call(
        kernel,
        out_shape=jax.ShapeDtypeStruct((n_steps, b_pad, n_x), jnp.float32),
        grid=(num_blocks,),
        in_specs=[
            pl.BlockSpec((BLOCK_B, n_x), lambda i: (i, 0)),        # x0 block
            pl.BlockSpec((BLOCK_B, n_steps), lambda i: (i, 0)),    # u  block
            pl.BlockSpec((n_x, hidden), lambda i: (0, 0)),         # w1x
            pl.BlockSpec((1, hidden), lambda i: (0, 0)),           # w1u
            pl.BlockSpec((1, hidden), lambda i: (0, 0)),           # b1
            pl.BlockSpec((n_x, hidden), lambda i: (0, 0)),         # w2^T
            pl.BlockSpec((1, n_x), lambda i: (0, 0)),              # b2
        ],
        out_specs=pl.BlockSpec((n_steps, BLOCK_B, n_x), lambda i: (0, i, 0)),
        compiler_params=pltpu.CompilerParams(
            dimension_semantics=("parallel",)),        # both TCs on v7x
    )(x0, u2, jnp.asarray(w1x, jnp.float32), jnp.asarray(w1u, jnp.float32),
      jnp.asarray(b1, jnp.float32), w2t, jnp.asarray(b2, jnp.float32))

    out = jnp.transpose(out, (1, 0, 2))[:B]            # (B, N, n_x)
    if single:
        out = out[0]                                   # (N, n_x) like xhat_data
    return out


def forward_euler_pem_ref(x0, u, w1x, w1u, b1, w2, b2, *, dt=DT):
    """Pure-JAX reference (same math as the PyTorch update==0 loop), batched."""
    def rollout(x0_b, u_b):                            # x0_b (n_x,), u_b (N, n_u)
        def step(x, u_q):
            h = jnp.tanh(x @ w1x + u_q @ w1u + b1[0])
            dx = h @ w2 + b2[0]
            x_new = x + dt * dx
            return x_new, x_new
        _, xs = lax.scan(step, x0_b, u_b)
        return xs                                      # (N, n_x)
    return jax.vmap(rollout)(x0, u)


if __name__ == "__main__":
    key = jax.random.PRNGKey(0)
    k_x0, k_u, k_w1x, k_w1u, k_b1, k_w2, k_b2 = jax.random.split(key, 7)

    # Deterministic synthetic model parameters + a batch of rollouts.
    x0 = jax.random.normal(k_x0, (BATCH, N_X), dtype=jnp.float32)
    u = jax.random.normal(k_u, (BATCH, N_STEPS, N_U), dtype=jnp.float32)
    w1x = 0.3 * jax.random.normal(k_w1x, (N_X, HIDDEN), dtype=jnp.float32)
    w1u = 0.3 * jax.random.normal(k_w1u, (N_U, HIDDEN), dtype=jnp.float32)
    b1 = 0.1 * jax.random.normal(k_b1, (1, HIDDEN), dtype=jnp.float32)
    w2 = 0.3 * jax.random.normal(k_w2, (HIDDEN, N_X), dtype=jnp.float32)
    b2 = 0.1 * jax.random.normal(k_b2, (1, N_X), dtype=jnp.float32)

    # Batched rollouts (main path).
    xhat = forward_euler_pem(x0, u, w1x, w1u, b1, w2, b2)
    xhat = jax.block_until_ready(xhat)
    ref = forward_euler_pem_ref(x0, u, w1x, w1u, b1, w2, b2)
    assert xhat.shape == (BATCH, N_STEPS, N_X)
    assert jnp.allclose(xhat, ref, atol=2e-4, rtol=2e-4), "batched mismatch vs reference"

    # Single-rollout path (matches the PyTorch module's xhat_data shape).
    xhat1 = forward_euler_pem(x0[:1], u[0], w1x, w1u, b1, w2, b2)
    xhat1 = jax.block_until_ready(xhat1)
    assert xhat1.shape == (N_STEPS, N_X)
    assert jnp.allclose(xhat1, ref[0], atol=2e-4, rtol=2e-4), "single mismatch vs reference"

    print("KERNEL_OK")
</pallas_src>

<mosaic_0001>
module attributes {stable_mosaic.version = 11 : i64} {
  func.func @_forward_euler_kernel(%arg0: i32, %arg1: memref<8x2xf32, #tpu.memory_space<vmem>>, %arg2: memref<8x64xf32, #tpu.memory_space<vmem>>, %arg3: memref<2x32xf32, #tpu.memory_space<vmem>>, %arg4: memref<1x32xf32, #tpu.memory_space<vmem>>, %arg5: memref<1x32xf32, #tpu.memory_space<vmem>>, %arg6: memref<2x32xf32, #tpu.memory_space<vmem>>, %arg7: memref<1x2xf32, #tpu.memory_space<vmem>>, %arg8: memref<64x8x2xf32, #tpu.memory_space<vmem>>) attributes {dimension_semantics = [#tpu.dimension_semantics<parallel>], iteration_bounds = array<i64: 2>, scalar_prefetch = 0 : i64, scratch_operands = 0 : i64, tpu.core_type = #tpu.core_type<tc>, window_params = [{transform_indices = @transform_0, window_bounds = array<i64: 8, 2>}, {transform_indices = @transform_1, window_bounds = array<i64: 8, 64>}, {pipeline_mode = #tpu.pipeline_mode<synchronous>, transform_indices = @transform_2, window_bounds = array<i64: 2, 32>}, {pipeline_mode = #tpu.pipeline_mode<synchronous>, transform_indices = @transform_3, window_bounds = array<i64: 1, 32>}, {pipeline_mode = #tpu.pipeline_mode<synchronous>, transform_indices = @transform_4, window_bounds = array<i64: 1, 32>}, {pipeline_mode = #tpu.pipeline_mode<synchronous>, transform_indices = @transform_5, window_bounds = array<i64: 2, 32>}, {pipeline_mode = #tpu.pipeline_mode<synchronous>, transform_indices = @transform_6, window_bounds = array<i64: 1, 2>}, {transform_indices = @transform_7, window_bounds = array<i64: 64, 8, 2>}]} {
    %c0 = arith.constant 0 : index
    %c0_0 = arith.constant 0 : index
    %0 = vector.load %arg3[%c0, %c0_0] : memref<2x32xf32, #tpu.memory_space<vmem>>, vector<2x32xf32>
    %1 = vector.extract_strided_slice %0 {offsets = [0, 0], sizes = [1, 32], strides = [1, 1]} : vector<2x32xf32> to vector<1x32xf32>
    %2 = vector.extract_strided_slice %0 {offsets = [1, 0], sizes = [1, 32], strides = [1, 1]} : vector<2x32xf32> to vector<1x32xf32>
    %c0_1 = arith.constant 0 : index
    %c0_2 = arith.constant 0 : index
    %3 = vector.load %arg4[%c0_1, %c0_2] : memref<1x32xf32, #tpu.memory_space<vmem>>, vector<1x32xf32>
    %c0_3 = arith.constant 0 : index
    %c0_4 = arith.constant 0 : index
    %4 = vector.load %arg5[%c0_3, %c0_4] : memref<1x32xf32, #tpu.memory_space<vmem>>, vector<1x32xf32>
    %c0_5 = arith.constant 0 : index
    %c0_6 = arith.constant 0 : index
    %5 = vector.load %arg6[%c0_5, %c0_6] : memref<2x32xf32, #tpu.memory_space<vmem>>, vector<2x32xf32>
    %cst = arith.constant 5.000000e-02 : f32
    %6 = vector.broadcast %cst : f32 to vector<2x32xf32>
    %7 = arith.mulf %6, %5 : vector<2x32xf32>
    %8 = vector.extract_strided_slice %7 {offsets = [0, 0], sizes = [1, 32], strides = [1, 1]} : vector<2x32xf32> to vector<1x32xf32>
    %9 = vector.extract_strided_slice %7 {offsets = [1, 0], sizes = [1, 32], strides = [1, 1]} : vector<2x32xf32> to vector<1x32xf32>
    %c0_7 = arith.constant 0 : index
    %c0_8 = arith.constant 0 : index
    %10 = vector.load %arg7[%c0_7, %c0_8] : memref<1x2xf32, #tpu.memory_space<vmem>>, vector<1x2xf32>
    %cst_9 = arith.constant 5.000000e-02 : f32
    %11 = vector.broadcast %cst_9 : f32 to vector<1x2xf32>
    %12 = arith.mulf %11, %10 : vector<1x2xf32>
    %13 = vector.extract_strided_slice %12 {offsets = [0, 0], sizes = [1, 1], strides = [1, 1]} : vector<1x2xf32> to vector<1x1xf32>
    %14 = vector.extract_strided_slice %12 {offsets = [0, 1], sizes = [1, 1], strides = [1, 1]} : vector<1x2xf32> to vector<1x1xf32>
    %c0_10 = arith.constant 0 : index
    %c0_11 = arith.constant 0 : index
    %15 = vector.load %arg1[%c0_10, %c0_11] : memref<8x2xf32, #tpu.memory_space<vmem>>, vector<8x2xf32>
    %16 = vector.extract_strided_slice %15 {offsets = [0, 0], sizes = [8, 1], strides = [1, 1]} : vector<8x2xf32> to vector<8x1xf32>
    %17 = vector.extract_strided_slice %15 {offsets = [0, 1], sizes = [8, 1], strides = [1, 1]} : vector<8x2xf32> to vector<8x1xf32>
    %c0_12 = arith.constant 0 : index
    %c0_13 = arith.constant 0 : index
    %18 = vector.load %arg2[%c0_12, %c0_13] : memref<8x64xf32, #tpu.memory_space<vmem>>, vector<8x64xf32>
    %19 = vector.extract_strided_slice %18 {offsets = [0, 0], sizes = [8, 1], strides = [1, 1]} : vector<8x64xf32> to vector<8x1xf32>
    %20 = vector.broadcast %19 : vector<8x1xf32> to vector<8x32xf32>
    %21 = vector.broadcast %3 : vector<1x32xf32> to vector<8x32xf32>
    %22 = arith.mulf %20, %21 : vector<8x32xf32>
    %23 = vector.broadcast %4 : vector<1x32xf32> to vector<8x32xf32>
    %24 = arith.addf %22, %23 : vector<8x32xf32>
    %25 = vector.broadcast %16 : vector<8x1xf32> to vector<8x32xf32>
    %26 = vector.broadcast %1 : vector<1x32xf32> to vector<8x32xf32>
    %27 = arith.mulf %25, %26 : vector<8x32xf32>
    %28 = vector.broadcast %17 : vector<8x1xf32> to vector<8x32xf32>
    %29 = vector.broadcast %2 : vector<1x32xf32> to vector<8x32xf32>
    %30 = arith.mulf %28, %29 : vector<8x32xf32>
    %31 = arith.addf %27, %30 : vector<8x32xf32>
    %32 = arith.addf %31, %24 : vector<8x32xf32>
    %33 = math.tanh %32 : vector<8x32xf32>
    %34 = vector.broadcast %13 : vector<1x1xf32> to vector<8x1xf32>
    %35 = arith.addf %16, %34 : vector<8x1xf32>
    %36 = vector.broadcast %8 : vector<1x32xf32> to vector<8x32xf32>
    %37 = arith.mulf %33, %36 : vector<8x32xf32>
    %cst_14 = arith.constant dense<0.000000e+00> : vector<8xf32>
    %38 = vector.multi_reduction <add>, %37, %cst_14 [1] : vector<8x32xf32> to vector<8xf32>
    %39 = vector.shape_cast %38 : vector<8xf32> to vector<8x1xf32>
    %40 = arith.addf %35, %39 : vector<8x1xf32>
    %41 = vector.broadcast %14 : vector<1x1xf32> to vector<8x1xf32>
    %42 = arith.addf %17, %41 : vector<8x1xf32>
    %43 = vector.broadcast %9 : vector<1x32xf32> to vector<8x32xf32>
    %44 = arith.mulf %33, %43 : vector<8x32xf32>
    %cst_15 = arith.constant dense<0.000000e+00> : vector<8xf32>
    %45 = vector.multi_reduction <add>, %44, %cst_15 [1] : vector<8x32xf32> to vector<8xf32>
    %46 = vector.shape_cast %45 : vector<8xf32> to vector<8x1xf32>
    %47 = arith.addf %42, %46 : vector<8x1xf32>
    %48 = tpu.concatenate %40, %47 in 1 : vector<8x1xf32>, vector<8x1xf32> -> vector<8x2xf32>
    %c0_16 = arith.constant 0 : index
    %c0_17 = arith.constant 0 : index
    %c0_18 = arith.constant 0 : index
    %49 = vector.load %arg8[%c0_16, %c0_17, %c0_18] : memref<64x8x2xf32, #tpu.memory_space<vmem>>, vector<1x8x2xf32>
    %50 = vector.shape_cast %49 : vector<1x8x2xf32> to vector<8x2xf32>
    %51 = vector.shape_cast %48 : vector<8x2xf32> to vector<1x8x2xf32>
    tpu.vector_store %arg8[%c0_16, %c0_17, %c0_18], %51 {strides = array<i32>} : memref<64x8x2xf32, #tpu.memory_space<vmem>>, vector<1x8x2xf32>,
    %52 = vector.extract_strided_slice %18 {offsets = [0, 1], sizes = [8, 1], strides = [1, 1]} : vector<8x64xf32> to vector<8x1xf32>
    %53 = vector.broadcast %52 : vector<8x1xf32> to vector<8x32xf32>
    %54 = vector.broadcast %3 : vector<1x32xf32> to vector<8x32xf32>
    %55 = arith.mulf %53, %54 : vector<8x32xf32>
    %56 = vector.broadcast %4 : vector<1x32xf32> to vector<8x32xf32>
    %57 = arith.addf %55, %56 : vector<8x32xf32>
    %58 = vector.broadcast %40 : vector<8x1xf32> to vector<8x32xf32>
    %59 = vector.broadcast %1 : vector<1x32xf32> to vector<8x32xf32>
    %60 = arith.mulf %58, %59 : vector<8x32xf32>
    %61 = vector.broadcast %47 : vector<8x1xf32> to vector<8x32xf32>
    %62 = vector.broadcast %2 : vector<1x32xf32> to vector<8x32xf32>
    %63 = arith.mulf %61, %62 : vector<8x32xf32>
    %64 = arith.addf %60, %63 : vector<8x32xf32>
    %65 = arith.addf %64, %57 : vector<8x32xf32>
    %66 = math.tanh %65 : vector<8x32xf32>
    %67 = vector.broadcast %13 : vector<1x1xf32> to vector<8x1xf32>
    %68 = arith.addf %40, %67 : vector<8x1xf32>
    %69 = vector.broadcast %8 : vector<1x32xf32> to vector<8x32xf32>
    %70 = arith.mulf %66, %69 : vector<8x32xf32>
    %cst_19 = arith.constant dense<0.000000e+00> : vector<8xf32>
    %71 = vector.multi_reduction <add>, %70, %cst_19 [1] : vector<8x32xf32> to vector<8xf32>
    %72 = vector.shape_cast %71 : vector<8xf32> to vector<8x1xf32>
    %73 = arith.addf %68, %72 : vector<8x1xf32>
    %74 = vector.broadcast %14 : vector<1x1xf32> to vector<8x1xf32>
    %75 = arith.addf %47, %74 : vector<8x1xf32>
    %76 = vector.broadcast %9 : vector<1x32xf32> to vector<8x32xf32>
    %77 = arith.mulf %66, %76 : vector<8x32xf32>
    %cst_20 = arith.constant dense<0.000000e+00> : vector<8xf32>
    %78 = vector.multi_reduction <add>, %77, %cst_20 [1] : vector<8x32xf32> to vector<8xf32>
    %79 = vector.shape_cast %78 : vector<8xf32> to vector<8x1xf32>
    %80 = arith.addf %75, %79 : vector<8x1xf32>
    %81 = tpu.concatenate %73, %80 in 1 : vector<8x1xf32>, vector<8x1xf32> -> vector<8x2xf32>
    %c1 = arith.constant 1 : index
    %c0_21 = arith.constant 0 : index
    %c0_22 = arith.constant 0 : index
    %82 = vector.load %arg8[%c1, %c0_21, %c0_22] : memref<64x8x2xf32, #tpu.memory_space<vmem>>, vector<1x8x2xf32>
    %83 = vector.shape_cast %82 : vector<1x8x2xf32> to vector<8x2xf32>
    %84 = vector.shape_cast %81 : vector<8x2xf32> to vector<1x8x2xf32>
    tpu.vector_store %arg8[%c1, %c0_21, %c0_22], %84 {strides = array<i32>} : memref<64x8x2xf32, #tpu.memory_space<vmem>>, vector<1x8x2xf32>,
    %85 = vector.extract_strided_slice %18 {offsets = [0, 2], sizes = [8, 1], strides = [1, 1]} : vector<8x64xf32> to vector<8x1xf32>
    %86 = vector.broadcast %85 : vector<8x1xf32> to vector<8x32xf32>
    %87 = vector.broadcast %3 : vector<1x32xf32> to vector<8x32xf32>
    %88 = arith.mulf %86, %87 : vector<8x32xf32>
    %89 = vector.broadcast %4 : vector<1x32xf32> to vector<8x32xf32>
    %90 = arith.addf %88, %89 : vector<8x32xf32>
    %91 = vector.broadcast %73 : vector<8x1xf32> to vector<8x32xf32>
    %92 = vector.broadcast %1 : vector<1x32xf32> to vector<8x32xf32>
    %93 = arith.mulf %91, %92 : vector<8x32xf32>
    %94 = vector.broadcast %80 : vector<8x1xf32> to vector<8x32xf32>
    %95 = vector.broadcast %2 : vector<1x32xf32> to vector<8x32xf32>
    %96 = arith.mulf %94, %95 : vector<8x32xf32>
    %97 = arith.addf %93, %96 : vector<8x32xf32>
    %98 = arith.addf %97, %90 : vector<8x32xf32>
    %99 = math.tanh %98 : vector<8x32xf32>
    %100 = vector.broadcast %13 : vector<1x1xf32> to vector<8x1xf32>
    %101 = arith.addf %73, %100 : vector<8x1xf32>
    %102 = vector.broadcast %8 : vector<1x32xf32> to vector<8x32xf32>
    %103 = arith.mulf %99, %102 : vector<8x32xf32>
    %cst_23 = arith.constant dense<0.000000e+00> : vector<8xf32>
    %104 = vector.multi_reduction <add>, %103, %cst_23 [1] : vector<8x32xf32> to vector<8xf32>
    %105 = vector.shape_cast %104 : vector<8xf32> to vector<8x1xf32>
    %106 = arith.addf %101, %105 : vector<8x1xf32>
    %107 = vector.broadcast %14 : vector<1x1xf32> to vector<8x1xf32>
    %108 = arith.addf %80, %107 : vector<8x1xf32>
    %109 = vector.broadcast %9 : vector<1x32xf32> to vector<8x32xf32>
    %110 = arith.mulf %99, %109 : vector<8x32xf32>
    %cst_24 = arith.constant dense<0.000000e+00> : vector<8xf32>
    %111 = vector.multi_reduction <add>, %110, %cst_24 [1] : vector<8x32xf32> to vector<8xf32>
    %112 = vector.shape_cast %111 : vector<8xf32> to vector<8x1xf32>
    %113 = arith.addf %108, %112 : vector<8x1xf32>
    %114 = tpu.concatenate %106, %113 in 1 : vector<8x1xf32>, vector<8x1xf32> -> vector<8x2xf32>
    %c2 = arith.constant 2 : index
    %c0_25 = arith.constant 0 : index
    %c0_26 = arith.constant 0 : index
    %115 = vector.load %arg8[%c2, %c0_25, %c0_26] : memref<64x8x2xf32, #tpu.memory_space<vmem>>, vector<1x8x2xf32>
    %116 = vector.shape_cast %115 : vector<1x8x2xf32> to vector<8x2xf32>
    %117 = vector.shape_cast %114 : vector<8x2xf32> to vector<1x8x2xf32>
    tpu.vector_store %arg8[%c2, %c0_25, %c0_26], %117 {strides = array<i32>} : memref<64x8x2xf32, #tpu.memory_space<vmem>>, vector<1x8x2xf32>,
    %118 = vector.extract_strided_slice %18 {offsets = [0, 3], sizes = [8, 1], strides = [1, 1]} : vector<8x64xf32> to vector<8x1xf32>
    %119 = vector.broadcast %118 : vector<8x1xf32> to vector<8x32xf32>
    %120 = vector.broadcast %3 : vector<1x32xf32> to vector<8x32xf32>
    %121 = arith.mulf %119, %120 : vector<8x32xf32>
    %122 = vector.broadcast %4 : vector<1x32xf32> to vector<8x32xf32>
    %123 = arith.addf %121, %122 : vector<8x32xf32>
    %124 = vector.broadcast %106 : vector<8x1xf32> to vector<8x32xf32>
    %125 = vector.broadcast %1 : vector<1x32xf32> to vector<8x32xf32>
    %126 = arith.mulf %124, %125 : vector<8x32xf32>
    %127 = vector.broadcast %113 : vector<8x1xf32> to vector<8x32xf32>
    %128 = vector.broadcast %2 : vector<1x32xf32> to vector<8x32xf32>
    %129 = arith.mulf %127, %128 : vector<8x32xf32>
    %130 = arith.addf %126, %129 : vector<8x32xf32>
    %131 = arith.addf %130, %123 : vector<8x32xf32>
    %132 = math.tanh %131 : vector<8x32xf32>
    %133 = vector.broadcast %13 : vector<1x1xf32> to vector<8x1xf32>
    %134 = arith.addf %106, %133 : vector<8x1xf32>
    %135 = vector.broadcast %8 : vector<1x32xf32> to vector<8x32xf32>
    %136 = arith.mulf %132, %135 : vector<8x32xf32>
    %cst_27 = arith.constant dense<0.000000e+00> : vector<8xf32>
    %137 = vector.multi_reduction <add>, %136, %cst_27 [1] : vector<8x32xf32> to vector<8xf32>
    %138 = vector.shape_cast %137 : vector<8xf32> to vector<8x1xf32>
    %139 = arith.addf %134, %138 : vector<8x1xf32>
    %140 = vector.broadcast %14 : vector<1x1xf32> to vector<8x1xf32>
    %141 = arith.addf %113, %140 : vector<8x1xf32>
    %142 = vector.broadcast %9 : vector<1x32xf32> to vector<8x32xf32>
    %143 = arith.mulf %132, %142 : vector<8x32xf32>
    %cst_28 = arith.constant dense<0.000000e+00> : vector<8xf32>
    %144 = vector.multi_reduction <add>, %143, %cst_28 [1] : vector<8x32xf32> to vector<8xf32>
    %145 = vector.shape_cast %144 : vector<8xf32> to vector<8x1xf32>
    %146 = arith.addf %141, %145 : vector<8x1xf32>
    %147 = tpu.concatenate %139, %146 in 1 : vector<8x1xf32>, vector<8x1xf32> -> vector<8x2xf32>
    %c3 = arith.constant 3 : index
    %c0_29 = arith.constant 0 : index
    %c0_30 = arith.constant 0 : index
    %148 = vector.load %arg8[%c3, %c0_29, %c0_30] : memref<64x8x2xf32, #tpu.memory_space<vmem>>, vector<1x8x2xf32>
    %149 = vector.shape_cast %148 : vector<1x8x2xf32> to vector<8x2xf32>
    %150 = vector.shape_cast %147 : vector<8x2xf32> to vector<1x8x2xf32>
    tpu.vector_store %arg8[%c3, %c0_29, %c0_30], %150 {strides = array<i32>} : memref<64x8x2xf32, #tpu.memory_space<vmem>>, vector<1x8x2xf32>,
    %151 = vector.extract_strided_slice %18 {offsets = [0, 4], sizes = [8, 1], strides = [1, 1]} : vector<8x64xf32> to vector<8x1xf32>
    %152 = vector.broadcast %151 : vector<8x1xf32> to vector<8x32xf32>
    %153 = vector.broadcast %3 : vector<1x32xf32> to vector<8x32xf32>
    %154 = arith.mulf %152, %153 : vector<8x32xf32>
    %155 = vector.broadcast %4 : vector<1x32xf32> to vector<8x32xf32>
    %156 = arith.addf %154, %155 : vector<8x32xf32>
    %157 = vector.broadcast %139 : vector<8x1xf32> to vector<8x32xf32>
    %158 = vector.broadcast %1 : vector<1x32xf32> to vector<8x32xf32>
    %159 = arith.mulf %157, %158 : vector<8x32xf32>
    %160 = vector.broadcast %146 : vector<8x1xf32> to vector<8x32xf32>
    %161 = vector.broadcast %2 : vector<1x32xf32> to vector<8x32xf32>
    %162 = arith.mulf %160, %161 : vector<8x32xf32>
    %163 = arith.addf %159, %162 : vector<8x32xf32>
    %164 = arith.addf %163, %156 : vector<8x32xf32>
    %165 = math.tanh %164 : vector<8x32xf32>
    %166 = vector.broadcast %13 : vector<1x1xf32> to vector<8x1xf32>
    %167 = arith.addf %139, %166 : vector<8x1xf32>
    %168 = vector.broadcast %8 : vector<1x32xf32> to vector<8x32xf32>
    %169 = arith.mulf %165, %168 : vector<8x32xf32>
    %cst_31 = arith.constant dense<0.000000e+00> : vector<8xf32>
    %170 = vector.multi_reduction <add>, %169, %cst_31 [1] : vector<8x32xf32> to vector<8xf32>
    %171 = vector.shape_cast %170 : vector<8xf32> to vector<8x1xf32>
    %172 = arith.addf %167, %171 : vector<8x1xf32>
    %173 = vector.broadcast %14 : vector<1x1xf32> to vector<8x1xf32>
    %174 = arith.addf %146, %173 : vector<8x1xf32>
    %175 = vector.broadcast %9 : vector<1x32xf32> to vector<8x32xf32>
    %176 = arith.mulf %165, %175 : vector<8x32xf32>
    %cst_32 = arith.constant dense<0.000000e+00> : vector<8xf32>
    %177 = vector.multi_reduction <add>, %176, %cst_32 [1] : vector<8x32xf32> to vector<8xf32>
    %178 = vector.shape_cast %177 : vector<8xf32> to vector<8x1xf32>
    %179 = arith.addf %174, %178 : vector<8x1xf32>
    %180 = tpu.concatenate %172, %179 in 1 : vector<8x1xf32>, vector<8x1xf32> -> vector<8x2xf32>
    %c4 = arith.constant 4 : index
    %c0_33 = arith.constant 0 : index
    %c0_34 = arith.constant 0 : index
    %181 = vector.load %arg8[%c4, %c0_33, %c0_34] : memref<64x8x2xf32, #tpu.memory_space<vmem>>, vector<1x8x2xf32>
    %182 = vector.shape_cast %181 : vector<1x8x2xf32> to vector<8x2xf32>
    %183 = vector.shape_cast %180 : vector<8x2xf32> to vector<1x8x2xf32>
    tpu.vector_store %arg8[%c4, %c0_33, %c0_34], %183 {strides = array<i32>} : memref<64x8x2xf32, #tpu.memory_space<vmem>>, vector<1x8x2xf32>,
    %184 = vector.extract_strided_slice %18 {offsets = [0, 5], sizes = [8, 1], strides = [1, 1]} : vector<8x64xf32> to vector<8x1xf32>
    %185 = vector.broadcast %184 : vector<8x1xf32> to vector<8x32xf32>
    %186 = vector.broadcast %3 : vector<1x32xf32> to vector<8x32xf32>
    %187 = arith.mulf %185, %186 : vector<8x32xf32>
    %188 = vector.broadcast %4 : vector<1x32xf32> to vector<8x32xf32>
    %189 = arith.addf %187, %188 : vector<8x32xf32>
    %190 = vector.broadcast %172 : vector<8x1xf32> to vector<8x32xf32>
    %191 = vector.broadcast %1 : vector<1x32xf32> to vector<8x32xf32>
    %192 = arith.mulf %190, %191 : vector<8x32xf32>
    %193 = vector.broadcast %179 : vector<8x1xf32> to vector<8x32xf32>
    %194 = vector.broadcast %2 : vector<1x32xf32> to vector<8x32xf32>
    %195 = arith.mulf %193, %194 : vector<8x32xf32>
    %196 = arith.addf %192, %195 : vector<8x32xf32>
    %197 = arith.addf %196, %189 : vector<8x32xf32>
    %198 = math.tanh %197 : vector<8x32xf32>
    %199 = vector.broadcast %13 : vector<1x1xf32> to vector<8x1xf32>
    %200 = arith.addf %172, %199 : vector<8x1xf32>
    %201 = vector.broadcast %8 : vector<1x32xf32> to vector<8x32xf32>
    %202 = arith.mulf %198, %201 : vector<8x32xf32>
    %cst_35 = arith.constant dense<0.000000e+00> : vector<8xf32>
    %203 = vector.multi_reduction <add>, %202, %cst_35 [1] : vector<8x32xf32> to vector<8xf32>
    %204 = vector.shape_cast %203 : vector<8xf32> to vector<8x1xf32>
    %205 = arith.addf %200, %204 : vector<8x1xf32>
    %206 = vector.broadcast %14 : vector<1x1xf32> to vector<8x1xf32>
    %207 = arith.addf %179, %206 : vector<8x1xf32>
    %208 = vector.broadcast %9 : vector<1x32xf32> to vector<8x32xf32>
    %209 = arith.mulf %198, %208 : vector<8x32xf32>
    %cst_36 = arith.constant dense<0.000000e+00> : vector<8xf32>
    %210 = vector.multi_reduction <add>, %209, %cst_36 [1] : vector<8x32xf32> to vector<8xf32>
    %211 = vector.shape_cast %210 : vector<8xf32> to vector<8x1xf32>
    %212 = arith.addf %207, %211 : vector<8x1xf32>
    %213 = tpu.concatenate %205, %212 in 1 : vector<8x1xf32>, vector<8x1xf32> -> vector<8x2xf32>
    %c5 = arith.constant 5 : index
    %c0_37 = arith.constant 0 : index
    %c0_38 = arith.constant 0 : index
    %214 = vector.load %arg8[%c5, %c0_37, %c0_38] : memref<64x8x2xf32, #tpu.memory_space<vmem>>, vector<1x8x2xf32>
    %215 = vector.shape_cast %214 : vector<1x8x2xf32> to vector<8x2xf32>
    %216 = vector.shape_cast %213 : vector<8x2xf32> to vector<1x8x2xf32>
    tpu.vector_store %arg8[%c5, %c0_37, %c0_38], %216 {strides = array<i32>} : memref<64x8x2xf32, #tpu.memory_space<vmem>>, vector<1x8x2xf32>,
    %217 = vector.extract_strided_slice %18 {offsets = [0, 6], sizes = [8, 1], strides = [1, 1]} : vector<8x64xf32> to vector<8x1xf32>
    %218 = vector.broadcast %217 : vector<8x1xf32> to vector<8x32xf32>
    %219 = vector.broadcast %3 : vector<1x32xf32> to vector<8x32xf32>
    %220 = arith.mulf %218, %219 : vector<8x32xf32>
    %221 = vector.broadcast %4 : vector<1x32xf32> to vector<8x32xf32>
    %222 = arith.addf %220, %221 : vector<8x32xf32>
    %223 = vector.broadcast %205 : vector<8x1xf32> to vector<8x32xf32>
    %224 = vector.broadcast %1 : vector<1x32xf32> to vector<8x32xf32>
    %225 = arith.mulf %223, %224 : vector<8x32xf32>
    %226 = vector.broadcast %212 : vector<8x1xf32> to vector<8x32xf32>
    %227 = vector.broadcast %2 : vector<1x32xf32> to vector<8x32xf32>
    %228 = arith.mulf %226, %227 : vector<8x32xf32>
    %229 = arith.addf %225, %228 : vector<8x32xf32>
    %230 = arith.addf %229, %222 : vector<8x32xf32>
    %231 = math.tanh %230 : vector<8x32xf32>
    %232 = vector.broadcast %13 : vector<1x1xf32> to vector<8x1xf32>
    %233 = arith.addf %205, %232 : vector<8x1xf32>
    %234 = vector.broadcast %8 : vector<1x32xf32> to vector<8x32xf32>
    %235 = arith.mulf %231, %234 : vector<8x32xf32>
    %cst_39 = arith.constant dense<0.000000e+00> : vector<8xf32>
    %236 = vector.multi_reduction <add>, %235, %cst_39 [1] : vector<8x32xf32> to vector<8xf32>
    %237 = vector.shape_cast %236 : vector<8xf32> to vector<8x1xf32>
    %238 = arith.addf %233, %237 : vector<8x1xf32>
    %239 = vector.broadcast %14 : vector<1x1xf32> to vector<8x1xf32>
    %240 = arith.addf %212, %239 : vector<8x1xf32>
    %241 = vector.broadcast %9 : vector<1x32xf32> to vector<8x32xf32>
    %242 = arith.mulf %231, %241 : vector<8x32xf32>
    %cst_40 = arith.constant dense<0.000000e+00> : vector<8xf32>
    %243 = vector.multi_reduction <add>, %242, %cst_40 [1] : vector<8x32xf32> to vector<8xf32>
    %244 = vector.shape_cast %243 : vector<8xf32> to vector<8x1xf32>
    %245 = arith.addf %240, %244 : vector<8x1xf32>
    %246 = tpu.concatenate %238, %245 in 1 : vector<8x1xf32>, vector<8x1xf32> -> vector<8x2xf32>
    %c6 = arith.constant 6 : index
    %c0_41 = arith.constant 0 : index
    %c0_42 = arith.constant 0 : index
    %247 = vector.load %arg8[%c6, %c0_41, %c0_42] : memref<64x8x2xf32, #tpu.memory_space<vmem>>, vector<1x8x2xf32>
    %248 = vector.shape_cast %247 : vector<1x8x2xf32> to vector<8x2xf32>
    %249 = vector.shape_cast %246 : vector<8x2xf32> to vector<1x8x2xf32>
    tpu.vector_store %arg8[%c6, %c0_41, %c0_42], %249 {strides = array<i32>} : memref<64x8x2xf32, #tpu.memory_space<vmem>>, vector<1x8x2xf32>,
    %250 = vector.extract_strided_slice %18 {offsets = [0, 7], sizes = [8, 1], strides = [1, 1]} : vector<8x64xf32> to vector<8x1xf32>
    %251 = vector.broadcast %250 : vector<8x1xf32> to vector<8x32xf32>
    %252 = vector.broadcast %3 : vector<1x32xf32> to vector<8x32xf32>
    %253 = arith.mulf %251, %252 : vector<8x32xf32>
    %254 = vector.broadcast %4 : vector<1x32xf32> to vector<8x32xf32>
    %255 = arith.addf %253, %254 : vector<8x32xf32>
    %256 = vector.broadcast %238 : vector<8x1xf32> to vector<8x32xf32>
    %257 = vector.broadcast %1 : vector<1x32xf32> to vector<8x32xf32>
    %258 = arith.mulf %256, %257 : vector<8x32xf32>
    %259 = vector.broadcast %245 : vector<8x1xf32> to vector<8x32xf32>
    %260 = vector.broadcast %2 : vector<1x32xf32> to vector<8x32xf32>
    %261 = arith.mulf %259, %260 : vector<8x32xf32>
    %262 = arith.addf %258, %261 : vector<8x32xf32>
    %263 = arith.addf %262, %255 : vector<8x32xf32>
    %264 = math.tanh %263 : vector<8x32xf32>
    %265 = vector.broadcast %13 : vector<1x1xf32> to vector<8x1xf32>
    %266 = arith.addf %238, %265 : vector<8x1xf32>
    %267 = vector.broadcast %8 : vector<1x32xf32> to vector<8x32xf32>
    %268 = arith.mulf %264, %267 : vector<8x32xf32>
    %cst_43 = arith.constant dense<0.000000e+00> : vector<8xf32>
    %269 = vector.multi_reduction <add>, %268, %cst_43 [1] : vector<8x32xf32> to vector<8xf32>
    %270 = vector.shape_cast %269 : vector<8xf32> to vector<8x1xf32>
    %271 = arith.addf %266, %270 : vector<8x1xf32>
    %272 = vector.broadcast %14 : vector<1x1xf32> to vector<8x1xf32>
    %273 = arith.addf %245, %272 : vector<8x1xf32>
    %274 = vector.broadcast %9 : vector<1x32xf32> to vector<8x32xf32>
    %275 = arith.mulf %264, %274 : vector<8x32xf32>
    %cst_44 = arith.constant dense<0.000000e+00> : vector<8xf32>
    %276 = vector.multi_reduction <add>, %275, %cst_44 [1] : vector<8x32xf32> to vector<8xf32>
    %277 = vector.shape_cast %276 : vector<8xf32> to vector<8x1xf32>
    %278 = arith.addf %273, %277 : vector<8x1xf32>
    %279 = tpu.concatenate %271, %278 in 1 : vector<8x1xf32>, vector<8x1xf32> -> vector<8x2xf32>
    %c7 = arith.constant 7 : index
    %c0_45 = arith.constant 0 : index
    %c0_46 = arith.constant 0 : index
    %280 = vector.load %arg8[%c7, %c0_45, %c0_46] : memref<64x8x2xf32, #tpu.memory_space<vmem>>, vector<1x8x2xf32>
    %281 = vector.shape_cast %280 : vector<1x8x2xf32> to vector<8x2xf32>
    %282 = vector.shape_cast %279 : vector<8x2xf32> to vector<1x8x2xf32>
    tpu.vector_store %arg8[%c7, %c0_45, %c0_46], %282 {strides = array<i32>} : memref<64x8x2xf32, #tpu.memory_space<vmem>>, vector<1x8x2xf32>,
    %283 = vector.extract_strided_slice %18 {offsets = [0, 8], sizes = [8, 1], strides = [1, 1]} : vector<8x64xf32> to vector<8x1xf32>
    %284 = vector.broadcast %283 : vector<8x1xf32> to vector<8x32xf32>
    %285 = vector.broadcast %3 : vector<1x32xf32> to vector<8x32xf32>
    %286 = arith.mulf %284, %285 : vector<8x32xf32>
    %287 = vector.broadcast %4 : vector<1x32xf32> to vector<8x32xf32>
    %288 = arith.addf %286, %287 : vector<8x32xf32>
    %289 = vector.broadcast %271 : vector<8x1xf32> to vector<8x32xf32>
    %290 = vector.broadcast %1 : vector<1x32xf32> to vector<8x32xf32>
    %291 = arith.mulf %289, %290 : vector<8x32xf32>
    %292 = vector.broadcast %278 : vector<8x1xf32> to vector<8x32xf32>
    %293 = vector.broadcast %2 : vector<1x32xf32> to vector<8x32xf32>
    %294 = arith.mulf %292, %293 : vector<8x32xf32>
    %295 = arith.addf %291, %294 : vector<8x32xf32>
    %296 = arith.addf %295, %288 : vector<8x32xf32>
    %297 = math.tanh %296 : vector<8x32xf32>
    %298 = vector.broadcast %13 : vector<1x1xf32> to vector<8x1xf32>
    %299 = arith.addf %271, %298 : vector<8x1xf32>
    %300 = vector.broadcast %8 : vector<1x32xf32> to vector<8x32xf32>
    %301 = arith.mulf %297, %300 : vector<8x32xf32>
    %cst_47 = arith.constant dense<0.000000e+00> : vector<8xf32>
    %302 = vector.multi_reduction <add>, %301, %cst_47 [1] : vector<8x32xf32> to vector<8xf32>
    %303 = vector.shape_cast %302 : vector<8xf32> to vector<8x1xf32>
    %304 = arith.addf %299, %303 : vector<8x1xf32>
    %305 = vector.broadcast %14 : vector<1x1xf32> to vector<8x1xf32>
    %306 = arith.addf %278, %305 : vector<8x1xf32>
    %307 = vector.broadcast %9 : vector<1x32xf32> to vector<8x32xf32>
    %308 = arith.mulf %297, %307 : vector<8x32xf32>
    %cst_48 = arith.constant dense<0.000000e+00> : vector<8xf32>
    %309 = vector.multi_reduction <add>, %308, %cst_48 [1] : vector<8x32xf32> to vector<8xf32>
    %310 = vector.shape_cast %309 : vector<8xf32> to vector<8x1xf32>
    %311 = arith.addf %306, %310 : vector<8x1xf32>
    %312 = tpu.concatenate %304, %311 in 1 : vector<8x1xf32>, vector<8x1xf32> -> vector<8x2xf32>
    %c8 = arith.constant 8 : index
    %c0_49 = arith.constant 0 : index
    %c0_50 = arith.constant 0 : index
    %313 = vector.load %arg8[%c8, %c0_49, %c0_50] : memref<64x8x2xf32, #tpu.memory_space<vmem>>, vector<1x8x2xf32>
    %314 = vector.shape_cast %313 : vector<1x8x2xf32> to vector<8x2xf32>
    %315 = vector.shape_cast %312 : vector<8x2xf32> to vector<1x8x2xf32>
    tpu.vector_store %arg8[%c8, %c0_49, %c0_50], %315 {strides = array<i32>} : memref<64x8x2xf32, #tpu.memory_space<vmem>>, vector<1x8x2xf32>,
    %316 = vector.extract_strided_slice %18 {offsets = [0, 9], sizes = [8, 1], strides = [1, 1]} : vector<8x64xf32> to vector<8x1xf32>
    %317 = vector.broadcast %316 : vector<8x1xf32> to vector<8x32xf32>
    %318 = vector.broadcast %3 : vector<1x32xf32> to vector<8x32xf32>
    %319 = arith.mulf %317, %318 : vector<8x32xf32>
    %320 = vector.broadcast %4 : vector<1x32xf32> to vector<8x32xf32>
    %321 = arith.addf %319, %320 : vector<8x32xf32>
    %322 = vector.broadcast %304 : vector<8x1xf32> to vector<8x32xf32>
    %323 = vector.broadcast %1 : vector<1x32xf32> to vector<8x32xf32>
    %324 = arith.mulf %322, %323 : vector<8x32xf32>
    %325 = vector.broadcast %311 : vector<8x1xf32> to vector<8x32xf32>
    %326 = vector.broadcast %2 : vector<1x32xf32> to vector<8x32xf32>
    %327 = arith.mulf %325, %326 : vector<8x32xf32>
    %328 = arith.addf %324, %327 : vector<8x32xf32>
    %329 = arith.addf %328, %321 : vector<8x32xf32>
    %330 = math.tanh %329 : vector<8x32xf32>
    %331 = vector.broadcast %13 : vector<1x1xf32> to vector<8x1xf32>
    %332 = arith.addf %304, %331 : vector<8x1xf32>
    %333 = vector.broadcast %8 : vector<1x32xf32> to vector<8x32xf32>
    %334 = arith.mulf %330, %333 : vector<8x32xf32>
    %cst_51 = arith.constant dense<0.000000e+00> : vector<8xf32>
    %335 = vector.multi_reduction <add>, %334, %cst_51 [1] : vector<8x32xf32> to vector<8xf32>
    %336 = vector.shape_cast %335 : vector<8xf32> to vector<8x1xf32>
    %337 = arith.addf %332, %336 : vector<8x1xf32>
    %338 = vector.broadcast %14 : vector<1x1xf32> to vector<8x1xf32>
    %339 = arith.addf %311, %338 : vector<8x1xf32>
    %340 = vector.broadcast %9 : vector<1x32xf32> to vector<8x32xf32>
    %341 = arith.mulf %330, %340 : vector<8x32xf32>
    %cst_52 = arith.constant dense<0.000000e+00> : vector<8xf32>
    %342 = vector.multi_reduction <add>, %341, %cst_52 [1] : vector<8x32xf32> to vector<8xf32>
    %343 = vector.shape_cast %342 : vector<8xf32> to vector<8x1xf32>
    %344 = arith.addf %339, %343 : vector<8x1xf32>
    %345 = tpu.concatenate %337, %344 in 1 : vector<8x1xf32>, vector<8x1xf32> -> vector<8x2xf32>
    %c9 = arith.constant 9 : index
    %c0_53 = arith.constant 0 : index
    %c0_54 = arith.constant 0 : index
    %346 = vector.load %arg8[%c9, %c0_53, %c0_54] : memref<64x8x2xf32, #tpu.memory_space<vmem>>, vector<1x8x2xf32>
    %347 = vector.shape_cast %346 : vector<1x8x2xf32> to vector<8x2xf32>
    %348 = vector.shape_cast %345 : vector<8x2xf32> to vector<1x8x2xf32>
    tpu.vector_store %arg8[%c9, %c0_53, %c0_54], %348 {strides = array<i32>} : memref<64x8x2xf32, #tpu.memory_space<vmem>>, vector<1x8x2xf32>,
    %349 = vector.extract_strided_slice %18 {offsets = [0, 10], sizes = [8, 1], strides = [1, 1]} : vector<8x64xf32> to vector<8x1xf32>
    %350 = vector.broadcast %349 : vector<8x1xf32> to vector<8x32xf32>
    %351 = vector.broadcast %3 : vector<1x32xf32> to vector<8x32xf32>
    %352 = arith.mulf %350, %351 : vector<8x32xf32>
    %353 = vector.broadcast %4 : vector<1x32xf32> to vector<8x32xf32>
    %354 = arith.addf %352, %353 : vector<8x32xf32>
    %355 = vector.broadcast %337 : vector<8x1xf32> to vector<8x32xf32>
    %356 = vector.broadcast %1 : vector<1x32xf32> to vector<8x32xf32>
    %357 = arith.mulf %355, %356 : vector<8x32xf32>
    %358 = vector.broadcast %344 : vector<8x1xf32> to vector<8x32xf32>
    %359 = vector.broadcast %2 : vector<1x32xf32> to vector<8x32xf32>
    %360 = arith.mulf %358, %359 : vector<8x32xf32>
    %361 = arith.addf %357, %360 : vector<8x32xf32>
    %362 = arith.addf %361, %354 : vector<8x32xf32>
    %363 = math.tanh %362 : vector<8x32xf32>
    %364 = vector.broadcast %13 : vector<1x1xf32> to vector<8x1xf32>
    %365 = arith.addf %337, %364 : vector<8x1xf32>
    %366 = vector.broadcast %8 : vector<1x32xf32> to vector<8x32xf32>
    %367 = arith.mulf %363, %366 : vector<8x32xf32>
    %cst_55 = arith.constant dense<0.000000e+00> : vector<8xf32>
    %368 = vector.multi_reduction <add>, %367, %cst_55 [1] : vector<8x32xf32> to vector<8xf32>
    %369 = vector.shape_cast %368 : vector<8xf32> to vector<8x1xf32>
    %370 = arith.addf %365, %369 : vector<8x1xf32>
    %371 = vector.broadcast %14 : vector<1x1xf32> to vector<8x1xf32>
    %372 = arith.addf %344, %371 : vector<8x1xf32>
    %373 = vector.broadcast %9 : vector<1x32xf32> to vector<8x32xf32>
    %374 = arith.mulf %363, %373 : vector<8x32xf32>
    %cst_56 = arith.constant dense<0.000000e+00> : vector<8xf32>
    %375 = vector.multi_reduction <add>, %374, %cst_56 [1] : vector<8x32xf32> to vector<8xf32>
    %376 = vector.shape_cast %375 : vector<8xf32> to vector<8x1xf32>
    %377 = arith.addf %372, %376 : vector<8x1xf32>
    %378 = tpu.concatenate %370, %377 in 1 : vector<8x1xf32>, vector<8x1xf32> -> vector<8x2xf32>
    %c10 = arith.constant 10 : index
    %c0_57 = arith.constant 0 : index
    %c0_58 = arith.constant 0 : index
    %379 = vector.load %arg8[%c10, %c0_57, %c0_58] : memref<64x8x2xf32, #tpu.memory_space<vmem>>, vector<1x8x2xf32>
    %380 = vector.shape_cast %379 : vector<1x8x2xf32> to vector<8x2xf32>
    %381 = vector.shape_cast %378 : vector<8x2xf32> to vector<1x8x2xf32>
    tpu.vector_store %arg8[%c10, %c0_57, %c0_58], %381 {strides = array<i32>} : memref<64x8x2xf32, #tpu.memory_space<vmem>>, vector<1x8x2xf32>,
    %382 = vector.extract_strided_slice %18 {offsets = [0, 11], sizes = [8, 1], strides = [1, 1]} : vector<8x64xf32> to vector<8x1xf32>
    %383 = vector.broadcast %382 : vector<8x1xf32> to vector<8x32xf32>
    %384 = vector.broadcast %3 : vector<1x32xf32> to vector<8x32xf32>
    %385 = arith.mulf %383, %384 : vector<8x32xf32>
    %386 = vector.broadcast %4 : vector<1x32xf32> to vector<8x32xf32>
    %387 = arith.addf %385, %386 : vector<8x32xf32>
    %388 = vector.broadcast %370 : vector<8x1xf32> to vector<8x32xf32>
    %389 = vector.broadcast %1 : vector<1x32xf32> to vector<8x32xf32>
    %390 = arith.mulf %388, %389 : vector<8x32xf32>
    %391 = vector.broadcast %377 : vector<8x1xf32> to vector<8x32xf32>
    %392 = vector.broadcast %2 : vector<1x32xf32> to vector<8x32xf32>
    %393 = arith.mulf %391, %392 : vector<8x32xf32>
    %394 = arith.addf %390, %393 : vector<8x32xf32>
    %395 = arith.addf %394, %387 : vector<8x32xf32>
    %396 = math.tanh %395 : vector<8x32xf32>
    %397 = vector.broadcast %13 : vector<1x1xf32> to vector<8x1xf32>
    %398 = arith.addf %370, %397 : vector<8x1xf32>
    %399 = vector.broadcast %8 : vector<1x32xf32> to vector<8x32xf32>
    %400 = arith.mulf %396, %399 : vector<8x32xf32>
    %cst_59 = arith.constant dense<0.000000e+00> : vector<8xf32>
    %401 = vector.multi_reduction <add>, %400, %cst_59 [1] : vector<8x32xf32> to vector<8xf32>
    %402 = vector.shape_cast %401 : vector<8xf32> to vector<8x1xf32>
    %403 = arith.addf %398, %402 : vector<8x1xf32>
    %404 = vector.broadcast %14 : vector<1x1xf32> to vector<8x1xf32>
    %405 = arith.addf %377, %404 : vector<8x1xf32>
    %406 = vector.broadcast %9 : vector<1x32xf32> to vector<8x32xf32>
    %407 = arith.mulf %396, %406 : vector<8x32xf32>
    %cst_60 = arith.constant dense<0.000000e+00> : vector<8xf32>
    %408 = vector.multi_reduction <add>, %407, %cst_60 [1] : vector<8x32xf32> to vector<8xf32>
    %409 = vector.shape_cast %408 : vector<8xf32> to vector<8x1xf32>
    %410 = arith.addf %405, %409 : vector<8x1xf32>
    %411 = tpu.concatenate %403, %410 in 1 : vector<8x1xf32>, vector<8x1xf32> -> vector<8x2xf32>
    %c11 = arith.constant 11 : index
    %c0_61 = arith.constant 0 : index
    %c0_62 = arith.constant 0 : index
    %412 = vector.load %arg8[%c11, %c0_61, %c0_62] : memref<64x8x2xf32, #tpu.memory_space<vmem>>, vector<1x8x2xf32>
    %413 = vector.shape_cast %412 : vector<1x8x2xf32> to vector<8x2xf32>
    %414 = vector.shape_cast %411 : vector<8x2xf32> to vector<1x8x2xf32>
    tpu.vector_store %arg8[%c11, %c0_61, %c0_62], %414 {strides = array<i32>} : memref<64x8x2xf32, #tpu.memory_space<vmem>>, vector<1x8x2xf32>,
    %415 = vector.extract_strided_slice %18 {offsets = [0, 12], sizes = [8, 1], strides = [1, 1]} : vector<8x64xf32> to vector<8x1xf32>
    %416 = vector.broadcast %415 : vector<8x1xf32> to vector<8x32xf32>
    %417 = vector.broadcast %3 : vector<1x32xf32> to vector<8x32xf32>
    %418 = arith.mulf %416, %417 : vector<8x32xf32>
    %419 = vector.broadcast %4 : vector<1x32xf32> to vector<8x32xf32>
    %420 = arith.addf %418, %419 : vector<8x32xf32>
    %421 = vector.broadcast %403 : vector<8x1xf32> to vector<8x32xf32>
    %422 = vector.broadcast %1 : vector<1x32xf32> to vector<8x32xf32>
    %423 = arith.mulf %421, %422 : vector<8x32xf32>
    %424 = vector.broadcast %410 : vector<8x1xf32> to vector<8x32xf32>
    %425 = vector.broadcast %2 : vector<1x32xf32> to vector<8x32xf32>
    %426 = arith.mulf %424, %425 : vector<8x32xf32>
    %427 = arith.addf %423, %426 : vector<8x32xf32>
    %428 = arith.addf %427, %420 : vector<8x32xf32>
    %429 = math.tanh %428 : vector<8x32xf32>
    %430 = vector.broadcast %13 : vector<1x1xf32> to vector<8x1xf32>
    %431 = arith.addf %403, %430 : vector<8x1xf32>
    %432 = vector.broadcast %8 : vector<1x32xf32> to vector<8x32xf32>
    %433 = arith.mulf %429, %432 : vector<8x32xf32>
    %cst_63 = arith.constant dense<0.000000e+00> : vector<8xf32>
    %434 = vector.multi_reduction <add>, %433, %cst_63 [1] : vector<8x32xf32> to vector<8xf32>
    %435 = vector.shape_cast %434 : vector<8xf32> to vector<8x1xf32>
    %436 = arith.addf %431, %435 : vector<8x1xf32>
    %437 = vector.broadcast %14 : vector<1x1xf32> to vector<8x1xf32>
    %438 = arith.addf %410, %437 : vector<8x1xf32>
    %439 = vector.broadcast %9 : vector<1x32xf32> to vector<8x32xf32>
    %440 = arith.mulf %429, %439 : vector<8x32xf32>
    %cst_64 = arith.constant dense<0.000000e+00> : vector<8xf32>
    %441 = vector.multi_reduction <add>, %440, %cst_64 [1] : vector<8x32xf32> to vector<8xf32>
    %442 = vector.shape_cast %441 : vector<8xf32> to vector<8x1xf32>
    %443 = arith.addf %438, %442 : vector<8x1xf32>
    %444 = tpu.concatenate %436, %443 in 1 : vector<8x1xf32>, vector<8x1xf32> -> vector<8x2xf32>
    %c12 = arith.constant 12 : index
    %c0_65 = arith.constant 0 : index
    %c0_66 = arith.constant 0 : index
    %445 = vector.load %arg8[%c12, %c0_65, %c0_66] : memref<64x8x2xf32, #tpu.memory_space<vmem>>, vector<1x8x2xf32>
    %446 = vector.shape_cast %445 : vector<1x8x2xf32> to vector<8x2xf32>
    %447 = vector.shape_cast %444 : vector<8x2xf32> to vector<1x8x2xf32>
    tpu.vector_store %arg8[%c12, %c0_65, %c0_66], %447 {strides = array<i32>} : memref<64x8x2xf32, #tpu.memory_space<vmem>>, vector<1x8x2xf32>,
    %448 = vector.extract_strided_slice %18 {offsets = [0, 13], sizes = [8, 1], strides = [1, 1]} : vector<8x64xf32> to vector<8x1xf32>
    %449 = vector.broadcast %448 : vector<8x1xf32> to vector<8x32xf32>
    %450 = vector.broadcast %3 : vector<1x32xf32> to vector<8x32xf32>
    %451 = arith.mulf %449, %450 : vector<8x32xf32>
    %452 = vector.broadcast %4 : vector<1x32xf32> to vector<8x32xf32>
    %453 = arith.addf %451, %452 : vector<8x32xf32>
    %454 = vector.broadcast %436 : vector<8x1xf32> to vector<8x32xf32>
    %455 = vector.broadcast %1 : vector<1x32xf32> to vector<8x32xf32>
    %456 = arith.mulf %454, %455 : vector<8x32xf32>
    %457 = vector.broadcast %443 : vector<8x1xf32> to vector<8x32xf32>
    %458 = vector.broadcast %2 : vector<1x32xf32> to vector<8x32xf32>
    %459 = arith.mulf %457, %458 : vector<8x32xf32>
    %460 = arith.addf %456, %459 : vector<8x32xf32>
    %461 = arith.addf %460, %453 : vector<8x32xf32>
    %462 = math.tanh %461 : vector<8x32xf32>
    %463 = vector.broadcast %13 : vector<1x1xf32> to vector<8x1xf32>
    %464 = arith.addf %436, %463 : vector<8x1xf32>
    %465 = vector.broadcast %8 : vector<1x32xf32> to vector<8x32xf32>
    %466 = arith.mulf %462, %465 : vector<8x32xf32>
    %cst_67 = arith.constant dense<0.000000e+00> : vector<8xf32>
    %467 = vector.multi_reduction <add>, %466, %cst_67 [1] : vector<8x32xf32> to vector<8xf32>
    %468 = vector.shape_cast %467 : vector<8xf32> to vector<8x1xf32>
    %469 = arith.addf %464, %468 : vector<8x1xf32>
    %470 = vector.broadcast %14 : vector<1x1xf32> to vector<8x1xf32>
    %471 = arith.addf %443, %470 : vector<8x1xf32>
    %472 = vector.broadcast %9 : vector<1x32xf32> to vector<8x32xf32>
    %473 = arith.mulf %462, %472 : vector<8x32xf32>
    %cst_68 = arith.constant dense<0.000000e+00> : vector<8xf32>
    %474 = vector.multi_reduction <add>, %473, %cst_68 [1] : vector<8x32xf32> to vector<8xf32>
    %475 = vector.shape_cast %474 : vector<8xf32> to vector<8x1xf32>
    %476 = arith.addf %471, %475 : vector<8x1xf32>
    %477 = tpu.concatenate %469, %476 in 1 : vector<8x1xf32>, vector<8x1xf32> -> vector<8x2xf32>
    %c13 = arith.constant 13 : index
    %c0_69 = arith.constant 0 : index
    %c0_70 = arith.constant 0 : index
    %478 = vector.load %arg8[%c13, %c0_69, %c0_70] : memref<64x8x2xf32, #tpu.memory_space<vmem>>, vector<1x8x2xf32>
    %479 = vector.shape_cast %478 : vector<1x8x2xf32> to vector<8x2xf32>
    %480 = vector.shape_cast %477 : vector<8x2xf32> to vector<1x8x2xf32>
    tpu.vector_store %arg8[%c13, %c0_69, %c0_70], %480 {strides = array<i32>} : memref<64x8x2xf32, #tpu.memory_space<vmem>>, vector<1x8x2xf32>,
    %481 = vector.extract_strided_slice %18 {offsets = [0, 14], sizes = [8, 1], strides = [1, 1]} : vector<8x64xf32> to vector<8x1xf32>
    %482 = vector.broadcast %481 : vector<8x1xf32> to vector<8x32xf32>
    %483 = vector.broadcast %3 : vector<1x32xf32> to vector<8x32xf32>
    %484 = arith.mulf %482, %483 : vector<8x32xf32>
    %485 = vector.broadcast %4 : vector<1x32xf32> to vector<8x32xf32>
    %486 = arith.addf %484, %485 : vector<8x32xf32>
    %487 = vector.broadcast %469 : vector<8x1xf32> to vector<8x32xf32>
    %488 = vector.broadcast %1 : vector<1x32xf32> to vector<8x32xf32>
    %489 = arith.mulf %487, %488 : vector<8x32xf32>
    %490 = vector.broadcast %476 : vector<8x1xf32> to vector<8x32xf32>
    %491 = vector.broadcast %2 : vector<1x32xf32> to vector<8x32xf32>
    %492 = arith.mulf %490, %491 : vector<8x32xf32>
    %493 = arith.addf %489, %492 : vector<8x32xf32>
    %494 = arith.addf %493, %486 : vector<8x32xf32>
    %495 = math.tanh %494 : vector<8x32xf32>
    %496 = vector.broadcast %13 : vector<1x1xf32> to vector<8x1xf32>
    %497 = arith.addf %469, %496 : vector<8x1xf32>
    %498 = vector.broadcast %8 : vector<1x32xf32> to vector<8x32xf32>
    %499 = arith.mulf %495, %498 : vector<8x32xf32>
    %cst_71 = arith.constant dense<0.000000e+00> : vector<8xf32>
    %500 = vector.multi_reduction <add>, %499, %cst_71 [1] : vector<8x32xf32> to vector<8xf32>
    %501 = vector.shape_cast %500 : vector<8xf32> to vector<8x1xf32>
    %502 = arith.addf %497, %501 : vector<8x1xf32>
    %503 = vector.broadcast %14 : vector<1x1xf32> to vector<8x1xf32>
    %504 = arith.addf %476, %503 : vector<8x1xf32>
    %505 = vector.broadcast %9 : vector<1x32xf32> to vector<8x32xf32>
    %506 = arith.mulf %495, %505 : vector<8x32xf32>
    %cst_72 = arith.constant dense<0.000000e+00> : vector<8xf32>
    %507 = vector.multi_reduction <add>, %506, %cst_72 [1] : vector<8x32xf32> to vector<8xf32>
    %508 = vector.shape_cast %507 : vector<8xf32> to vector<8x1xf32>
    %509 = arith.addf %504, %508 : vector<8x1xf32>
    %510 = tpu.concatenate %502, %509 in 1 : vector<8x1xf32>, vector<8x1xf32> -> vector<8x2xf32>
    %c14 = arith.constant 14 : index
    %c0_73 = arith.constant 0 : index
    %c0_74 = arith.constant 0 : index
    %511 = vector.load %arg8[%c14, %c0_73, %c0_74] : memref<64x8x2xf32, #tpu.memory_space<vmem>>, vector<1x8x2xf32>
    %512 = vector.shape_cast %511 : vector<1x8x2xf32> to vector<8x2xf32>
    %513 = vector.shape_cast %510 : vector<8x2xf32> to vector<1x8x2xf32>
    tpu.vector_store %arg8[%c14, %c0_73, %c0_74], %513 {strides = array<i32>} : memref<64x8x2xf32, #tpu.memory_space<vmem>>, vector<1x8x2xf32>,
    %514 = vector.extract_strided_slice %18 {offsets = [0, 15], sizes = [8, 1], strides = [1, 1]} : vector<8x64xf32> to vector<8x1xf32>
    %515 = vector.broadcast %514 : vector<8x1xf32> to vector<8x32xf32>
    %516 = vector.broadcast %3 : vector<1x32xf32> to vector<8x32xf32>
    %517 = arith.mulf %515, %516 : vector<8x32xf32>
    %518 = vector.broadcast %4 : vector<1x32xf32> to vector<8x32xf32>
    %519 = arith.addf %517, %518 : vector<8x32xf32>
    %520 = vector.broadcast %502 : vector<8x1xf32> to vector<8x32xf32>
    %521 = vector.broadcast %1 : vector<1x32xf32> to vector<8x32xf32>
    %522 = arith.mulf %520, %521 : vector<8x32xf32>
    %523 = vector.broadcast %509 : vector<8x1xf32> to vector<8x32xf32>
    %524 = vector.broadcast %2 : vector<1x32xf32> to vector<8x32xf32>
    %525 = arith.mulf %523, %524 : vector<8x32xf32>
    %526 = arith.addf %522, %525 : vector<8x32xf32>
    %527 = arith.addf %526, %519 : vector<8x32xf32>
    %528 = math.tanh %527 : vector<8x32xf32>
    %529 = vector.broadcast %13 : vector<1x1xf32> to vector<8x1xf32>
    %530 = arith.addf %502, %529 : vector<8x1xf32>
    %531 = vector.broadcast %8 : vector<1x32xf32> to vector<8x32xf32>
    %532 = arith.mulf %528, %531 : vector<8x32xf32>
    %cst_75 = arith.constant dense<0.000000e+00> : vector<8xf32>
    %533 = vector.multi_reduction <add>, %532, %cst_75 [1] : vector<8x32xf32> to vector<8xf32>
    %534 = vector.shape_cast %533 : vector<8xf32> to vector<8x1xf32>
    %535 = arith.addf %530, %534 : vector<8x1xf32>
    %536 = vector.broadcast %14 : vector<1x1xf32> to vector<8x1xf32>
    %537 = arith.addf %509, %536 : vector<8x1xf32>
    %538 = vector.broadcast %9 : vector<1x32xf32> to vector<8x32xf32>
    %539 = arith.mulf %528, %538 : vector<8x32xf32>
    %cst_76 = arith.constant dense<0.000000e+00> : vector<8xf32>
    %540 = vector.multi_reduction <add>, %539, %cst_76 [1] : vector<8x32xf32> to vector<8xf32>
    %541 = vector.shape_cast %540 : vector<8xf32> to vector<8x1xf32>
    %542 = arith.addf %537, %541 : vector<8x1xf32>
    %543 = tpu.concatenate %535, %542 in 1 : vector<8x1xf32>, vector<8x1xf32> -> vector<8x2xf32>
    %c15 = arith.constant 15 : index
    %c0_77 = arith.constant 0 : index
    %c0_78 = arith.constant 0 : index
    %544 = vector.load %arg8[%c15, %c0_77, %c0_78] : memref<64x8x2xf32, #tpu.memory_space<vmem>>, vector<1x8x2xf32>
    %545 = vector.shape_cast %544 : vector<1x8x2xf32> to vector<8x2xf32>
    %546 = vector.shape_cast %543 : vector<8x2xf32> to vector<1x8x2xf32>
    tpu.vector_store %arg8[%c15, %c0_77, %c0_78], %546 {strides = array<i32>} : memref<64x8x2xf32, #tpu.memory_space<vmem>>, vector<1x8x2xf32>,
    %547 = vector.extract_strided_slice %18 {offsets = [0, 16], sizes = [8, 1], strides = [1, 1]} : vector<8x64xf32> to vector<8x1xf32>
    %548 = vector.broadcast %547 : vector<8x1xf32> to vector<8x32xf32>
    %549 = vector.broadcast %3 : vector<1x32xf32> to vector<8x32xf32>
    %550 = arith.mulf %548, %549 : vector<8x32xf32>
    %551 = vector.broadcast %4 : vector<1x32xf32> to vector<8x32xf32>
    %552 = arith.addf %550, %551 : vector<8x32xf32>
    %553 = vector.broadcast %535 : vector<8x1xf32> to vector<8x32xf32>
    %554 = vector.broadcast %1 : vector<1x32xf32> to vector<8x32xf32>
    %555 = arith.mulf %553, %554 : vector<8x32xf32>
    %556 = vector.broadcast %542 : vector<8x1xf32> to vector<8x32xf32>
    %557 = vector.broadcast %2 : vector<1x32xf32> to vector<8x32xf32>
    %558 = arith.mulf %556, %557 : vector<8x32xf32>
    %559 = arith.addf %555, %558 : vector<8x32xf32>
    %560 = arith.addf %559, %552 : vector<8x32xf32>
    %561 = math.tanh %560 : vector<8x32xf32>
    %562 = vector.broadcast %13 : vector<1x1xf32> to vector<8x1xf32>
    %563 = arith.addf %535, %562 : vector<8x1xf32>
    %564 = vector.broadcast %8 : vector<1x32xf32> to vector<8x32xf32>
    %565 = arith.mulf %561, %564 : vector<8x32xf32>
    %cst_79 = arith.constant dense<0.000000e+00> : vector<8xf32>
    %566 = vector.multi_reduction <add>, %565, %cst_79 [1] : vector<8x32xf32> to vector<8xf32>
    %567 = vector.shape_cast %566 : vector<8xf32> to vector<8x1xf32>
    %568 = arith.addf %563, %567 : vector<8x1xf32>
    %569 = vector.broadcast %14 : vector<1x1xf32> to vector<8x1xf32>
    %570 = arith.addf %542, %569 : vector<8x1xf32>
    %571 = vector.broadcast %9 : vector<1x32xf32> to vector<8x32xf32>
    %572 = arith.mulf %561, %571 : vector<8x32xf32>
    %cst_80 = arith.constant dense<0.000000e+00> : vector<8xf32>
    %573 = vector.multi_reduction <add>, %572, %cst_80 [1] : vector<8x32xf32> to vector<8xf32>
    %574 = vector.shape_cast %573 : vector<8xf32> to vector<8x1xf32>
    %575 = arith.addf %570, %574 : vector<8x1xf32>
    %576 = tpu.concatenate %568, %575 in 1 : vector<8x1xf32>, vector<8x1xf32> -> vector<8x2xf32>
    %c16 = arith.constant 16 : index
    %c0_81 = arith.constant 0 : index
    %c0_82 = arith.constant 0 : index
    %577 = vector.load %arg8[%c16, %c0_81, %c0_82] : memref<64x8x2xf32, #tpu.memory_space<vmem>>, vector<1x8x2xf32>
    %578 = vector.shape_cast %577 : vector<1x8x2xf32> to vector<8x2xf32>
    %579 = vector.shape_cast %576 : vector<8x2xf32> to vector<1x8x2xf32>
    tpu.vector_store %arg8[%c16, %c0_81, %c0_82], %579 {strides = array<i32>} : memref<64x8x2xf32, #tpu.memory_space<vmem>>, vector<1x8x2xf32>,
    %580 = vector.extract_strided_slice %18 {offsets = [0, 17], sizes = [8, 1], strides = [1, 1]} : vector<8x64xf32> to vector<8x1xf32>
    %581 = vector.broadcast %580 : vector<8x1xf32> to vector<8x32xf32>
    %582 = vector.broadcast %3 : vector<1x32xf32> to vector<8x32xf32>
    %583 = arith.mulf %581, %582 : vector<8x32xf32>
    %584 = vector.broadcast %4 : vector<1x32xf32> to vector<8x32xf32>
    %585 = arith.addf %583, %584 : vector<8x32xf32>
    %586 = vector.broadcast %568 : vector<8x1xf32> to vector<8x32xf32>
    %587 = vector.broadcast %1 : vector<1x32xf32> to vector<8x32xf32>
    %588 = arith.mulf %586, %587 : vector<8x32xf32>
    %589 = vector.broadcast %575 : vector<8x1xf32> to vector<8x32xf32>
    %590 = vector.broadcast %2 : vector<1x32xf32> to vector<8x32xf32>
    %591 = arith.mulf %589, %590 : vector<8x32xf32>
    %592 = arith.addf %588, %591 : vector<8x32xf32>
    %593 = arith.addf %592, %585 : vector<8x32xf32>
    %594 = math.tanh %593 : vector<8x32xf32>
    %595 = vector.broadcast %13 : vector<1x1xf32> to vector<8x1xf32>
    %596 = arith.addf %568, %595 : vector<8x1xf32>
    %597 = vector.broadcast %8 : vector<1x32xf32> to vector<8x32xf32>
    %598 = arith.mulf %594, %597 : vector<8x32xf32>
    %cst_83 = arith.constant dense<0.000000e+00> : vector<8xf32>
    %599 = vector.multi_reduction <add>, %598, %cst_83 [1] : vector<8x32xf32> to vector<8xf32>
    %600 = vector.shape_cast %599 : vector<8xf32> to vector<8x1xf32>
    %601 = arith.addf %596, %600 : vector<8x1xf32>
    %602 = vector.broadcast %14 : vector<1x1xf32> to vector<8x1xf32>
    %603 = arith.addf %575, %602 : vector<8x1xf32>
    %604 = vector.broadcast %9 : vector<1x32xf32> to vector<8x32xf32>
    %605 = arith.mulf %594, %604 : vector<8x32xf32>
    %cst_84 = arith.constant dense<0.000000e+00> : vector<8xf32>
    %606 = vector.multi_reduction <add>, %605, %cst_84 [1] : vector<8x32xf32> to vector<8xf32>
    %607 = vector.shape_cast %606 : vector<8xf32> to vector<8x1xf32>
    %608 = arith.addf %603, %607 : vector<8x1xf32>
    %609 = tpu.concatenate %601, %608 in 1 : vector<8x1xf32>, vector<8x1xf32> -> vector<8x2xf32>
    %c17 = arith.constant 17 : index
    %c0_85 = arith.constant 0 : index
    %c0_86 = arith.constant 0 : index
    %610 = vector.load %arg8[%c17, %c0_85, %c0_86] : memref<64x8x2xf32, #tpu.memory_space<vmem>>, vector<1x8x2xf32>
    %611 = vector.shape_cast %610 : vector<1x8x2xf32> to vector<8x2xf32>
    %612 = vector.shape_cast %609 : vector<8x2xf32> to vector<1x8x2xf32>
    tpu.vector_store %arg8[%c17, %c0_85, %c0_86], %612 {strides = array<i32>} : memref<64x8x2xf32, #tpu.memory_space<vmem>>, vector<1x8x2xf32>,
    %613 = vector.extract_strided_slice %18 {offsets = [0, 18], sizes = [8, 1], strides = [1, 1]} : vector<8x64xf32> to vector<8x1xf32>
    %614 = vector.broadcast %613 : vector<8x1xf32> to vector<8x32xf32>
    %615 = vector.broadcast %3 : vector<1x32xf32> to vector<8x32xf32>
    %616 = arith.mulf %614, %615 : vector<8x32xf32>
    %617 = vector.broadcast %4 : vector<1x32xf32> to vector<8x32xf32>
    %618 = arith.addf %616, %617 : vector<8x32xf32>
    %619 = vector.broadcast %601 : vector<8x1xf32> to vector<8x32xf32>
    %620 = vector.broadcast %1 : vector<1x32xf32> to vector<8x32xf32>
    %621 = arith.mulf %619, %620 : vector<8x32xf32>
    %622 = vector.broadcast %608 : vector<8x1xf32> to vector<8x32xf32>
    %623 = vector.broadcast %2 : vector<1x32xf32> to vector<8x32xf32>
    %624 = arith.mulf %622, %623 : vector<8x32xf32>
    %625 = arith.addf %621, %624 : vector<8x32xf32>
    %626 = arith.addf %625, %618 : vector<8x32xf32>
    %627 = math.tanh %626 : vector<8x32xf32>
    %628 = vector.broadcast %13 : vector<1x1xf32> to vector<8x1xf32>
    %629 = arith.addf %601, %628 : vector<8x1xf32>
    %630 = vector.broadcast %8 : vector<1x32xf32> to vector<8x32xf32>
    %631 = arith.mulf %627, %630 : vector<8x32xf32>
    %cst_87 = arith.constant dense<0.000000e+00> : vector<8xf32>
    %632 = vector.multi_reduction <add>, %631, %cst_87 [1] : vector<8x32xf32> to vector<8xf32>
    %633 = vector.shape_cast %632 : vector<8xf32> to vector<8x1xf32>
    %634 = arith.addf %629, %633 : vector<8x1xf32>
    %635 = vector.broadcast %14 : vector<1x1xf32> to vector<8x1xf32>
    %636 = arith.addf %608, %635 : vector<8x1xf32>
    %637 = vector.broadcast %9 : vector<1x32xf32> to vector<8x32xf32>
    %638 = arith.mulf %627, %637 : vector<8x32xf32>
    %cst_88 = arith.constant dense<0.000000e+00> : vector<8xf32>
    %639 = vector.multi_reduction <add>, %638, %cst_88 [1] : vector<8x32xf32> to vector<8xf32>
    %640 = vector.shape_cast %639 : vector<8xf32> to vector<8x1xf32>
    %641 = arith.addf %636, %640 : vector<8x1xf32>
    %642 = tpu.concatenate %634, %641 in 1 : vector<8x1xf32>, vector<8x1xf32> -> vector<8x2xf32>
    %c18 = arith.constant 18 : index
    %c0_89 = arith.constant 0 : index
    %c0_90 = arith.constant 0 : index
    %643 = vector.load %arg8[%c18, %c0_89, %c0_90] : memref<64x8x2xf32, #tpu.memory_space<vmem>>, vector<1x8x2xf32>
    %644 = vector.shape_cast %643 : vector<1x8x2xf32> to vector<8x2xf32>
    %645 = vector.shape_cast %642 : vector<8x2xf32> to vector<1x8x2xf32>
    tpu.vector_store %arg8[%c18, %c0_89, %c0_90], %645 {strides = array<i32>} : memref<64x8x2xf32, #tpu.memory_space<vmem>>, vector<1x8x2xf32>,
    %646 = vector.extract_strided_slice %18 {offsets = [0, 19], sizes = [8, 1], strides = [1, 1]} : vector<8x64xf32> to vector<8x1xf32>
    %647 = vector.broadcast %646 : vector<8x1xf32> to vector<8x32xf32>
    %648 = vector.broadcast %3 : vector<1x32xf32> to vector<8x32xf32>
    %649 = arith.mulf %647, %648 : vector<8x32xf32>
    %650 = vector.broadcast %4 : vector<1x32xf32> to vector<8x32xf32>
    %651 = arith.addf %649, %650 : vector<8x32xf32>
    %652 = vector.broadcast %634 : vector<8x1xf32> to vector<8x32xf32>
    %653 = vector.broadcast %1 : vector<1x32xf32> to vector<8x32xf32>
    %654 = arith.mulf %652, %653 : vector<8x32xf32>
    %655 = vector.broadcast %641 : vector<8x1xf32> to vector<8x32xf32>
    %656 = vector.broadcast %2 : vector<1x32xf32> to vector<8x32xf32>
    %657 = arith.mulf %655, %656 : vector<8x32xf32>
    %658 = arith.addf %654, %657 : vector<8x32xf32>
    %659 = arith.addf %658, %651 : vector<8x32xf32>
    %660 = math.tanh %659 : vector<8x32xf32>
    %661 = vector.broadcast %13 : vector<1x1xf32> to vector<8x1xf32>
    %662 = arith.addf %634, %661 : vector<8x1xf32>
    %663 = vector.broadcast %8 : vector<1x32xf32> to vector<8x32xf32>
    %664 = arith.mulf %660, %663 : vector<8x32xf32>
    %cst_91 = arith.constant dense<0.000000e+00> : vector<8xf32>
    %665 = vector.multi_reduction <add>, %664, %cst_91 [1] : vector<8x32xf32> to vector<8xf32>
    %666 = vector.shape_cast %665 : vector<8xf32> to vector<8x1xf32>
    %667 = arith.addf %662, %666 : vector<8x1xf32>
    %668 = vector.broadcast %14 : vector<1x1xf32> to vector<8x1xf32>
    %669 = arith.addf %641, %668 : vector<8x1xf32>
    %670 = vector.broadcast %9 : vector<1x32xf32> to vector<8x32xf32>
    %671 = arith.mulf %660, %670 : vector<8x32xf32>
    %cst_92 = arith.constant dense<0.000000e+00> : vector<8xf32>
    %672 = vector.multi_reduction <add>, %671, %cst_92 [1] : vector<8x32xf32> to vector<8xf32>
    %673 = vector.shape_cast %672 : vector<8xf32> to vector<8x1xf32>
    %674 = arith.addf %669, %673 : vector<8x1xf32>
    %675 = tpu.concatenate %667, %674 in 1 : vector<8x1xf32>, vector<8x1xf32> -> vector<8x2xf32>
    %c19 = arith.constant 19 : index
    %c0_93 = arith.constant 0 : index
    %c0_94 = arith.constant 0 : index
    %676 = vector.load %arg8[%c19, %c0_93, %c0_94] : memref<64x8x2xf32, #tpu.memory_space<vmem>>, vector<1x8x2xf32>
    %677 = vector.shape_cast %676 : vector<1x8x2xf32> to vector<8x2xf32>
    %678 = vector.shape_cast %675 : vector<8x2xf32> to vector<1x8x2xf32>
    tpu.vector_store %arg8[%c19, %c0_93, %c0_94], %678 {strides = array<i32>} : memref<64x8x2xf32, #tpu.memory_space<vmem>>, vector<1x8x2xf32>,
    %679 = vector.extract_strided_slice %18 {offsets = [0, 20], sizes = [8, 1], strides = [1, 1]} : vector<8x64xf32> to vector<8x1xf32>
    %680 = vector.broadcast %679 : vector<8x1xf32> to vector<8x32xf32>
    %681 = vector.broadcast %3 : vector<1x32xf32> to vector<8x32xf32>
    %682 = arith.mulf %680, %681 : vector<8x32xf32>
    %683 = vector.broadcast %4 : vector<1x32xf32> to vector<8x32xf32>
    %684 = arith.addf %682, %683 : vector<8x32xf32>
    %685 = vector.broadcast %667 : vector<8x1xf32> to vector<8x32xf32>
    %686 = vector.broadcast %1 : vector<1x32xf32> to vector<8x32xf32>
    %687 = arith.mulf %685, %686 : vector<8x32xf32>
    %688 = vector.broadcast %674 : vector<8x1xf32> to vector<8x32xf32>
    %689 = vector.broadcast %2 : vector<1x32xf32> to vector<8x32xf32>
    %690 = arith.mulf %688, %689 : vector<8x32xf32>
    %691 = arith.addf %687, %690 : vector<8x32xf32>
    %692 = arith.addf %691, %684 : vector<8x32xf32>
    %693 = math.tanh %692 : vector<8x32xf32>
    %694 = vector.broadcast %13 : vector<1x1xf32> to vector<8x1xf32>
    %695 = arith.addf %667, %694 : vector<8x1xf32>
    %696 = vector.broadcast %8 : vector<1x32xf32> to vector<8x32xf32>
    %697 = arith.mulf %693, %696 : vector<8x32xf32>
    %cst_95 = arith.constant dense<0.000000e+00> : vector<8xf32>
    %698 = vector.multi_reduction <add>, %697, %cst_95 [1] : vector<8x32xf32> to vector<8xf32>
    %699 = vector.shape_cast %698 : vector<8xf32> to vector<8x1xf32>
    %700 = arith.addf %695, %699 : vector<8x1xf32>
    %701 = vector.broadcast %14 : vector<1x1xf32> to vector<8x1xf32>
    %702 = arith.addf %674, %701 : vector<8x1xf32>
    %703 = vector.broadcast %9 : vector<1x32xf32> to vector<8x32xf32>
    %704 = arith.mulf %693, %703 : vector<8x32xf32>
    %cst_96 = arith.constant dense<0.000000e+00> : vector<8xf32>
    %705 = vector.multi_reduction <add>, %704, %cst_96 [1] : vector<8x32xf32> to vector<8xf32>
    %706 = vector.shape_cast %705 : vector<8xf32> to vector<8x1xf32>
    %707 = arith.addf %702, %706 : vector<8x1xf32>
    %708 = tpu.concatenate %700, %707 in 1 : vector<8x1xf32>, vector<8x1xf32> -> vector<8x2xf32>
    %c20 = arith.constant 20 : index
    %c0_97 = arith.constant 0 : index
    %c0_98 = arith.constant 0 : index
    %709 = vector.load %arg8[%c20, %c0_97, %c0_98] : memref<64x8x2xf32, #tpu.memory_space<vmem>>, vector<1x8x2xf32>
    %710 = vector.shape_cast %709 : vector<1x8x2xf32> to vector<8x2xf32>
    %711 = vector.shape_cast %708 : vector<8x2xf32> to vector<1x8x2xf32>
    tpu.vector_store %arg8[%c20, %c0_97, %c0_98], %711 {strides = array<i32>} : memref<64x8x2xf32, #tpu.memory_space<vmem>>, vector<1x8x2xf32>,
    %712 = vector.extract_strided_slice %18 {offsets = [0, 21], sizes = [8, 1], strides = [1, 1]} : vector<8x64xf32> to vector<8x1xf32>
    %713 = vector.broadcast %712 : vector<8x1xf32> to vector<8x32xf32>
    %714 = vector.broadcast %3 : vector<1x32xf32> to vector<8x32xf32>
    %715 = arith.mulf %713, %714 : vector<8x32xf32>
    %716 = vector.broadcast %4 : vector<1x32xf32> to vector<8x32xf32>
    %717 = arith.addf %715, %716 : vector<8x32xf32>
    %718 = vector.broadcast %700 : vector<8x1xf32> to vector<8x32xf32>
    %719 = vector.broadcast %1 : vector<1x32xf32> to vector<8x32xf32>
    %720 = arith.mulf %718, %719 : vector<8x32xf32>
    %721 = vector.broadcast %707 : vector<8x1xf32> to vector<8x32xf32>
    %722 = vector.broadcast %2 : vector<1x32xf32> to vector<8x32xf32>
    %723 = arith.mulf %721, %722 : vector<8x32xf32>
    %724 = arith.addf %720, %723 : vector<8x32xf32>
    %725 = arith.addf %724, %717 : vector<8x32xf32>
    %726 = math.tanh %725 : vector<8x32xf32>
    %727 = vector.broadcast %13 : vector<1x1xf32> to vector<8x1xf32>
    %728 = arith.addf %700, %727 : vector<8x1xf32>
    %729 = vector.broadcast %8 : vector<1x32xf32> to vector<8x32xf32>
    %730 = arith.mulf %726, %729 : vector<8x32xf32>
    %cst_99 = arith.constant dense<0.000000e+00> : vector<8xf32>
    %731 = vector.multi_reduction <add>, %730, %cst_99 [1] : vector<8x32xf32> to vector<8xf32>
    %732 = vector.shape_cast %731 : vector<8xf32> to vector<8x1xf32>
    %733 = arith.addf %728, %732 : vector<8x1xf32>
    %734 = vector.broadcast %14 : vector<1x1xf32> to vector<8x1xf32>
    %735 = arith.addf %707, %734 : vector<8x1xf32>
    %736 = vector.broadcast %9 : vector<1x32xf32> to vector<8x32xf32>
    %737 = arith.mulf %726, %736 : vector<8x32xf32>
    %cst_100 = arith.constant dense<0.000000e+00> : vector<8xf32>
    %738 = vector.multi_reduction <add>, %737, %cst_100 [1] : vector<8x32xf32> to vector<8xf32>
    %739 = vector.shape_cast %738 : vector<8xf32> to vector<8x1xf32>
    %740 = arith.addf %735, %739 : vector<8x1xf32>
    %741 = tpu.concatenate %733, %740 in 1 : vector<8x1xf32>, vector<8x1xf32> -> vector<8x2xf32>
    %c21 = arith.constant 21 : index
    %c0_101 = arith.constant 0 : index
    %c0_102 = arith.constant 0 : index
    %742 = vector.load %arg8[%c21, %c0_101, %c0_102] : memref<64x8x2xf32, #tpu.memory_space<vmem>>, vector<1x8x2xf32>
    %743 = vector.shape_cast %742 : vector<1x8x2xf32> to vector<8x2xf32>
    %744 = vector.shape_cast %741 : vector<8x2xf32> to vector<1x8x2xf32>
    tpu.vector_store %arg8[%c21, %c0_101, %c0_102], %744 {strides = array<i32>} : memref<64x8x2xf32, #tpu.memory_space<vmem>>, vector<1x8x2xf32>,
    %745 = vector.extract_strided_slice %18 {offsets = [0, 22], sizes = [8, 1], strides = [1, 1]} : vector<8x64xf32> to vector<8x1xf32>
    %746 = vector.broadcast %745 : vector<8x1xf32> to vector<8x32xf32>
    %747 = vector.broadcast %3 : vector<1x32xf32> to vector<8x32xf32>
    %748 = arith.mulf %746, %747 : vector<8x32xf32>
    %749 = vector.broadcast %4 : vector<1x32xf32> to vector<8x32xf32>
    %750 = arith.addf %748, %749 : vector<8x32xf32>
    %751 = vector.broadcast %733 : vector<8x1xf32> to vector<8x32xf32>
    %752 = vector.broadcast %1 : vector<1x32xf32> to vector<8x32xf32>
    %753 = arith.mulf %751, %752 : vector<8x32xf32>
    %754 = vector.broadcast %740 : vector<8x1xf32> to vector<8x32xf32>
    %755 = vector.broadcast %2 : vector<1x32xf32> to vector<8x32xf32>
    %756 = arith.mulf %754, %755 : vector<8x32xf32>
    %757 = arith.addf %753, %756 : vector<8x32xf32>
    %758 = arith.addf %757, %750 : vector<8x32xf32>
    %759 = math.tanh %758 : vector<8x32xf32>
    %760 = vector.broadcast %13 : vector<1x1xf32> to vector<8x1xf32>
    %761 = arith.addf %733, %760 : vector<8x1xf32>
    %762 = vector.broadcast %8 : vector<1x32xf32> to vector<8x32xf32>
    %763 = arith.mulf %759, %762 : vector<8x32xf32>
    %cst_103 = arith.constant dense<0.000000e+00> : vector<8xf32>
    %764 = vector.multi_reduction <add>, %763, %cst_103 [1] : vector<8x32xf32> to vector<8xf32>
    %765 = vector.shape_cast %764 : vector<8xf32> to vector<8x1xf32>
    %766 = arith.addf %761, %765 : vector<8x1xf32>
    %767 = vector.broadcast %14 : vector<1x1xf32> to vector<8x1xf32>
    %768 = arith.addf %740, %767 : vector<8x1xf32>
    %769 = vector.broadcast %9 : vector<1x32xf32> to vector<8x32xf32>
    %770 = arith.mulf %759, %769 : vector<8x32xf32>
    %cst_104 = arith.constant dense<0.000000e+00> : vector<8xf32>
    %771 = vector.multi_reduction <add>, %770, %cst_104 [1] : vector<8x32xf32> to vector<8xf32>
    %772 = vector.shape_cast %771 : vector<8xf32> to vector<8x1xf32>
    %773 = arith.addf %768, %772 : vector<8x1xf32>
    %774 = tpu.concatenate %766, %773 in 1 : vector<8x1xf32>, vector<8x1xf32> -> vector<8x2xf32>
    %c22 = arith.constant 22 : index
    %c0_105 = arith.constant 0 : index
    %c0_106 = arith.constant 0 : index
    %775 = vector.load %arg8[%c22, %c0_105, %c0_106] : memref<64x8x2xf32, #tpu.memory_space<vmem>>, vector<1x8x2xf32>
    %776 = vector.shape_cast %775 : vector<1x8x2xf32> to vector<8x2xf32>
    %777 = vector.shape_cast %774 : vector<8x2xf32> to vector<1x8x2xf32>
    tpu.vector_store %arg8[%c22, %c0_105, %c0_106], %777 {strides = array<i32>} : memref<64x8x2xf32, #tpu.memory_space<vmem>>, vector<1x8x2xf32>,
    %778 = vector.extract_strided_slice %18 {offsets = [0, 23], sizes = [8, 1], strides = [1, 1]} : vector<8x64xf32> to vector<8x1xf32>
    %779 = vector.broadcast %778 : vector<8x1xf32> to vector<8x32xf32>
    %780 = vector.broadcast %3 : vector<1x32xf32> to vector<8x32xf32>
    %781 = arith.mulf %779, %780 : vector<8x32xf32>
    %782 = vector.broadcast %4 : vector<1x32xf32> to vector<8x32xf32>
    %783 = arith.addf %781, %782 : vector<8x32xf32>
    %784 = vector.broadcast %766 : vector<8x1xf32> to vector<8x32xf32>
    %785 = vector.broadcast %1 : vector<1x32xf32> to vector<8x32xf32>
    %786 = arith.mulf %784, %785 : vector<8x32xf32>
    %787 = vector.broadcast %773 : vector<8x1xf32> to vector<8x32xf32>
    %788 = vector.broadcast %2 : vector<1x32xf32> to vector<8x32xf32>
    %789 = arith.mulf %787, %788 : vector<8x32xf32>
    %790 = arith.addf %786, %789 : vector<8x32xf32>
    %791 = arith.addf %790, %783 : vector<8x32xf32>
    %792 = math.tanh %791 : vector<8x32xf32>
    %793 = vector.broadcast %13 : vector<1x1xf32> to vector<8x1xf32>
    %794 = arith.addf %766, %793 : vector<8x1xf32>
    %795 = vector.broadcast %8 : vector<1x32xf32> to vector<8x32xf32>
    %796 = arith.mulf %792, %795 : vector<8x32xf32>
    %cst_107 = arith.constant dense<0.000000e+00> : vector<8xf32>
    %797 = vector.multi_reduction <add>, %796, %cst_107 [1] : vector<8x32xf32> to vector<8xf32>
    %798 = vector.shape_cast %797 : vector<8xf32> to vector<8x1xf32>
    %799 = arith.addf %794, %798 : vector<8x1xf32>
    %800 = vector.broadcast %14 : vector<1x1xf32> to vector<8x1xf32>
    %801 = arith.addf %773, %800 : vector<8x1xf32>
    %802 = vector.broadcast %9 : vector<1x32xf32> to vector<8x32xf32>
    %803 = arith.mulf %792, %802 : vector<8x32xf32>
    %cst_108 = arith.constant dense<0.000000e+00> : vector<8xf32>
    %804 = vector.multi_reduction <add>, %803, %cst_108 [1] : vector<8x32xf32> to vector<8xf32>
    %805 = vector.shape_cast %804 : vector<8xf32> to vector<8x1xf32>
    %806 = arith.addf %801, %805 : vector<8x1xf32>
    %807 = tpu.concatenate %799, %806 in 1 : vector<8x1xf32>, vector<8x1xf32> -> vector<8x2xf32>
    %c23 = arith.constant 23 : index
    %c0_109 = arith.constant 0 : index
    %c0_110 = arith.constant 0 : index
    %808 = vector.load %arg8[%c23, %c0_109, %c0_110] : memref<64x8x2xf32, #tpu.memory_space<vmem>>, vector<1x8x2xf32>
    %809 = vector.shape_cast %808 : vector<1x8x2xf32> to vector<8x2xf32>
    %810 = vector.shape_cast %807 : vector<8x2xf32> to vector<1x8x2xf32>
    tpu.vector_store %arg8[%c23, %c0_109, %c0_110], %810 {strides = array<i32>} : memref<64x8x2xf32, #tpu.memory_space<vmem>>, vector<1x8x2xf32>,
    %811 = vector.extract_strided_slice %18 {offsets = [0, 24], sizes = [8, 1], strides = [1, 1]} : vector<8x64xf32> to vector<8x1xf32>
    %812 = vector.broadcast %811 : vector<8x1xf32> to vector<8x32xf32>
    %813 = vector.broadcast %3 : vector<1x32xf32> to vector<8x32xf32>
    %814 = arith.mulf %812, %813 : vector<8x32xf32>
    %815 = vector.broadcast %4 : vector<1x32xf32> to vector<8x32xf32>
    %816 = arith.addf %814, %815 : vector<8x32xf32>
    %817 = vector.broadcast %799 : vector<8x1xf32> to vector<8x32xf32>
    %818 = vector.broadcast %1 : vector<1x32xf32> to vector<8x32xf32>
    %819 = arith.mulf %817, %818 : vector<8x32xf32>
    %820 = vector.broadcast %806 : vector<8x1xf32> to vector<8x32xf32>
    %821 = vector.broadcast %2 : vector<1x32xf32> to vector<8x32xf32>
    %822 = arith.mulf %820, %821 : vector<8x32xf32>
    %823 = arith.addf %819, %822 : vector<8x32xf32>
    %824 = arith.addf %823, %816 : vector<8x32xf32>
    %825 = math.tanh %824 : vector<8x32xf32>
    %826 = vector.broadcast %13 : vector<1x1xf32> to vector<8x1xf32>
    %827 = arith.addf %799, %826 : vector<8x1xf32>
    %828 = vector.broadcast %8 : vector<1x32xf32> to vector<8x32xf32>
    %829 = arith.mulf %825, %828 : vector<8x32xf32>
    %cst_111 = arith.constant dense<0.000000e+00> : vector<8xf32>
    %830 = vector.multi_reduction <add>, %829, %cst_111 [1] : vector<8x32xf32> to vector<8xf32>
    %831 = vector.shape_cast %830 : vector<8xf32> to vector<8x1xf32>
    %832 = arith.addf %827, %831 : vector<8x1xf32>
    %833 = vector.broadcast %14 : vector<1x1xf32> to vector<8x1xf32>
    %834 = arith.addf %806, %833 : vector<8x1xf32>
    %835 = vector.broadcast %9 : vector<1x32xf32> to vector<8x32xf32>
    %836 = arith.mulf %825, %835 : vector<8x32xf32>
    %cst_112 = arith.constant dense<0.000000e+00> : vector<8xf32>
    %837 = vector.multi_reduction <add>, %836, %cst_112 [1] : vector<8x32xf32> to vector<8xf32>
    %838 = vector.shape_cast %837 : vector<8xf32> to vector<8x1xf32>
    %839 = arith.addf %834, %838 : vector<8x1xf32>
    %840 = tpu.concatenate %832, %839 in 1 : vector<8x1xf32>, vector<8x1xf32> -> vector<8x2xf32>
    %c24 = arith.constant 24 : index
    %c0_113 = arith.constant 0 : index
    %c0_114 = arith.constant 0 : index
    %841 = vector.load %arg8[%c24, %c0_113, %c0_114] : memref<64x8x2xf32, #tpu.memory_space<vmem>>, vector<1x8x2xf32>
    %842 = vector.shape_cast %841 : vector<1x8x2xf32> to vector<8x2xf32>
    %843 = vector.shape_cast %840 : vector<8x2xf32> to vector<1x8x2xf32>
    tpu.vector_store %arg8[%c24, %c0_113, %c0_114], %843 {strides = array<i32>} : memref<64x8x2xf32, #tpu.memory_space<vmem>>, vector<1x8x2xf32>,
    %844 = vector.extract_strided_slice %18 {offsets = [0, 25], sizes = [8, 1], strides = [1, 1]} : vector<8x64xf32> to vector<8x1xf32>
    %845 = vector.broadcast %844 : vector<8x1xf32> to vector<8x32xf32>
    %846 = vector.broadcast %3 : vector<1x32xf32> to vector<8x32xf32>
    %847 = arith.mulf %845, %846 : vector<8x32xf32>
    %848 = vector.broadcast %4 : vector<1x32xf32> to vector<8x32xf32>
    %849 = arith.addf %847, %848 : vector<8x32xf32>
    %850 = vector.broadcast %832 : vector<8x1xf32> to vector<8x32xf32>
    %851 = vector.broadcast %1 : vector<1x32xf32> to vector<8x32xf32>
    %852 = arith.mulf %850, %851 : vector<8x32xf32>
    %853 = vector.broadcast %839 : vector<8x1xf32> to vector<8x32xf32>
    %854 = vector.broadcast %2 : vector<1x32xf32> to vector<8x32xf32>
    %855 = arith.mulf %853, %854 : vector<8x32xf32>
    %856 = arith.addf %852, %855 : vector<8x32xf32>
    %857 = arith.addf %856, %849 : vector<8x32xf32>
    %858 = math.tanh %857 : vector<8x32xf32>
    %859 = vector.broadcast %13 : vector<1x1xf32> to vector<8x1xf32>
    %860 = arith.addf %832, %859 : vector<8x1xf32>
    %861 = vector.broadcast %8 : vector<1x32xf32> to vector<8x32xf32>
    %862 = arith.mulf %858, %861 : vector<8x32xf32>
    %cst_115 = arith.constant dense<0.000000e+00> : vector<8xf32>
    %863 = vector.multi_reduction <add>, %862, %cst_115 [1] : vector<8x32xf32> to vector<8xf32>
    %864 = vector.shape_cast %863 : vector<8xf32> to vector<8x1xf32>
    %865 = arith.addf %860, %864 : vector<8x1xf32>
    %866 = vector.broadcast %14 : vector<1x1xf32> to vector<8x1xf32>
    %867 = arith.addf %839, %866 : vector<8x1xf32>
    %868 = vector.broadcast %9 : vector<1x32xf32> to vector<8x32xf32>
    %869 = arith.mulf %858, %868 : vector<8x32xf32>
    %cst_116 = arith.constant dense<0.000000e+00> : vector<8xf32>
    %870 = vector.multi_reduction <add>, %869, %cst_116 [1] : vector<8x32xf32> to vector<8xf32>
    %871 = vector.shape_cast %870 : vector<8xf32> to vector<8x1xf32>
    %872 = arith.addf %867, %871 : vector<8x1xf32>
    %873 = tpu.concatenate %865, %872 in 1 : vector<8x1xf32>, vector<8x1xf32> -> vector<8x2xf32>
    %c25 = arith.constant 25 : index
    %c0_117 = arith.constant 0 : index
    %c0_118 = arith.constant 0 : index
    %874 = vector.load %arg8[%c25, %c0_117, %c0_118] : memref<64x8x2xf32, #tpu.memory_space<vmem>>, vector<1x8x2xf32>
    %875 = vector.shape_cast %874 : vector<1x8x2xf32> to vector<8x2xf32>
    %876 = vector.shape_cast %873 : vector<8x2xf32> to vector<1x8x2xf32>
    tpu.vector_store %arg8[%c25, %c0_117, %c0_118], %876 {strides = array<i32>} : memref<64x8x2xf32, #tpu.memory_space<vmem>>, vector<1x8x2xf32>,
    %877 = vector.extract_strided_slice %18 {offsets = [0, 26], sizes = [8, 1], strides = [1, 1]} : vector<8x64xf32> to vector<8x1xf32>
    %878 = vector.broadcast %877 : vector<8x1xf32> to vector<8x32xf32>
    %879 = vector.broadcast %3 : vector<1x32xf32> to vector<8x32xf32>
    %880 = arith.mulf %878, %879 : vector<8x32xf32>
    %881 = vector.broadcast %4 : vector<1x32xf32> to vector<8x32xf32>
    %882 = arith.addf %880, %881 : vector<8x32xf32>
    %883 = vector.broadcast %865 : vector<8x1xf32> to vector<8x32xf32>
    %884 = vector.broadcast %1 : vector<1x32xf32> to vector<8x32xf32>
    %885 = arith.mulf %883, %884 : vector<8x32xf32>
    %886 = vector.broadcast %872 : vector<8x1xf32> to vector<8x32xf32>
    %887 = vector.broadcast %2 : vector<1x32xf32> to vector<8x32xf32>
    %888 = arith.mulf %886, %887 : vector<8x32xf32>
    %889 = arith.addf %885, %888 : vector<8x32xf32>
    %890 = arith.addf %889, %882 : vector<8x32xf32>
    %891 = math.tanh %890 : vector<8x32xf32>
    %892 = vector.broadcast %13 : vector<1x1xf32> to vector<8x1xf32>
    %893 = arith.addf %865, %892 : vector<8x1xf32>
    %894 = vector.broadcast %8 : vector<1x32xf32> to vector<8x32xf32>
    %895 = arith.mulf %891, %894 : vector<8x32xf32>
    %cst_119 = arith.constant dense<0.000000e+00> : vector<8xf32>
    %896 = vector.multi_reduction <add>, %895, %cst_119 [1] : vector<8x32xf32> to vector<8xf32>
    %897 = vector.shape_cast %896 : vector<8xf32> to vector<8x1xf32>
    %898 = arith.addf %893, %897 : vector<8x1xf32>
    %899 = vector.broadcast %14 : vector<1x1xf32> to vector<8x1xf32>
    %900 = arith.addf %872, %899 : vector<8x1xf32>
    %901 = vector.broadcast %9 : vector<1x32xf32> to vector<8x32xf32>
    %902 = arith.mulf %891, %901 : vector<8x32xf32>
    %cst_120 = arith.constant dense<0.000000e+00> : vector<8xf32>
    %903 = vector.multi_reduction <add>, %902, %cst_120 [1] : vector<8x32xf32> to vector<8xf32>
    %904 = vector.shape_cast %903 : vector<8xf32> to vector<8x1xf32>
    %905 = arith.addf %900, %904 : vector<8x1xf32>
    %906 = tpu.concatenate %898, %905 in 1 : vector<8x1xf32>, vector<8x1xf32> -> vector<8x2xf32>
    %c26 = arith.constant 26 : index
    %c0_121 = arith.constant 0 : index
    %c0_122 = arith.constant 0 : index
    %907 = vector.load %arg8[%c26, %c0_121, %c0_122] : memref<64x8x2xf32, #tpu.memory_space<vmem>>, vector<1x8x2xf32>
    %908 = vector.shape_cast %907 : vector<1x8x2xf32> to vector<8x2xf32>
    %909 = vector.shape_cast %906 : vector<8x2xf32> to vector<1x8x2xf32>
    tpu.vector_store %arg8[%c26, %c0_121, %c0_122], %909 {strides = array<i32>} : memref<64x8x2xf32, #tpu.memory_space<vmem>>, vector<1x8x2xf32>,
    %910 = vector.extract_strided_slice %18 {offsets = [0, 27], sizes = [8, 1], strides = [1, 1]} : vector<8x64xf32> to vector<8x1xf32>
    %911 = vector.broadcast %910 : vector<8x1xf32> to vector<8x32xf32>
    %912 = vector.broadcast %3 : vector<1x32xf32> to vector<8x32xf32>
    %913 = arith.mulf %911, %912 : vector<8x32xf32>
    %914 = vector.broadcast %4 : vector<1x32xf32> to vector<8x32xf32>
    %915 = arith.addf %913, %914 : vector<8x32xf32>
    %916 = vector.broadcast %898 : vector<8x1xf32> to vector<8x32xf32>
    %917 = vector.broadcast %1 : vector<1x32xf32> to vector<8x32xf32>
    %918 = arith.mulf %916, %917 : vector<8x32xf32>
    %919 = vector.broadcast %905 : vector<8x1xf32> to vector<8x32xf32>
    %920 = vector.broadcast %2 : vector<1x32xf32> to vector<8x32xf32>
    %921 = arith.mulf %919, %920 : vector<8x32xf32>
    %922 = arith.addf %918, %921 : vector<8x32xf32>
    %923 = arith.addf %922, %915 : vector<8x32xf32>
    %924 = math.tanh %923 : vector<8x32xf32>
    %925 = vector.broadcast %13 : vector<1x1xf32> to vector<8x1xf32>
    %926 = arith.addf %898, %925 : vector<8x1xf32>
    %927 = vector.broadcast %8 : vector<1x32xf32> to vector<8x32xf32>
    %928 = arith.mulf %924, %927 : vector<8x32xf32>
    %cst_123 = arith.constant dense<0.000000e+00> : vector<8xf32>
    %929 = vector.multi_reduction <add>, %928, %cst_123 [1] : vector<8x32xf32> to vector<8xf32>
    %930 = vector.shape_cast %929 : vector<8xf32> to vector<8x1xf32>
    %931 = arith.addf %926, %930 : vector<8x1xf32>
    %932 = vector.broadcast %14 : vector<1x1xf32> to vector<8x1xf32>
    %933 = arith.addf %905, %932 : vector<8x1xf32>
    %934 = vector.broadcast %9 : vector<1x32xf32> to vector<8x32xf32>
    %935 = arith.mulf %924, %934 : vector<8x32xf32>
    %cst_124 = arith.constant dense<0.000000e+00> : vector<8xf32>
    %936 = vector.multi_reduction <add>, %935, %cst_124 [1] : vector<8x32xf32> to vector<8xf32>
    %937 = vector.shape_cast %936 : vector<8xf32> to vector<8x1xf32>
    %938 = arith.addf %933, %937 : vector<8x1xf32>
    %939 = tpu.concatenate %931, %938 in 1 : vector<8x1xf32>, vector<8x1xf32> -> vector<8x2xf32>
    %c27 = arith.constant 27 : index
    %c0_125 = arith.constant 0 : index
    %c0_126 = arith.constant 0 : index
    %940 = vector.load %arg8[%c27, %c0_125, %c0_126] : memref<64x8x2xf32, #tpu.memory_space<vmem>>, vector<1x8x2xf32>
    %941 = vector.shape_cast %940 : vector<1x8x2xf32> to vector<8x2xf32>
    %942 = vector.shape_cast %939 : vector<8x2xf32> to vector<1x8x2xf32>
    tpu.vector_store %arg8[%c27, %c0_125, %c0_126], %942 {strides = array<i32>} : memref<64x8x2xf32, #tpu.memory_space<vmem>>, vector<1x8x2xf32>,
    %943 = vector.extract_strided_slice %18 {offsets = [0, 28], sizes = [8, 1], strides = [1, 1]} : vector<8x64xf32> to vector<8x1xf32>
    %944 = vector.broadcast %943 : vector<8x1xf32> to vector<8x32xf32>
    %945 = vector.broadcast %3 : vector<1x32xf32> to vector<8x32xf32>
    %946 = arith.mulf %944, %945 : vector<8x32xf32>
    %947 = vector.broadcast %4 : vector<1x32xf32> to vector<8x32xf32>
    %948 = arith.addf %946, %947 : vector<8x32xf32>
    %949 = vector.broadcast %931 : vector<8x1xf32> to vector<8x32xf32>
    %950 = vector.broadcast %1 : vector<1x32xf32> to vector<8x32xf32>
    %951 = arith.mulf %949, %950 : vector<8x32xf32>
    %952 = vector.broadcast %938 : vector<8x1xf32> to vector<8x32xf32>
    %953 = vector.broadcast %2 : vector<1x32xf32> to vector<8x32xf32>
    %954 = arith.mulf %952, %953 : vector<8x32xf32>
    %955 = arith.addf %951, %954 : vector<8x32xf32>
    %956 = arith.addf %955, %948 : vector<8x32xf32>
    %957 = math.tanh %956 : vector<8x32xf32>
    %958 = vector.broadcast %13 : vector<1x1xf32> to vector<8x1xf32>
    %959 = arith.addf %931, %958 : vector<8x1xf32>
    %960 = vector.broadcast %8 : vector<1x32xf32> to vector<8x32xf32>
    %961 = arith.mulf %957, %960 : vector<8x32xf32>
    %cst_127 = arith.constant dense<0.000000e+00> : vector<8xf32>
    %962 = vector.multi_reduction <add>, %961, %cst_127 [1] : vector<8x32xf32> to vector<8xf32>
    %963 = vector.shape_cast %962 : vector<8xf32> to vector<8x1xf32>
    %964 = arith.addf %959, %963 : vector<8x1xf32>
    %965 = vector.broadcast %14 : vector<1x1xf32> to vector<8x1xf32>
    %966 = arith.addf %938, %965 : vector<8x1xf32>
    %967 = vector.broadcast %9 : vector<1x32xf32> to vector<8x32xf32>
    %968 = arith.mulf %957, %967 : vector<8x32xf32>
    %cst_128 = arith.constant dense<0.000000e+00> : vector<8xf32>
    %969 = vector.multi_reduction <add>, %968, %cst_128 [1] : vector<8x32xf32> to vector<8xf32>
    %970 = vector.shape_cast %969 : vector<8xf32> to vector<8x1xf32>
    %971 = arith.addf %966, %970 : vector<8x1xf32>
    %972 = tpu.concatenate %964, %971 in 1 : vector<8x1xf32>, vector<8x1xf32> -> vector<8x2xf32>
    %c28 = arith.constant 28 : index
    %c0_129 = arith.constant 0 : index
    %c0_130 = arith.constant 0 : index
    %973 = vector.load %arg8[%c28, %c0_129, %c0_130] : memref<64x8x2xf32, #tpu.memory_space<vmem>>, vector<1x8x2xf32>
    %974 = vector.shape_cast %973 : vector<1x8x2xf32> to vector<8x2xf32>
    %975 = vector.shape_cast %972 : vector<8x2xf32> to vector<1x8x2xf32>
    tpu.vector_store %arg8[%c28, %c0_129, %c0_130], %975 {strides = array<i32>} : memref<64x8x2xf32, #tpu.memory_space<vmem>>, vector<1x8x2xf32>,
    %976 = vector.extract_strided_slice %18 {offsets = [0, 29], sizes = [8, 1], strides = [1, 1]} : vector<8x64xf32> to vector<8x1xf32>
    %977 = vector.broadcast %976 : vector<8x1xf32> to vector<8x32xf32>
    %978 = vector.broadcast %3 : vector<1x32xf32> to vector<8x32xf32>
    %979 = arith.mulf %977, %978 : vector<8x32xf32>
    %980 = vector.broadcast %4 : vector<1x32xf32> to vector<8x32xf32>
    %981 = arith.addf %979, %980 : vector<8x32xf32>
    %982 = vector.broadcast %964 : vector<8x1xf32> to vector<8x32xf32>
    %983 = vector.broadcast %1 : vector<1x32xf32> to vector<8x32xf32>
    %984 = arith.mulf %982, %983 : vector<8x32xf32>
    %985 = vector.broadcast %971 : vector<8x1xf32> to vector<8x32xf32>
    %986 = vector.broadcast %2 : vector<1x32xf32> to vector<8x32xf32>
    %987 = arith.mulf %985, %986 : vector<8x32xf32>
    %988 = arith.addf %984, %987 : vector<8x32xf32>
    %989 = arith.addf %988, %981 : vector<8x32xf32>
    %990 = math.tanh %989 : vector<8x32xf32>
    %991 = vector.broadcast %13 : vector<1x1xf32> to vector<8x1xf32>
    %992 = arith.addf %964, %991 : vector<8x1xf32>
    %993 = vector.broadcast %8 : vector<1x32xf32> to vector<8x32xf32>
    %994 = arith.mulf %990, %993 : vector<8x32xf32>
    %cst_131 = arith.constant dense<0.000000e+00> : vector<8xf32>
    %995 = vector.multi_reduction <add>, %994, %cst_131 [1] : vector<8x32xf32> to vector<8xf32>
    %996 = vector.shape_cast %995 : vector<8xf32> to vector<8x1xf32>
    %997 = arith.addf %992, %996 : vector<8x1xf32>
    %998 = vector.broadcast %14 : vector<1x1xf32> to vector<8x1xf32>
    %999 = arith.addf %971, %998 : vector<8x1xf32>
    %1000 = vector.broadcast %9 : vector<1x32xf32> to vector<8x32xf32>
    %1001 = arith.mulf %990, %1000 : vector<8x32xf32>
    %cst_132 = arith.constant dense<0.000000e+00> : vector<8xf32>
    %1002 = vector.multi_reduction <add>, %1001, %cst_132 [1] : vector<8x32xf32> to vector<8xf32>
    %1003 = vector.shape_cast %1002 : vector<8xf32> to vector<8x1xf32>
    %1004 = arith.addf %999, %1003 : vector<8x1xf32>
    %1005 = tpu.concatenate %997, %1004 in 1 : vector<8x1xf32>, vector<8x1xf32> -> vector<8x2xf32>
    %c29 = arith.constant 29 : index
    %c0_133 = arith.constant 0 : index
    %c0_134 = arith.constant 0 : index
    %1006 = vector.load %arg8[%c29, %c0_133, %c0_134] : memref<64x8x2xf32, #tpu.memory_space<vmem>>, vector<1x8x2xf32>
    %1007 = vector.shape_cast %1006 : vector<1x8x2xf32> to vector<8x2xf32>
    %1008 = vector.shape_cast %1005 : vector<8x2xf32> to vector<1x8x2xf32>
    tpu.vector_store %arg8[%c29, %c0_133, %c0_134], %1008 {strides = array<i32>} : memref<64x8x2xf32, #tpu.memory_space<vmem>>, vector<1x8x2xf32>,
    %1009 = vector.extract_strided_slice %18 {offsets = [0, 30], sizes = [8, 1], strides = [1, 1]} : vector<8x64xf32> to vector<8x1xf32>
    %1010 = vector.broadcast %1009 : vector<8x1xf32> to vector<8x32xf32>
    %1011 = vector.broadcast %3 : vector<1x32xf32> to vector<8x32xf32>
    %1012 = arith.mulf %1010, %1011 : vector<8x32xf32>
    %1013 = vector.broadcast %4 : vector<1x32xf32> to vector<8x32xf32>
    %1014 = arith.addf %1012, %1013 : vector<8x32xf32>
    %1015 = vector.broadcast %997 : vector<8x1xf32> to vector<8x32xf32>
    %1016 = vector.broadcast %1 : vector<1x32xf32> to vector<8x32xf32>
    %1017 = arith.mulf %1015, %1016 : vector<8x32xf32>
    %1018 = vector.broadcast %1004 : vector<8x1xf32> to vector<8x32xf32>
    %1019 = vector.broadcast %2 : vector<1x32xf32> to vector<8x32xf32>
    %1020 = arith.mulf %1018, %1019 : vector<8x32xf32>
    %1021 = arith.addf %1017, %1020 : vector<8x32xf32>
    %1022 = arith.addf %1021, %1014 : vector<8x32xf32>
    %1023 = math.tanh %1022 : vector<8x32xf32>
    %1024 = vector.broadcast %13 : vector<1x1xf32> to vector<8x1xf32>
    %1025 = arith.addf %997, %1024 : vector<8x1xf32>
    %1026 = vector.broadcast %8 : vector<1x32xf32> to vector<8x32xf32>
    %1027 = arith.mulf %1023, %1026 : vector<8x32xf32>
    %cst_135 = arith.constant dense<0.000000e+00> : vector<8xf32>
    %1028 = vector.multi_reduction <add>, %1027, %cst_135 [1] : vector<8x32xf32> to vector<8xf32>
    %1029 = vector.shape_cast %1028 : vector<8xf32> to vector<8x1xf32>
    %1030 = arith.addf %1025, %1029 : vector<8x1xf32>
    %1031 = vector.broadcast %14 : vector<1x1xf32> to vector<8x1xf32>
    %1032 = arith.addf %1004, %1031 : vector<8x1xf32>
    %1033 = vector.broadcast %9 : vector<1x32xf32> to vector<8x32xf32>
    %1034 = arith.mulf %1023, %1033 : vector<8x32xf32>
    %cst_136 = arith.constant dense<0.000000e+00> : vector<8xf32>
    %1035 = vector.multi_reduction <add>, %1034, %cst_136 [1] : vector<8x32xf32> to vector<8xf32>
    %1036 = vector.shape_cast %1035 : vector<8xf32> to vector<8x1xf32>
    %1037 = arith.addf %1032, %1036 : vector<8x1xf32>
    %1038 = tpu.concatenate %1030, %1037 in 1 : vector<8x1xf32>, vector<8x1xf32> -> vector<8x2xf32>
    %c30 = arith.constant 30 : index
    %c0_137 = arith.constant 0 : index
    %c0_138 = arith.constant 0 : index
    %1039 = vector.load %arg8[%c30, %c0_137, %c0_138] : memref<64x8x2xf32, #tpu.memory_space<vmem>>, vector<1x8x2xf32>
    %1040 = vector.shape_cast %1039 : vector<1x8x2xf32> to vector<8x2xf32>
    %1041 = vector.shape_cast %1038 : vector<8x2xf32> to vector<1x8x2xf32>
    tpu.vector_store %arg8[%c30, %c0_137, %c0_138], %1041 {strides = array<i32>} : memref<64x8x2xf32, #tpu.memory_space<vmem>>, vector<1x8x2xf32>,
    %1042 = vector.extract_strided_slice %18 {offsets = [0, 31], sizes = [8, 1], strides = [1, 1]} : vector<8x64xf32> to vector<8x1xf32>
    %1043 = vector.broadcast %1042 : vector<8x1xf32> to vector<8x32xf32>
    %1044 = vector.broadcast %3 : vector<1x32xf32> to vector<8x32xf32>
    %1045 = arith.mulf %1043, %1044 : vector<8x32xf32>
    %1046 = vector.broadcast %4 : vector<1x32xf32> to vector<8x32xf32>
    %1047 = arith.addf %1045, %1046 : vector<8x32xf32>
    %1048 = vector.broadcast %1030 : vector<8x1xf32> to vector<8x32xf32>
    %1049 = vector.broadcast %1 : vector<1x32xf32> to vector<8x32xf32>
    %1050 = arith.mulf %1048, %1049 : vector<8x32xf32>
    %1051 = vector.broadcast %1037 : vector<8x1xf32> to vector<8x32xf32>
    %1052 = vector.broadcast %2 : vector<1x32xf32> to vector<8x32xf32>
    %1053 = arith.mulf %1051, %1052 : vector<8x32xf32>
    %1054 = arith.addf %1050, %1053 : vector<8x32xf32>
    %1055 = arith.addf %1054, %1047 : vector<8x32xf32>
    %1056 = math.tanh %1055 : vector<8x32xf32>
    %1057 = vector.broadcast %13 : vector<1x1xf32> to vector<8x1xf32>
    %1058 = arith.addf %1030, %1057 : vector<8x1xf32>
    %1059 = vector.broadcast %8 : vector<1x32xf32> to vector<8x32xf32>
    %1060 = arith.mulf %1056, %1059 : vector<8x32xf32>
    %cst_139 = arith.constant dense<0.000000e+00> : vector<8xf32>
    %1061 = vector.multi_reduction <add>, %1060, %cst_139 [1] : vector<8x32xf32> to vector<8xf32>
    %1062 = vector.shape_cast %1061 : vector<8xf32> to vector<8x1xf32>
    %1063 = arith.addf %1058, %1062 : vector<8x1xf32>
    %1064 = vector.broadcast %14 : vector<1x1xf32> to vector<8x1xf32>
    %1065 = arith.addf %1037, %1064 : vector<8x1xf32>
    %1066 = vector.broadcast %9 : vector<1x32xf32> to vector<8x32xf32>
    %1067 = arith.mulf %1056, %1066 : vector<8x32xf32>
    %cst_140 = arith.constant dense<0.000000e+00> : vector<8xf32>
    %1068 = vector.multi_reduction <add>, %1067, %cst_140 [1] : vector<8x32xf32> to vector<8xf32>
    %1069 = vector.shape_cast %1068 : vector<8xf32> to vector<8x1xf32>
    %1070 = arith.addf %1065, %1069 : vector<8x1xf32>
    %1071 = tpu.concatenate %1063, %1070 in 1 : vector<8x1xf32>, vector<8x1xf32> -> vector<8x2xf32>
    %c31 = arith.constant 31 : index
    %c0_141 = arith.constant 0 : index
    %c0_142 = arith.constant 0 : index
    %1072 = vector.load %arg8[%c31, %c0_141, %c0_142] : memref<64x8x2xf32, #tpu.memory_space<vmem>>, vector<1x8x2xf32>
    %1073 = vector.shape_cast %1072 : vector<1x8x2xf32> to vector<8x2xf32>
    %1074 = vector.shape_cast %1071 : vector<8x2xf32> to vector<1x8x2xf32>
    tpu.vector_store %arg8[%c31, %c0_141, %c0_142], %1074 {strides = array<i32>} : memref<64x8x2xf32, #tpu.memory_space<vmem>>, vector<1x8x2xf32>,
    %1075 = vector.extract_strided_slice %18 {offsets = [0, 32], sizes = [8, 1], strides = [1, 1]} : vector<8x64xf32> to vector<8x1xf32>
    %1076 = vector.broadcast %1075 : vector<8x1xf32> to vector<8x32xf32>
    %1077 = vector.broadcast %3 : vector<1x32xf32> to vector<8x32xf32>
    %1078 = arith.mulf %1076, %1077 : vector<8x32xf32>
    %1079 = vector.broadcast %4 : vector<1x32xf32> to vector<8x32xf32>
    %1080 = arith.addf %1078, %1079 : vector<8x32xf32>
    %1081 = vector.broadcast %1063 : vector<8x1xf32> to vector<8x32xf32>
    %1082 = vector.broadcast %1 : vector<1x32xf32> to vector<8x32xf32>
    %1083 = arith.mulf %1081, %1082 : vector<8x32xf32>
    %1084 = vector.broadcast %1070 : vector<8x1xf32> to vector<8x32xf32>
    %1085 = vector.broadcast %2 : vector<1x32xf32> to vector<8x32xf32>
    %1086 = arith.mulf %1084, %1085 : vector<8x32xf32>
    %1087 = arith.addf %1083, %1086 : vector<8x32xf32>
    %1088 = arith.addf %1087, %1080 : vector<8x32xf32>
    %1089 = math.tanh %1088 : vector<8x32xf32>
    %1090 = vector.broadcast %13 : vector<1x1xf32> to vector<8x1xf32>
    %1091 = arith.addf %1063, %1090 : vector<8x1xf32>
    %1092 = vector.broadcast %8 : vector<1x32xf32> to vector<8x32xf32>
    %1093 = arith.mulf %1089, %1092 : vector<8x32xf32>
    %cst_143 = arith.constant dense<0.000000e+00> : vector<8xf32>
    %1094 = vector.multi_reduction <add>, %1093, %cst_143 [1] : vector<8x32xf32> to vector<8xf32>
    %1095 = vector.shape_cast %1094 : vector<8xf32> to vector<8x1xf32>
    %1096 = arith.addf %1091, %1095 : vector<8x1xf32>
    %1097 = vector.broadcast %14 : vector<1x1xf32> to vector<8x1xf32>
    %1098 = arith.addf %1070, %1097 : vector<8x1xf32>
    %1099 = vector.broadcast %9 : vector<1x32xf32> to vector<8x32xf32>
    %1100 = arith.mulf %1089, %1099 : vector<8x32xf32>
    %cst_144 = arith.constant dense<0.000000e+00> : vector<8xf32>
    %1101 = vector.multi_reduction <add>, %1100, %cst_144 [1] : vector<8x32xf32> to vector<8xf32>
    %1102 = vector.shape_cast %1101 : vector<8xf32> to vector<8x1xf32>
    %1103 = arith.addf %1098, %1102 : vector<8x1xf32>
    %1104 = tpu.concatenate %1096, %1103 in 1 : vector<8x1xf32>, vector<8x1xf32> -> vector<8x2xf32>
    %c32 = arith.constant 32 : index
    %c0_145 = arith.constant 0 : index
    %c0_146 = arith.constant 0 : index
    %1105 = vector.load %arg8[%c32, %c0_145, %c0_146] : memref<64x8x2xf32, #tpu.memory_space<vmem>>, vector<1x8x2xf32>
    %1106 = vector.shape_cast %1105 : vector<1x8x2xf32> to vector<8x2xf32>
    %1107 = vector.shape_cast %1104 : vector<8x2xf32> to vector<1x8x2xf32>
    tpu.vector_store %arg8[%c32, %c0_145, %c0_146], %1107 {strides = array<i32>} : memref<64x8x2xf32, #tpu.memory_space<vmem>>, vector<1x8x2xf32>,
    %1108 = vector.extract_strided_slice %18 {offsets = [0, 33], sizes = [8, 1], strides = [1, 1]} : vector<8x64xf32> to vector<8x1xf32>
    %1109 = vector.broadcast %1108 : vector<8x1xf32> to vector<8x32xf32>
    %1110 = vector.broadcast %3 : vector<1x32xf32> to vector<8x32xf32>
    %1111 = arith.mulf %1109, %1110 : vector<8x32xf32>
    %1112 = vector.broadcast %4 : vector<1x32xf32> to vector<8x32xf32>
    %1113 = arith.addf %1111, %1112 : vector<8x32xf32>
    %1114 = vector.broadcast %1096 : vector<8x1xf32> to vector<8x32xf32>
    %1115 = vector.broadcast %1 : vector<1x32xf32> to vector<8x32xf32>
    %1116 = arith.mulf %1114, %1115 : vector<8x32xf32>
    %1117 = vector.broadcast %1103 : vector<8x1xf32> to vector<8x32xf32>
    %1118 = vector.broadcast %2 : vector<1x32xf32> to vector<8x32xf32>
    %1119 = arith.mulf %1117, %1118 : vector<8x32xf32>
    %1120 = arith.addf %1116, %1119 : vector<8x32xf32>
    %1121 = arith.addf %1120, %1113 : vector<8x32xf32>
    %1122 = math.tanh %1121 : vector<8x32xf32>
    %1123 = vector.broadcast %13 : vector<1x1xf32> to vector<8x1xf32>
    %1124 = arith.addf %1096, %1123 : vector<8x1xf32>
    %1125 = vector.broadcast %8 : vector<1x32xf32> to vector<8x32xf32>
    %1126 = arith.mulf %1122, %1125 : vector<8x32xf32>
    %cst_147 = arith.constant dense<0.000000e+00> : vector<8xf32>
    %1127 = vector.multi_reduction <add>, %1126, %cst_147 [1] : vector<8x32xf32> to vector<8xf32>
    %1128 = vector.shape_cast %1127 : vector<8xf32> to vector<8x1xf32>
    %1129 = arith.addf %1124, %1128 : vector<8x1xf32>
    %1130 = vector.broadcast %14 : vector<1x1xf32> to vector<8x1xf32>
    %1131 = arith.addf %1103, %1130 : vector<8x1xf32>
    %1132 = vector.broadcast %9 : vector<1x32xf32> to vector<8x32xf32>
    %1133 = arith.mulf %1122, %1132 : vector<8x32xf32>
    %cst_148 = arith.constant dense<0.000000e+00> : vector<8xf32>
    %1134 = vector.multi_reduction <add>, %1133, %cst_148 [1] : vector<8x32xf32> to vector<8xf32>
    %1135 = vector.shape_cast %1134 : vector<8xf32> to vector<8x1xf32>
    %1136 = arith.addf %1131, %1135 : vector<8x1xf32>
    %1137 = tpu.concatenate %1129, %1136 in 1 : vector<8x1xf32>, vector<8x1xf32> -> vector<8x2xf32>
    %c33 = arith.constant 33 : index
    %c0_149 = arith.constant 0 : index
    %c0_150 = arith.constant 0 : index
    %1138 = vector.load %arg8[%c33, %c0_149, %c0_150] : memref<64x8x2xf32, #tpu.memory_space<vmem>>, vector<1x8x2xf32>
    %1139 = vector.shape_cast %1138 : vector<1x8x2xf32> to vector<8x2xf32>
    %1140 = vector.shape_cast %1137 : vector<8x2xf32> to vector<1x8x2xf32>
    tpu.vector_store %arg8[%c33, %c0_149, %c0_150], %1140 {strides = array<i32>} : memref<64x8x2xf32, #tpu.memory_space<vmem>>, vector<1x8x2xf32>,
    %1141 = vector.extract_strided_slice %18 {offsets = [0, 34], sizes = [8, 1], strides = [1, 1]} : vector<8x64xf32> to vector<8x1xf32>
    %1142 = vector.broadcast %1141 : vector<8x1xf32> to vector<8x32xf32>
    %1143 = vector.broadcast %3 : vector<1x32xf32> to vector<8x32xf32>
    %1144 = arith.mulf %1142, %1143 : vector<8x32xf32>
    %1145 = vector.broadcast %4 : vector<1x32xf32> to vector<8x32xf32>
    %1146 = arith.addf %1144, %1145 : vector<8x32xf32>
    %1147 = vector.broadcast %1129 : vector<8x1xf32> to vector<8x32xf32>
    %1148 = vector.broadcast %1 : vector<1x32xf32> to vector<8x32xf32>
    %1149 = arith.mulf %1147, %1148 : vector<8x32xf32>
    %1150 = vector.broadcast %1136 : vector<8x1xf32> to vector<8x32xf32>
    %1151 = vector.broadcast %2 : vector<1x32xf32> to vector<8x32xf32>
    %1152 = arith.mulf %1150, %1151 : vector<8x32xf32>
    %1153 = arith.addf %1149, %1152 : vector<8x32xf32>
    %1154 = arith.addf %1153, %1146 : vector<8x32xf32>
    %1155 = math.tanh %1154 : vector<8x32xf32>
    %1156 = vector.broadcast %13 : vector<1x1xf32> to vector<8x1xf32>
    %1157 = arith.addf %1129, %1156 : vector<8x1xf32>
    %1158 = vector.broadcast %8 : vector<1x32xf32> to vector<8x32xf32>
    %1159 = arith.mulf %1155, %1158 : vector<8x32xf32>
    %cst_151 = arith.constant dense<0.000000e+00> : vector<8xf32>
    %1160 = vector.multi_reduction <add>, %1159, %cst_151 [1] : vector<8x32xf32> to vector<8xf32>
    %1161 = vector.shape_cast %1160 : vector<8xf32> to vector<8x1xf32>
    %1162 = arith.addf %1157, %1161 : vector<8x1xf32>
    %1163 = vector.broadcast %14 : vector<1x1xf32> to vector<8x1xf32>
    %1164 = arith.addf %1136, %1163 : vector<8x1xf32>
    %1165 = vector.broadcast %9 : vector<1x32xf32> to vector<8x32xf32>
    %1166 = arith.mulf %1155, %1165 : vector<8x32xf32>
    %cst_152 = arith.constant dense<0.000000e+00> : vector<8xf32>
    %1167 = vector.multi_reduction <add>, %1166, %cst_152 [1] : vector<8x32xf32> to vector<8xf32>
    %1168 = vector.shape_cast %1167 : vector<8xf32> to vector<8x1xf32>
    %1169 = arith.addf %1164, %1168 : vector<8x1xf32>
    %1170 = tpu.concatenate %1162, %1169 in 1 : vector<8x1xf32>, vector<8x1xf32> -> vector<8x2xf32>
    %c34 = arith.constant 34 : index
    %c0_153 = arith.constant 0 : index
    %c0_154 = arith.constant 0 : index
    %1171 = vector.load %arg8[%c34, %c0_153, %c0_154] : memref<64x8x2xf32, #tpu.memory_space<vmem>>, vector<1x8x2xf32>
    %1172 = vector.shape_cast %1171 : vector<1x8x2xf32> to vector<8x2xf32>
    %1173 = vector.shape_cast %1170 : vector<8x2xf32> to vector<1x8x2xf32>
    tpu.vector_store %arg8[%c34, %c0_153, %c0_154], %1173 {strides = array<i32>} : memref<64x8x2xf32, #tpu.memory_space<vmem>>, vector<1x8x2xf32>,
    %1174 = vector.extract_strided_slice %18 {offsets = [0, 35], sizes = [8, 1], strides = [1, 1]} : vector<8x64xf32> to vector<8x1xf32>
    %1175 = vector.broadcast %1174 : vector<8x1xf32> to vector<8x32xf32>
    %1176 = vector.broadcast %3 : vector<1x32xf32> to vector<8x32xf32>
    %1177 = arith.mulf %1175, %1176 : vector<8x32xf32>
    %1178 = vector.broadcast %4 : vector<1x32xf32> to vector<8x32xf32>
    %1179 = arith.addf %1177, %1178 : vector<8x32xf32>
    %1180 = vector.broadcast %1162 : vector<8x1xf32> to vector<8x32xf32>
    %1181 = vector.broadcast %1 : vector<1x32xf32> to vector<8x32xf32>
    %1182 = arith.mulf %1180, %1181 : vector<8x32xf32>
    %1183 = vector.broadcast %1169 : vector<8x1xf32> to vector<8x32xf32>
    %1184 = vector.broadcast %2 : vector<1x32xf32> to vector<8x32xf32>
    %1185 = arith.mulf %1183, %1184 : vector<8x32xf32>
    %1186 = arith.addf %1182, %1185 : vector<8x32xf32>
    %1187 = arith.addf %1186, %1179 : vector<8x32xf32>
    %1188 = math.tanh %1187 : vector<8x32xf32>
    %1189 = vector.broadcast %13 : vector<1x1xf32> to vector<8x1xf32>
    %1190 = arith.addf %1162, %1189 : vector<8x1xf32>
    %1191 = vector.broadcast %8 : vector<1x32xf32> to vector<8x32xf32>
    %1192 = arith.mulf %1188, %1191 : vector<8x32xf32>
    %cst_155 = arith.constant dense<0.000000e+00> : vector<8xf32>
    %1193 = vector.multi_reduction <add>, %1192, %cst_155 [1] : vector<8x32xf32> to vector<8xf32>
    %1194 = vector.shape_cast %1193 : vector<8xf32> to vector<8x1xf32>
    %1195 = arith.addf %1190, %1194 : vector<8x1xf32>
    %1196 = vector.broadcast %14 : vector<1x1xf32> to vector<8x1xf32>
    %1197 = arith.addf %1169, %1196 : vector<8x1xf32>
    %1198 = vector.broadcast %9 : vector<1x32xf32> to vector<8x32xf32>
    %1199 = arith.mulf %1188, %1198 : vector<8x32xf32>
    %cst_156 = arith.constant dense<0.000000e+00> : vector<8xf32>
    %1200 = vector.multi_reduction <add>, %1199, %cst_156 [1] : vector<8x32xf32> to vector<8xf32>
    %1201 = vector.shape_cast %1200 : vector<8xf32> to vector<8x1xf32>
    %1202 = arith.addf %1197, %1201 : vector<8x1xf32>
    %1203 = tpu.concatenate %1195, %1202 in 1 : vector<8x1xf32>, vector<8x1xf32> -> vector<8x2xf32>
    %c35 = arith.constant 35 : index
    %c0_157 = arith.constant 0 : index
    %c0_158 = arith.constant 0 : index
    %1204 = vector.load %arg8[%c35, %c0_157, %c0_158] : memref<64x8x2xf32, #tpu.memory_space<vmem>>, vector<1x8x2xf32>
    %1205 = vector.shape_cast %1204 : vector<1x8x2xf32> to vector<8x2xf32>
    %1206 = vector.shape_cast %1203 : vector<8x2xf32> to vector<1x8x2xf32>
    tpu.vector_store %arg8[%c35, %c0_157, %c0_158], %1206 {strides = array<i32>} : memref<64x8x2xf32, #tpu.memory_space<vmem>>, vector<1x8x2xf32>,
    %1207 = vector.extract_strided_slice %18 {offsets = [0, 36], sizes = [8, 1], strides = [1, 1]} : vector<8x64xf32> to vector<8x1xf32>
    %1208 = vector.broadcast %1207 : vector<8x1xf32> to vector<8x32xf32>
    %1209 = vector.broadcast %3 : vector<1x32xf32> to vector<8x32xf32>
    %1210 = arith.mulf %1208, %1209 : vector<8x32xf32>
    %1211 = vector.broadcast %4 : vector<1x32xf32> to vector<8x32xf32>
    %1212 = arith.addf %1210, %1211 : vector<8x32xf32>
    %1213 = vector.broadcast %1195 : vector<8x1xf32> to vector<8x32xf32>
    %1214 = vector.broadcast %1 : vector<1x32xf32> to vector<8x32xf32>
    %1215 = arith.mulf %1213, %1214 : vector<8x32xf32>
    %1216 = vector.broadcast %1202 : vector<8x1xf32> to vector<8x32xf32>
    %1217 = vector.broadcast %2 : vector<1x32xf32> to vector<8x32xf32>
    %1218 = arith.mulf %1216, %1217 : vector<8x32xf32>
    %1219 = arith.addf %1215, %1218 : vector<8x32xf32>
    %1220 = arith.addf %1219, %1212 : vector<8x32xf32>
    %1221 = math.tanh %1220 : vector<8x32xf32>
    %1222 = vector.broadcast %13 : vector<1x1xf32> to vector<8x1xf32>
    %1223 = arith.addf %1195, %1222 : vector<8x1xf32>
    %1224 = vector.broadcast %8 : vector<1x32xf32> to vector<8x32xf32>
    %1225 = arith.mulf %1221, %1224 : vector<8x32xf32>
    %cst_159 = arith.constant dense<0.000000e+00> : vector<8xf32>
    %1226 = vector.multi_reduction <add>, %1225, %cst_159 [1] : vector<8x32xf32> to vector<8xf32>
    %1227 = vector.shape_cast %1226 : vector<8xf32> to vector<8x1xf32>
    %1228 = arith.addf %1223, %1227 : vector<8x1xf32>
    %1229 = vector.broadcast %14 : vector<1x1xf32> to vector<8x1xf32>
    %1230 = arith.addf %1202, %1229 : vector<8x1xf32>
    %1231 = vector.broadcast %9 : vector<1x32xf32> to vector<8x32xf32>
    %1232 = arith.mulf %1221, %1231 : vector<8x32xf32>
    %cst_160 = arith.constant dense<0.000000e+00> : vector<8xf32>
    %1233 = vector.multi_reduction <add>, %1232, %cst_160 [1] : vector<8x32xf32> to vector<8xf32>
    %1234 = vector.shape_cast %1233 : vector<8xf32> to vector<8x1xf32>
    %1235 = arith.addf %1230, %1234 : vector<8x1xf32>
    %1236 = tpu.concatenate %1228, %1235 in 1 : vector<8x1xf32>, vector<8x1xf32> -> vector<8x2xf32>
    %c36 = arith.constant 36 : index
    %c0_161 = arith.constant 0 : index
    %c0_162 = arith.constant 0 : index
    %1237 = vector.load %arg8[%c36, %c0_161, %c0_162] : memref<64x8x2xf32, #tpu.memory_space<vmem>>, vector<1x8x2xf32>
    %1238 = vector.shape_cast %1237 : vector<1x8x2xf32> to vector<8x2xf32>
    %1239 = vector.shape_cast %1236 : vector<8x2xf32> to vector<1x8x2xf32>
    tpu.vector_store %arg8[%c36, %c0_161, %c0_162], %1239 {strides = array<i32>} : memref<64x8x2xf32, #tpu.memory_space<vmem>>, vector<1x8x2xf32>,
    %1240 = vector.extract_strided_slice %18 {offsets = [0, 37], sizes = [8, 1], strides = [1, 1]} : vector<8x64xf32> to vector<8x1xf32>
    %1241 = vector.broadcast %1240 : vector<8x1xf32> to vector<8x32xf32>
    %1242 = vector.broadcast %3 : vector<1x32xf32> to vector<8x32xf32>
    %1243 = arith.mulf %1241, %1242 : vector<8x32xf32>
    %1244 = vector.broadcast %4 : vector<1x32xf32> to vector<8x32xf32>
    %1245 = arith.addf %1243, %1244 : vector<8x32xf32>
    %1246 = vector.broadcast %1228 : vector<8x1xf32> to vector<8x32xf32>
    %1247 = vector.broadcast %1 : vector<1x32xf32> to vector<8x32xf32>
    %1248 = arith.mulf %1246, %1247 : vector<8x32xf32>
    %1249 = vector.broadcast %1235 : vector<8x1xf32> to vector<8x32xf32>
    %1250 = vector.broadcast %2 : vector<1x32xf32> to vector<8x32xf32>
    %1251 = arith.mulf %1249, %1250 : vector<8x32xf32>
    %1252 = arith.addf %1248, %1251 : vector<8x32xf32>
    %1253 = arith.addf %1252, %1245 : vector<8x32xf32>
    %1254 = math.tanh %1253 : vector<8x32xf32>
    %1255 = vector.broadcast %13 : vector<1x1xf32> to vector<8x1xf32>
    %1256 = arith.addf %1228, %1255 : vector<8x1xf32>
    %1257 = vector.broadcast %8 : vector<1x32xf32> to vector<8x32xf32>
    %1258 = arith.mulf %1254, %1257 : vector<8x32xf32>
    %cst_163 = arith.constant dense<0.000000e+00> : vector<8xf32>
    %1259 = vector.multi_reduction <add>, %1258, %cst_163 [1] : vector<8x32xf32> to vector<8xf32>
    %1260 = vector.shape_cast %1259 : vector<8xf32> to vector<8x1xf32>
    %1261 = arith.addf %1256, %1260 : vector<8x1xf32>
    %1262 = vector.broadcast %14 : vector<1x1xf32> to vector<8x1xf32>
    %1263 = arith.addf %1235, %1262 : vector<8x1xf32>
    %1264 = vector.broadcast %9 : vector<1x32xf32> to vector<8x32xf32>
    %1265 = arith.mulf %1254, %1264 : vector<8x32xf32>
    %cst_164 = arith.constant dense<0.000000e+00> : vector<8xf32>
    %1266 = vector.multi_reduction <add>, %1265, %cst_164 [1] : vector<8x32xf32> to vector<8xf32>
    %1267 = vector.shape_cast %1266 : vector<8xf32> to vector<8x1xf32>
    %1268 = arith.addf %1263, %1267 : vector<8x1xf32>
    %1269 = tpu.concatenate %1261, %1268 in 1 : vector<8x1xf32>, vector<8x1xf32> -> vector<8x2xf32>
    %c37 = arith.constant 37 : index
    %c0_165 = arith.constant 0 : index
    %c0_166 = arith.constant 0 : index
    %1270 = vector.load %arg8[%c37, %c0_165, %c0_166] : memref<64x8x2xf32, #tpu.memory_space<vmem>>, vector<1x8x2xf32>
    %1271 = vector.shape_cast %1270 : vector<1x8x2xf32> to vector<8x2xf32>
    %1272 = vector.shape_cast %1269 : vector<8x2xf32> to vector<1x8x2xf32>
    tpu.vector_store %arg8[%c37, %c0_165, %c0_166], %1272 {strides = array<i32>} : memref<64x8x2xf32, #tpu.memory_space<vmem>>, vector<1x8x2xf32>,
    %1273 = vector.extract_strided_slice %18 {offsets = [0, 38], sizes = [8, 1], strides = [1, 1]} : vector<8x64xf32> to vector<8x1xf32>
    %1274 = vector.broadcast %1273 : vector<8x1xf32> to vector<8x32xf32>
    %1275 = vector.broadcast %3 : vector<1x32xf32> to vector<8x32xf32>
    %1276 = arith.mulf %1274, %1275 : vector<8x32xf32>
    %1277 = vector.broadcast %4 : vector<1x32xf32> to vector<8x32xf32>
    %1278 = arith.addf %1276, %1277 : vector<8x32xf32>
    %1279 = vector.broadcast %1261 : vector<8x1xf32> to vector<8x32xf32>
    %1280 = vector.broadcast %1 : vector<1x32xf32> to vector<8x32xf32>
    %1281 = arith.mulf %1279, %1280 : vector<8x32xf32>
    %1282 = vector.broadcast %1268 : vector<8x1xf32> to vector<8x32xf32>
    %1283 = vector.broadcast %2 : vector<1x32xf32> to vector<8x32xf32>
    %1284 = arith.mulf %1282, %1283 : vector<8x32xf32>
    %1285 = arith.addf %1281, %1284 : vector<8x32xf32>
    %1286 = arith.addf %1285, %1278 : vector<8x32xf32>
    %1287 = math.tanh %1286 : vector<8x32xf32>
    %1288 = vector.broadcast %13 : vector<1x1xf32> to vector<8x1xf32>
    %1289 = arith.addf %1261, %1288 : vector<8x1xf32>
    %1290 = vector.broadcast %8 : vector<1x32xf32> to vector<8x32xf32>
    %1291 = arith.mulf %1287, %1290 : vector<8x32xf32>
    %cst_167 = arith.constant dense<0.000000e+00> : vector<8xf32>
    %1292 = vector.multi_reduction <add>, %1291, %cst_167 [1] : vector<8x32xf32> to vector<8xf32>
    %1293 = vector.shape_cast %1292 : vector<8xf32> to vector<8x1xf32>
    %1294 = arith.addf %1289, %1293 : vector<8x1xf32>
    %1295 = vector.broadcast %14 : vector<1x1xf32> to vector<8x1xf32>
    %1296 = arith.addf %1268, %1295 : vector<8x1xf32>
    %1297 = vector.broadcast %9 : vector<1x32xf32> to vector<8x32xf32>
    %1298 = arith.mulf %1287, %1297 : vector<8x32xf32>
    %cst_168 = arith.constant dense<0.000000e+00> : vector<8xf32>
    %1299 = vector.multi_reduction <add>, %1298, %cst_168 [1] : vector<8x32xf32> to vector<8xf32>
    %1300 = vector.shape_cast %1299 : vector<8xf32> to vector<8x1xf32>
    %1301 = arith.addf %1296, %1300 : vector<8x1xf32>
    %1302 = tpu.concatenate %1294, %1301 in 1 : vector<8x1xf32>, vector<8x1xf32> -> vector<8x2xf32>
    %c38 = arith.constant 38 : index
    %c0_169 = arith.constant 0 : index
    %c0_170 = arith.constant 0 : index
    %1303 = vector.load %arg8[%c38, %c0_169, %c0_170] : memref<64x8x2xf32, #tpu.memory_space<vmem>>, vector<1x8x2xf32>
    %1304 = vector.shape_cast %1303 : vector<1x8x2xf32> to vector<8x2xf32>
    %1305 = vector.shape_cast %1302 : vector<8x2xf32> to vector<1x8x2xf32>
    tpu.vector_store %arg8[%c38, %c0_169, %c0_170], %1305 {strides = array<i32>} : memref<64x8x2xf32, #tpu.memory_space<vmem>>, vector<1x8x2xf32>,
    %1306 = vector.extract_strided_slice %18 {offsets = [0, 39], sizes = [8, 1], strides = [1, 1]} : vector<8x64xf32> to vector<8x1xf32>
    %1307 = vector.broadcast %1306 : vector<8x1xf32> to vector<8x32xf32>
    %1308 = vector.broadcast %3 : vector<1x32xf32> to vector<8x32xf32>
    %1309 = arith.mulf %1307, %1308 : vector<8x32xf32>
    %1310 = vector.broadcast %4 : vector<1x32xf32> to vector<8x32xf32>
    %1311 = arith.addf %1309, %1310 : vector<8x32xf32>
    %1312 = vector.broadcast %1294 : vector<8x1xf32> to vector<8x32xf32>
    %1313 = vector.broadcast %1 : vector<1x32xf32> to vector<8x32xf32>
    %1314 = arith.mulf %1312, %1313 : vector<8x32xf32>
    %1315 = vector.broadcast %1301 : vector<8x1xf32> to vector<8x32xf32>
    %1316 = vector.broadcast %2 : vector<1x32xf32> to vector<8x32xf32>
    %1317 = arith.mulf %1315, %1316 : vector<8x32xf32>
    %1318 = arith.addf %1314, %1317 : vector<8x32xf32>
    %1319 = arith.addf %1318, %1311 : vector<8x32xf32>
    %1320 = math.tanh %1319 : vector<8x32xf32>
    %1321 = vector.broadcast %13 : vector<1x1xf32> to vector<8x1xf32>
    %1322 = arith.addf %1294, %1321 : vector<8x1xf32>
    %1323 = vector.broadcast %8 : vector<1x32xf32> to vector<8x32xf32>
    %1324 = arith.mulf %1320, %1323 : vector<8x32xf32>
    %cst_171 = arith.constant dense<0.000000e+00> : vector<8xf32>
    %1325 = vector.multi_reduction <add>, %1324, %cst_171 [1] : vector<8x32xf32> to vector<8xf32>
    %1326 = vector.shape_cast %1325 : vector<8xf32> to vector<8x1xf32>
    %1327 = arith.addf %1322, %1326 : vector<8x1xf32>
    %1328 = vector.broadcast %14 : vector<1x1xf32> to vector<8x1xf32>
    %1329 = arith.addf %1301, %1328 : vector<8x1xf32>
    %1330 = vector.broadcast %9 : vector<1x32xf32> to vector<8x32xf32>
    %1331 = arith.mulf %1320, %1330 : vector<8x32xf32>
    %cst_172 = arith.constant dense<0.000000e+00> : vector<8xf32>
    %1332 = vector.multi_reduction <add>, %1331, %cst_172 [1] : vector<8x32xf32> to vector<8xf32>
    %1333 = vector.shape_cast %1332 : vector<8xf32> to vector<8x1xf32>
    %1334 = arith.addf %1329, %1333 : vector<8x1xf32>
    %1335 = tpu.concatenate %1327, %1334 in 1 : vector<8x1xf32>, vector<8x1xf32> -> vector<8x2xf32>
    %c39 = arith.constant 39 : index
    %c0_173 = arith.constant 0 : index
    %c0_174 = arith.constant 0 : index
    %1336 = vector.load %arg8[%c39, %c0_173, %c0_174] : memref<64x8x2xf32, #tpu.memory_space<vmem>>, vector<1x8x2xf32>
    %1337 = vector.shape_cast %1336 : vector<1x8x2xf32> to vector<8x2xf32>
    %1338 = vector.shape_cast %1335 : vector<8x2xf32> to vector<1x8x2xf32>
    tpu.vector_store %arg8[%c39, %c0_173, %c0_174], %1338 {strides = array<i32>} : memref<64x8x2xf32, #tpu.memory_space<vmem>>, vector<1x8x2xf32>,
    %1339 = vector.extract_strided_slice %18 {offsets = [0, 40], sizes = [8, 1], strides = [1, 1]} : vector<8x64xf32> to vector<8x1xf32>
    %1340 = vector.broadcast %1339 : vector<8x1xf32> to vector<8x32xf32>
    %1341 = vector.broadcast %3 : vector<1x32xf32> to vector<8x32xf32>
    %1342 = arith.mulf %1340, %1341 : vector<8x32xf32>
    %1343 = vector.broadcast %4 : vector<1x32xf32> to vector<8x32xf32>
    %1344 = arith.addf %1342, %1343 : vector<8x32xf32>
    %1345 = vector.broadcast %1327 : vector<8x1xf32> to vector<8x32xf32>
    %1346 = vector.broadcast %1 : vector<1x32xf32> to vector<8x32xf32>
    %1347 = arith.mulf %1345, %1346 : vector<8x32xf32>
    %1348 = vector.broadcast %1334 : vector<8x1xf32> to vector<8x32xf32>
    %1349 = vector.broadcast %2 : vector<1x32xf32> to vector<8x32xf32>
    %1350 = arith.mulf %1348, %1349 : vector<8x32xf32>
    %1351 = arith.addf %1347, %1350 : vector<8x32xf32>
    %1352 = arith.addf %1351, %1344 : vector<8x32xf32>
    %1353 = math.tanh %1352 : vector<8x32xf32>
    %1354 = vector.broadcast %13 : vector<1x1xf32> to vector<8x1xf32>
    %1355 = arith.addf %1327, %1354 : vector<8x1xf32>
    %1356 = vector.broadcast %8 : vector<1x32xf32> to vector<8x32xf32>
    %1357 = arith.mulf %1353, %1356 : vector<8x32xf32>
    %cst_175 = arith.constant dense<0.000000e+00> : vector<8xf32>
    %1358 = vector.multi_reduction <add>, %1357, %cst_175 [1] : vector<8x32xf32> to vector<8xf32>
    %1359 = vector.shape_cast %1358 : vector<8xf32> to vector<8x1xf32>
    %1360 = arith.addf %1355, %1359 : vector<8x1xf32>
    %1361 = vector.broadcast %14 : vector<1x1xf32> to vector<8x1xf32>
    %1362 = arith.addf %1334, %1361 : vector<8x1xf32>
    %1363 = vector.broadcast %9 : vector<1x32xf32> to vector<8x32xf32>
    %1364 = arith.mulf %1353, %1363 : vector<8x32xf32>
    %cst_176 = arith.constant dense<0.000000e+00> : vector<8xf32>
    %1365 = vector.multi_reduction <add>, %1364, %cst_176 [1] : vector<8x32xf32> to vector<8xf32>
    %1366 = vector.shape_cast %1365 : vector<8xf32> to vector<8x1xf32>
    %1367 = arith.addf %1362, %1366 : vector<8x1xf32>
    %1368 = tpu.concatenate %1360, %1367 in 1 : vector<8x1xf32>, vector<8x1xf32> -> vector<8x2xf32>
    %c40 = arith.constant 40 : index
    %c0_177 = arith.constant 0 : index
    %c0_178 = arith.constant 0 : index
    %1369 = vector.load %arg8[%c40, %c0_177, %c0_178] : memref<64x8x2xf32, #tpu.memory_space<vmem>>, vector<1x8x2xf32>
    %1370 = vector.shape_cast %1369 : vector<1x8x2xf32> to vector<8x2xf32>
    %1371 = vector.shape_cast %1368 : vector<8x2xf32> to vector<1x8x2xf32>
    tpu.vector_store %arg8[%c40, %c0_177, %c0_178], %1371 {strides = array<i32>} : memref<64x8x2xf32, #tpu.memory_space<vmem>>, vector<1x8x2xf32>,
    %1372 = vector.extract_strided_slice %18 {offsets = [0, 41], sizes = [8, 1], strides = [1, 1]} : vector<8x64xf32> to vector<8x1xf32>
    %1373 = vector.broadcast %1372 : vector<8x1xf32> to vector<8x32xf32>
    %1374 = vector.broadcast %3 : vector<1x32xf32> to vector<8x32xf32>
    %1375 = arith.mulf %1373, %1374 : vector<8x32xf32>
    %1376 = vector.broadcast %4 : vector<1x32xf32> to vector<8x32xf32>
    %1377 = arith.addf %1375, %1376 : vector<8x32xf32>
    %1378 = vector.broadcast %1360 : vector<8x1xf32> to vector<8x32xf32>
    %1379 = vector.broadcast %1 : vector<1x32xf32> to vector<8x32xf32>
    %1380 = arith.mulf %1378, %1379 : vector<8x32xf32>
    %1381 = vector.broadcast %1367 : vector<8x1xf32> to vector<8x32xf32>
    %1382 = vector.broadcast %2 : vector<1x32xf32> to vector<8x32xf32>
    %1383 = arith.mulf %1381, %1382 : vector<8x32xf32>
    %1384 = arith.addf %1380, %1383 : vector<8x32xf32>
    %1385 = arith.addf %1384, %1377 : vector<8x32xf32>
    %1386 = math.tanh %1385 : vector<8x32xf32>
    %1387 = vector.broadcast %13 : vector<1x1xf32> to vector<8x1xf32>
    %1388 = arith.addf %1360, %1387 : vector<8x1xf32>
    %1389 = vector.broadcast %8 : vector<1x32xf32> to vector<8x32xf32>
    %1390 = arith.mulf %1386, %1389 : vector<8x32xf32>
    %cst_179 = arith.constant dense<0.000000e+00> : vector<8xf32>
    %1391 = vector.multi_reduction <add>, %1390, %cst_179 [1] : vector<8x32xf32> to vector<8xf32>
    %1392 = vector.shape_cast %1391 : vector<8xf32> to vector<8x1xf32>
    %1393 = arith.addf %1388, %1392 : vector<8x1xf32>
    %1394 = vector.broadcast %14 : vector<1x1xf32> to vector<8x1xf32>
    %1395 = arith.addf %1367, %1394 : vector<8x1xf32>
    %1396 = vector.broadcast %9 : vector<1x32xf32> to vector<8x32xf32>
    %1397 = arith.mulf %1386, %1396 : vector<8x32xf32>
    %cst_180 = arith.constant dense<0.000000e+00> : vector<8xf32>
    %1398 = vector.multi_reduction <add>, %1397, %cst_180 [1] : vector<8x32xf32> to vector<8xf32>
    %1399 = vector.shape_cast %1398 : vector<8xf32> to vector<8x1xf32>
    %1400 = arith.addf %1395, %1399 : vector<8x1xf32>
    %1401 = tpu.concatenate %1393, %1400 in 1 : vector<8x1xf32>, vector<8x1xf32> -> vector<8x2xf32>
    %c41 = arith.constant 41 : index
    %c0_181 = arith.constant 0 : index
    %c0_182 = arith.constant 0 : index
    %1402 = vector.load %arg8[%c41, %c0_181, %c0_182] : memref<64x8x2xf32, #tpu.memory_space<vmem>>, vector<1x8x2xf32>
    %1403 = vector.shape_cast %1402 : vector<1x8x2xf32> to vector<8x2xf32>
    %1404 = vector.shape_cast %1401 : vector<8x2xf32> to vector<1x8x2xf32>
    tpu.vector_store %arg8[%c41, %c0_181, %c0_182], %1404 {strides = array<i32>} : memref<64x8x2xf32, #tpu.memory_space<vmem>>, vector<1x8x2xf32>,
    %1405 = vector.extract_strided_slice %18 {offsets = [0, 42], sizes = [8, 1], strides = [1, 1]} : vector<8x64xf32> to vector<8x1xf32>
    %1406 = vector.broadcast %1405 : vector<8x1xf32> to vector<8x32xf32>
    %1407 = vector.broadcast %3 : vector<1x32xf32> to vector<8x32xf32>
    %1408 = arith.mulf %1406, %1407 : vector<8x32xf32>
    %1409 = vector.broadcast %4 : vector<1x32xf32> to vector<8x32xf32>
    %1410 = arith.addf %1408, %1409 : vector<8x32xf32>
    %1411 = vector.broadcast %1393 : vector<8x1xf32> to vector<8x32xf32>
    %1412 = vector.broadcast %1 : vector<1x32xf32> to vector<8x32xf32>
    %1413 = arith.mulf %1411, %1412 : vector<8x32xf32>
    %1414 = vector.broadcast %1400 : vector<8x1xf32> to vector<8x32xf32>
    %1415 = vector.broadcast %2 : vector<1x32xf32> to vector<8x32xf32>
    %1416 = arith.mulf %1414, %1415 : vector<8x32xf32>
    %1417 = arith.addf %1413, %1416 : vector<8x32xf32>
    %1418 = arith.addf %1417, %1410 : vector<8x32xf32>
    %1419 = math.tanh %1418 : vector<8x32xf32>
    %1420 = vector.broadcast %13 : vector<1x1xf32> to vector<8x1xf32>
    %1421 = arith.addf %1393, %1420 : vector<8x1xf32>
    %1422 = vector.broadcast %8 : vector<1x32xf32> to vector<8x32xf32>
    %1423 = arith.mulf %1419, %1422 : vector<8x32xf32>
    %cst_183 = arith.constant dense<0.000000e+00> : vector<8xf32>
    %1424 = vector.multi_reduction <add>, %1423, %cst_183 [1] : vector<8x32xf32> to vector<8xf32>
    %1425 = vector.shape_cast %1424 : vector<8xf32> to vector<8x1xf32>
    %1426 = arith.addf %1421, %1425 : vector<8x1xf32>
    %1427 = vector.broadcast %14 : vector<1x1xf32> to vector<8x1xf32>
    %1428 = arith.addf %1400, %1427 : vector<8x1xf32>
    %1429 = vector.broadcast %9 : vector<1x32xf32> to vector<8x32xf32>
    %1430 = arith.mulf %1419, %1429 : vector<8x32xf32>
    %cst_184 = arith.constant dense<0.000000e+00> : vector<8xf32>
    %1431 = vector.multi_reduction <add>, %1430, %cst_184 [1] : vector<8x32xf32> to vector<8xf32>
    %1432 = vector.shape_cast %1431 : vector<8xf32> to vector<8x1xf32>
    %1433 = arith.addf %1428, %1432 : vector<8x1xf32>
    %1434 = tpu.concatenate %1426, %1433 in 1 : vector<8x1xf32>, vector<8x1xf32> -> vector<8x2xf32>
    %c42 = arith.constant 42 : index
    %c0_185 = arith.constant 0 : index
    %c0_186 = arith.constant 0 : index
    %1435 = vector.load %arg8[%c42, %c0_185, %c0_186] : memref<64x8x2xf32, #tpu.memory_space<vmem>>, vector<1x8x2xf32>
    %1436 = vector.shape_cast %1435 : vector<1x8x2xf32> to vector<8x2xf32>
    %1437 = vector.shape_cast %1434 : vector<8x2xf32> to vector<1x8x2xf32>
    tpu.vector_store %arg8[%c42, %c0_185, %c0_186], %1437 {strides = array<i32>} : memref<64x8x2xf32, #tpu.memory_space<vmem>>, vector<1x8x2xf32>,
    %1438 = vector.extract_strided_slice %18 {offsets = [0, 43], sizes = [8, 1], strides = [1, 1]} : vector<8x64xf32> to vector<8x1xf32>
    %1439 = vector.broadcast %1438 : vector<8x1xf32> to vector<8x32xf32>
    %1440 = vector.broadcast %3 : vector<1x32xf32> to vector<8x32xf32>
    %1441 = arith.mulf %1439, %1440 : vector<8x32xf32>
    %1442 = vector.broadcast %4 : vector<1x32xf32> to vector<8x32xf32>
    %1443 = arith.addf %1441, %1442 : vector<8x32xf32>
    %1444 = vector.broadcast %1426 : vector<8x1xf32> to vector<8x32xf32>
    %1445 = vector.broadcast %1 : vector<1x32xf32> to vector<8x32xf32>
    %1446 = arith.mulf %1444, %1445 : vector<8x32xf32>
    %1447 = vector.broadcast %1433 : vector<8x1xf32> to vector<8x32xf32>
    %1448 = vector.broadcast %2 : vector<1x32xf32> to vector<8x32xf32>
    %1449 = arith.mulf %1447, %1448 : vector<8x32xf32>
    %1450 = arith.addf %1446, %1449 : vector<8x32xf32>
    %1451 = arith.addf %1450, %1443 : vector<8x32xf32>
    %1452 = math.tanh %1451 : vector<8x32xf32>
    %1453 = vector.broadcast %13 : vector<1x1xf32> to vector<8x1xf32>
    %1454 = arith.addf %1426, %1453 : vector<8x1xf32>
    %1455 = vector.broadcast %8 : vector<1x32xf32> to vector<8x32xf32>
    %1456 = arith.mulf %1452, %1455 : vector<8x32xf32>
    %cst_187 = arith.constant dense<0.000000e+00> : vector<8xf32>
    %1457 = vector.multi_reduction <add>, %1456, %cst_187 [1] : vector<8x32xf32> to vector<8xf32>
    %1458 = vector.shape_cast %1457 : vector<8xf32> to vector<8x1xf32>
    %1459 = arith.addf %1454, %1458 : vector<8x1xf32>
    %1460 = vector.broadcast %14 : vector<1x1xf32> to vector<8x1xf32>
    %1461 = arith.addf %1433, %1460 : vector<8x1xf32>
    %1462 = vector.broadcast %9 : vector<1x32xf32> to vector<8x32xf32>
    %1463 = arith.mulf %1452, %1462 : vector<8x32xf32>
    %cst_188 = arith.constant dense<0.000000e+00> : vector<8xf32>
    %1464 = vector.multi_reduction <add>, %1463, %cst_188 [1] : vector<8x32xf32> to vector<8xf32>
    %1465 = vector.shape_cast %1464 : vector<8xf32> to vector<8x1xf32>
    %1466 = arith.addf %1461, %1465 : vector<8x1xf32>
    %1467 = tpu.concatenate %1459, %1466 in 1 : vector<8x1xf32>, vector<8x1xf32> -> vector<8x2xf32>
    %c43 = arith.constant 43 : index
    %c0_189 = arith.constant 0 : index
    %c0_190 = arith.constant 0 : index
    %1468 = vector.load %arg8[%c43, %c0_189, %c0_190] : memref<64x8x2xf32, #tpu.memory_space<vmem>>, vector<1x8x2xf32>
    %1469 = vector.shape_cast %1468 : vector<1x8x2xf32> to vector<8x2xf32>
    %1470 = vector.shape_cast %1467 : vector<8x2xf32> to vector<1x8x2xf32>
    tpu.vector_store %arg8[%c43, %c0_189, %c0_190], %1470 {strides = array<i32>} : memref<64x8x2xf32, #tpu.memory_space<vmem>>, vector<1x8x2xf32>,
    %1471 = vector.extract_strided_slice %18 {offsets = [0, 44], sizes = [8, 1], strides = [1, 1]} : vector<8x64xf32> to vector<8x1xf32>
    %1472 = vector.broadcast %1471 : vector<8x1xf32> to vector<8x32xf32>
    %1473 = vector.broadcast %3 : vector<1x32xf32> to vector<8x32xf32>
    %1474 = arith.mulf %1472, %1473 : vector<8x32xf32>
    %1475 = vector.broadcast %4 : vector<1x32xf32> to vector<8x32xf32>
    %1476 = arith.addf %1474, %1475 : vector<8x32xf32>
    %1477 = vector.broadcast %1459 : vector<8x1xf32> to vector<8x32xf32>
    %1478 = vector.broadcast %1 : vector<1x32xf32> to vector<8x32xf32>
    %1479 = arith.mulf %1477, %1478 : vector<8x32xf32>
    %1480 = vector.broadcast %1466 : vector<8x1xf32> to vector<8x32xf32>
    %1481 = vector.broadcast %2 : vector<1x32xf32> to vector<8x32xf32>
    %1482 = arith.mulf %1480, %1481 : vector<8x32xf32>
    %1483 = arith.addf %1479, %1482 : vector<8x32xf32>
    %1484 = arith.addf %1483, %1476 : vector<8x32xf32>
    %1485 = math.tanh %1484 : vector<8x32xf32>
    %1486 = vector.broadcast %13 : vector<1x1xf32> to vector<8x1xf32>
    %1487 = arith.addf %1459, %1486 : vector<8x1xf32>
    %1488 = vector.broadcast %8 : vector<1x32xf32> to vector<8x32xf32>
    %1489 = arith.mulf %1485, %1488 : vector<8x32xf32>
    %cst_191 = arith.constant dense<0.000000e+00> : vector<8xf32>
    %1490 = vector.multi_reduction <add>, %1489, %cst_191 [1] : vector<8x32xf32> to vector<8xf32>
    %1491 = vector.shape_cast %1490 : vector<8xf32> to vector<8x1xf32>
    %1492 = arith.addf %1487, %1491 : vector<8x1xf32>
    %1493 = vector.broadcast %14 : vector<1x1xf32> to vector<8x1xf32>
    %1494 = arith.addf %1466, %1493 : vector<8x1xf32>
    %1495 = vector.broadcast %9 : vector<1x32xf32> to vector<8x32xf32>
    %1496 = arith.mulf %1485, %1495 : vector<8x32xf32>
    %cst_192 = arith.constant dense<0.000000e+00> : vector<8xf32>
    %1497 = vector.multi_reduction <add>, %1496, %cst_192 [1] : vector<8x32xf32> to vector<8xf32>
    %1498 = vector.shape_cast %1497 : vector<8xf32> to vector<8x1xf32>
    %1499 = arith.addf %1494, %1498 : vector<8x1xf32>
    %1500 = tpu.concatenate %1492, %1499 in 1 : vector<8x1xf32>, vector<8x1xf32> -> vector<8x2xf32>
    %c44 = arith.constant 44 : index
    %c0_193 = arith.constant 0 : index
    %c0_194 = arith.constant 0 : index
    %1501 = vector.load %arg8[%c44, %c0_193, %c0_194] : memref<64x8x2xf32, #tpu.memory_space<vmem>>, vector<1x8x2xf32>
    %1502 = vector.shape_cast %1501 : vector<1x8x2xf32> to vector<8x2xf32>
    %1503 = vector.shape_cast %1500 : vector<8x2xf32> to vector<1x8x2xf32>
    tpu.vector_store %arg8[%c44, %c0_193, %c0_194], %1503 {strides = array<i32>} : memref<64x8x2xf32, #tpu.memory_space<vmem>>, vector<1x8x2xf32>,
    %1504 = vector.extract_strided_slice %18 {offsets = [0, 45], sizes = [8, 1], strides = [1, 1]} : vector<8x64xf32> to vector<8x1xf32>
    %1505 = vector.broadcast %1504 : vector<8x1xf32> to vector<8x32xf32>
    %1506 = vector.broadcast %3 : vector<1x32xf32> to vector<8x32xf32>
    %1507 = arith.mulf %1505, %1506 : vector<8x32xf32>
    %1508 = vector.broadcast %4 : vector<1x32xf32> to vector<8x32xf32>
    %1509 = arith.addf %1507, %1508 : vector<8x32xf32>
    %1510 = vector.broadcast %1492 : vector<8x1xf32> to vector<8x32xf32>
    %1511 = vector.broadcast %1 : vector<1x32xf32> to vector<8x32xf32>
    %1512 = arith.mulf %1510, %1511 : vector<8x32xf32>
    %1513 = vector.broadcast %1499 : vector<8x1xf32> to vector<8x32xf32>
    %1514 = vector.broadcast %2 : vector<1x32xf32> to vector<8x32xf32>
    %1515 = arith.mulf %1513, %1514 : vector<8x32xf32>
    %1516 = arith.addf %1512, %1515 : vector<8x32xf32>
    %1517 = arith.addf %1516, %1509 : vector<8x32xf32>
    %1518 = math.tanh %1517 : vector<8x32xf32>
    %1519 = vector.broadcast %13 : vector<1x1xf32> to vector<8x1xf32>
    %1520 = arith.addf %1492, %1519 : vector<8x1xf32>
    %1521 = vector.broadcast %8 : vector<1x32xf32> to vector<8x32xf32>
    %1522 = arith.mulf %1518, %1521 : vector<8x32xf32>
    %cst_195 = arith.constant dense<0.000000e+00> : vector<8xf32>
    %1523 = vector.multi_reduction <add>, %1522, %cst_195 [1] : vector<8x32xf32> to vector<8xf32>
    %1524 = vector.shape_cast %1523 : vector<8xf32> to vector<8x1xf32>
    %1525 = arith.addf %1520, %1524 : vector<8x1xf32>
    %1526 = vector.broadcast %14 : vector<1x1xf32> to vector<8x1xf32>
    %1527 = arith.addf %1499, %1526 : vector<8x1xf32>
    %1528 = vector.broadcast %9 : vector<1x32xf32> to vector<8x32xf32>
    %1529 = arith.mulf %1518, %1528 : vector<8x32xf32>
    %cst_196 = arith.constant dense<0.000000e+00> : vector<8xf32>
    %1530 = vector.multi_reduction <add>, %1529, %cst_196 [1] : vector<8x32xf32> to vector<8xf32>
    %1531 = vector.shape_cast %1530 : vector<8xf32> to vector<8x1xf32>
    %1532 = arith.addf %1527, %1531 : vector<8x1xf32>
    %1533 = tpu.concatenate %1525, %1532 in 1 : vector<8x1xf32>, vector<8x1xf32> -> vector<8x2xf32>
    %c45 = arith.constant 45 : index
    %c0_197 = arith.constant 0 : index
    %c0_198 = arith.constant 0 : index
    %1534 = vector.load %arg8[%c45, %c0_197, %c0_198] : memref<64x8x2xf32, #tpu.memory_space<vmem>>, vector<1x8x2xf32>
    %1535 = vector.shape_cast %1534 : vector<1x8x2xf32> to vector<8x2xf32>
    %1536 = vector.shape_cast %1533 : vector<8x2xf32> to vector<1x8x2xf32>
    tpu.vector_store %arg8[%c45, %c0_197, %c0_198], %1536 {strides = array<i32>} : memref<64x8x2xf32, #tpu.memory_space<vmem>>, vector<1x8x2xf32>,
    %1537 = vector.extract_strided_slice %18 {offsets = [0, 46], sizes = [8, 1], strides = [1, 1]} : vector<8x64xf32> to vector<8x1xf32>
    %1538 = vector.broadcast %1537 : vector<8x1xf32> to vector<8x32xf32>
    %1539 = vector.broadcast %3 : vector<1x32xf32> to vector<8x32xf32>
    %1540 = arith.mulf %1538, %1539 : vector<8x32xf32>
    %1541 = vector.broadcast %4 : vector<1x32xf32> to vector<8x32xf32>
    %1542 = arith.addf %1540, %1541 : vector<8x32xf32>
    %1543 = vector.broadcast %1525 : vector<8x1xf32> to vector<8x32xf32>
    %1544 = vector.broadcast %1 : vector<1x32xf32> to vector<8x32xf32>
    %1545 = arith.mulf %1543, %1544 : vector<8x32xf32>
    %1546 = vector.broadcast %1532 : vector<8x1xf32> to vector<8x32xf32>
    %1547 = vector.broadcast %2 : vector<1x32xf32> to vector<8x32xf32>
    %1548 = arith.mulf %1546, %1547 : vector<8x32xf32>
    %1549 = arith.addf %1545, %1548 : vector<8x32xf32>
    %1550 = arith.addf %1549, %1542 : vector<8x32xf32>
    %1551 = math.tanh %1550 : vector<8x32xf32>
    %1552 = vector.broadcast %13 : vector<1x1xf32> to vector<8x1xf32>
    %1553 = arith.addf %1525, %1552 : vector<8x1xf32>
    %1554 = vector.broadcast %8 : vector<1x32xf32> to vector<8x32xf32>
    %1555 = arith.mulf %1551, %1554 : vector<8x32xf32>
    %cst_199 = arith.constant dense<0.000000e+00> : vector<8xf32>
    %1556 = vector.multi_reduction <add>, %1555, %cst_199 [1] : vector<8x32xf32> to vector<8xf32>
    %1557 = vector.shape_cast %1556 : vector<8xf32> to vector<8x1xf32>
    %1558 = arith.addf %1553, %1557 : vector<8x1xf32>
    %1559 = vector.broadcast %14 : vector<1x1xf32> to vector<8x1xf32>
    %1560 = arith.addf %1532, %1559 : vector<8x1xf32>
    %1561 = vector.broadcast %9 : vector<1x32xf32> to vector<8x32xf32>
    %1562 = arith.mulf %1551, %1561 : vector<8x32xf32>
    %cst_200 = arith.constant dense<0.000000e+00> : vector<8xf32>
    %1563 = vector.multi_reduction <add>, %1562, %cst_200 [1] : vector<8x32xf32> to vector<8xf32>
    %1564 = vector.shape_cast %1563 : vector<8xf32> to vector<8x1xf32>
    %1565 = arith.addf %1560, %1564 : vector<8x1xf32>
    %1566 = tpu.concatenate %1558, %1565 in 1 : vector<8x1xf32>, vector<8x1xf32> -> vector<8x2xf32>
    %c46 = arith.constant 46 : index
    %c0_201 = arith.constant 0 : index
    %c0_202 = arith.constant 0 : index
    %1567 = vector.load %arg8[%c46, %c0_201, %c0_202] : memref<64x8x2xf32, #tpu.memory_space<vmem>>, vector<1x8x2xf32>
    %1568 = vector.shape_cast %1567 : vector<1x8x2xf32> to vector<8x2xf32>
    %1569 = vector.shape_cast %1566 : vector<8x2xf32> to vector<1x8x2xf32>
    tpu.vector_store %arg8[%c46, %c0_201, %c0_202], %1569 {strides = array<i32>} : memref<64x8x2xf32, #tpu.memory_space<vmem>>, vector<1x8x2xf32>,
    %1570 = vector.extract_strided_slice %18 {offsets = [0, 47], sizes = [8, 1], strides = [1, 1]} : vector<8x64xf32> to vector<8x1xf32>
    %1571 = vector.broadcast %1570 : vector<8x1xf32> to vector<8x32xf32>
    %1572 = vector.broadcast %3 : vector<1x32xf32> to vector<8x32xf32>
    %1573 = arith.mulf %1571, %1572 : vector<8x32xf32>
    %1574 = vector.broadcast %4 : vector<1x32xf32> to vector<8x32xf32>
    %1575 = arith.addf %1573, %1574 : vector<8x32xf32>
    %1576 = vector.broadcast %1558 : vector<8x1xf32> to vector<8x32xf32>
    %1577 = vector.broadcast %1 : vector<1x32xf32> to vector<8x32xf32>
    %1578 = arith.mulf %1576, %1577 : vector<8x32xf32>
    %1579 = vector.broadcast %1565 : vector<8x1xf32> to vector<8x32xf32>
    %1580 = vector.broadcast %2 : vector<1x32xf32> to vector<8x32xf32>
    %1581 = arith.mulf %1579, %1580 : vector<8x32xf32>
    %1582 = arith.addf %1578, %1581 : vector<8x32xf32>
    %1583 = arith.addf %1582, %1575 : vector<8x32xf32>
    %1584 = math.tanh %1583 : vector<8x32xf32>
    %1585 = vector.broadcast %13 : vector<1x1xf32> to vector<8x1xf32>
    %1586 = arith.addf %1558, %1585 : vector<8x1xf32>
    %1587 = vector.broadcast %8 : vector<1x32xf32> to vector<8x32xf32>
    %1588 = arith.mulf %1584, %1587 : vector<8x32xf32>
    %cst_203 = arith.constant dense<0.000000e+00> : vector<8xf32>
    %1589 = vector.multi_reduction <add>, %1588, %cst_203 [1] : vector<8x32xf32> to vector<8xf32>
    %1590 = vector.shape_cast %1589 : vector<8xf32> to vector<8x1xf32>
    %1591 = arith.addf %1586, %1590 : vector<8x1xf32>
    %1592 = vector.broadcast %14 : vector<1x1xf32> to vector<8x1xf32>
    %1593 = arith.addf %1565, %1592 : vector<8x1xf32>
    %1594 = vector.broadcast %9 : vector<1x32xf32> to vector<8x32xf32>
    %1595 = arith.mulf %1584, %1594 : vector<8x32xf32>
    %cst_204 = arith.constant dense<0.000000e+00> : vector<8xf32>
    %1596 = vector.multi_reduction <add>, %1595, %cst_204 [1] : vector<8x32xf32> to vector<8xf32>
    %1597 = vector.shape_cast %1596 : vector<8xf32> to vector<8x1xf32>
    %1598 = arith.addf %1593, %1597 : vector<8x1xf32>
    %1599 = tpu.concatenate %1591, %1598 in 1 : vector<8x1xf32>, vector<8x1xf32> -> vector<8x2xf32>
    %c47 = arith.constant 47 : index
    %c0_205 = arith.constant 0 : index
    %c0_206 = arith.constant 0 : index
    %1600 = vector.load %arg8[%c47, %c0_205, %c0_206] : memref<64x8x2xf32, #tpu.memory_space<vmem>>, vector<1x8x2xf32>
    %1601 = vector.shape_cast %1600 : vector<1x8x2xf32> to vector<8x2xf32>
    %1602 = vector.shape_cast %1599 : vector<8x2xf32> to vector<1x8x2xf32>
    tpu.vector_store %arg8[%c47, %c0_205, %c0_206], %1602 {strides = array<i32>} : memref<64x8x2xf32, #tpu.memory_space<vmem>>, vector<1x8x2xf32>,
    %1603 = vector.extract_strided_slice %18 {offsets = [0, 48], sizes = [8, 1], strides = [1, 1]} : vector<8x64xf32> to vector<8x1xf32>
    %1604 = vector.broadcast %1603 : vector<8x1xf32> to vector<8x32xf32>
    %1605 = vector.broadcast %3 : vector<1x32xf32> to vector<8x32xf32>
    %1606 = arith.mulf %1604, %1605 : vector<8x32xf32>
    %1607 = vector.broadcast %4 : vector<1x32xf32> to vector<8x32xf32>
    %1608 = arith.addf %1606, %1607 : vector<8x32xf32>
    %1609 = vector.broadcast %1591 : vector<8x1xf32> to vector<8x32xf32>
    %1610 = vector.broadcast %1 : vector<1x32xf32> to vector<8x32xf32>
    %1611 = arith.mulf %1609, %1610 : vector<8x32xf32>
    %1612 = vector.broadcast %1598 : vector<8x1xf32> to vector<8x32xf32>
    %1613 = vector.broadcast %2 : vector<1x32xf32> to vector<8x32xf32>
    %1614 = arith.mulf %1612, %1613 : vector<8x32xf32>
    %1615 = arith.addf %1611, %1614 : vector<8x32xf32>
    %1616 = arith.addf %1615, %1608 : vector<8x32xf32>
    %1617 = math.tanh %1616 : vector<8x32xf32>
    %1618 = vector.broadcast %13 : vector<1x1xf32> to vector<8x1xf32>
    %1619 = arith.addf %1591, %1618 : vector<8x1xf32>
    %1620 = vector.broadcast %8 : vector<1x32xf32> to vector<8x32xf32>
    %1621 = arith.mulf %1617, %1620 : vector<8x32xf32>
    %cst_207 = arith.constant dense<0.000000e+00> : vector<8xf32>
    %1622 = vector.multi_reduction <add>, %1621, %cst_207 [1] : vector<8x32xf32> to vector<8xf32>
    %1623 = vector.shape_cast %1622 : vector<8xf32> to vector<8x1xf32>
    %1624 = arith.addf %1619, %1623 : vector<8x1xf32>
    %1625 = vector.broadcast %14 : vector<1x1xf32> to vector<8x1xf32>
    %1626 = arith.addf %1598, %1625 : vector<8x1xf32>
    %1627 = vector.broadcast %9 : vector<1x32xf32> to vector<8x32xf32>
    %1628 = arith.mulf %1617, %1627 : vector<8x32xf32>
    %cst_208 = arith.constant dense<0.000000e+00> : vector<8xf32>
    %1629 = vector.multi_reduction <add>, %1628, %cst_208 [1] : vector<8x32xf32> to vector<8xf32>
    %1630 = vector.shape_cast %1629 : vector<8xf32> to vector<8x1xf32>
    %1631 = arith.addf %1626, %1630 : vector<8x1xf32>
    %1632 = tpu.concatenate %1624, %1631 in 1 : vector<8x1xf32>, vector<8x1xf32> -> vector<8x2xf32>
    %c48 = arith.constant 48 : index
    %c0_209 = arith.constant 0 : index
    %c0_210 = arith.constant 0 : index
    %1633 = vector.load %arg8[%c48, %c0_209, %c0_210] : memref<64x8x2xf32, #tpu.memory_space<vmem>>, vector<1x8x2xf32>
    %1634 = vector.shape_cast %1633 : vector<1x8x2xf32> to vector<8x2xf32>
    %1635 = vector.shape_cast %1632 : vector<8x2xf32> to vector<1x8x2xf32>
    tpu.vector_store %arg8[%c48, %c0_209, %c0_210], %1635 {strides = array<i32>} : memref<64x8x2xf32, #tpu.memory_space<vmem>>, vector<1x8x2xf32>,
    %1636 = vector.extract_strided_slice %18 {offsets = [0, 49], sizes = [8, 1], strides = [1, 1]} : vector<8x64xf32> to vector<8x1xf32>
    %1637 = vector.broadcast %1636 : vector<8x1xf32> to vector<8x32xf32>
    %1638 = vector.broadcast %3 : vector<1x32xf32> to vector<8x32xf32>
    %1639 = arith.mulf %1637, %1638 : vector<8x32xf32>
    %1640 = vector.broadcast %4 : vector<1x32xf32> to vector<8x32xf32>
    %1641 = arith.addf %1639, %1640 : vector<8x32xf32>
    %1642 = vector.broadcast %1624 : vector<8x1xf32> to vector<8x32xf32>
    %1643 = vector.broadcast %1 : vector<1x32xf32> to vector<8x32xf32>
    %1644 = arith.mulf %1642, %1643 : vector<8x32xf32>
    %1645 = vector.broadcast %1631 : vector<8x1xf32> to vector<8x32xf32>
    %1646 = vector.broadcast %2 : vector<1x32xf32> to vector<8x32xf32>
    %1647 = arith.mulf %1645, %1646 : vector<8x32xf32>
    %1648 = arith.addf %1644, %1647 : vector<8x32xf32>
    %1649 = arith.addf %1648, %1641 : vector<8x32xf32>
    %1650 = math.tanh %1649 : vector<8x32xf32>
    %1651 = vector.broadcast %13 : vector<1x1xf32> to vector<8x1xf32>
    %1652 = arith.addf %1624, %1651 : vector<8x1xf32>
    %1653 = vector.broadcast %8 : vector<1x32xf32> to vector<8x32xf32>
    %1654 = arith.mulf %1650, %1653 : vector<8x32xf32>
    %cst_211 = arith.constant dense<0.000000e+00> : vector<8xf32>
    %1655 = vector.multi_reduction <add>, %1654, %cst_211 [1] : vector<8x32xf32> to vector<8xf32>
    %1656 = vector.shape_cast %1655 : vector<8xf32> to vector<8x1xf32>
    %1657 = arith.addf %1652, %1656 : vector<8x1xf32>
    %1658 = vector.broadcast %14 : vector<1x1xf32> to vector<8x1xf32>
    %1659 = arith.addf %1631, %1658 : vector<8x1xf32>
    %1660 = vector.broadcast %9 : vector<1x32xf32> to vector<8x32xf32>
    %1661 = arith.mulf %1650, %1660 : vector<8x32xf32>
    %cst_212 = arith.constant dense<0.000000e+00> : vector<8xf32>
    %1662 = vector.multi_reduction <add>, %1661, %cst_212 [1] : vector<8x32xf32> to vector<8xf32>
    %1663 = vector.shape_cast %1662 : vector<8xf32> to vector<8x1xf32>
    %1664 = arith.addf %1659, %1663 : vector<8x1xf32>
    %1665 = tpu.concatenate %1657, %1664 in 1 : vector<8x1xf32>, vector<8x1xf32> -> vector<8x2xf32>
    %c49 = arith.constant 49 : index
    %c0_213 = arith.constant 0 : index
    %c0_214 = arith.constant 0 : index
    %1666 = vector.load %arg8[%c49, %c0_213, %c0_214] : memref<64x8x2xf32, #tpu.memory_space<vmem>>, vector<1x8x2xf32>
    %1667 = vector.shape_cast %1666 : vector<1x8x2xf32> to vector<8x2xf32>
    %1668 = vector.shape_cast %1665 : vector<8x2xf32> to vector<1x8x2xf32>
    tpu.vector_store %arg8[%c49, %c0_213, %c0_214], %1668 {strides = array<i32>} : memref<64x8x2xf32, #tpu.memory_space<vmem>>, vector<1x8x2xf32>,
    %1669 = vector.extract_strided_slice %18 {offsets = [0, 50], sizes = [8, 1], strides = [1, 1]} : vector<8x64xf32> to vector<8x1xf32>
    %1670 = vector.broadcast %1669 : vector<8x1xf32> to vector<8x32xf32>
    %1671 = vector.broadcast %3 : vector<1x32xf32> to vector<8x32xf32>
    %1672 = arith.mulf %1670, %1671 : vector<8x32xf32>
    %1673 = vector.broadcast %4 : vector<1x32xf32> to vector<8x32xf32>
    %1674 = arith.addf %1672, %1673 : vector<8x32xf32>
    %1675 = vector.broadcast %1657 : vector<8x1xf32> to vector<8x32xf32>
    %1676 = vector.broadcast %1 : vector<1x32xf32> to vector<8x32xf32>
    %1677 = arith.mulf %1675, %1676 : vector<8x32xf32>
    %1678 = vector.broadcast %1664 : vector<8x1xf32> to vector<8x32xf32>
    %1679 = vector.broadcast %2 : vector<1x32xf32> to vector<8x32xf32>
    %1680 = arith.mulf %1678, %1679 : vector<8x32xf32>
    %1681 = arith.addf %1677, %1680 : vector<8x32xf32>
    %1682 = arith.addf %1681, %1674 : vector<8x32xf32>
    %1683 = math.tanh %1682 : vector<8x32xf32>
    %1684 = vector.broadcast %13 : vector<1x1xf32> to vector<8x1xf32>
    %1685 = arith.addf %1657, %1684 : vector<8x1xf32>
    %1686 = vector.broadcast %8 : vector<1x32xf32> to vector<8x32xf32>
    %1687 = arith.mulf %1683, %1686 : vector<8x32xf32>
    %cst_215 = arith.constant dense<0.000000e+00> : vector<8xf32>
    %1688 = vector.multi_reduction <add>, %1687, %cst_215 [1] : vector<8x32xf32> to vector<8xf32>
    %1689 = vector.shape_cast %1688 : vector<8xf32> to vector<8x1xf32>
    %1690 = arith.addf %1685, %1689 : vector<8x1xf32>
    %1691 = vector.broadcast %14 : vector<1x1xf32> to vector<8x1xf32>
    %1692 = arith.addf %1664, %1691 : vector<8x1xf32>
    %1693 = vector.broadcast %9 : vector<1x32xf32> to vector<8x32xf32>
    %1694 = arith.mulf %1683, %1693 : vector<8x32xf32>
    %cst_216 = arith.constant dense<0.000000e+00> : vector<8xf32>
    %1695 = vector.multi_reduction <add>, %1694, %cst_216 [1] : vector<8x32xf32> to vector<8xf32>
    %1696 = vector.shape_cast %1695 : vector<8xf32> to vector<8x1xf32>
    %1697 = arith.addf %1692, %1696 : vector<8x1xf32>
    %1698 = tpu.concatenate %1690, %1697 in 1 : vector<8x1xf32>, vector<8x1xf32> -> vector<8x2xf32>
    %c50 = arith.constant 50 : index
    %c0_217 = arith.constant 0 : index
    %c0_218 = arith.constant 0 : index
    %1699 = vector.load %arg8[%c50, %c0_217, %c0_218] : memref<64x8x2xf32, #tpu.memory_space<vmem>>, vector<1x8x2xf32>
    %1700 = vector.shape_cast %1699 : vector<1x8x2xf32> to vector<8x2xf32>
    %1701 = vector.shape_cast %1698 : vector<8x2xf32> to vector<1x8x2xf32>
    tpu.vector_store %arg8[%c50, %c0_217, %c0_218], %1701 {strides = array<i32>} : memref<64x8x2xf32, #tpu.memory_space<vmem>>, vector<1x8x2xf32>,
    %1702 = vector.extract_strided_slice %18 {offsets = [0, 51], sizes = [8, 1], strides = [1, 1]} : vector<8x64xf32> to vector<8x1xf32>
    %1703 = vector.broadcast %1702 : vector<8x1xf32> to vector<8x32xf32>
    %1704 = vector.broadcast %3 : vector<1x32xf32> to vector<8x32xf32>
    %1705 = arith.mulf %1703, %1704 : vector<8x32xf32>
    %1706 = vector.broadcast %4 : vector<1x32xf32> to vector<8x32xf32>
    %1707 = arith.addf %1705, %1706 : vector<8x32xf32>
    %1708 = vector.broadcast %1690 : vector<8x1xf32> to vector<8x32xf32>
    %1709 = vector.broadcast %1 : vector<1x32xf32> to vector<8x32xf32>
    %1710 = arith.mulf %1708, %1709 : vector<8x32xf32>
    %1711 = vector.broadcast %1697 : vector<8x1xf32> to vector<8x32xf32>
    %1712 = vector.broadcast %2 : vector<1x32xf32> to vector<8x32xf32>
    %1713 = arith.mulf %1711, %1712 : vector<8x32xf32>
    %1714 = arith.addf %1710, %1713 : vector<8x32xf32>
    %1715 = arith.addf %1714, %1707 : vector<8x32xf32>
    %1716 = math.tanh %1715 : vector<8x32xf32>
    %1717 = vector.broadcast %13 : vector<1x1xf32> to vector<8x1xf32>
    %1718 = arith.addf %1690, %1717 : vector<8x1xf32>
    %1719 = vector.broadcast %8 : vector<1x32xf32> to vector<8x32xf32>
    %1720 = arith.mulf %1716, %1719 : vector<8x32xf32>
    %cst_219 = arith.constant dense<0.000000e+00> : vector<8xf32>
    %1721 = vector.multi_reduction <add>, %1720, %cst_219 [1] : vector<8x32xf32> to vector<8xf32>
    %1722 = vector.shape_cast %1721 : vector<8xf32> to vector<8x1xf32>
    %1723 = arith.addf %1718, %1722 : vector<8x1xf32>
    %1724 = vector.broadcast %14 : vector<1x1xf32> to vector<8x1xf32>
    %1725 = arith.addf %1697, %1724 : vector<8x1xf32>
    %1726 = vector.broadcast %9 : vector<1x32xf32> to vector<8x32xf32>
    %1727 = arith.mulf %1716, %1726 : vector<8x32xf32>
    %cst_220 = arith.constant dense<0.000000e+00> : vector<8xf32>
    %1728 = vector.multi_reduction <add>, %1727, %cst_220 [1] : vector<8x32xf32> to vector<8xf32>
    %1729 = vector.shape_cast %1728 : vector<8xf32> to vector<8x1xf32>
    %1730 = arith.addf %1725, %1729 : vector<8x1xf32>
    %1731 = tpu.concatenate %1723, %1730 in 1 : vector<8x1xf32>, vector<8x1xf32> -> vector<8x2xf32>
    %c51 = arith.constant 51 : index
    %c0_221 = arith.constant 0 : index
    %c0_222 = arith.constant 0 : index
    %1732 = vector.load %arg8[%c51, %c0_221, %c0_222] : memref<64x8x2xf32, #tpu.memory_space<vmem>>, vector<1x8x2xf32>
    %1733 = vector.shape_cast %1732 : vector<1x8x2xf32> to vector<8x2xf32>
    %1734 = vector.shape_cast %1731 : vector<8x2xf32> to vector<1x8x2xf32>
    tpu.vector_store %arg8[%c51, %c0_221, %c0_222], %1734 {strides = array<i32>} : memref<64x8x2xf32, #tpu.memory_space<vmem>>, vector<1x8x2xf32>,
    %1735 = vector.extract_strided_slice %18 {offsets = [0, 52], sizes = [8, 1], strides = [1, 1]} : vector<8x64xf32> to vector<8x1xf32>
    %1736 = vector.broadcast %1735 : vector<8x1xf32> to vector<8x32xf32>
    %1737 = vector.broadcast %3 : vector<1x32xf32> to vector<8x32xf32>
    %1738 = arith.mulf %1736, %1737 : vector<8x32xf32>
    %1739 = vector.broadcast %4 : vector<1x32xf32> to vector<8x32xf32>
    %1740 = arith.addf %1738, %1739 : vector<8x32xf32>
    %1741 = vector.broadcast %1723 : vector<8x1xf32> to vector<8x32xf32>
    %1742 = vector.broadcast %1 : vector<1x32xf32> to vector<8x32xf32>
    %1743 = arith.mulf %1741, %1742 : vector<8x32xf32>
    %1744 = vector.broadcast %1730 : vector<8x1xf32> to vector<8x32xf32>
    %1745 = vector.broadcast %2 : vector<1x32xf32> to vector<8x32xf32>
    %1746 = arith.mulf %1744, %1745 : vector<8x32xf32>
    %1747 = arith.addf %1743, %1746 : vector<8x32xf32>
    %1748 = arith.addf %1747, %1740 : vector<8x32xf32>
    %1749 = math.tanh %1748 : vector<8x32xf32>
    %1750 = vector.broadcast %13 : vector<1x1xf32> to vector<8x1xf32>
    %1751 = arith.addf %1723, %1750 : vector<8x1xf32>
    %1752 = vector.broadcast %8 : vector<1x32xf32> to vector<8x32xf32>
    %1753 = arith.mulf %1749, %1752 : vector<8x32xf32>
    %cst_223 = arith.constant dense<0.000000e+00> : vector<8xf32>
    %1754 = vector.multi_reduction <add>, %1753, %cst_223 [1] : vector<8x32xf32> to vector<8xf32>
    %1755 = vector.shape_cast %1754 : vector<8xf32> to vector<8x1xf32>
    %1756 = arith.addf %1751, %1755 : vector<8x1xf32>
    %1757 = vector.broadcast %14 : vector<1x1xf32> to vector<8x1xf32>
    %1758 = arith.addf %1730, %1757 : vector<8x1xf32>
    %1759 = vector.broadcast %9 : vector<1x32xf32> to vector<8x32xf32>
    %1760 = arith.mulf %1749, %1759 : vector<8x32xf32>
    %cst_224 = arith.constant dense<0.000000e+00> : vector<8xf32>
    %1761 = vector.multi_reduction <add>, %1760, %cst_224 [1] : vector<8x32xf32> to vector<8xf32>
    %1762 = vector.shape_cast %1761 : vector<8xf32> to vector<8x1xf32>
    %1763 = arith.addf %1758, %1762 : vector<8x1xf32>
    %1764 = tpu.concatenate %1756, %1763 in 1 : vector<8x1xf32>, vector<8x1xf32> -> vector<8x2xf32>
    %c52 = arith.constant 52 : index
    %c0_225 = arith.constant 0 : index
    %c0_226 = arith.constant 0 : index
    %1765 = vector.load %arg8[%c52, %c0_225, %c0_226] : memref<64x8x2xf32, #tpu.memory_space<vmem>>, vector<1x8x2xf32>
    %1766 = vector.shape_cast %1765 : vector<1x8x2xf32> to vector<8x2xf32>
    %1767 = vector.shape_cast %1764 : vector<8x2xf32> to vector<1x8x2xf32>
    tpu.vector_store %arg8[%c52, %c0_225, %c0_226], %1767 {strides = array<i32>} : memref<64x8x2xf32, #tpu.memory_space<vmem>>, vector<1x8x2xf32>,
    %1768 = vector.extract_strided_slice %18 {offsets = [0, 53], sizes = [8, 1], strides = [1, 1]} : vector<8x64xf32> to vector<8x1xf32>
    %1769 = vector.broadcast %1768 : vector<8x1xf32> to vector<8x32xf32>
    %1770 = vector.broadcast %3 : vector<1x32xf32> to vector<8x32xf32>
    %1771 = arith.mulf %1769, %1770 : vector<8x32xf32>
    %1772 = vector.broadcast %4 : vector<1x32xf32> to vector<8x32xf32>
    %1773 = arith.addf %1771, %1772 : vector<8x32xf32>
    %1774 = vector.broadcast %1756 : vector<8x1xf32> to vector<8x32xf32>
    %1775 = vector.broadcast %1 : vector<1x32xf32> to vector<8x32xf32>
    %1776 = arith.mulf %1774, %1775 : vector<8x32xf32>
    %1777 = vector.broadcast %1763 : vector<8x1xf32> to vector<8x32xf32>
    %1778 = vector.broadcast %2 : vector<1x32xf32> to vector<8x32xf32>
    %1779 = arith.mulf %1777, %1778 : vector<8x32xf32>
    %1780 = arith.addf %1776, %1779 : vector<8x32xf32>
    %1781 = arith.addf %1780, %1773 : vector<8x32xf32>
    %1782 = math.tanh %1781 : vector<8x32xf32>
    %1783 = vector.broadcast %13 : vector<1x1xf32> to vector<8x1xf32>
    %1784 = arith.addf %1756, %1783 : vector<8x1xf32>
    %1785 = vector.broadcast %8 : vector<1x32xf32> to vector<8x32xf32>
    %1786 = arith.mulf %1782, %1785 : vector<8x32xf32>
    %cst_227 = arith.constant dense<0.000000e+00> : vector<8xf32>
    %1787 = vector.multi_reduction <add>, %1786, %cst_227 [1] : vector<8x32xf32> to vector<8xf32>
    %1788 = vector.shape_cast %1787 : vector<8xf32> to vector<8x1xf32>
    %1789 = arith.addf %1784, %1788 : vector<8x1xf32>
    %1790 = vector.broadcast %14 : vector<1x1xf32> to vector<8x1xf32>
    %1791 = arith.addf %1763, %1790 : vector<8x1xf32>
    %1792 = vector.broadcast %9 : vector<1x32xf32> to vector<8x32xf32>
    %1793 = arith.mulf %1782, %1792 : vector<8x32xf32>
    %cst_228 = arith.constant dense<0.000000e+00> : vector<8xf32>
    %1794 = vector.multi_reduction <add>, %1793, %cst_228 [1] : vector<8x32xf32> to vector<8xf32>
    %1795 = vector.shape_cast %1794 : vector<8xf32> to vector<8x1xf32>
    %1796 = arith.addf %1791, %1795 : vector<8x1xf32>
    %1797 = tpu.concatenate %1789, %1796 in 1 : vector<8x1xf32>, vector<8x1xf32> -> vector<8x2xf32>
    %c53 = arith.constant 53 : index
    %c0_229 = arith.constant 0 : index
    %c0_230 = arith.constant 0 : index
    %1798 = vector.load %arg8[%c53, %c0_229, %c0_230] : memref<64x8x2xf32, #tpu.memory_space<vmem>>, vector<1x8x2xf32>
    %1799 = vector.shape_cast %1798 : vector<1x8x2xf32> to vector<8x2xf32>
    %1800 = vector.shape_cast %1797 : vector<8x2xf32> to vector<1x8x2xf32>
    tpu.vector_store %arg8[%c53, %c0_229, %c0_230], %1800 {strides = array<i32>} : memref<64x8x2xf32, #tpu.memory_space<vmem>>, vector<1x8x2xf32>,
    %1801 = vector.extract_strided_slice %18 {offsets = [0, 54], sizes = [8, 1], strides = [1, 1]} : vector<8x64xf32> to vector<8x1xf32>
    %1802 = vector.broadcast %1801 : vector<8x1xf32> to vector<8x32xf32>
    %1803 = vector.broadcast %3 : vector<1x32xf32> to vector<8x32xf32>
    %1804 = arith.mulf %1802, %1803 : vector<8x32xf32>
    %1805 = vector.broadcast %4 : vector<1x32xf32> to vector<8x32xf32>
    %1806 = arith.addf %1804, %1805 : vector<8x32xf32>
    %1807 = vector.broadcast %1789 : vector<8x1xf32> to vector<8x32xf32>
    %1808 = vector.broadcast %1 : vector<1x32xf32> to vector<8x32xf32>
    %1809 = arith.mulf %1807, %1808 : vector<8x32xf32>
    %1810 = vector.broadcast %1796 : vector<8x1xf32> to vector<8x32xf32>
    %1811 = vector.broadcast %2 : vector<1x32xf32> to vector<8x32xf32>
    %1812 = arith.mulf %1810, %1811 : vector<8x32xf32>
    %1813 = arith.addf %1809, %1812 : vector<8x32xf32>
    %1814 = arith.addf %1813, %1806 : vector<8x32xf32>
    %1815 = math.tanh %1814 : vector<8x32xf32>
    %1816 = vector.broadcast %13 : vector<1x1xf32> to vector<8x1xf32>
    %1817 = arith.addf %1789, %1816 : vector<8x1xf32>
    %1818 = vector.broadcast %8 : vector<1x32xf32> to vector<8x32xf32>
    %1819 = arith.mulf %1815, %1818 : vector<8x32xf32>
    %cst_231 = arith.constant dense<0.000000e+00> : vector<8xf32>
    %1820 = vector.multi_reduction <add>, %1819, %cst_231 [1] : vector<8x32xf32> to vector<8xf32>
    %1821 = vector.shape_cast %1820 : vector<8xf32> to vector<8x1xf32>
    %1822 = arith.addf %1817, %1821 : vector<8x1xf32>
    %1823 = vector.broadcast %14 : vector<1x1xf32> to vector<8x1xf32>
    %1824 = arith.addf %1796, %1823 : vector<8x1xf32>
    %1825 = vector.broadcast %9 : vector<1x32xf32> to vector<8x32xf32>
    %1826 = arith.mulf %1815, %1825 : vector<8x32xf32>
    %cst_232 = arith.constant dense<0.000000e+00> : vector<8xf32>
    %1827 = vector.multi_reduction <add>, %1826, %cst_232 [1] : vector<8x32xf32> to vector<8xf32>
    %1828 = vector.shape_cast %1827 : vector<8xf32> to vector<8x1xf32>
    %1829 = arith.addf %1824, %1828 : vector<8x1xf32>
    %1830 = tpu.concatenate %1822, %1829 in 1 : vector<8x1xf32>, vector<8x1xf32> -> vector<8x2xf32>
    %c54 = arith.constant 54 : index
    %c0_233 = arith.constant 0 : index
    %c0_234 = arith.constant 0 : index
    %1831 = vector.load %arg8[%c54, %c0_233, %c0_234] : memref<64x8x2xf32, #tpu.memory_space<vmem>>, vector<1x8x2xf32>
    %1832 = vector.shape_cast %1831 : vector<1x8x2xf32> to vector<8x2xf32>
    %1833 = vector.shape_cast %1830 : vector<8x2xf32> to vector<1x8x2xf32>
    tpu.vector_store %arg8[%c54, %c0_233, %c0_234], %1833 {strides = array<i32>} : memref<64x8x2xf32, #tpu.memory_space<vmem>>, vector<1x8x2xf32>,
    %1834 = vector.extract_strided_slice %18 {offsets = [0, 55], sizes = [8, 1], strides = [1, 1]} : vector<8x64xf32> to vector<8x1xf32>
    %1835 = vector.broadcast %1834 : vector<8x1xf32> to vector<8x32xf32>
    %1836 = vector.broadcast %3 : vector<1x32xf32> to vector<8x32xf32>
    %1837 = arith.mulf %1835, %1836 : vector<8x32xf32>
    %1838 = vector.broadcast %4 : vector<1x32xf32> to vector<8x32xf32>
    %1839 = arith.addf %1837, %1838 : vector<8x32xf32>
    %1840 = vector.broadcast %1822 : vector<8x1xf32> to vector<8x32xf32>
    %1841 = vector.broadcast %1 : vector<1x32xf32> to vector<8x32xf32>
    %1842 = arith.mulf %1840, %1841 : vector<8x32xf32>
    %1843 = vector.broadcast %1829 : vector<8x1xf32> to vector<8x32xf32>
    %1844 = vector.broadcast %2 : vector<1x32xf32> to vector<8x32xf32>
    %1845 = arith.mulf %1843, %1844 : vector<8x32xf32>
    %1846 = arith.addf %1842, %1845 : vector<8x32xf32>
    %1847 = arith.addf %1846, %1839 : vector<8x32xf32>
    %1848 = math.tanh %1847 : vector<8x32xf32>
    %1849 = vector.broadcast %13 : vector<1x1xf32> to vector<8x1xf32>
    %1850 = arith.addf %1822, %1849 : vector<8x1xf32>
    %1851 = vector.broadcast %8 : vector<1x32xf32> to vector<8x32xf32>
    %1852 = arith.mulf %1848, %1851 : vector<8x32xf32>
    %cst_235 = arith.constant dense<0.000000e+00> : vector<8xf32>
    %1853 = vector.multi_reduction <add>, %1852, %cst_235 [1] : vector<8x32xf32> to vector<8xf32>
    %1854 = vector.shape_cast %1853 : vector<8xf32> to vector<8x1xf32>
    %1855 = arith.addf %1850, %1854 : vector<8x1xf32>
    %1856 = vector.broadcast %14 : vector<1x1xf32> to vector<8x1xf32>
    %1857 = arith.addf %1829, %1856 : vector<8x1xf32>
    %1858 = vector.broadcast %9 : vector<1x32xf32> to vector<8x32xf32>
    %1859 = arith.mulf %1848, %1858 : vector<8x32xf32>
    %cst_236 = arith.constant dense<0.000000e+00> : vector<8xf32>
    %1860 = vector.multi_reduction <add>, %1859, %cst_236 [1] : vector<8x32xf32> to vector<8xf32>
    %1861 = vector.shape_cast %1860 : vector<8xf32> to vector<8x1xf32>
    %1862 = arith.addf %1857, %1861 : vector<8x1xf32>
    %1863 = tpu.concatenate %1855, %1862 in 1 : vector<8x1xf32>, vector<8x1xf32> -> vector<8x2xf32>
    %c55 = arith.constant 55 : index
    %c0_237 = arith.constant 0 : index
    %c0_238 = arith.constant 0 : index
    %1864 = vector.load %arg8[%c55, %c0_237, %c0_238] : memref<64x8x2xf32, #tpu.memory_space<vmem>>, vector<1x8x2xf32>
    %1865 = vector.shape_cast %1864 : vector<1x8x2xf32> to vector<8x2xf32>
    %1866 = vector.shape_cast %1863 : vector<8x2xf32> to vector<1x8x2xf32>
    tpu.vector_store %arg8[%c55, %c0_237, %c0_238], %1866 {strides = array<i32>} : memref<64x8x2xf32, #tpu.memory_space<vmem>>, vector<1x8x2xf32>,
    %1867 = vector.extract_strided_slice %18 {offsets = [0, 56], sizes = [8, 1], strides = [1, 1]} : vector<8x64xf32> to vector<8x1xf32>
    %1868 = vector.broadcast %1867 : vector<8x1xf32> to vector<8x32xf32>
    %1869 = vector.broadcast %3 : vector<1x32xf32> to vector<8x32xf32>
    %1870 = arith.mulf %1868, %1869 : vector<8x32xf32>
    %1871 = vector.broadcast %4 : vector<1x32xf32> to vector<8x32xf32>
    %1872 = arith.addf %1870, %1871 : vector<8x32xf32>
    %1873 = vector.broadcast %1855 : vector<8x1xf32> to vector<8x32xf32>
    %1874 = vector.broadcast %1 : vector<1x32xf32> to vector<8x32xf32>
    %1875 = arith.mulf %1873, %1874 : vector<8x32xf32>
    %1876 = vector.broadcast %1862 : vector<8x1xf32> to vector<8x32xf32>
    %1877 = vector.broadcast %2 : vector<1x32xf32> to vector<8x32xf32>
    %1878 = arith.mulf %1876, %1877 : vector<8x32xf32>
    %1879 = arith.addf %1875, %1878 : vector<8x32xf32>
    %1880 = arith.addf %1879, %1872 : vector<8x32xf32>
    %1881 = math.tanh %1880 : vector<8x32xf32>
    %1882 = vector.broadcast %13 : vector<1x1xf32> to vector<8x1xf32>
    %1883 = arith.addf %1855, %1882 : vector<8x1xf32>
    %1884 = vector.broadcast %8 : vector<1x32xf32> to vector<8x32xf32>
    %1885 = arith.mulf %1881, %1884 : vector<8x32xf32>
    %cst_239 = arith.constant dense<0.000000e+00> : vector<8xf32>
    %1886 = vector.multi_reduction <add>, %1885, %cst_239 [1] : vector<8x32xf32> to vector<8xf32>
    %1887 = vector.shape_cast %1886 : vector<8xf32> to vector<8x1xf32>
    %1888 = arith.addf %1883, %1887 : vector<8x1xf32>
    %1889 = vector.broadcast %14 : vector<1x1xf32> to vector<8x1xf32>
    %1890 = arith.addf %1862, %1889 : vector<8x1xf32>
    %1891 = vector.broadcast %9 : vector<1x32xf32> to vector<8x32xf32>
    %1892 = arith.mulf %1881, %1891 : vector<8x32xf32>
    %cst_240 = arith.constant dense<0.000000e+00> : vector<8xf32>
    %1893 = vector.multi_reduction <add>, %1892, %cst_240 [1] : vector<8x32xf32> to vector<8xf32>
    %1894 = vector.shape_cast %1893 : vector<8xf32> to vector<8x1xf32>
    %1895 = arith.addf %1890, %1894 : vector<8x1xf32>
    %1896 = tpu.concatenate %1888, %1895 in 1 : vector<8x1xf32>, vector<8x1xf32> -> vector<8x2xf32>
    %c56 = arith.constant 56 : index
    %c0_241 = arith.constant 0 : index
    %c0_242 = arith.constant 0 : index
    %1897 = vector.load %arg8[%c56, %c0_241, %c0_242] : memref<64x8x2xf32, #tpu.memory_space<vmem>>, vector<1x8x2xf32>
    %1898 = vector.shape_cast %1897 : vector<1x8x2xf32> to vector<8x2xf32>
    %1899 = vector.shape_cast %1896 : vector<8x2xf32> to vector<1x8x2xf32>
    tpu.vector_store %arg8[%c56, %c0_241, %c0_242], %1899 {strides = array<i32>} : memref<64x8x2xf32, #tpu.memory_space<vmem>>, vector<1x8x2xf32>,
    %1900 = vector.extract_strided_slice %18 {offsets = [0, 57], sizes = [8, 1], strides = [1, 1]} : vector<8x64xf32> to vector<8x1xf32>
    %1901 = vector.broadcast %1900 : vector<8x1xf32> to vector<8x32xf32>
    %1902 = vector.broadcast %3 : vector<1x32xf32> to vector<8x32xf32>
    %1903 = arith.mulf %1901, %1902 : vector<8x32xf32>
    %1904 = vector.broadcast %4 : vector<1x32xf32> to vector<8x32xf32>
    %1905 = arith.addf %1903, %1904 : vector<8x32xf32>
    %1906 = vector.broadcast %1888 : vector<8x1xf32> to vector<8x32xf32>
    %1907 = vector.broadcast %1 : vector<1x32xf32> to vector<8x32xf32>
    %1908 = arith.mulf %1906, %1907 : vector<8x32xf32>
    %1909 = vector.broadcast %1895 : vector<8x1xf32> to vector<8x32xf32>
    %1910 = vector.broadcast %2 : vector<1x32xf32> to vector<8x32xf32>
    %1911 = arith.mulf %1909, %1910 : vector<8x32xf32>
    %1912 = arith.addf %1908, %1911 : vector<8x32xf32>
    %1913 = arith.addf %1912, %1905 : vector<8x32xf32>
    %1914 = math.tanh %1913 : vector<8x32xf32>
    %1915 = vector.broadcast %13 : vector<1x1xf32> to vector<8x1xf32>
    %1916 = arith.addf %1888, %1915 : vector<8x1xf32>
    %1917 = vector.broadcast %8 : vector<1x32xf32> to vector<8x32xf32>
    %1918 = arith.mulf %1914, %1917 : vector<8x32xf32>
    %cst_243 = arith.constant dense<0.000000e+00> : vector<8xf32>
    %1919 = vector.multi_reduction <add>, %1918, %cst_243 [1] : vector<8x32xf32> to vector<8xf32>
    %1920 = vector.shape_cast %1919 : vector<8xf32> to vector<8x1xf32>
    %1921 = arith.addf %1916, %1920 : vector<8x1xf32>
    %1922 = vector.broadcast %14 : vector<1x1xf32> to vector<8x1xf32>
    %1923 = arith.addf %1895, %1922 : vector<8x1xf32>
    %1924 = vector.broadcast %9 : vector<1x32xf32> to vector<8x32xf32>
    %1925 = arith.mulf %1914, %1924 : vector<8x32xf32>
    %cst_244 = arith.constant dense<0.000000e+00> : vector<8xf32>
    %1926 = vector.multi_reduction <add>, %1925, %cst_244 [1] : vector<8x32xf32> to vector<8xf32>
    %1927 = vector.shape_cast %1926 : vector<8xf32> to vector<8x1xf32>
    %1928 = arith.addf %1923, %1927 : vector<8x1xf32>
    %1929 = tpu.concatenate %1921, %1928 in 1 : vector<8x1xf32>, vector<8x1xf32> -> vector<8x2xf32>
    %c57 = arith.constant 57 : index
    %c0_245 = arith.constant 0 : index
    %c0_246 = arith.constant 0 : index
    %1930 = vector.load %arg8[%c57, %c0_245, %c0_246] : memref<64x8x2xf32, #tpu.memory_space<vmem>>, vector<1x8x2xf32>
    %1931 = vector.shape_cast %1930 : vector<1x8x2xf32> to vector<8x2xf32>
    %1932 = vector.shape_cast %1929 : vector<8x2xf32> to vector<1x8x2xf32>
    tpu.vector_store %arg8[%c57, %c0_245, %c0_246], %1932 {strides = array<i32>} : memref<64x8x2xf32, #tpu.memory_space<vmem>>, vector<1x8x2xf32>,
    %1933 = vector.extract_strided_slice %18 {offsets = [0, 58], sizes = [8, 1], strides = [1, 1]} : vector<8x64xf32> to vector<8x1xf32>
    %1934 = vector.broadcast %1933 : vector<8x1xf32> to vector<8x32xf32>
    %1935 = vector.broadcast %3 : vector<1x32xf32> to vector<8x32xf32>
    %1936 = arith.mulf %1934, %1935 : vector<8x32xf32>
    %1937 = vector.broadcast %4 : vector<1x32xf32> to vector<8x32xf32>
    %1938 = arith.addf %1936, %1937 : vector<8x32xf32>
    %1939 = vector.broadcast %1921 : vector<8x1xf32> to vector<8x32xf32>
    %1940 = vector.broadcast %1 : vector<1x32xf32> to vector<8x32xf32>
    %1941 = arith.mulf %1939, %1940 : vector<8x32xf32>
    %1942 = vector.broadcast %1928 : vector<8x1xf32> to vector<8x32xf32>
    %1943 = vector.broadcast %2 : vector<1x32xf32> to vector<8x32xf32>
    %1944 = arith.mulf %1942, %1943 : vector<8x32xf32>
    %1945 = arith.addf %1941, %1944 : vector<8x32xf32>
    %1946 = arith.addf %1945, %1938 : vector<8x32xf32>
    %1947 = math.tanh %1946 : vector<8x32xf32>
    %1948 = vector.broadcast %13 : vector<1x1xf32> to vector<8x1xf32>
    %1949 = arith.addf %1921, %1948 : vector<8x1xf32>
    %1950 = vector.broadcast %8 : vector<1x32xf32> to vector<8x32xf32>
    %1951 = arith.mulf %1947, %1950 : vector<8x32xf32>
    %cst_247 = arith.constant dense<0.000000e+00> : vector<8xf32>
    %1952 = vector.multi_reduction <add>, %1951, %cst_247 [1] : vector<8x32xf32> to vector<8xf32>
    %1953 = vector.shape_cast %1952 : vector<8xf32> to vector<8x1xf32>
    %1954 = arith.addf %1949, %1953 : vector<8x1xf32>
    %1955 = vector.broadcast %14 : vector<1x1xf32> to vector<8x1xf32>
    %1956 = arith.addf %1928, %1955 : vector<8x1xf32>
    %1957 = vector.broadcast %9 : vector<1x32xf32> to vector<8x32xf32>
    %1958 = arith.mulf %1947, %1957 : vector<8x32xf32>
    %cst_248 = arith.constant dense<0.000000e+00> : vector<8xf32>
    %1959 = vector.multi_reduction <add>, %1958, %cst_248 [1] : vector<8x32xf32> to vector<8xf32>
    %1960 = vector.shape_cast %1959 : vector<8xf32> to vector<8x1xf32>
    %1961 = arith.addf %1956, %1960 : vector<8x1xf32>
    %1962 = tpu.concatenate %1954, %1961 in 1 : vector<8x1xf32>, vector<8x1xf32> -> vector<8x2xf32>
    %c58 = arith.constant 58 : index
    %c0_249 = arith.constant 0 : index
    %c0_250 = arith.constant 0 : index
    %1963 = vector.load %arg8[%c58, %c0_249, %c0_250] : memref<64x8x2xf32, #tpu.memory_space<vmem>>, vector<1x8x2xf32>
    %1964 = vector.shape_cast %1963 : vector<1x8x2xf32> to vector<8x2xf32>
    %1965 = vector.shape_cast %1962 : vector<8x2xf32> to vector<1x8x2xf32>
    tpu.vector_store %arg8[%c58, %c0_249, %c0_250], %1965 {strides = array<i32>} : memref<64x8x2xf32, #tpu.memory_space<vmem>>, vector<1x8x2xf32>,
    %1966 = vector.extract_strided_slice %18 {offsets = [0, 59], sizes = [8, 1], strides = [1, 1]} : vector<8x64xf32> to vector<8x1xf32>
    %1967 = vector.broadcast %1966 : vector<8x1xf32> to vector<8x32xf32>
    %1968 = vector.broadcast %3 : vector<1x32xf32> to vector<8x32xf32>
    %1969 = arith.mulf %1967, %1968 : vector<8x32xf32>
    %1970 = vector.broadcast %4 : vector<1x32xf32> to vector<8x32xf32>
    %1971 = arith.addf %1969, %1970 : vector<8x32xf32>
    %1972 = vector.broadcast %1954 : vector<8x1xf32> to vector<8x32xf32>
    %1973 = vector.broadcast %1 : vector<1x32xf32> to vector<8x32xf32>
    %1974 = arith.mulf %1972, %1973 : vector<8x32xf32>
    %1975 = vector.broadcast %1961 : vector<8x1xf32> to vector<8x32xf32>
    %1976 = vector.broadcast %2 : vector<1x32xf32> to vector<8x32xf32>
    %1977 = arith.mulf %1975, %1976 : vector<8x32xf32>
    %1978 = arith.addf %1974, %1977 : vector<8x32xf32>
    %1979 = arith.addf %1978, %1971 : vector<8x32xf32>
    %1980 = math.tanh %1979 : vector<8x32xf32>
    %1981 = vector.broadcast %13 : vector<1x1xf32> to vector<8x1xf32>
    %1982 = arith.addf %1954, %1981 : vector<8x1xf32>
    %1983 = vector.broadcast %8 : vector<1x32xf32> to vector<8x32xf32>
    %1984 = arith.mulf %1980, %1983 : vector<8x32xf32>
    %cst_251 = arith.constant dense<0.000000e+00> : vector<8xf32>
    %1985 = vector.multi_reduction <add>, %1984, %cst_251 [1] : vector<8x32xf32> to vector<8xf32>
    %1986 = vector.shape_cast %1985 : vector<8xf32> to vector<8x1xf32>
    %1987 = arith.addf %1982, %1986 : vector<8x1xf32>
    %1988 = vector.broadcast %14 : vector<1x1xf32> to vector<8x1xf32>
    %1989 = arith.addf %1961, %1988 : vector<8x1xf32>
    %1990 = vector.broadcast %9 : vector<1x32xf32> to vector<8x32xf32>
    %1991 = arith.mulf %1980, %1990 : vector<8x32xf32>
    %cst_252 = arith.constant dense<0.000000e+00> : vector<8xf32>
    %1992 = vector.multi_reduction <add>, %1991, %cst_252 [1] : vector<8x32xf32> to vector<8xf32>
    %1993 = vector.shape_cast %1992 : vector<8xf32> to vector<8x1xf32>
    %1994 = arith.addf %1989, %1993 : vector<8x1xf32>
    %1995 = tpu.concatenate %1987, %1994 in 1 : vector<8x1xf32>, vector<8x1xf32> -> vector<8x2xf32>
    %c59 = arith.constant 59 : index
    %c0_253 = arith.constant 0 : index
    %c0_254 = arith.constant 0 : index
    %1996 = vector.load %arg8[%c59, %c0_253, %c0_254] : memref<64x8x2xf32, #tpu.memory_space<vmem>>, vector<1x8x2xf32>
    %1997 = vector.shape_cast %1996 : vector<1x8x2xf32> to vector<8x2xf32>
    %1998 = vector.shape_cast %1995 : vector<8x2xf32> to vector<1x8x2xf32>
    tpu.vector_store %arg8[%c59, %c0_253, %c0_254], %1998 {strides = array<i32>} : memref<64x8x2xf32, #tpu.memory_space<vmem>>, vector<1x8x2xf32>,
    %1999 = vector.extract_strided_slice %18 {offsets = [0, 60], sizes = [8, 1], strides = [1, 1]} : vector<8x64xf32> to vector<8x1xf32>
    %2000 = vector.broadcast %1999 : vector<8x1xf32> to vector<8x32xf32>
    %2001 = vector.broadcast %3 : vector<1x32xf32> to vector<8x32xf32>
    %2002 = arith.mulf %2000, %2001 : vector<8x32xf32>
    %2003 = vector.broadcast %4 : vector<1x32xf32> to vector<8x32xf32>
    %2004 = arith.addf %2002, %2003 : vector<8x32xf32>
    %2005 = vector.broadcast %1987 : vector<8x1xf32> to vector<8x32xf32>
    %2006 = vector.broadcast %1 : vector<1x32xf32> to vector<8x32xf32>
    %2007 = arith.mulf %2005, %2006 : vector<8x32xf32>
    %2008 = vector.broadcast %1994 : vector<8x1xf32> to vector<8x32xf32>
    %2009 = vector.broadcast %2 : vector<1x32xf32> to vector<8x32xf32>
    %2010 = arith.mulf %2008, %2009 : vector<8x32xf32>
    %2011 = arith.addf %2007, %2010 : vector<8x32xf32>
    %2012 = arith.addf %2011, %2004 : vector<8x32xf32>
    %2013 = math.tanh %2012 : vector<8x32xf32>
    %2014 = vector.broadcast %13 : vector<1x1xf32> to vector<8x1xf32>
    %2015 = arith.addf %1987, %2014 : vector<8x1xf32>
    %2016 = vector.broadcast %8 : vector<1x32xf32> to vector<8x32xf32>
    %2017 = arith.mulf %2013, %2016 : vector<8x32xf32>
    %cst_255 = arith.constant dense<0.000000e+00> : vector<8xf32>
    %2018 = vector.multi_reduction <add>, %2017, %cst_255 [1] : vector<8x32xf32> to vector<8xf32>
    %2019 = vector.shape_cast %2018 : vector<8xf32> to vector<8x1xf32>
    %2020 = arith.addf %2015, %2019 : vector<8x1xf32>
    %2021 = vector.broadcast %14 : vector<1x1xf32> to vector<8x1xf32>
    %2022 = arith.addf %1994, %2021 : vector<8x1xf32>
    %2023 = vector.broadcast %9 : vector<1x32xf32> to vector<8x32xf32>
    %2024 = arith.mulf %2013, %2023 : vector<8x32xf32>
    %cst_256 = arith.constant dense<0.000000e+00> : vector<8xf32>
    %2025 = vector.multi_reduction <add>, %2024, %cst_256 [1] : vector<8x32xf32> to vector<8xf32>
    %2026 = vector.shape_cast %2025 : vector<8xf32> to vector<8x1xf32>
    %2027 = arith.addf %2022, %2026 : vector<8x1xf32>
    %2028 = tpu.concatenate %2020, %2027 in 1 : vector<8x1xf32>, vector<8x1xf32> -> vector<8x2xf32>
    %c60 = arith.constant 60 : index
    %c0_257 = arith.constant 0 : index
    %c0_258 = arith.constant 0 : index
    %2029 = vector.load %arg8[%c60, %c0_257, %c0_258] : memref<64x8x2xf32, #tpu.memory_space<vmem>>, vector<1x8x2xf32>
    %2030 = vector.shape_cast %2029 : vector<1x8x2xf32> to vector<8x2xf32>
    %2031 = vector.shape_cast %2028 : vector<8x2xf32> to vector<1x8x2xf32>
    tpu.vector_store %arg8[%c60, %c0_257, %c0_258], %2031 {strides = array<i32>} : memref<64x8x2xf32, #tpu.memory_space<vmem>>, vector<1x8x2xf32>,
    %2032 = vector.extract_strided_slice %18 {offsets = [0, 61], sizes = [8, 1], strides = [1, 1]} : vector<8x64xf32> to vector<8x1xf32>
    %2033 = vector.broadcast %2032 : vector<8x1xf32> to vector<8x32xf32>
    %2034 = vector.broadcast %3 : vector<1x32xf32> to vector<8x32xf32>
    %2035 = arith.mulf %2033, %2034 : vector<8x32xf32>
    %2036 = vector.broadcast %4 : vector<1x32xf32> to vector<8x32xf32>
    %2037 = arith.addf %2035, %2036 : vector<8x32xf32>
    %2038 = vector.broadcast %2020 : vector<8x1xf32> to vector<8x32xf32>
    %2039 = vector.broadcast %1 : vector<1x32xf32> to vector<8x32xf32>
    %2040 = arith.mulf %2038, %2039 : vector<8x32xf32>
    %2041 = vector.broadcast %2027 : vector<8x1xf32> to vector<8x32xf32>
    %2042 = vector.broadcast %2 : vector<1x32xf32> to vector<8x32xf32>
    %2043 = arith.mulf %2041, %2042 : vector<8x32xf32>
    %2044 = arith.addf %2040, %2043 : vector<8x32xf32>
    %2045 = arith.addf %2044, %2037 : vector<8x32xf32>
    %2046 = math.tanh %2045 : vector<8x32xf32>
    %2047 = vector.broadcast %13 : vector<1x1xf32> to vector<8x1xf32>
    %2048 = arith.addf %2020, %2047 : vector<8x1xf32>
    %2049 = vector.broadcast %8 : vector<1x32xf32> to vector<8x32xf32>
    %2050 = arith.mulf %2046, %2049 : vector<8x32xf32>
    %cst_259 = arith.constant dense<0.000000e+00> : vector<8xf32>
    %2051 = vector.multi_reduction <add>, %2050, %cst_259 [1] : vector<8x32xf32> to vector<8xf32>
    %2052 = vector.shape_cast %2051 : vector<8xf32> to vector<8x1xf32>
    %2053 = arith.addf %2048, %2052 : vector<8x1xf32>
    %2054 = vector.broadcast %14 : vector<1x1xf32> to vector<8x1xf32>
    %2055 = arith.addf %2027, %2054 : vector<8x1xf32>
    %2056 = vector.broadcast %9 : vector<1x32xf32> to vector<8x32xf32>
    %2057 = arith.mulf %2046, %2056 : vector<8x32xf32>
    %cst_260 = arith.constant dense<0.000000e+00> : vector<8xf32>
    %2058 = vector.multi_reduction <add>, %2057, %cst_260 [1] : vector<8x32xf32> to vector<8xf32>
    %2059 = vector.shape_cast %2058 : vector<8xf32> to vector<8x1xf32>
    %2060 = arith.addf %2055, %2059 : vector<8x1xf32>
    %2061 = tpu.concatenate %2053, %2060 in 1 : vector<8x1xf32>, vector<8x1xf32> -> vector<8x2xf32>
    %c61 = arith.constant 61 : index
    %c0_261 = arith.constant 0 : index
    %c0_262 = arith.constant 0 : index
    %2062 = vector.load %arg8[%c61, %c0_261, %c0_262] : memref<64x8x2xf32, #tpu.memory_space<vmem>>, vector<1x8x2xf32>
    %2063 = vector.shape_cast %2062 : vector<1x8x2xf32> to vector<8x2xf32>
    %2064 = vector.shape_cast %2061 : vector<8x2xf32> to vector<1x8x2xf32>
    tpu.vector_store %arg8[%c61, %c0_261, %c0_262], %2064 {strides = array<i32>} : memref<64x8x2xf32, #tpu.memory_space<vmem>>, vector<1x8x2xf32>,
    %2065 = vector.extract_strided_slice %18 {offsets = [0, 62], sizes = [8, 1], strides = [1, 1]} : vector<8x64xf32> to vector<8x1xf32>
    %2066 = vector.broadcast %2065 : vector<8x1xf32> to vector<8x32xf32>
    %2067 = vector.broadcast %3 : vector<1x32xf32> to vector<8x32xf32>
    %2068 = arith.mulf %2066, %2067 : vector<8x32xf32>
    %2069 = vector.broadcast %4 : vector<1x32xf32> to vector<8x32xf32>
    %2070 = arith.addf %2068, %2069 : vector<8x32xf32>
    %2071 = vector.broadcast %2053 : vector<8x1xf32> to vector<8x32xf32>
    %2072 = vector.broadcast %1 : vector<1x32xf32> to vector<8x32xf32>
    %2073 = arith.mulf %2071, %2072 : vector<8x32xf32>
    %2074 = vector.broadcast %2060 : vector<8x1xf32> to vector<8x32xf32>
    %2075 = vector.broadcast %2 : vector<1x32xf32> to vector<8x32xf32>
    %2076 = arith.mulf %2074, %2075 : vector<8x32xf32>
    %2077 = arith.addf %2073, %2076 : vector<8x32xf32>
    %2078 = arith.addf %2077, %2070 : vector<8x32xf32>
    %2079 = math.tanh %2078 : vector<8x32xf32>
    %2080 = vector.broadcast %13 : vector<1x1xf32> to vector<8x1xf32>
    %2081 = arith.addf %2053, %2080 : vector<8x1xf32>
    %2082 = vector.broadcast %8 : vector<1x32xf32> to vector<8x32xf32>
    %2083 = arith.mulf %2079, %2082 : vector<8x32xf32>
    %cst_263 = arith.constant dense<0.000000e+00> : vector<8xf32>
    %2084 = vector.multi_reduction <add>, %2083, %cst_263 [1] : vector<8x32xf32> to vector<8xf32>
    %2085 = vector.shape_cast %2084 : vector<8xf32> to vector<8x1xf32>
    %2086 = arith.addf %2081, %2085 : vector<8x1xf32>
    %2087 = vector.broadcast %14 : vector<1x1xf32> to vector<8x1xf32>
    %2088 = arith.addf %2060, %2087 : vector<8x1xf32>
    %2089 = vector.broadcast %9 : vector<1x32xf32> to vector<8x32xf32>
    %2090 = arith.mulf %2079, %2089 : vector<8x32xf32>
    %cst_264 = arith.constant dense<0.000000e+00> : vector<8xf32>
    %2091 = vector.multi_reduction <add>, %2090, %cst_264 [1] : vector<8x32xf32> to vector<8xf32>
    %2092 = vector.shape_cast %2091 : vector<8xf32> to vector<8x1xf32>
    %2093 = arith.addf %2088, %2092 : vector<8x1xf32>
    %2094 = tpu.concatenate %2086, %2093 in 1 : vector<8x1xf32>, vector<8x1xf32> -> vector<8x2xf32>
    %c62 = arith.constant 62 : index
    %c0_265 = arith.constant 0 : index
    %c0_266 = arith.constant 0 : index
    %2095 = vector.load %arg8[%c62, %c0_265, %c0_266] : memref<64x8x2xf32, #tpu.memory_space<vmem>>, vector<1x8x2xf32>
    %2096 = vector.shape_cast %2095 : vector<1x8x2xf32> to vector<8x2xf32>
    %2097 = vector.shape_cast %2094 : vector<8x2xf32> to vector<1x8x2xf32>
    tpu.vector_store %arg8[%c62, %c0_265, %c0_266], %2097 {strides = array<i32>} : memref<64x8x2xf32, #tpu.memory_space<vmem>>, vector<1x8x2xf32>,
    %2098 = vector.extract_strided_slice %18 {offsets = [0, 63], sizes = [8, 1], strides = [1, 1]} : vector<8x64xf32> to vector<8x1xf32>
    %2099 = vector.broadcast %2098 : vector<8x1xf32> to vector<8x32xf32>
    %2100 = vector.broadcast %3 : vector<1x32xf32> to vector<8x32xf32>
    %2101 = arith.mulf %2099, %2100 : vector<8x32xf32>
    %2102 = vector.broadcast %4 : vector<1x32xf32> to vector<8x32xf32>
    %2103 = arith.addf %2101, %2102 : vector<8x32xf32>
    %2104 = vector.broadcast %2086 : vector<8x1xf32> to vector<8x32xf32>
    %2105 = vector.broadcast %1 : vector<1x32xf32> to vector<8x32xf32>
    %2106 = arith.mulf %2104, %2105 : vector<8x32xf32>
    %2107 = vector.broadcast %2093 : vector<8x1xf32> to vector<8x32xf32>
    %2108 = vector.broadcast %2 : vector<1x32xf32> to vector<8x32xf32>
    %2109 = arith.mulf %2107, %2108 : vector<8x32xf32>
    %2110 = arith.addf %2106, %2109 : vector<8x32xf32>
    %2111 = arith.addf %2110, %2103 : vector<8x32xf32>
    %2112 = math.tanh %2111 : vector<8x32xf32>
    %2113 = vector.broadcast %13 : vector<1x1xf32> to vector<8x1xf32>
    %2114 = arith.addf %2086, %2113 : vector<8x1xf32>
    %2115 = vector.broadcast %8 : vector<1x32xf32> to vector<8x32xf32>
    %2116 = arith.mulf %2112, %2115 : vector<8x32xf32>
    %cst_267 = arith.constant dense<0.000000e+00> : vector<8xf32>
    %2117 = vector.multi_reduction <add>, %2116, %cst_267 [1] : vector<8x32xf32> to vector<8xf32>
    %2118 = vector.shape_cast %2117 : vector<8xf32> to vector<8x1xf32>
    %2119 = arith.addf %2114, %2118 : vector<8x1xf32>
    %2120 = vector.broadcast %14 : vector<1x1xf32> to vector<8x1xf32>
    %2121 = arith.addf %2093, %2120 : vector<8x1xf32>
    %2122 = vector.broadcast %9 : vector<1x32xf32> to vector<8x32xf32>
    %2123 = arith.mulf %2112, %2122 : vector<8x32xf32>
    %cst_268 = arith.constant dense<0.000000e+00> : vector<8xf32>
    %2124 = vector.multi_reduction <add>, %2123, %cst_268 [1] : vector<8x32xf32> to vector<8xf32>
    %2125 = vector.shape_cast %2124 : vector<8xf32> to vector<8x1xf32>
    %2126 = arith.addf %2121, %2125 : vector<8x1xf32>
    %2127 = tpu.concatenate %2119, %2126 in 1 : vector<8x1xf32>, vector<8x1xf32> -> vector<8x2xf32>
    %c63 = arith.constant 63 : index
    %c0_269 = arith.constant 0 : index
    %c0_270 = arith.constant 0 : index
    %2128 = vector.load %arg8[%c63, %c0_269, %c0_270] : memref<64x8x2xf32, #tpu.memory_space<vmem>>, vector<1x8x2xf32>
    %2129 = vector.shape_cast %2128 : vector<1x8x2xf32> to vector<8x2xf32>
    %2130 = vector.shape_cast %2127 : vector<8x2xf32> to vector<1x8x2xf32>
    tpu.vector_store %arg8[%c63, %c0_269, %c0_270], %2130 {strides = array<i32>} : memref<64x8x2xf32, #tpu.memory_space<vmem>>, vector<1x8x2xf32>,
    return
  }
  func.func @transform_0(%arg0: i32) -> (i32, i32) {
    %c0_i32 = arith.constant 0 : i32
    %c0_i32_0 = arith.constant 0 : i32
    return %arg0, %c0_i32 : i32, i32
  }
  func.func @transform_1(%arg0: i32) -> (i32, i32) {
    %c0_i32 = arith.constant 0 : i32
    %c0_i32_0 = arith.constant 0 : i32
    return %arg0, %c0_i32 : i32, i32
  }
  func.func @transform_2(%arg0: i32) -> (i32, i32) {
    %c0_i32 = arith.constant 0 : i32
    %c0_i32_0 = arith.constant 0 : i32
    %c0_i32_1 = arith.constant 0 : i32
    return %c0_i32, %c0_i32_0 : i32, i32
  }
  func.func @transform_3(%arg0: i32) -> (i32, i32) {
    %c0_i32 = arith.constant 0 : i32
    %c0_i32_0 = arith.constant 0 : i32
    %c0_i32_1 = arith.constant 0 : i32
    return %c0_i32, %c0_i32_0 : i32, i32
  }
  func.func @transform_4(%arg0: i32) -> (i32, i32) {
    %c0_i32 = arith.constant 0 : i32
    %c0_i32_0 = arith.constant 0 : i32
    %c0_i32_1 = arith.constant 0 : i32
    return %c0_i32, %c0_i32_0 : i32, i32
  }
  func.func @transform_5(%arg0: i32) -> (i32, i32) {
    %c0_i32 = arith.constant 0 : i32
    %c0_i32_0 = arith.constant 0 : i32
    %c0_i32_1 = arith.constant 0 : i32
    return %c0_i32, %c0_i32_0 : i32, i32
  }
  func.func @transform_6(%arg0: i32) -> (i32, i32) {
    %c0_i32 = arith.constant 0 : i32
    %c0_i32_0 = arith.constant 0 : i32
    %c0_i32_1 = arith.constant 0 : i32
    return %c0_i32, %c0_i32_0 : i32, i32
  }
  func.func @transform_7(%arg0: i32) -> (i32, i32, i32) {
    %c0_i32 = arith.constant 0 : i32
    %c0_i32_0 = arith.constant 0 : i32
    %c0_i32_1 = arith.constant 0 : i32
    return %c0_i32, %arg0, %c0_i32_0 : i32, i32, i32
  }
}

</mosaic_0001>

<bundles_post_ra>
// kernel: tpu_custom_call.1
= control target key start
LH: loop header
LB: loop body
LE: loop exit
PB: predicated region body
PF: predicated region fallthrough
CT: control target
= control target key end

     0   :  { %s3605_s24 = smov 0   ;;  %s3607_s25 = smov 0   ;;  %s4882_s0 = inlined_call_operand.vmem [shape: f32[16,2], index: 0, kind: input, shape index: {}]   ;;  %s4883_s1 = inlined_call_operand.vmem [shape: f32[16,64], index: 1, kind: input, shape index: {}]   ;;  %s4884_s2 = inlined_call_operand.vmem [shape: f32[2,32], index: 2, kind: input, shape index: {}]   ;;  %s4885_s3 = inlined_call_operand.vmem [shape: f32[1,32], index: 3, kind: input, shape index: {}]   ;;  %s4886_s4 = inlined_call_operand.vmem [shape: f32[1,32], index: 4, kind: input, shape index: {}]   ;;  %s4887_s5 = inlined_call_operand.vmem [shape: f32[2,32], index: 5, kind: input, shape index: {}]   ;;  %s4888_s6 = inlined_call_operand.vmem [shape: f32[1,2], index: 6, kind: input, shape index: {}]   ;;  %s4889_s7 = inlined_call_operand.vmem [shape: f32[64,16,2], index: 7, kind: output, shape index: {}]  }
   0x1   :  { %s3609_s26 = smov 0  }
   0x2 LB: > { %s3618_s27 = sadd.s32 4294967295, %s3499_s26   ;;  %s3620_s28 = sadd.s32 1, %s3499_s26   ;;  %s3499_s26 = sphi %s3609_s26, %s4893_s26   ;;  %s3495_s25 = sphi %s3607_s25, %s4892_s25   ;;  %s3491_s24 = sphi %s3605_s24, %s4891_s24  }
   0x3   : > { %s178_s29 = ssub.s32 %s3499_s26, %s3620_s28  ;;  %s181_s30 = sadd.s32 1, %s3495_s25 }
   0x4   : > { %p179_p0 = scmp.eq.s32.totalorder %s178_s29, 0  ;;  %p191_p1 = scmp.ne.s32.totalorder %s3495_s25, %s3491_s24 }
   0x5   : > { %p192_p2 = scmp.eq.s32.totalorder %s3618_s27, 1  ;;  %p2994_p3 = scmp.ge.s32.totalorder %s3499_s26, 1 }
   0x6   : > { %s3628_s8 = scalar_select %p179_p0, %s3495_s25, %s181_s30  }
   0x7   : > { %p3630_p4 = por %p192_p2, %p191_p1  ;;  %p245_p5 = scmp.lt.s32.totalorder %s3499_s26, 3 }
   0x9   : > { %p246_p6 = pnand %p2994_p3, %p245_p5 }
   0xa   : > { %p279_p7 = scmp.lt.s32.totalorder (!%p246_p6), %s3618_s27, 1  ;;  %v3501_v0 = vmov (!%p246_p6), 0   ;;  %v3502_v1 = vmov (!%p246_p6), 1   ;;  %v320_v4 = vlaneseq (!%p246_p6)  ;;  %v287_v7 = vld [vmem:[%s4884_s2] sm:$0x3] (!%p246_p6)  ;;  %vm349_vm0 = vcmask (!%p246_p6), 261120  }
   0xb   : > { %249 = sbr.rel (%p246_p6) target bundleno = 18890 (0x49ca), region = 48  ;;  %3155 = vset.pattern.permute.xlu0 (!%p246_p6), %v3501_v0  ;;  %3156 = vset.pattern.permute.xlu1 (!%p246_p6), %v3502_v1  ;;  %v3660_v10 = vld [vmem:[%s4885_s3] ss:$0 sm:$0xff] (!%p246_p6)  ;;  %vm363_vm1 = vcmask (!%p246_p6), 7168   ;;  %vm365_vm2 = vcmask (!%p246_p6), 15360   ;;  %v3503_v40 = vmov (!%p246_p6), 2  }
   0xc   : > { %v321_v5 = vshrl.u32 (!%p246_p6), %v320_v4, 7  ;;  %v3669_v16 = vld [vmem:[%s4886_s4] ss:$0 sm:$0xff] (!%p246_p6) }
   0xd   : > { %v290_v22 = vld [vmem:[%s4887_s5] sm:$0x3] (!%p246_p6) }
   0xe   : > { %v331_v6 = vsub.s32 (!%p246_p6), 1, %v321_v5  ;;  %v322_v8 = vsub.s32 (!%p246_p6), 0, %v321_v5  ;;  %v291_v23 = vmul.f32 (!%p246_p6), 0.05, %v290_v22  ;;  %v292_v31 = vld [vmem:[%s4888_s6] sm:$0x1] (!%p246_p6) }
   0xf   : > { %v293_v32 = vmul.f32 (!%p246_p6), 0.05, %v292_v31 }
  0x10   : > { %v3655_v9 = vrot.slane (!%p246_p6), %v287_v7, %v331_v6  ;;  %v3662_v13 = vrot.slane (!%p246_p6), %v287_v7, %v322_v8  ;;  %v3676_v24 = vrot.slane (!%p246_p6), %v291_v23, %v331_v6  ;;  %v3678_v25 = vrot.slane (!%p246_p6), %v291_v23, %v322_v8 }
  0x11   : > { %v3689_v33 = vrot.slane (!%p246_p6), %v293_v32, %v322_v8 }
  0x12   : > { %s280_s10 = scalar_select %p279_p7, %s3618_s27, 1 }
  0x13   : > { %s3064_s29 = sshll.u32 (%p3630_p4), %s3618_s27, 3 }
  0x14   : > { %s2996_s11 = sshll.u32 %s280_s10, 3 }
  0x15   : > { %s3641_s14 = scalar_lea.vmem %s4883_s1, %s2996_s11  ;;  %s282_s17 = scalar_lea.vmem %s4882_s0, %s2996_s11 }
  0x16   : > { %v3647_v2 = vld [vmem:[%s3641_s14] sm:$0xff]  ;;  %s276_s11 = sand.u32 1, %s3491_s24  }
  0x17   : > { %v294_v3 = vld [vmem:[%s282_s17] sm:$0xff]  ;;  %298 = vperm.xlu0 %3155, %v3647_v2   ;;  %s2995_s12 = sshll.u32 %s276_s11, 9  ;;  %s4745_s11 = scalar_lea.vmem (%p3630_p4), %s4889_s7, %s3064_s29 }
  0x18   : > { %326 = vperm.xlu1 %3156, %v294_v3   ;;  %v343_v34 = vadd.f32 %v3689_v33, %v294_v3  ;;  %s3694_s13 = scalar_lea.vmem [#allocation2], %s2995_s12 }
  0x1b   : > { %317 = vperm.xlu0 %3155, %v294_v3  }
  0x1c   : > { %3158 = vset.pattern.permute.xlu1 %v3501_v0 }
  0x1f   : > { %3157 = vset.pattern.permute.xlu0 %v3502_v1 }
  0x96   : > { %v299_v11 = vpop.permute.xlu0 %298 }
  0x97   : > { %v327_v12 = vpop.permute.xlu1 %326  ;;  %v307_v14 = vmul.f32 %v3660_v10, %v299_v11 }
  0x98   : > { %v333_v15 = vmul.f32 %v3655_v9, %v327_v12 }
  0x99   : > { %v314_v19 = vadd.f32 %v3669_v16, %v307_v14 }
  0x9a   : > { %v318_v17 = vpop.permute.xlu0 %317 }
  0x9b   : > { %v324_v18 = vmul.f32 %v3662_v13, %v318_v17 }
  0x9d   : > { %v334_v20 = vadd.f32 %v333_v15, %v324_v18 }
  0x9f   : > { %v335_v21 = vadd.f32 %v334_v20, %v314_v19  ;;  %v3504_v19 = vmov 3  }
  0xa1   : > { %3340 = vtanh.f32 %v335_v21 }
  0xab   : > { %v3341_v26 = vpop.eup %3340 }
  0xac   : > { %v358_v27 = vmul.f32 %v3341_v26, %v3676_v24  ;;  %v348_v28 = vmul.f32 %v3341_v26, %v3678_v25 }
  0xae   : > { %v359_v29 = vsel %vm349_vm0, %v358_v27, 0.0  ;;  %v350_v30 = vsel %vm349_vm0, %v348_v28, 0.0 }
  0xaf   : > { %360 = vadd.xlane.f32.xlu0 %v359_v29  ;;  %351 = vadd.xlane.f32.xlu1 %v350_v30 }
  0xc5   : > { %368 = vperm.xlu0 %3157, %v3647_v2  }
  0xc9   : > { %3161 = vset.pattern.permute.xlu0 %v3501_v0 }
 0x13c   : > { %v361_v35 = vpop.xlane.xlu0 %360  ;;  %v352_v36 = vpop.xlane.xlu1 %351 }
 0x13d   : > { %v362_v37 = vadd.f32 %v361_v35, %v343_v34  ;;  %v353_v38 = vadd.f32 %v352_v36, %v343_v34 }
 0x13f   : > { %v364_v39 = vsel %vm363_vm1, %v353_v38, %v362_v37  ;;  %375 = vperm.xlu1 %3158, %v353_v38   ;;  %v394_v55 = vadd.f32 %v362_v37, %v3689_v33  ;;  %v388_v56 = vadd.f32 %v353_v38, %v3689_v33 }
 0x140   : > { %366 = vst.msk [vmem:[%s3694_s13] sm:$0xff] %vm365_vm2, %v364_v39 }
 0x143   : > { %3159 = vset.pattern.permute.xlu1 %v3502_v1 }
 0x144   : > { %381 = vperm.xlu1 %3159, %v362_v37   ;;  %v369_v41 = vpop.permute.xlu0 %368 }
 0x145   : > { %v371_v43 = vmul.f32 %v3660_v10, %v369_v41 }
 0x147   : > { %v372_v46 = vadd.f32 %v3669_v16, %v371_v43 }
 0x148   : > { %3160 = vset.pattern.permute.xlu1 %v3503_v40 }
 0x1be   : > { %v376_v42 = vpop.permute.xlu1 %375 }
 0x1bf   : > { %v378_v45 = vmul.f32 %v376_v42, %v3662_v13 }
 0x1c3   : > { %v382_v44 = vpop.permute.xlu1 %381 }
 0x1c4   : > { %v384_v47 = vmul.f32 %v382_v44, %v3655_v9  ;;  %v3505_v44 = vmov 4  }
 0x1c6   : > { %v385_v48 = vadd.f32 %v384_v47, %v378_v45 }
 0x1c8   : > { %v386_v49 = vadd.f32 %v385_v48, %v372_v46 }
 0x1ca   : > { %3342 = vtanh.f32 %v386_v49 }
 0x1d4   : > { %v3343_v50 = vpop.eup %3342 }
 0x1d5   : > { %v395_v51 = vmul.f32 %v3343_v50, %v3676_v24  ;;  %v389_v52 = vmul.f32 %v3343_v50, %v3678_v25 }
 0x1d7   : > { %v396_v53 = vsel %vm349_vm0, %v395_v51, 0.0  ;;  %v390_v54 = vsel %vm349_vm0, %v389_v52, 0.0  ;;  %v3506_v52 = vmov 5  }
 0x1d8   : > { %397 = vadd.xlane.f32.xlu0 %v396_v53  ;;  %391 = vadd.xlane.f32.xlu1 %v390_v54 }
 0x1e9   : > { %404 = vperm.xlu1 %3160, %v3647_v2  }
 0x1ed   : > { %3162 = vset.pattern.permute.xlu1 %v3502_v1 }
 0x265   : > { %v398_v57 = vpop.xlane.xlu0 %397  ;;  %v392_v58 = vpop.xlane.xlu1 %391 }
 0x266   : > { %v399_v59 = vadd.f32 %v398_v57, %v394_v55  ;;  %v393_v60 = vadd.f32 %v392_v58, %v388_v56 }
 0x268   : > { %v400_v61 = vsel %vm363_vm1, %v393_v60, %v399_v59  ;;  %417 = vperm.xlu1 %3162, %v399_v59   ;;  %411 = vperm.xlu0 %3161, %v393_v60   ;;  %v424_v20 = vadd.f32 %v393_v60, %v3689_v33  ;;  %v430_v23 = vadd.f32 %v399_v59, %v3689_v33 }
 0x269   : > { %3000 = vst.msk [vmem:[%s3694_s13 + $0x8] sm:$0xff] %vm365_vm2, %v400_v61  ;;  %v405_v62 = vpop.permute.xlu1 %404 }
 0x26a   : > { %v407_v63 = vmul.f32 %v3660_v10, %v405_v62 }
 0x26c   : > { %3164 = vset.pattern.permute.xlu1 %v3501_v0  ;;  %v408_v7 = vadd.f32 %v3669_v16, %v407_v63  ;;  %3163 = vset.pattern.permute.xlu0 %v3504_v19 }
 0x26d   : > { %440 = vperm.xlu0 %3163, %v3647_v2  }
 0x271   : > { %3165 = vset.pattern.permute.xlu0 %v3502_v1 }
 0x2e7   : > { %v418_v3 = vpop.permute.xlu1 %417  ;;  %v412_v4 = vpop.permute.xlu0 %411 }
 0x2e8   : > { %v420_v5 = vmul.f32 %v418_v3, %v3655_v9  ;;  %v414_v6 = vmul.f32 %v412_v4, %v3662_v13 }
 0x2ea   : > { %v421_v8 = vadd.f32 %v420_v5, %v414_v6 }
 0x2ec   : > { %v422_v11 = vadd.f32 %v421_v8, %v408_v7  ;;  %v441_v29 = vpop.permute.xlu0 %440 }
 0x2ed   : > { %v443_v31 = vmul.f32 %v3660_v10, %v441_v29 }
 0x2ee   : > { %3344 = vtanh.f32 %v422_v11 }
 0x2ef   : > { %v444_v36 = vadd.f32 %v3669_v16, %v443_v31 }
 0x2f8   : > { %v3345_v12 = vpop.eup %3344 }
 0x2f9   : > { %v425_v14 = vmul.f32 %v3345_v12, %v3678_v25  ;;  %v431_v17 = vmul.f32 %v3345_v12, %v3676_v24 }
 0x2fb   : > { %v426_v15 = vsel %vm349_vm0, %v425_v14, 0.0  ;;  %v432_v18 = vsel %vm349_vm0, %v431_v17, 0.0  ;;  %v3507_v17 = vmov 6  }
 0x2fc   : > { %427 = vadd.xlane.f32.xlu1 %v426_v15 }
 0x300   : > { %433 = vadd.xlane.f32.xlu1 %v432_v18 }
 0x389   : > { %v428_v21 = vpop.xlane.xlu1 %427 }
 0x38a   : > { %v429_v22 = vadd.f32 %v428_v21, %v424_v20 }
 0x38c   : > { %447 = vperm.xlu1 %3164, %v429_v22   ;;  %v460_v46 = vadd.f32 %v429_v22, %v3689_v33 }
 0x38d   : > { %v434_v26 = vpop.xlane.xlu1 %433 }
 0x38e   : > { %v435_v27 = vadd.f32 %v434_v26, %v430_v23 }
 0x390   : > { %v436_v28 = vsel %vm363_vm1, %v429_v22, %v435_v27  ;;  %453 = vperm.xlu0 %3165, %v435_v27   ;;  %v466_v45 = vadd.f32 %v435_v27, %v3689_v33 }
 0x391   : > { %3001 = vst.msk [vmem:[%s3694_s13 + $0x10] sm:$0xff] %vm365_vm2, %v436_v28 }
 0x394   : > { %3166 = vset.pattern.permute.xlu0 %v3505_v44 }
 0x40b   : > { %v448_v30 = vpop.permute.xlu1 %447 }
 0x40c   : > { %v450_v34 = vmul.f32 %v448_v30, %v3662_v13 }
 0x40f   : > { %v454_v32 = vpop.permute.xlu0 %453 }
 0x410   : > { %v456_v35 = vmul.f32 %v454_v32, %v3655_v9 }
 0x412   : > { %v457_v37 = vadd.f32 %v456_v35, %v450_v34 }
 0x414   : > { %v458_v38 = vadd.f32 %v457_v37, %v444_v36 }
 0x416   : > { %3346 = vtanh.f32 %v458_v38 }
 0x420   : > { %v3347_v39 = vpop.eup %3346 }
 0x421   : > { %v467_v40 = vmul.f32 %v3347_v39, %v3676_v24  ;;  %v461_v41 = vmul.f32 %v3347_v39, %v3678_v25 }
 0x423   : > { %v468_v42 = vsel %vm349_vm0, %v467_v40, 0.0  ;;  %v462_v43 = vsel %vm349_vm0, %v461_v41, 0.0 }
 0x424   : > { %469 = vadd.xlane.f32.xlu1 %v468_v42  ;;  %463 = vadd.xlane.f32.xlu0 %v462_v43  ;;  %v3508_v42 = vmov 7  }
 0x43a   : > { %476 = vperm.xlu0 %3166, %v3647_v2  }
 0x43e   : > { %3169 = vset.pattern.permute.xlu0 %v3501_v0 }
 0x4b1   : > { %v470_v47 = vpop.xlane.xlu1 %469  ;;  %v464_v48 = vpop.xlane.xlu0 %463 }
 0x4b2   : > { %v471_v49 = vadd.f32 %v470_v47, %v466_v45  ;;  %v465_v50 = vadd.f32 %v464_v48, %v460_v46 }
 0x4b4   : > { %v472_v51 = vsel %vm363_vm1, %v465_v50, %v471_v49  ;;  %483 = vperm.xlu1 %3164, %v465_v50   ;;  %v502_v6 = vadd.f32 %v471_v49, %v3689_v33  ;;  %v496_v7 = vadd.f32 %v465_v50, %v3689_v33 }
 0x4b5   : > { %3002 = vst.msk [vmem:[%s3694_s13 + $0x18] sm:$0xff] %vm365_vm2, %v472_v51 }
 0x4b8   : > { %3167 = vset.pattern.permute.xlu1 %v3502_v1 }
 0x4b9   : > { %489 = vperm.xlu1 %3167, %v471_v49   ;;  %v477_v53 = vpop.permute.xlu0 %476 }
 0x4ba   : > { %v479_v55 = vmul.f32 %v3660_v10, %v477_v53 }
 0x4bc   : > { %v480_v58 = vadd.f32 %v3669_v16, %v479_v55 }
 0x4bd   : > { %3168 = vset.pattern.permute.xlu1 %v3506_v52 }
 0x533   : > { %v484_v54 = vpop.permute.xlu1 %483 }
 0x534   : > { %v486_v57 = vmul.f32 %v484_v54, %v3662_v13 }
 0x538   : > { %v490_v56 = vpop.permute.xlu1 %489 }
 0x539   : > { %v492_v59 = vmul.f32 %v490_v56, %v3655_v9 }
 0x53b   : > { %v493_v60 = vadd.f32 %v492_v59, %v486_v57 }
 0x53d   : > { %v494_v61 = vadd.f32 %v493_v60, %v480_v58 }
 0x53f   : > { %3348 = vtanh.f32 %v494_v61 }
 0x549   : > { %v3349_v62 = vpop.eup %3348 }
 0x54a   : > { %v503_v63 = vmul.f32 %v3349_v62, %v3676_v24  ;;  %v497_v3 = vmul.f32 %v3349_v62, %v3678_v25 }
 0x54c   : > { %v504_v4 = vsel %vm349_vm0, %v503_v63, 0.0  ;;  %v498_v5 = vsel %vm349_vm0, %v497_v3, 0.0  ;;  %v3509_v3 = vmov 8  }
 0x54d   : > { %505 = vadd.xlane.f32.xlu0 %v504_v4  ;;  %499 = vadd.xlane.f32.xlu1 %v498_v5 }
 0x55e   : > { %512 = vperm.xlu1 %3168, %v3647_v2  }
 0x562   : > { %3170 = vset.pattern.permute.xlu1 %v3502_v1 }
 0x5da   : > { %v506_v8 = vpop.xlane.xlu0 %505  ;;  %v500_v11 = vpop.xlane.xlu1 %499 }
 0x5db   : > { %v507_v12 = vadd.f32 %v506_v8, %v502_v6  ;;  %v501_v14 = vadd.f32 %v500_v11, %v496_v7 }
 0x5dd   : > { %v508_v15 = vsel %vm363_vm1, %v501_v14, %v507_v12  ;;  %525 = vperm.xlu1 %3170, %v507_v12   ;;  %519 = vperm.xlu0 %3169, %v501_v14   ;;  %v538_v35 = vadd.f32 %v507_v12, %v3689_v33  ;;  %v532_v36 = vadd.f32 %v501_v14, %v3689_v33 }
 0x5de   : > { %3003 = vst.msk [vmem:[%s3694_s13 + $0x20] sm:$0xff] %vm365_vm2, %v508_v15  ;;  %v513_v18 = vpop.permute.xlu1 %512 }
 0x5df   : > { %v515_v19 = vmul.f32 %v3660_v10, %v513_v18 }
 0x5e1   : > { %3171 = vset.pattern.permute.xlu1 %v3507_v17  ;;  %v516_v26 = vadd.f32 %v3669_v16, %v515_v19  ;;  %3174 = vset.pattern.permute.xlu0 %v3508_v42 }
 0x65c   : > { %v526_v20 = vpop.permute.xlu1 %525  ;;  %v520_v21 = vpop.permute.xlu0 %519 }
 0x65d   : > { %v528_v22 = vmul.f32 %v526_v20, %v3655_v9  ;;  %v522_v23 = vmul.f32 %v520_v21, %v3662_v13 }
 0x65f   : > { %v529_v27 = vadd.f32 %v528_v22, %v522_v23 }
 0x661   : > { %v530_v28 = vadd.f32 %v529_v27, %v516_v26 }
 0x663   : > { %3350 = vtanh.f32 %v530_v28 }
 0x66d   : > { %v3351_v29 = vpop.eup %3350 }
 0x66e   : > { %v539_v30 = vmul.f32 %v3351_v29, %v3676_v24  ;;  %v533_v31 = vmul.f32 %v3351_v29, %v3678_v25 }
 0x670   : > { %v540_v32 = vsel %vm349_vm0, %v539_v30, 0.0  ;;  %v534_v34 = vsel %vm349_vm0, %v533_v31, 0.0  ;;  %v3510_v31 = vmov 9  }
 0x671   : > { %541 = vadd.xlane.f32.xlu0 %v540_v32  ;;  %535 = vadd.xlane.f32.xlu1 %v534_v34 }
 0x682   : > { %548 = vperm.xlu1 %3171, %v3647_v2  }
 0x686   : > { %3172 = vset.pattern.permute.xlu1 %v3501_v0 }
 0x6fe   : > { %v542_v37 = vpop.xlane.xlu0 %541  ;;  %v536_v38 = vpop.xlane.xlu1 %535 }
 0x6ff   : > { %v543_v39 = vadd.f32 %v542_v37, %v538_v35  ;;  %v537_v40 = vadd.f32 %v536_v38, %v532_v36 }
 0x701   : > { %v544_v41 = vsel %vm363_vm1, %v537_v40, %v543_v39  ;;  %555 = vperm.xlu1 %3172, %v537_v40   ;;  %v574_v57 = vadd.f32 %v543_v39, %v3689_v33  ;;  %v568_v58 = vadd.f32 %v537_v40, %v3689_v33 }
 0x702   : > { %3004 = vst.msk [vmem:[%s3694_s13 + $0x28] sm:$0xff] %vm365_vm2, %v544_v41  ;;  %v549_v43 = vpop.permute.xlu1 %548 }
 0x703   : > { %v551_v45 = vmul.f32 %v3660_v10, %v549_v43 }
 0x705   : > { %3173 = vset.pattern.permute.xlu1 %v3502_v1  ;;  %v552_v49 = vadd.f32 %v3669_v16, %v551_v45 }
 0x706   : > { %561 = vperm.xlu1 %3173, %v543_v39  }
 0x70a   : > { %3175 = vset.pattern.permute.xlu1 %v3501_v0 }
 0x780   : > { %v556_v44 = vpop.permute.xlu1 %555 }
 0x781   : > { %v558_v47 = vmul.f32 %v556_v44, %v3662_v13 }
 0x785   : > { %v562_v46 = vpop.permute.xlu1 %561 }
 0x786   : > { %v564_v48 = vmul.f32 %v562_v46, %v3655_v9 }
 0x788   : > { %v565_v50 = vadd.f32 %v564_v48, %v558_v47 }
 0x78a   : > { %v566_v51 = vadd.f32 %v565_v50, %v552_v49 }
 0x78c   : > { %3352 = vtanh.f32 %v566_v51 }
 0x796   : > { %v3353_v52 = vpop.eup %3352 }
 0x797   : > { %v575_v53 = vmul.f32 %v3353_v52, %v3676_v24  ;;  %v569_v54 = vmul.f32 %v3353_v52, %v3678_v25 }
 0x799   : > { %v576_v55 = vsel %vm349_vm0, %v575_v53, 0.0  ;;  %v570_v56 = vsel %vm349_vm0, %v569_v54, 0.0 }
 0x79a   : > { %577 = vadd.xlane.f32.xlu0 %v576_v55  ;;  %571 = vadd.xlane.f32.xlu1 %v570_v56 }
 0x7b0   : > { %584 = vperm.xlu0 %3174, %v3647_v2  }
 0x7b4   : > { %3176 = vset.pattern.permute.xlu0 %v3502_v1 }
 0x827   : > { %v578_v59 = vpop.xlane.xlu0 %577  ;;  %v572_v60 = vpop.xlane.xlu1 %571 }
 0x828   : > { %v579_v61 = vadd.f32 %v578_v59, %v574_v57  ;;  %v573_v62 = vadd.f32 %v572_v60, %v568_v58 }
 0x82a   : > { %v580_v63 = vsel %vm363_vm1, %v573_v62, %v579_v61  ;;  %597 = vperm.xlu0 %3176, %v579_v61   ;;  %591 = vperm.xlu1 %3175, %v573_v62   ;;  %v610_v22 = vadd.f32 %v579_v61, %v3689_v33  ;;  %v604_v23 = vadd.f32 %v573_v62, %v3689_v33 }
 0x82b   : > { %3005 = vst.msk [vmem:[%s3694_s13 + $0x30] sm:$0xff] %vm365_vm2, %v580_v63 }
 0x82e   : > { %3178 = vset.pattern.permute.xlu0 %v3501_v0  ;;  %3177 = vset.pattern.permute.xlu1 %v3509_v3 }
 0x82f   : > { %v585_v4 = vpop.permute.xlu0 %584 }
 0x830   : > { %v587_v5 = vmul.f32 %v3660_v10, %v585_v4 }
 0x832   : > { %v588_v12 = vadd.f32 %v3669_v16, %v587_v5 }
 0x8a9   : > { %v598_v6 = vpop.permute.xlu0 %597  ;;  %v592_v7 = vpop.permute.xlu1 %591 }
 0x8aa   : > { %v600_v8 = vmul.f32 %v598_v6, %v3655_v9  ;;  %v594_v11 = vmul.f32 %v592_v7, %v3662_v13  ;;  %v3511_v7 = vmov 10  }
 0x8ac   : > { %v601_v14 = vadd.f32 %v600_v8, %v594_v11 }
 0x8ae   : > { %v602_v15 = vadd.f32 %v601_v14, %v588_v12 }
 0x8b0   : > { %3354 = vtanh.f32 %v602_v15 }
 0x8ba   : > { %v3355_v17 = vpop.eup %3354 }
 0x8bb   : > { %v611_v18 = vmul.f32 %v3355_v17, %v3676_v24  ;;  %v605_v19 = vmul.f32 %v3355_v17, %v3678_v25 }
 0x8bd   : > { %v612_v20 = vsel %vm349_vm0, %v611_v18, 0.0  ;;  %v606_v21 = vsel %vm349_vm0, %v605_v19, 0.0 }
 0x8be   : > { %613 = vadd.xlane.f32.xlu0 %v612_v20  ;;  %607 = vadd.xlane.f32.xlu1 %v606_v21 }
 0x8cf   : > { %620 = vperm.xlu1 %3177, %v3647_v2  }
 0x8d3   : > { %3179 = vset.pattern.permute.xlu1 %v3502_v1 }
 0x94b   : > { %v614_v26 = vpop.xlane.xlu0 %613  ;;  %v608_v27 = vpop.xlane.xlu1 %607 }
 0x94c   : > { %v615_v28 = vadd.f32 %v614_v26, %v610_v22  ;;  %v609_v29 = vadd.f32 %v608_v27, %v604_v23 }
 0x94e   : > { %v616_v30 = vsel %vm363_vm1, %v609_v29, %v615_v28  ;;  %633 = vperm.xlu1 %3179, %v615_v28   ;;  %627 = vperm.xlu0 %3178, %v609_v29   ;;  %v646_v47 = vadd.f32 %v615_v28, %v3689_v33  ;;  %v640_v48 = vadd.f32 %v609_v29, %v3689_v33 }
 0x94f   : > { %3006 = vst.msk [vmem:[%s3694_s13 + $0x38] sm:$0xff] %vm365_vm2, %v616_v30  ;;  %v621_v32 = vpop.permute.xlu1 %620 }
 0x950   : > { %v623_v34 = vmul.f32 %v3660_v10, %v621_v32 }
 0x952   : > { %3182 = vset.pattern.permute.xlu0 %v3502_v1  ;;  %3180 = vset.pattern.permute.xlu1 %v3510_v31  ;;  %v624_v39 = vadd.f32 %v3669_v16, %v623_v34 }
 0x9cd   : > { %v634_v35 = vpop.permute.xlu1 %633  ;;  %v628_v36 = vpop.permute.xlu0 %627 }
 0x9ce   : > { %v636_v37 = vmul.f32 %v634_v35, %v3655_v9  ;;  %v630_v38 = vmul.f32 %v628_v36, %v3662_v13  ;;  %v3512_v36 = vmov 11  }
 0x9d0   : > { %v637_v40 = vadd.f32 %v636_v37, %v630_v38 }
 0x9d2   : > { %v638_v41 = vadd.f32 %v637_v40, %v624_v39 }
 0x9d4   : > { %3356 = vtanh.f32 %v638_v41 }
 0x9de   : > { %v3357_v42 = vpop.eup %3356 }
 0x9df   : > { %v647_v43 = vmul.f32 %v3357_v42, %v3676_v24  ;;  %v641_v44 = vmul.f32 %v3357_v42, %v3678_v25 }
 0x9e1   : > { %v648_v45 = vsel %vm349_vm0, %v647_v43, 0.0  ;;  %v642_v46 = vsel %vm349_vm0, %v641_v44, 0.0  ;;  %v3513_v44 = vmov 12  }
 0x9e2   : > { %649 = vadd.xlane.f32.xlu0 %v648_v45  ;;  %643 = vadd.xlane.f32.xlu1 %v642_v46 }
 0x9f3   : > { %656 = vperm.xlu1 %3180, %v3647_v2  }
 0x9f7   : > { %3181 = vset.pattern.permute.xlu1 %v3501_v0 }
 0xa6f   : > { %v650_v49 = vpop.xlane.xlu0 %649  ;;  %v644_v50 = vpop.xlane.xlu1 %643 }
 0xa70   : > { %v651_v51 = vadd.f32 %v650_v49, %v646_v47  ;;  %v645_v52 = vadd.f32 %v644_v50, %v640_v48 }
 0xa72   : > { %v652_v53 = vsel %vm363_vm1, %v645_v52, %v651_v51  ;;  %669 = vperm.xlu0 %3182, %v651_v51   ;;  %663 = vperm.xlu1 %3181, %v645_v52   ;;  %v676_v8 = vadd.f32 %v645_v52, %v3689_v33  ;;  %v682_v14 = vadd.f32 %v651_v51, %v3689_v33 }
 0xa73   : > { %3007 = vst.msk [vmem:[%s3694_s13 + $0x40] sm:$0xff] %vm365_vm2, %v652_v53  ;;  %v657_v54 = vpop.permute.xlu1 %656 }
 0xa74   : > { %v659_v55 = vmul.f32 %v3660_v10, %v657_v54 }
 0xa76   : > { %3184 = vset.pattern.permute.xlu0 %v3501_v0  ;;  %v660_v60 = vadd.f32 %v3669_v16, %v659_v55  ;;  %3183 = vset.pattern.permute.xlu1 %v3511_v7 }
 0xaf1   : > { %v670_v56 = vpop.permute.xlu0 %669  ;;  %v664_v57 = vpop.permute.xlu1 %663 }
 0xaf2   : > { %v672_v58 = vmul.f32 %v670_v56, %v3655_v9  ;;  %v666_v59 = vmul.f32 %v664_v57, %v3662_v13 }
 0xaf4   : > { %v673_v61 = vadd.f32 %v672_v58, %v666_v59 }
 0xaf6   : > { %v674_v62 = vadd.f32 %v673_v61, %v660_v60 }
 0xaf8   : > { %3358 = vtanh.f32 %v674_v62 }
 0xb02   : > { %v3359_v63 = vpop.eup %3358 }
 0xb03   : > { %v677_v3 = vmul.f32 %v3359_v63, %v3678_v25  ;;  %v683_v5 = vmul.f32 %v3359_v63, %v3676_v24 }
 0xb05   : > { %v678_v4 = vsel %vm349_vm0, %v677_v3, 0.0  ;;  %v684_v6 = vsel %vm349_vm0, %v683_v5, 0.0 }
 0xb06   : > { %679 = vadd.xlane.f32.xlu1 %v678_v4 }
 0xb0a   : > { %685 = vadd.xlane.f32.xlu1 %v684_v6 }
 0xb1b   : > { %692 = vperm.xlu1 %3183, %v3647_v2  }
 0xb1f   : > { %3187 = vset.pattern.permute.xlu1 %v3501_v0 }
 0xb93   : > { %v680_v11 = vpop.xlane.xlu1 %679 }
 0xb94   : > { %v681_v12 = vadd.f32 %v680_v11, %v676_v8 }
 0xb96   : > { %699 = vperm.xlu0 %3184, %v681_v12   ;;  %v712_v38 = vadd.f32 %v681_v12, %v3689_v33 }
 0xb97   : > { %v686_v15 = vpop.xlane.xlu1 %685 }
 0xb98   : > { %v687_v17 = vadd.f32 %v686_v15, %v682_v14 }
 0xb9a   : > { %v688_v18 = vsel %vm363_vm1, %v681_v12, %v687_v17  ;;  %3185 = vset.pattern.permute.xlu0 %v3502_v1  ;;  %v718_v37 = vadd.f32 %v687_v17, %v3689_v33 }
 0xb9b   : > { %3008 = vst.msk [vmem:[%s3694_s13 + $0x48] sm:$0xff] %vm365_vm2, %v688_v18  ;;  %705 = vperm.xlu0 %3185, %v687_v17   ;;  %v693_v19 = vpop.permute.xlu1 %692 }
 0xb9c   : > { %v695_v21 = vmul.f32 %v3660_v10, %v693_v19 }
 0xb9e   : > { %v696_v26 = vadd.f32 %v3669_v16, %v695_v21 }
 0xb9f   : > { %3186 = vset.pattern.permute.xlu0 %v3512_v36 }
 0xc15   : > { %v700_v20 = vpop.permute.xlu0 %699 }
 0xc16   : > { %v702_v23 = vmul.f32 %v700_v20, %v3662_v13 }
 0xc1a   : > { %v706_v22 = vpop.permute.xlu0 %705 }
 0xc1b   : > { %v708_v27 = vmul.f32 %v706_v22, %v3655_v9 }
 0xc1d   : > { %v709_v28 = vadd.f32 %v708_v27, %v702_v23  ;;  %v3514_v23 = vmov 13  }
 0xc1f   : > { %v710_v29 = vadd.f32 %v709_v28, %v696_v26 }
 0xc21   : > { %3360 = vtanh.f32 %v710_v29 }
 0xc2b   : > { %v3361_v30 = vpop.eup %3360 }
 0xc2c   : > { %v719_v31 = vmul.f32 %v3361_v30, %v3676_v24  ;;  %v713_v32 = vmul.f32 %v3361_v30, %v3678_v25 }
 0xc2e   : > { %v720_v34 = vsel %vm349_vm0, %v719_v31, 0.0  ;;  %v714_v35 = vsel %vm349_vm0, %v713_v32, 0.0 }
 0xc2f   : > { %721 = vadd.xlane.f32.xlu0 %v720_v34  ;;  %715 = vadd.xlane.f32.xlu1 %v714_v35 }
 0xc45   : > { %728 = vperm.xlu0 %3186, %v3647_v2  }
 0xc49   : > { %3190 = vset.pattern.permute.xlu0 %v3501_v0 }
 0xcbc   : > { %v722_v39 = vpop.xlane.xlu0 %721  ;;  %v716_v40 = vpop.xlane.xlu1 %715 }
 0xcbd   : > { %v723_v41 = vadd.f32 %v722_v39, %v718_v37  ;;  %v717_v42 = vadd.f32 %v716_v40, %v712_v38 }
 0xcbf   : > { %v724_v43 = vsel %vm363_vm1, %v717_v42, %v723_v41  ;;  %735 = vperm.xlu1 %3187, %v717_v42   ;;  %v754_v59 = vadd.f32 %v723_v41, %v3689_v33  ;;  %v748_v60 = vadd.f32 %v717_v42, %v3689_v33 }
 0xcc0   : > { %3009 = vst.msk [vmem:[%s3694_s13 + $0x50] sm:$0xff] %vm365_vm2, %v724_v43 }
 0xcc3   : > { %3188 = vset.pattern.permute.xlu1 %v3502_v1 }
 0xcc4   : > { %741 = vperm.xlu1 %3188, %v723_v41   ;;  %v729_v45 = vpop.permute.xlu0 %728 }
 0xcc5   : > { %v731_v47 = vmul.f32 %v3660_v10, %v729_v45 }
 0xcc7   : > { %v732_v50 = vadd.f32 %v3669_v16, %v731_v47 }
 0xcc8   : > { %3189 = vset.pattern.permute.xlu1 %v3513_v44 }
 0xd3e   : > { %v736_v46 = vpop.permute.xlu1 %735 }
 0xd3f   : > { %v738_v49 = vmul.f32 %v736_v46, %v3662_v13 }
 0xd43   : > { %v742_v48 = vpop.permute.xlu1 %741 }
 0xd44   : > { %v744_v51 = vmul.f32 %v742_v48, %v3655_v9  ;;  %v3515_v48 = vmov 14  }
 0xd46   : > { %v745_v52 = vadd.f32 %v744_v51, %v738_v49 }
 0xd48   : > { %v746_v53 = vadd.f32 %v745_v52, %v732_v50 }
 0xd4a   : > { %3362 = vtanh.f32 %v746_v53 }
 0xd54   : > { %v3363_v54 = vpop.eup %3362 }
 0xd55   : > { %v755_v55 = vmul.f32 %v3363_v54, %v3676_v24  ;;  %v749_v56 = vmul.f32 %v3363_v54, %v3678_v25 }
 0xd57   : > { %v756_v57 = vsel %vm349_vm0, %v755_v55, 0.0  ;;  %v750_v58 = vsel %vm349_vm0, %v749_v56, 0.0  ;;  %v3516_v56 = vmov 15  }
 0xd58   : > { %757 = vadd.xlane.f32.xlu0 %v756_v57  ;;  %751 = vadd.xlane.f32.xlu1 %v750_v58 }
 0xd69   : > { %764 = vperm.xlu1 %3189, %v3647_v2  }
 0xd6d   : > { %3191 = vset.pattern.permute.xlu1 %v3502_v1 }
 0xde5   : > { %v758_v61 = vpop.xlane.xlu0 %757  ;;  %v752_v62 = vpop.xlane.xlu1 %751 }
 0xde6   : > { %v759_v63 = vadd.f32 %v758_v61, %v754_v59  ;;  %v753_v3 = vadd.f32 %v752_v62, %v748_v60 }
 0xde8   : > { %v760_v4 = vsel %vm363_vm1, %v753_v3, %v759_v63  ;;  %777 = vperm.xlu1 %3191, %v759_v63   ;;  %771 = vperm.xlu0 %3190, %v753_v3   ;;  %v784_v26 = vadd.f32 %v753_v3, %v3689_v33  ;;  %v790_v29 = vadd.f32 %v759_v63, %v3689_v33 }
 0xde9   : > { %3010 = vst.msk [vmem:[%s3694_s13 + $0x58] sm:$0xff] %vm365_vm2, %v760_v4  ;;  %v765_v5 = vpop.permute.xlu1 %764 }
 0xdea   : > { %v767_v6 = vmul.f32 %v3660_v10, %v765_v5 }
 0xdec   : > { %3193 = vset.pattern.permute.xlu1 %v3501_v0  ;;  %v768_v14 = vadd.f32 %v3669_v16, %v767_v6  ;;  %3192 = vset.pattern.permute.xlu0 %v3514_v23 }
 0xded   : > { %800 = vperm.xlu0 %3192, %v3647_v2  }
 0xdf1   : > { %3194 = vset.pattern.permute.xlu0 %v3502_v1 }
 0xe67   : > { %v778_v7 = vpop.permute.xlu1 %777  ;;  %v772_v8 = vpop.permute.xlu0 %771 }
 0xe68   : > { %v780_v11 = vmul.f32 %v778_v7, %v3655_v9  ;;  %v774_v12 = vmul.f32 %v772_v8, %v3662_v13 }
 0xe6a   : > { %v781_v15 = vadd.f32 %v780_v11, %v774_v12 }
 0xe6c   : > { %v782_v17 = vadd.f32 %v781_v15, %v768_v14  ;;  %v801_v34 = vpop.permute.xlu0 %800 }
 0xe6d   : > { %v803_v36 = vmul.f32 %v3660_v10, %v801_v34 }
 0xe6e   : > { %3364 = vtanh.f32 %v782_v17 }
 0xe6f   : > { %v804_v40 = vadd.f32 %v3669_v16, %v803_v36 }
 0xe78   : > { %v3365_v18 = vpop.eup %3364 }
 0xe79   : > { %v785_v19 = vmul.f32 %v3365_v18, %v3678_v25  ;;  %v791_v21 = vmul.f32 %v3365_v18, %v3676_v24 }
 0xe7b   : > { %v786_v20 = vsel %vm349_vm0, %v785_v19, 0.0  ;;  %v792_v22 = vsel %vm349_vm0, %v791_v21, 0.0  ;;  %v3517_v21 = vmov 16  }
 0xe7c   : > { %787 = vadd.xlane.f32.xlu1 %v786_v20 }
 0xe80   : > { %793 = vadd.xlane.f32.xlu1 %v792_v22 }
 0xf09   : > { %v788_v27 = vpop.xlane.xlu1 %787 }
 0xf0a   : > { %v789_v28 = vadd.f32 %v788_v27, %v784_v26 }
 0xf0c   : > { %807 = vperm.xlu1 %3193, %v789_v28   ;;  %v820_v50 = vadd.f32 %v789_v28, %v3689_v33 }
 0xf0d   : > { %v794_v30 = vpop.xlane.xlu1 %793 }
 0xf0e   : > { %v795_v31 = vadd.f32 %v794_v30, %v790_v29 }
 0xf10   : > { %v796_v32 = vsel %vm363_vm1, %v789_v28, %v795_v31  ;;  %813 = vperm.xlu0 %3194, %v795_v31   ;;  %v826_v49 = vadd.f32 %v795_v31, %v3689_v33 }
 0xf11   : > { %3011 = vst.msk [vmem:[%s3694_s13 + $0x60] sm:$0xff] %vm365_vm2, %v796_v32 }
 0xf14   : > { %3195 = vset.pattern.permute.xlu0 %v3515_v48 }
 0xf8b   : > { %v808_v35 = vpop.permute.xlu1 %807 }
 0xf8c   : > { %v810_v38 = vmul.f32 %v808_v35, %v3662_v13 }
 0xf8f   : > { %v814_v37 = vpop.permute.xlu0 %813 }
 0xf90   : > { %v816_v39 = vmul.f32 %v814_v37, %v3655_v9  ;;  %v3929_v37 = vld [vmem:[%s3641_s14] sm:$0xff] }
 0xf92   : > { %v817_v41 = vadd.f32 %v816_v39, %v810_v38 }
 0xf94   : > { %v818_v42 = vadd.f32 %v817_v41, %v804_v40 }
 0xf96   : > { %3366 = vtanh.f32 %v818_v42 }
 0xfa0   : > { %v3367_v43 = vpop.eup %3366 }
 0xfa1   : > { %v827_v44 = vmul.f32 %v3367_v43, %v3676_v24  ;;  %v821_v45 = vmul.f32 %v3367_v43, %v3678_v25 }
 0xfa3   : > { %v828_v46 = vsel %vm349_vm0, %v827_v44, 0.0  ;;  %v822_v47 = vsel %vm349_vm0, %v821_v45, 0.0  ;;  %v3518_v44 = vmov 17  }
 0xfa4   : > { %829 = vadd.xlane.f32.xlu1 %v828_v46  ;;  %823 = vadd.xlane.f32.xlu0 %v822_v47  ;;  %v3943_v47 = vld [vmem:[%s4885_s3] ss:$0 sm:$0xff] }
 0xfba   : > { %836 = vperm.xlu0 %3195, %v3647_v2  }
 0xfbe   : > { %3198 = vset.pattern.permute.xlu0 %v3501_v0 }
0x1031   : > { %v830_v51 = vpop.xlane.xlu1 %829  ;;  %v824_v52 = vpop.xlane.xlu0 %823 }
0x1032   : > { %v831_v53 = vadd.f32 %v830_v51, %v826_v49  ;;  %v825_v54 = vadd.f32 %v824_v52, %v820_v50  ;;  %v3951_v52 = vld [vmem:[%s4886_s4] ss:$0 sm:$0xff] }
0x1034   : > { %v832_v55 = vsel %vm363_vm1, %v825_v54, %v831_v53  ;;  %843 = vperm.xlu1 %3193, %v825_v54   ;;  %v862_v12 = vadd.f32 %v831_v53, %v3689_v33  ;;  %v856_v14 = vadd.f32 %v825_v54, %v3689_v33 }
0x1035   : > { %3012 = vst.msk [vmem:[%s3694_s13 + $0x68] sm:$0xff] %vm365_vm2, %v832_v55 }
0x1038   : > { %3196 = vset.pattern.permute.xlu1 %v3502_v1 }
0x1039   : > { %849 = vperm.xlu1 %3196, %v831_v53   ;;  %v837_v57 = vpop.permute.xlu0 %836 }
0x103a   : > { %v839_v59 = vmul.f32 %v3660_v10, %v837_v57 }
0x103c   : > { %v840_v62 = vadd.f32 %v3669_v16, %v839_v59 }
0x103d   : > { %3197 = vset.pattern.permute.xlu1 %v3516_v56 }
0x10b3   : > { %v844_v58 = vpop.permute.xlu1 %843 }
0x10b4   : > { %v846_v61 = vmul.f32 %v844_v58, %v3662_v13 }
0x10b8   : > { %v850_v60 = vpop.permute.xlu1 %849 }
0x10b9   : > { %v852_v63 = vmul.f32 %v850_v60, %v3655_v9 }
0x10bb   : > { %v853_v3 = vadd.f32 %v852_v63, %v846_v61 }
0x10bd   : > { %v854_v4 = vadd.f32 %v853_v3, %v840_v62 }
0x10bf   : > { %3368 = vtanh.f32 %v854_v4 }
0x10c9   : > { %v3369_v5 = vpop.eup %3368 }
0x10ca   : > { %v863_v6 = vmul.f32 %v3369_v5, %v3676_v24  ;;  %v857_v7 = vmul.f32 %v3369_v5, %v3678_v25 }
0x10cc   : > { %v864_v8 = vsel %vm349_vm0, %v863_v6, 0.0  ;;  %v858_v11 = vsel %vm349_vm0, %v857_v7, 0.0  ;;  %v3519_v7 = vmov 18  }
0x10cd   : > { %865 = vadd.xlane.f32.xlu0 %v864_v8  ;;  %859 = vadd.xlane.f32.xlu1 %v858_v11 }
0x10de   : > { %872 = vperm.xlu1 %3197, %v3647_v2  }
0x10e2   : > { %3199 = vset.pattern.permute.xlu1 %v3502_v1 }
0x115a   : > { %v866_v15 = vpop.xlane.xlu0 %865  ;;  %v860_v17 = vpop.xlane.xlu1 %859 }
0x115b   : > { %v867_v18 = vadd.f32 %v866_v15, %v862_v12  ;;  %v861_v19 = vadd.f32 %v860_v17, %v856_v14 }
0x115d   : > { %v868_v20 = vsel %vm363_vm1, %v861_v19, %v867_v18  ;;  %885 = vperm.xlu1 %3199, %v867_v18   ;;  %879 = vperm.xlu0 %3198, %v861_v19   ;;  %v892_v38 = vadd.f32 %v861_v19, %v3689_v33 }
0x115e   : > { %3013 = vst.msk [vmem:[%s3694_s13 + $0x70] sm:$0xff] %vm365_vm2, %v868_v20  ;;  %v873_v22 = vpop.permute.xlu1 %872 }
0x115f   : > { %v875_v2 = vmul.f32 %v3660_v10, %v873_v22 }
0x1161   : > { %3200 = vset.pattern.permute.xlu1 %v3517_v21  ;;  %v876_v29 = vadd.f32 %v3669_v16, %v875_v2  ;;  %v898_v16 = vadd.f32 %v867_v18, %v3689_v33  ;;  %3203 = vset.pattern.permute.xlu0 %v3518_v44 }
0x11dc   : > { %v886_v23 = vpop.permute.xlu1 %885  ;;  %v880_v26 = vpop.permute.xlu0 %879 }
0x11dd   : > { %v888_v27 = vmul.f32 %v886_v23, %v3655_v9  ;;  %v882_v28 = vmul.f32 %v880_v26, %v3662_v13 }
0x11df   : > { %v889_v30 = vadd.f32 %v888_v27, %v882_v28 }
0x11e1   : > { %v890_v31 = vadd.f32 %v889_v30, %v876_v29 }
0x11e3   : > { %3370 = vtanh.f32 %v890_v31 }
0x11ed   : > { %v3371_v32 = vpop.eup %3370 }
0x11ee   : > { %v899_v34 = vmul.f32 %v3371_v32, %v3676_v24  ;;  %v893_v35 = vmul.f32 %v3371_v32, %v3678_v25 }
0x11f0   : > { %v900_v10 = vsel %vm349_vm0, %v899_v34, 0.0  ;;  %v894_v36 = vsel %vm349_vm0, %v893_v35, 0.0  ;;  %v3520_v35 = vmov 19  }
0x11f1   : > { %901 = vadd.xlane.f32.xlu0 %v900_v10  ;;  %895 = vadd.xlane.f32.xlu1 %v894_v36 }
0x1202   : > { %908 = vperm.xlu1 %3200, %v3929_v37  }
0x1206   : > { %3201 = vset.pattern.permute.xlu1 %v3501_v0 }
0x127e   : > { %v902_v39 = vpop.xlane.xlu0 %901  ;;  %v896_v40 = vpop.xlane.xlu1 %895 }
0x127f   : > { %v903_v41 = vadd.f32 %v902_v39, %v898_v16  ;;  %v897_v42 = vadd.f32 %v896_v40, %v892_v38 }
0x1281   : > { %v904_v43 = vsel %vm363_vm1, %v897_v42, %v903_v41  ;;  %915 = vperm.xlu1 %3201, %v897_v42   ;;  %v934_v61 = vadd.f32 %v903_v41, %v3689_v33  ;;  %v928_v62 = vadd.f32 %v897_v42, %v3689_v33 }
0x1282   : > { %3014 = vst.msk [vmem:[%s3694_s13 + $0x78] sm:$0xff] %vm365_vm2, %v904_v43  ;;  %v909_v45 = vpop.permute.xlu1 %908 }
0x1283   : > { %v911_v48 = vmul.f32 %v3943_v47, %v909_v45 }
0x1285   : > { %3202 = vset.pattern.permute.xlu1 %v3502_v1  ;;  %v912_v53 = vadd.f32 %v3951_v52, %v911_v48 }
0x1286   : > { %921 = vperm.xlu1 %3202, %v903_v41  }
0x128a   : > { %3204 = vset.pattern.permute.xlu1 %v3501_v0 }
0x1300   : > { %v916_v46 = vpop.permute.xlu1 %915 }
0x1301   : > { %v918_v50 = vmul.f32 %v916_v46, %v3662_v13 }
0x1305   : > { %v922_v49 = vpop.permute.xlu1 %921 }
0x1306   : > { %v924_v51 = vmul.f32 %v922_v49, %v3655_v9 }
0x1308   : > { %v925_v54 = vadd.f32 %v924_v51, %v918_v50 }
0x130a   : > { %v926_v55 = vadd.f32 %v925_v54, %v912_v53 }
0x130c   : > { %3372 = vtanh.f32 %v926_v55 }
0x1316   : > { %v3373_v56 = vpop.eup %3372 }
0x1317   : > { %v935_v57 = vmul.f32 %v3373_v56, %v3676_v24  ;;  %v929_v58 = vmul.f32 %v3373_v56, %v3678_v25 }
0x1319   : > { %v936_v59 = vsel %vm349_vm0, %v935_v57, 0.0  ;;  %v930_v60 = vsel %vm349_vm0, %v929_v58, 0.0 }
0x131a   : > { %937 = vadd.xlane.f32.xlu0 %v936_v59  ;;  %931 = vadd.xlane.f32.xlu1 %v930_v60 }
0x1330   : > { %944 = vperm.xlu0 %3203, %v3929_v37  }
0x1334   : > { %3205 = vset.pattern.permute.xlu0 %v3502_v1 }
0x13a7   : > { %v938_v63 = vpop.xlane.xlu0 %937  ;;  %v932_v3 = vpop.xlane.xlu1 %931 }
0x13a8   : > { %v939_v4 = vadd.f32 %v938_v63, %v934_v61  ;;  %v933_v5 = vadd.f32 %v932_v3, %v928_v62 }
0x13aa   : > { %v940_v6 = vsel %vm363_vm1, %v933_v5, %v939_v4  ;;  %957 = vperm.xlu0 %3205, %v939_v4   ;;  %951 = vperm.xlu1 %3204, %v933_v5   ;;  %v970_v27 = vadd.f32 %v939_v4, %v3689_v33  ;;  %v964_v28 = vadd.f32 %v933_v5, %v3689_v33 }
0x13ab   : > { %3015 = vst.msk [vmem:[%s3694_s13 + $0x80] sm:$0xff] %vm365_vm2, %v940_v6 }
0x13ae   : > { %3207 = vset.pattern.permute.xlu0 %v3501_v0  ;;  %3206 = vset.pattern.permute.xlu1 %v3519_v7 }
0x13af   : > { %v945_v8 = vpop.permute.xlu0 %944 }
0x13b0   : > { %v947_v11 = vmul.f32 %v3943_v47, %v945_v8 }
0x13b2   : > { %v948_v18 = vadd.f32 %v3951_v52, %v947_v11 }
0x1429   : > { %v958_v12 = vpop.permute.xlu0 %957  ;;  %v952_v14 = vpop.permute.xlu1 %951 }
0x142a   : > { %v960_v15 = vmul.f32 %v958_v12, %v3655_v9  ;;  %v954_v17 = vmul.f32 %v952_v14, %v3662_v13  ;;  %v3521_v14 = vmov 20  }
0x142c   : > { %v961_v19 = vadd.f32 %v960_v15, %v954_v17 }
0x142e   : > { %v962_v20 = vadd.f32 %v961_v19, %v948_v18 }
0x1430   : > { %3374 = vtanh.f32 %v962_v20 }
0x143a   : > { %v3375_v21 = vpop.eup %3374 }
0x143b   : > { %v971_v22 = vmul.f32 %v3375_v21, %v3676_v24  ;;  %v965_v2 = vmul.f32 %v3375_v21, %v3678_v25 }
0x143d   : > { %v972_v23 = vsel %vm349_vm0, %v971_v22, 0.0  ;;  %v966_v26 = vsel %vm349_vm0, %v965_v2, 0.0 }
0x143e   : > { %973 = vadd.xlane.f32.xlu0 %v972_v23  ;;  %967 = vadd.xlane.f32.xlu1 %v966_v26 }
0x144f   : > { %980 = vperm.xlu1 %3206, %v3929_v37  }
0x1453   : > { %3208 = vset.pattern.permute.xlu1 %v3502_v1 }
0x14cb   : > { %v974_v29 = vpop.xlane.xlu0 %973  ;;  %v968_v30 = vpop.xlane.xlu1 %967 }
0x14cc   : > { %v975_v31 = vadd.f32 %v974_v29, %v970_v27  ;;  %v969_v32 = vadd.f32 %v968_v30, %v964_v28 }
0x14ce   : > { %v976_v34 = vsel %vm363_vm1, %v969_v32, %v975_v31  ;;  %993 = vperm.xlu1 %3208, %v975_v31   ;;  %987 = vperm.xlu0 %3207, %v969_v32   ;;  %v1006_v50 = vadd.f32 %v975_v31, %v3689_v33  ;;  %v1000_v51 = vadd.f32 %v969_v32, %v3689_v33 }
0x14cf   : > { %3016 = vst.msk [vmem:[%s3694_s13 + $0x88] sm:$0xff] %vm365_vm2, %v976_v34  ;;  %v981_v10 = vpop.permute.xlu1 %980 }
0x14d0   : > { %v983_v36 = vmul.f32 %v3943_v47, %v981_v10 }
0x14d2   : > { %3211 = vset.pattern.permute.xlu0 %v3502_v1  ;;  %3209 = vset.pattern.permute.xlu1 %v3520_v35  ;;  %v984_v41 = vadd.f32 %v3951_v52, %v983_v36 }
0x154d   : > { %v994_v16 = vpop.permute.xlu1 %993  ;;  %v988_v38 = vpop.permute.xlu0 %987 }
0x154e   : > { %v996_v39 = vmul.f32 %v994_v16, %v3655_v9  ;;  %v990_v40 = vmul.f32 %v988_v38, %v3662_v13  ;;  %v3522_v38 = vmov 21  }
0x1550   : > { %v997_v42 = vadd.f32 %v996_v39, %v990_v40 }
0x1552   : > { %v998_v43 = vadd.f32 %v997_v42, %v984_v41 }
0x1554   : > { %3376 = vtanh.f32 %v998_v43 }
0x155e   : > { %v3377_v44 = vpop.eup %3376 }
0x155f   : > { %v1007_v45 = vmul.f32 %v3377_v44, %v3676_v24  ;;  %v1001_v46 = vmul.f32 %v3377_v44, %v3678_v25 }
0x1561   : > { %v1008_v48 = vsel %vm349_vm0, %v1007_v45, 0.0  ;;  %v1002_v49 = vsel %vm349_vm0, %v1001_v46, 0.0  ;;  %v3523_v46 = vmov 22  }
0x1562   : > { %1009 = vadd.xlane.f32.xlu0 %v1008_v48  ;;  %1003 = vadd.xlane.f32.xlu1 %v1002_v49 }
0x1573   : > { %1016 = vperm.xlu1 %3209, %v3929_v37  }
0x1577   : > { %3210 = vset.pattern.permute.xlu1 %v3501_v0 }
0x15ef   : > { %v1010_v53 = vpop.xlane.xlu0 %1009  ;;  %v1004_v54 = vpop.xlane.xlu1 %1003 }
0x15f0   : > { %v1011_v55 = vadd.f32 %v1010_v53, %v1006_v50  ;;  %v1005_v56 = vadd.f32 %v1004_v54, %v1000_v51 }
0x15f2   : > { %v1012_v57 = vsel %vm363_vm1, %v1005_v56, %v1011_v55  ;;  %1029 = vperm.xlu0 %3211, %v1011_v55   ;;  %1023 = vperm.xlu1 %3210, %v1005_v56   ;;  %v1036_v15 = vadd.f32 %v1005_v56, %v3689_v33  ;;  %v1042_v19 = vadd.f32 %v1011_v55, %v3689_v33 }
0x15f3   : > { %3017 = vst.msk [vmem:[%s3694_s13 + $0x90] sm:$0xff] %vm365_vm2, %v1012_v57  ;;  %v1017_v58 = vpop.permute.xlu1 %1016 }
0x15f4   : > { %v1019_v59 = vmul.f32 %v3943_v47, %v1017_v58 }
0x15f6   : > { %3213 = vset.pattern.permute.xlu0 %v3501_v0  ;;  %v1020_v3 = vadd.f32 %v3951_v52, %v1019_v59  ;;  %3212 = vset.pattern.permute.xlu1 %v3521_v14 }
0x1671   : > { %v1030_v60 = vpop.permute.xlu0 %1029  ;;  %v1024_v61 = vpop.permute.xlu1 %1023 }
0x1672   : > { %v1032_v62 = vmul.f32 %v1030_v60, %v3655_v9  ;;  %v1026_v63 = vmul.f32 %v1024_v61, %v3662_v13 }
0x1674   : > { %v1033_v4 = vadd.f32 %v1032_v62, %v1026_v63 }
0x1676   : > { %v1034_v5 = vadd.f32 %v1033_v4, %v1020_v3 }
0x1678   : > { %3378 = vtanh.f32 %v1034_v5 }
0x1682   : > { %v3379_v6 = vpop.eup %3378 }
0x1683   : > { %v1037_v7 = vmul.f32 %v3379_v6, %v3678_v25  ;;  %v1043_v11 = vmul.f32 %v3379_v6, %v3676_v24 }
0x1685   : > { %v1038_v8 = vsel %vm349_vm0, %v1037_v7, 0.0  ;;  %v1044_v12 = vsel %vm349_vm0, %v1043_v11, 0.0 }
0x1686   : > { %1039 = vadd.xlane.f32.xlu1 %v1038_v8 }
0x168a   : > { %1045 = vadd.xlane.f32.xlu1 %v1044_v12 }
0x169b   : > { %1052 = vperm.xlu1 %3212, %v3929_v37  }
0x169f   : > { %3216 = vset.pattern.permute.xlu1 %v3501_v0 }
0x1713   : > { %v1040_v17 = vpop.xlane.xlu1 %1039 }
0x1714   : > { %v1041_v18 = vadd.f32 %v1040_v17, %v1036_v15 }
0x1716   : > { %1059 = vperm.xlu0 %3213, %v1041_v18   ;;  %v1072_v40 = vadd.f32 %v1041_v18, %v3689_v33 }
0x1717   : > { %v1046_v20 = vpop.xlane.xlu1 %1045 }
0x1718   : > { %v1047_v21 = vadd.f32 %v1046_v20, %v1042_v19 }
0x171a   : > { %v1048_v22 = vsel %vm363_vm1, %v1041_v18, %v1047_v21  ;;  %3214 = vset.pattern.permute.xlu0 %v3502_v1  ;;  %v1078_v39 = vadd.f32 %v1047_v21, %v3689_v33 }
0x171b   : > { %3018 = vst.msk [vmem:[%s3694_s13 + $0x98] sm:$0xff] %vm365_vm2, %v1048_v22  ;;  %1065 = vperm.xlu0 %3214, %v1047_v21   ;;  %v1053_v2 = vpop.permute.xlu1 %1052 }
0x171c   : > { %v1055_v26 = vmul.f32 %v3943_v47, %v1053_v2 }
0x171e   : > { %v1056_v29 = vadd.f32 %v3951_v52, %v1055_v26 }
0x171f   : > { %3215 = vset.pattern.permute.xlu0 %v3522_v38 }
0x1795   : > { %v1060_v23 = vpop.permute.xlu0 %1059 }
0x1796   : > { %v1062_v28 = vmul.f32 %v1060_v23, %v3662_v13 }
0x179a   : > { %v1066_v27 = vpop.permute.xlu0 %1065 }
0x179b   : > { %v1068_v30 = vmul.f32 %v1066_v27, %v3655_v9 }
0x179d   : > { %v1069_v31 = vadd.f32 %v1068_v30, %v1062_v28  ;;  %v3524_v28 = vmov 23  }
0x179f   : > { %v1070_v32 = vadd.f32 %v1069_v31, %v1056_v29 }
0x17a1   : > { %3380 = vtanh.f32 %v1070_v32 }
0x17ab   : > { %v3381_v34 = vpop.eup %3380 }
0x17ac   : > { %v1079_v35 = vmul.f32 %v3381_v34, %v3676_v24  ;;  %v1073_v10 = vmul.f32 %v3381_v34, %v3678_v25 }
0x17ae   : > { %v1080_v36 = vsel %vm349_vm0, %v1079_v35, 0.0  ;;  %v1074_v16 = vsel %vm349_vm0, %v1073_v10, 0.0 }
0x17af   : > { %1081 = vadd.xlane.f32.xlu0 %v1080_v36  ;;  %1075 = vadd.xlane.f32.xlu1 %v1074_v16 }
0x17c5   : > { %1088 = vperm.xlu0 %3215, %v3929_v37  }
0x17c9   : > { %3219 = vset.pattern.permute.xlu0 %v3501_v0 }
0x183c   : > { %v1082_v41 = vpop.xlane.xlu0 %1081  ;;  %v1076_v42 = vpop.xlane.xlu1 %1075 }
0x183d   : > { %v1083_v43 = vadd.f32 %v1082_v41, %v1078_v39  ;;  %v1077_v44 = vadd.f32 %v1076_v42, %v1072_v40 }
0x183f   : > { %v1084_v45 = vsel %vm363_vm1, %v1077_v44, %v1083_v43  ;;  %1095 = vperm.xlu1 %3216, %v1077_v44   ;;  %v1114_v63 = vadd.f32 %v1083_v43, %v3689_v33  ;;  %v1108_v3 = vadd.f32 %v1077_v44, %v3689_v33 }
0x1840   : > { %3019 = vst.msk [vmem:[%s3694_s13 + $0xa0] sm:$0xff] %vm365_vm2, %v1084_v45 }
0x1843   : > { %3217 = vset.pattern.permute.xlu1 %v3502_v1 }
0x1844   : > { %1101 = vperm.xlu1 %3217, %v1083_v43   ;;  %v1089_v48 = vpop.permute.xlu0 %1088 }
0x1845   : > { %v1091_v50 = vmul.f32 %v3943_v47, %v1089_v48 }
0x1847   : > { %v1092_v54 = vadd.f32 %v3951_v52, %v1091_v50 }
0x1848   : > { %3218 = vset.pattern.permute.xlu1 %v3523_v46 }
0x18be   : > { %v1096_v49 = vpop.permute.xlu1 %1095 }
0x18bf   : > { %v1098_v53 = vmul.f32 %v1096_v49, %v3662_v13 }
0x18c3   : > { %v1102_v51 = vpop.permute.xlu1 %1101 }
0x18c4   : > { %v1104_v55 = vmul.f32 %v1102_v51, %v3655_v9  ;;  %v3525_v51 = vmov 24  }
0x18c6   : > { %v1105_v56 = vadd.f32 %v1104_v55, %v1098_v53 }
0x18c8   : > { %v1106_v57 = vadd.f32 %v1105_v56, %v1092_v54 }
0x18ca   : > { %3382 = vtanh.f32 %v1106_v57 }
0x18d4   : > { %v3383_v58 = vpop.eup %3382 }
0x18d5   : > { %v1115_v59 = vmul.f32 %v3383_v58, %v3676_v24  ;;  %v1109_v60 = vmul.f32 %v3383_v58, %v3678_v25 }
0x18d7   : > { %v1116_v61 = vsel %vm349_vm0, %v1115_v59, 0.0  ;;  %v1110_v62 = vsel %vm349_vm0, %v1109_v60, 0.0  ;;  %v3526_v60 = vmov 25  }
0x18d8   : > { %1117 = vadd.xlane.f32.xlu0 %v1116_v61  ;;  %1111 = vadd.xlane.f32.xlu1 %v1110_v62 }
0x18e9   : > { %1124 = vperm.xlu1 %3218, %v3929_v37  }
0x18ed   : > { %3220 = vset.pattern.permute.xlu1 %v3502_v1 }
0x1965   : > { %v1118_v4 = vpop.xlane.xlu0 %1117  ;;  %v1112_v5 = vpop.xlane.xlu1 %1111 }
0x1966   : > { %v1119_v6 = vadd.f32 %v1118_v4, %v1114_v63  ;;  %v1113_v7 = vadd.f32 %v1112_v5, %v1108_v3 }
0x1968   : > { %v1120_v8 = vsel %vm363_vm1, %v1113_v7, %v1119_v6  ;;  %1137 = vperm.xlu1 %3220, %v1119_v6   ;;  %1131 = vperm.xlu0 %3219, %v1113_v7   ;;  %v1144_v29 = vadd.f32 %v1113_v7, %v3689_v33  ;;  %v1150_v32 = vadd.f32 %v1119_v6, %v3689_v33 }
0x1969   : > { %3020 = vst.msk [vmem:[%s3694_s13 + $0xa8] sm:$0xff] %vm365_vm2, %v1120_v8  ;;  %v1125_v11 = vpop.permute.xlu1 %1124 }
0x196a   : > { %v1127_v12 = vmul.f32 %v3943_v47, %v1125_v11 }
0x196c   : > { %3222 = vset.pattern.permute.xlu1 %v3501_v0  ;;  %v1128_v19 = vadd.f32 %v3951_v52, %v1127_v12  ;;  %3221 = vset.pattern.permute.xlu0 %v3524_v28 }
0x196d   : > { %1160 = vperm.xlu0 %3221, %v3929_v37  }
0x1971   : > { %3223 = vset.pattern.permute.xlu0 %v3502_v1 }
0x19e7   : > { %v1138_v14 = vpop.permute.xlu1 %1137  ;;  %v1132_v15 = vpop.permute.xlu0 %1131 }
0x19e8   : > { %v1140_v17 = vmul.f32 %v1138_v14, %v3655_v9  ;;  %v1134_v18 = vmul.f32 %v1132_v15, %v3662_v13 }
0x19ea   : > { %v1141_v20 = vadd.f32 %v1140_v17, %v1134_v18 }
0x19ec   : > { %v1142_v21 = vadd.f32 %v1141_v20, %v1128_v19  ;;  %v1161_v36 = vpop.permute.xlu0 %1160 }
0x19ed   : > { %v1163_v38 = vmul.f32 %v3943_v47, %v1161_v36 }
0x19ee   : > { %3384 = vtanh.f32 %v1142_v21 }
0x19ef   : > { %v1164_v42 = vadd.f32 %v3951_v52, %v1163_v38 }
0x19f8   : > { %v3385_v22 = vpop.eup %3384 }
0x19f9   : > { %v1145_v2 = vmul.f32 %v3385_v22, %v3678_v25  ;;  %v1151_v26 = vmul.f32 %v3385_v22, %v3676_v24 }
0x19fb   : > { %v1146_v23 = vsel %vm349_vm0, %v1145_v2, 0.0  ;;  %v1152_v27 = vsel %vm349_vm0, %v1151_v26, 0.0  ;;  %v3527_v26 = vmov 26  }
0x19fc   : > { %1147 = vadd.xlane.f32.xlu1 %v1146_v23 }
0x1a00   : > { %1153 = vadd.xlane.f32.xlu1 %v1152_v27 }
0x1a89   : > { %v1148_v30 = vpop.xlane.xlu1 %1147 }
0x1a8a   : > { %v1149_v31 = vadd.f32 %v1148_v30, %v1144_v29 }
0x1a8c   : > { %1167 = vperm.xlu1 %3222, %v1149_v31   ;;  %v1180_v54 = vadd.f32 %v1149_v31, %v3689_v33 }
0x1a8d   : > { %v1154_v34 = vpop.xlane.xlu1 %1153 }
0x1a8e   : > { %v1155_v35 = vadd.f32 %v1154_v34, %v1150_v32 }
0x1a90   : > { %v1156_v10 = vsel %vm363_vm1, %v1149_v31, %v1155_v35  ;;  %1173 = vperm.xlu0 %3223, %v1155_v35   ;;  %v1186_v53 = vadd.f32 %v1155_v35, %v3689_v33 }
0x1a91   : > { %3021 = vst.msk [vmem:[%s3694_s13 + $0xb0] sm:$0xff] %vm365_vm2, %v1156_v10 }
0x1a94   : > { %3224 = vset.pattern.permute.xlu0 %v3525_v51 }
0x1b0b   : > { %v1168_v16 = vpop.permute.xlu1 %1167 }
0x1b0c   : > { %v1170_v40 = vmul.f32 %v1168_v16, %v3662_v13 }
0x1b0f   : > { %v1174_v39 = vpop.permute.xlu0 %1173 }
0x1b10   : > { %v1176_v41 = vmul.f32 %v1174_v39, %v3655_v9 }
0x1b12   : > { %v1177_v43 = vadd.f32 %v1176_v41, %v1170_v40 }
0x1b14   : > { %v1178_v44 = vadd.f32 %v1177_v43, %v1164_v42 }
0x1b16   : > { %3386 = vtanh.f32 %v1178_v44 }
0x1b20   : > { %v3387_v45 = vpop.eup %3386 }
0x1b21   : > { %v1187_v46 = vmul.f32 %v3387_v45, %v3676_v24  ;;  %v1181_v48 = vmul.f32 %v3387_v45, %v3678_v25 }
0x1b23   : > { %v1188_v49 = vsel %vm349_vm0, %v1187_v46, 0.0  ;;  %v1182_v50 = vsel %vm349_vm0, %v1181_v48, 0.0 }
0x1b24   : > { %1189 = vadd.xlane.f32.xlu1 %v1188_v49  ;;  %1183 = vadd.xlane.f32.xlu0 %v1182_v50  ;;  %v3528_v49 = vmov 27  }
0x1b3a   : > { %1196 = vperm.xlu0 %3224, %v3929_v37  }
0x1b3e   : > { %3227 = vset.pattern.permute.xlu0 %v3501_v0 }
0x1bb1   : > { %v1190_v55 = vpop.xlane.xlu1 %1189  ;;  %v1184_v56 = vpop.xlane.xlu0 %1183 }
0x1bb2   : > { %v1191_v57 = vadd.f32 %v1190_v55, %v1186_v53  ;;  %v1185_v58 = vadd.f32 %v1184_v56, %v1180_v54 }
0x1bb4   : > { %v1192_v59 = vsel %vm363_vm1, %v1185_v58, %v1191_v57  ;;  %1203 = vperm.xlu1 %3222, %v1185_v58   ;;  %v1222_v18 = vadd.f32 %v1191_v57, %v3689_v33  ;;  %v1216_v19 = vadd.f32 %v1185_v58, %v3689_v33 }
0x1bb5   : > { %3022 = vst.msk [vmem:[%s3694_s13 + $0xb8] sm:$0xff] %vm365_vm2, %v1192_v59 }
0x1bb8   : > { %3225 = vset.pattern.permute.xlu1 %v3502_v1 }
0x1bb9   : > { %1209 = vperm.xlu1 %3225, %v1191_v57   ;;  %v1197_v61 = vpop.permute.xlu0 %1196 }
0x1bba   : > { %v1199_v63 = vmul.f32 %v3943_v47, %v1197_v61 }
0x1bbc   : > { %v1200_v5 = vadd.f32 %v3951_v52, %v1199_v63 }
0x1bbd   : > { %3226 = vset.pattern.permute.xlu1 %v3526_v60 }
0x1c33   : > { %v1204_v62 = vpop.permute.xlu1 %1203 }
0x1c34   : > { %v1206_v4 = vmul.f32 %v1204_v62, %v3662_v13 }
0x1c38   : > { %v1210_v3 = vpop.permute.xlu1 %1209 }
0x1c39   : > { %v1212_v6 = vmul.f32 %v1210_v3, %v3655_v9 }
0x1c3b   : > { %v1213_v7 = vadd.f32 %v1212_v6, %v1206_v4 }
0x1c3d   : > { %v1214_v8 = vadd.f32 %v1213_v7, %v1200_v5 }
0x1c3f   : > { %3388 = vtanh.f32 %v1214_v8 }
0x1c49   : > { %v3389_v11 = vpop.eup %3388 }
0x1c4a   : > { %v1223_v12 = vmul.f32 %v3389_v11, %v3676_v24  ;;  %v1217_v14 = vmul.f32 %v3389_v11, %v3678_v25 }
0x1c4c   : > { %v1224_v15 = vsel %vm349_vm0, %v1223_v12, 0.0  ;;  %v1218_v17 = vsel %vm349_vm0, %v1217_v14, 0.0  ;;  %v3529_v14 = vmov 28  }
0x1c4d   : > { %1225 = vadd.xlane.f32.xlu0 %v1224_v15  ;;  %1219 = vadd.xlane.f32.xlu1 %v1218_v17 }
0x1c5e   : > { %1232 = vperm.xlu1 %3226, %v3929_v37  }
0x1c62   : > { %3228 = vset.pattern.permute.xlu1 %v3502_v1 }
0x1cda   : > { %v1226_v20 = vpop.xlane.xlu0 %1225  ;;  %v1220_v21 = vpop.xlane.xlu1 %1219 }
0x1cdb   : > { %v1227_v22 = vadd.f32 %v1226_v20, %v1222_v18  ;;  %v1221_v2 = vadd.f32 %v1220_v21, %v1216_v19 }
0x1cdd   : > { %v1228_v23 = vsel %vm363_vm1, %v1221_v2, %v1227_v22  ;;  %1245 = vperm.xlu1 %3228, %v1227_v22   ;;  %1239 = vperm.xlu0 %3227, %v1221_v2   ;;  %v1258_v41 = vadd.f32 %v1227_v22, %v3689_v33  ;;  %v1252_v42 = vadd.f32 %v1221_v2, %v3689_v33 }
0x1cde   : > { %3023 = vst.msk [vmem:[%s3694_s13 + $0xc0] sm:$0xff] %vm365_vm2, %v1228_v23  ;;  %v1233_v27 = vpop.permute.xlu1 %1232 }
0x1cdf   : > { %v1235_v28 = vmul.f32 %v3943_v47, %v1233_v27 }
0x1ce1   : > { %3229 = vset.pattern.permute.xlu1 %v3527_v26  ;;  %v1236_v34 = vadd.f32 %v3951_v52, %v1235_v28  ;;  %3232 = vset.pattern.permute.xlu0 %v3528_v49 }
0x1d5c   : > { %v1246_v29 = vpop.permute.xlu1 %1245  ;;  %v1240_v30 = vpop.permute.xlu0 %1239 }
0x1d5d   : > { %v1248_v31 = vmul.f32 %v1246_v29, %v3655_v9  ;;  %v1242_v32 = vmul.f32 %v1240_v30, %v3662_v13 }
0x1d5f   : > { %v1249_v35 = vadd.f32 %v1248_v31, %v1242_v32 }
0x1d61   : > { %v1250_v10 = vadd.f32 %v1249_v35, %v1236_v34 }
0x1d63   : > { %3390 = vtanh.f32 %v1250_v10 }
0x1d6d   : > { %v3391_v36 = vpop.eup %3390 }
0x1d6e   : > { %v1259_v16 = vmul.f32 %v3391_v36, %v3676_v24  ;;  %v1253_v38 = vmul.f32 %v3391_v36, %v3678_v25 }
0x1d70   : > { %v1260_v39 = vsel %vm349_vm0, %v1259_v16, 0.0  ;;  %v1254_v40 = vsel %vm349_vm0, %v1253_v38, 0.0  ;;  %v3530_v38 = vmov 29  }
0x1d71   : > { %1261 = vadd.xlane.f32.xlu0 %v1260_v39  ;;  %1255 = vadd.xlane.f32.xlu1 %v1254_v40 }
0x1d82   : > { %1268 = vperm.xlu1 %3229, %v3929_v37  }
0x1d86   : > { %3230 = vset.pattern.permute.xlu1 %v3501_v0 }
0x1dfe   : > { %v1262_v43 = vpop.xlane.xlu0 %1261  ;;  %v1256_v44 = vpop.xlane.xlu1 %1255 }
0x1dff   : > { %v1263_v45 = vadd.f32 %v1262_v43, %v1258_v41  ;;  %v1257_v46 = vadd.f32 %v1256_v44, %v1252_v42 }
0x1e01   : > { %v1264_v48 = vsel %vm363_vm1, %v1257_v46, %v1263_v45  ;;  %1275 = vperm.xlu1 %3230, %v1257_v46   ;;  %v1294_v4 = vadd.f32 %v1263_v45, %v3689_v33  ;;  %v1288_v5 = vadd.f32 %v1257_v46, %v3689_v33 }
0x1e02   : > { %3024 = vst.msk [vmem:[%s3694_s13 + $0xc8] sm:$0xff] %vm365_vm2, %v1264_v48  ;;  %v1269_v50 = vpop.permute.xlu1 %1268 }
0x1e03   : > { %v1271_v53 = vmul.f32 %v3943_v47, %v1269_v50 }
0x1e05   : > { %3231 = vset.pattern.permute.xlu1 %v3502_v1  ;;  %v1272_v57 = vadd.f32 %v3951_v52, %v1271_v53 }
0x1e06   : > { %1281 = vperm.xlu1 %3231, %v1263_v45  }
0x1e0a   : > { %3233 = vset.pattern.permute.xlu1 %v3501_v0 }
0x1e80   : > { %v1276_v51 = vpop.permute.xlu1 %1275 }
0x1e81   : > { %v1278_v55 = vmul.f32 %v1276_v51, %v3662_v13 }
0x1e85   : > { %v1282_v54 = vpop.permute.xlu1 %1281 }
0x1e86   : > { %v1284_v56 = vmul.f32 %v1282_v54, %v3655_v9 }
0x1e88   : > { %v1285_v58 = vadd.f32 %v1284_v56, %v1278_v55 }
0x1e8a   : > { %v1286_v59 = vadd.f32 %v1285_v58, %v1272_v57 }
0x1e8c   : > { %3392 = vtanh.f32 %v1286_v59 }
0x1e96   : > { %v3393_v60 = vpop.eup %3392 }
0x1e97   : > { %v1295_v61 = vmul.f32 %v3393_v60, %v3676_v24  ;;  %v1289_v62 = vmul.f32 %v3393_v60, %v3678_v25 }
0x1e99   : > { %v1296_v63 = vsel %vm349_vm0, %v1295_v61, 0.0  ;;  %v1290_v3 = vsel %vm349_vm0, %v1289_v62, 0.0 }
0x1e9a   : > { %1297 = vadd.xlane.f32.xlu0 %v1296_v63  ;;  %1291 = vadd.xlane.f32.xlu1 %v1290_v3 }
0x1eb0   : > { %1304 = vperm.xlu0 %3232, %v3929_v37  }
0x1eb4   : > { %3234 = vset.pattern.permute.xlu0 %v3502_v1 }
0x1f27   : > { %v1298_v6 = vpop.xlane.xlu0 %1297  ;;  %v1292_v7 = vpop.xlane.xlu1 %1291 }
0x1f28   : > { %v1299_v8 = vadd.f32 %v1298_v6, %v1294_v4  ;;  %v1293_v11 = vadd.f32 %v1292_v7, %v1288_v5 }
0x1f2a   : > { %v1300_v12 = vsel %vm363_vm1, %v1293_v11, %v1299_v8  ;;  %1317 = vperm.xlu0 %3234, %v1299_v8   ;;  %1311 = vperm.xlu1 %3233, %v1293_v11   ;;  %v1330_v31 = vadd.f32 %v1299_v8, %v3689_v33  ;;  %v1324_v32 = vadd.f32 %v1293_v11, %v3689_v33 }
0x1f2b   : > { %3025 = vst.msk [vmem:[%s3694_s13 + $0xd0] sm:$0xff] %vm365_vm2, %v1300_v12 }
0x1f2e   : > { %3236 = vset.pattern.permute.xlu0 %v3501_v0  ;;  %3235 = vset.pattern.permute.xlu1 %v3529_v14 }
0x1f2f   : > { %v1305_v15 = vpop.permute.xlu0 %1304 }
0x1f30   : > { %v1307_v17 = vmul.f32 %v3943_v47, %v1305_v15 }
0x1f32   : > { %v1308_v22 = vadd.f32 %v3951_v52, %v1307_v17 }
0x1fa9   : > { %v1318_v18 = vpop.permute.xlu0 %1317  ;;  %v1312_v19 = vpop.permute.xlu1 %1311 }
0x1faa   : > { %v1320_v20 = vmul.f32 %v1318_v18, %v3655_v9  ;;  %v1314_v21 = vmul.f32 %v1312_v19, %v3662_v13  ;;  %v3531_v19 = vmov 30  }
0x1fac   : > { %v1321_v2 = vadd.f32 %v1320_v20, %v1314_v21 }
0x1fae   : > { %v1322_v23 = vadd.f32 %v1321_v2, %v1308_v22 }
0x1fb0   : > { %3394 = vtanh.f32 %v1322_v23 }
0x1fba   : > { %v3395_v26 = vpop.eup %3394 }
0x1fbb   : > { %v1331_v27 = vmul.f32 %v3395_v26, %v3676_v24  ;;  %v1325_v28 = vmul.f32 %v3395_v26, %v3678_v25 }
0x1fbd   : > { %v1332_v29 = vsel %vm349_vm0, %v1331_v27, 0.0  ;;  %v1326_v30 = vsel %vm349_vm0, %v1325_v28, 0.0 }
0x1fbe   : > { %1333 = vadd.xlane.f32.xlu0 %v1332_v29  ;;  %1327 = vadd.xlane.f32.xlu1 %v1326_v30 }
0x1fcf   : > { %1340 = vperm.xlu1 %3235, %v3929_v37  }
0x1fd3   : > { %3237 = vset.pattern.permute.xlu1 %v3502_v1 }
0x204b   : > { %v1334_v34 = vpop.xlane.xlu0 %1333  ;;  %v1328_v35 = vpop.xlane.xlu1 %1327 }
0x204c   : > { %v1335_v10 = vadd.f32 %v1334_v34, %v1330_v31  ;;  %v1329_v36 = vadd.f32 %v1328_v35, %v1324_v32 }
0x204e   : > { %v1336_v16 = vsel %vm363_vm1, %v1329_v36, %v1335_v10  ;;  %1353 = vperm.xlu1 %3237, %v1335_v10   ;;  %1347 = vperm.xlu0 %3236, %v1329_v36   ;;  %v1366_v55 = vadd.f32 %v1335_v10, %v3689_v33  ;;  %v1360_v56 = vadd.f32 %v1329_v36, %v3689_v33 }
0x204f   : > { %3026 = vst.msk [vmem:[%s3694_s13 + $0xd8] sm:$0xff] %vm365_vm2, %v1336_v16  ;;  %v1341_v39 = vpop.permute.xlu1 %1340 }
0x2050   : > { %v1343_v40 = vmul.f32 %v3943_v47, %v1341_v39 }
0x2052   : > { %3240 = vset.pattern.permute.xlu0 %v3502_v1  ;;  %3238 = vset.pattern.permute.xlu1 %v3530_v38  ;;  %v1344_v45 = vadd.f32 %v3951_v52, %v1343_v40 }
0x20cd   : > { %v1354_v41 = vpop.permute.xlu1 %1353  ;;  %v1348_v42 = vpop.permute.xlu0 %1347 }
0x20ce   : > { %v1356_v43 = vmul.f32 %v1354_v41, %v3655_v9  ;;  %v1350_v44 = vmul.f32 %v1348_v42, %v3662_v13  ;;  %v3532_v42 = vmov 31  }
0x20d0   : > { %v1357_v46 = vadd.f32 %v1356_v43, %v1350_v44 }
0x20d2   : > { %v1358_v48 = vadd.f32 %v1357_v46, %v1344_v45 }
0x20d4   : > { %3396 = vtanh.f32 %v1358_v48 }
0x20de   : > { %v3397_v49 = vpop.eup %3396 }
0x20df   : > { %v1367_v50 = vmul.f32 %v3397_v49, %v3676_v24  ;;  %v1361_v51 = vmul.f32 %v3397_v49, %v3678_v25 }
0x20e1   : > { %v1368_v53 = vsel %vm349_vm0, %v1367_v50, 0.0  ;;  %v1362_v54 = vsel %vm349_vm0, %v1361_v51, 0.0  ;;  %v3533_v51 = vmov 32  }
0x20e2   : > { %1369 = vadd.xlane.f32.xlu0 %v1368_v53  ;;  %1363 = vadd.xlane.f32.xlu1 %v1362_v54 }
0x20f3   : > { %1376 = vperm.xlu1 %3238, %v3929_v37  }
0x20f7   : > { %3239 = vset.pattern.permute.xlu1 %v3501_v0 }
0x216f   : > { %v1370_v57 = vpop.xlane.xlu0 %1369  ;;  %v1364_v58 = vpop.xlane.xlu1 %1363 }
0x2170   : > { %v1371_v59 = vadd.f32 %v1370_v57, %v1366_v55  ;;  %v1365_v60 = vadd.f32 %v1364_v58, %v1360_v56 }
0x2172   : > { %v1372_v61 = vsel %vm363_vm1, %v1365_v60, %v1371_v59  ;;  %1389 = vperm.xlu0 %3240, %v1371_v59   ;;  %1383 = vperm.xlu1 %3239, %v1365_v60   ;;  %v1396_v20 = vadd.f32 %v1365_v60, %v3689_v33  ;;  %v1402_v2 = vadd.f32 %v1371_v59, %v3689_v33 }
0x2173   : > { %3027 = vst.msk [vmem:[%s3694_s13 + $0xe0] sm:$0xff] %vm365_vm2, %v1372_v61  ;;  %v1377_v62 = vpop.permute.xlu1 %1376 }
0x2174   : > { %v1379_v63 = vmul.f32 %v3943_v47, %v1377_v62 }
0x2176   : > { %3242 = vset.pattern.permute.xlu0 %v3501_v0  ;;  %v1380_v7 = vadd.f32 %v3951_v52, %v1379_v63  ;;  %3241 = vset.pattern.permute.xlu1 %v3531_v19 }
0x21f1   : > { %v1390_v3 = vpop.permute.xlu0 %1389  ;;  %v1384_v4 = vpop.permute.xlu1 %1383 }
0x21f2   : > { %v1392_v5 = vmul.f32 %v1390_v3, %v3655_v9  ;;  %v1386_v6 = vmul.f32 %v1384_v4, %v3662_v13 }
0x21f4   : > { %v1393_v8 = vadd.f32 %v1392_v5, %v1386_v6  ;;  %v4198_v5 = vld [vmem:[%s3641_s14] sm:$0xff] }
0x21f6   : > { %v1394_v11 = vadd.f32 %v1393_v8, %v1380_v7 }
0x21f8   : > { %3398 = vtanh.f32 %v1394_v11 }
0x2202   : > { %v3399_v12 = vpop.eup %3398 }
0x2203   : > { %v1397_v14 = vmul.f32 %v3399_v12, %v3678_v25  ;;  %v1403_v17 = vmul.f32 %v3399_v12, %v3676_v24 }
0x2205   : > { %v1398_v15 = vsel %vm349_vm0, %v1397_v14, 0.0  ;;  %v1404_v18 = vsel %vm349_vm0, %v1403_v17, 0.0 }
0x2206   : > { %1399 = vadd.xlane.f32.xlu1 %v1398_v15 }
0x220a   : > { %1405 = vadd.xlane.f32.xlu1 %v1404_v18 }
0x221b   : > { %1412 = vperm.xlu1 %3241, %v3929_v37  }
0x221f   : > { %3245 = vset.pattern.permute.xlu1 %v3501_v0 }
0x2293   : > { %v1400_v21 = vpop.xlane.xlu1 %1399 }
0x2294   : > { %v1401_v22 = vadd.f32 %v1400_v21, %v1396_v20 }
0x2296   : > { %1419 = vperm.xlu0 %3242, %v1401_v22   ;;  %v1432_v44 = vadd.f32 %v1401_v22, %v3689_v33 }
0x2297   : > { %v1406_v23 = vpop.xlane.xlu1 %1405 }
0x2298   : > { %v1407_v26 = vadd.f32 %v1406_v23, %v1402_v2 }
0x229a   : > { %v1408_v27 = vsel %vm363_vm1, %v1401_v22, %v1407_v26  ;;  %3243 = vset.pattern.permute.xlu0 %v3502_v1  ;;  %v1438_v43 = vadd.f32 %v1407_v26, %v3689_v33 }
0x229b   : > { %3028 = vst.msk [vmem:[%s3694_s13 + $0xe8] sm:$0xff] %vm365_vm2, %v1408_v27  ;;  %1425 = vperm.xlu0 %3243, %v1407_v26   ;;  %v1413_v28 = vpop.permute.xlu1 %1412 }
0x229c   : > { %v1415_v30 = vmul.f32 %v3943_v47, %v1413_v28 }
0x229e   : > { %v1416_v34 = vadd.f32 %v3951_v52, %v1415_v30 }
0x229f   : > { %3244 = vset.pattern.permute.xlu0 %v3532_v42 }
0x2315   : > { %v1420_v29 = vpop.permute.xlu0 %1419 }
0x2316   : > { %v1422_v32 = vmul.f32 %v1420_v29, %v3662_v13 }
0x231a   : > { %v1426_v31 = vpop.permute.xlu0 %1425 }
0x231b   : > { %v1428_v35 = vmul.f32 %v1426_v31, %v3655_v9  ;;  %v3534_v31 = vmov 33  }
0x231d   : > { %v1429_v10 = vadd.f32 %v1428_v35, %v1422_v32 }
0x231f   : > { %v1430_v36 = vadd.f32 %v1429_v10, %v1416_v34 }
0x2321   : > { %3400 = vtanh.f32 %v1430_v36 }
0x232b   : > { %v3401_v16 = vpop.eup %3400 }
0x232c   : > { %v1439_v38 = vmul.f32 %v3401_v16, %v3676_v24  ;;  %v1433_v39 = vmul.f32 %v3401_v16, %v3678_v25 }
0x232e   : > { %v1440_v40 = vsel %vm349_vm0, %v1439_v38, 0.0  ;;  %v1434_v41 = vsel %vm349_vm0, %v1433_v39, 0.0 }
0x232f   : > { %1441 = vadd.xlane.f32.xlu0 %v1440_v40  ;;  %1435 = vadd.xlane.f32.xlu1 %v1434_v41  ;;  %v4226_v40 = vld [vmem:[%s4885_s3] ss:$0 sm:$0xff] }
0x2345   : > { %1448 = vperm.xlu0 %3244, %v3929_v37  }
0x2349   : > { %3248 = vset.pattern.permute.xlu0 %v3501_v0 }
0x23bc   : > { %v1442_v45 = vpop.xlane.xlu0 %1441  ;;  %v1436_v46 = vpop.xlane.xlu1 %1435 }
0x23bd   : > { %v1443_v48 = vadd.f32 %v1442_v45, %v1438_v43  ;;  %v1437_v49 = vadd.f32 %v1436_v46, %v1432_v44  ;;  %v4234_v45 = vld [vmem:[%s4886_s4] ss:$0 sm:$0xff] }
0x23bf   : > { %v1444_v50 = vsel %vm363_vm1, %v1437_v49, %v1443_v48  ;;  %1455 = vperm.xlu1 %3245, %v1437_v49   ;;  %v1474_v6 = vadd.f32 %v1443_v48, %v3689_v33  ;;  %v1468_v7 = vadd.f32 %v1437_v49, %v3689_v33 }
0x23c0   : > { %3029 = vst.msk [vmem:[%s3694_s13 + $0xf0] sm:$0xff] %vm365_vm2, %v1444_v50 }
0x23c3   : > { %3246 = vset.pattern.permute.xlu1 %v3502_v1 }
0x23c4   : > { %1461 = vperm.xlu1 %3246, %v1443_v48   ;;  %v1449_v37 = vpop.permute.xlu0 %1448 }
0x23c5   : > { %v1451_v54 = vmul.f32 %v3943_v47, %v1449_v37 }
0x23c7   : > { %v1452_v57 = vadd.f32 %v3951_v52, %v1451_v54 }
0x23c8   : > { %3247 = vset.pattern.permute.xlu1 %v3533_v51 }
0x243e   : > { %v1456_v53 = vpop.permute.xlu1 %1455 }
0x243f   : > { %v1458_v56 = vmul.f32 %v1456_v53, %v3662_v13 }
0x2443   : > { %v1462_v55 = vpop.permute.xlu1 %1461 }
0x2444   : > { %v1464_v58 = vmul.f32 %v1462_v55, %v3655_v9  ;;  %v3535_v55 = vmov 34  }
0x2446   : > { %v1465_v59 = vadd.f32 %v1464_v58, %v1458_v56 }
0x2448   : > { %v1466_v60 = vadd.f32 %v1465_v59, %v1452_v57 }
0x244a   : > { %3402 = vtanh.f32 %v1466_v60 }
0x2454   : > { %v3403_v61 = vpop.eup %3402 }
0x2455   : > { %v1475_v62 = vmul.f32 %v3403_v61, %v3676_v24  ;;  %v1469_v63 = vmul.f32 %v3403_v61, %v3678_v25 }
0x2457   : > { %v1476_v3 = vsel %vm349_vm0, %v1475_v62, 0.0  ;;  %v1470_v4 = vsel %vm349_vm0, %v1469_v63, 0.0  ;;  %v3536_v63 = vmov 35  }
0x2458   : > { %1477 = vadd.xlane.f32.xlu0 %v1476_v3  ;;  %1471 = vadd.xlane.f32.xlu1 %v1470_v4 }
0x2469   : > { %1484 = vperm.xlu1 %3247, %v4198_v5  }
0x246d   : > { %3249 = vset.pattern.permute.xlu1 %v3502_v1 }
0x24e5   : > { %v1478_v8 = vpop.xlane.xlu0 %1477  ;;  %v1472_v11 = vpop.xlane.xlu1 %1471 }
0x24e6   : > { %v1479_v12 = vadd.f32 %v1478_v8, %v1474_v6  ;;  %v1473_v14 = vadd.f32 %v1472_v11, %v1468_v7 }
0x24e8   : > { %v1480_v15 = vsel %vm363_vm1, %v1473_v14, %v1479_v12  ;;  %1497 = vperm.xlu1 %3249, %v1479_v12   ;;  %1491 = vperm.xlu0 %3248, %v1473_v14   ;;  %v1510_v35 = vadd.f32 %v1479_v12, %v3689_v33 }
0x24e9   : > { %3030 = vst.msk [vmem:[%s3694_s13 + $0xf8] sm:$0xff] %vm365_vm2, %v1480_v15  ;;  %v1485_v17 = vpop.permute.xlu1 %1484 }
0x24ea   : > { %v1487_v18 = vmul.f32 %v3943_v47, %v1485_v17 }
0x24ec   : > { %3251 = vset.pattern.permute.xlu1 %v3501_v0  ;;  %v1488_v2 = vadd.f32 %v3951_v52, %v1487_v18  ;;  %3250 = vset.pattern.permute.xlu0 %v3534_v31  ;;  %v1504_v52 = vadd.f32 %v1473_v14, %v3689_v33 }
0x24ed   : > { %1520 = vperm.xlu0 %3250, %v4198_v5  }
0x24f1   : > { %3252 = vset.pattern.permute.xlu0 %v3502_v1 }
0x2567   : > { %v1498_v19 = vpop.permute.xlu1 %1497  ;;  %v1492_v20 = vpop.permute.xlu0 %1491 }
0x2568   : > { %v1500_v21 = vmul.f32 %v1498_v19, %v3655_v9  ;;  %v1494_v22 = vmul.f32 %v1492_v20, %v3662_v13 }
0x256a   : > { %v1501_v23 = vadd.f32 %v1500_v21, %v1494_v22 }
0x256c   : > { %v1502_v26 = vadd.f32 %v1501_v23, %v1488_v2  ;;  %v1521_v38 = vpop.permute.xlu0 %1520 }
0x256d   : > { %v1523_v41 = vmul.f32 %v4226_v40, %v1521_v38 }
0x256e   : > { %3404 = vtanh.f32 %v1502_v26 }
0x256f   : > { %v1524_v46 = vadd.f32 %v4234_v45, %v1523_v41 }
0x2578   : > { %v3405_v27 = vpop.eup %3404 }
0x2579   : > { %v1505_v28 = vmul.f32 %v3405_v27, %v3678_v25  ;;  %v1511_v30 = vmul.f32 %v3405_v27, %v3676_v24 }
0x257b   : > { %v1506_v29 = vsel %vm349_vm0, %v1505_v28, 0.0  ;;  %v1512_v47 = vsel %vm349_vm0, %v1511_v30, 0.0  ;;  %v3537_v30 = vmov 36  }
0x257c   : > { %1507 = vadd.xlane.f32.xlu1 %v1506_v29 }
0x2580   : > { %1513 = vadd.xlane.f32.xlu1 %v1512_v47 }
0x2609   : > { %v1508_v32 = vpop.xlane.xlu1 %1507 }
0x260a   : > { %v1509_v34 = vadd.f32 %v1508_v32, %v1504_v52 }
0x260c   : > { %1527 = vperm.xlu1 %3251, %v1509_v34   ;;  %v1540_v57 = vadd.f32 %v1509_v34, %v3689_v33 }
0x260d   : > { %v1514_v10 = vpop.xlane.xlu1 %1513 }
0x260e   : > { %v1515_v36 = vadd.f32 %v1514_v10, %v1510_v35 }
0x2610   : > { %v1516_v16 = vsel %vm363_vm1, %v1509_v34, %v1515_v36  ;;  %1533 = vperm.xlu0 %3252, %v1515_v36   ;;  %v1546_v56 = vadd.f32 %v1515_v36, %v3689_v33 }
0x2611   : > { %3031 = vst.msk [vmem:[%s3694_s13 + $0x100] sm:$0xff] %vm365_vm2, %v1516_v16 }
0x2614   : > { %3253 = vset.pattern.permute.xlu0 %v3535_v55 }
0x268b   : > { %v1528_v39 = vpop.permute.xlu1 %1527 }
0x268c   : > { %v1530_v43 = vmul.f32 %v1528_v39, %v3662_v13 }
0x268f   : > { %v1534_v42 = vpop.permute.xlu0 %1533 }
0x2690   : > { %v1536_v44 = vmul.f32 %v1534_v42, %v3655_v9 }
0x2692   : > { %v1537_v48 = vadd.f32 %v1536_v44, %v1530_v43 }
0x2694   : > { %v1538_v49 = vadd.f32 %v1537_v48, %v1524_v46 }
0x2696   : > { %3406 = vtanh.f32 %v1538_v49 }
0x26a0   : > { %v3407_v50 = vpop.eup %3406 }
0x26a1   : > { %v1547_v51 = vmul.f32 %v3407_v50, %v3676_v24  ;;  %v1541_v37 = vmul.f32 %v3407_v50, %v3678_v25 }
0x26a3   : > { %v1548_v53 = vsel %vm349_vm0, %v1547_v51, 0.0  ;;  %v1542_v54 = vsel %vm349_vm0, %v1541_v37, 0.0 }
0x26a4   : > { %1549 = vadd.xlane.f32.xlu1 %v1548_v53  ;;  %1543 = vadd.xlane.f32.xlu0 %v1542_v54  ;;  %v3538_v53 = vmov 37  }
0x26ba   : > { %1556 = vperm.xlu0 %3253, %v4198_v5  }
0x26be   : > { %3256 = vset.pattern.permute.xlu0 %v3501_v0 }
0x2731   : > { %v1550_v58 = vpop.xlane.xlu1 %1549  ;;  %v1544_v59 = vpop.xlane.xlu0 %1543 }
0x2732   : > { %v1551_v60 = vadd.f32 %v1550_v58, %v1546_v56  ;;  %v1545_v61 = vadd.f32 %v1544_v59, %v1540_v57 }
0x2734   : > { %v1552_v62 = vsel %vm363_vm1, %v1545_v61, %v1551_v60  ;;  %1563 = vperm.xlu1 %3251, %v1545_v61   ;;  %v1582_v22 = vadd.f32 %v1551_v60, %v3689_v33  ;;  %v1576_v2 = vadd.f32 %v1545_v61, %v3689_v33 }
0x2735   : > { %3032 = vst.msk [vmem:[%s3694_s13 + $0x108] sm:$0xff] %vm365_vm2, %v1552_v62 }
0x2738   : > { %3254 = vset.pattern.permute.xlu1 %v3502_v1 }
0x2739   : > { %1569 = vperm.xlu1 %3254, %v1551_v60   ;;  %v1557_v3 = vpop.permute.xlu0 %1556 }
0x273a   : > { %v1559_v6 = vmul.f32 %v4226_v40, %v1557_v3 }
0x273c   : > { %v1560_v11 = vadd.f32 %v4234_v45, %v1559_v6 }
0x273d   : > { %3255 = vset.pattern.permute.xlu1 %v3536_v63 }
0x27b3   : > { %v1564_v4 = vpop.permute.xlu1 %1563 }
0x27b4   : > { %v1566_v8 = vmul.f32 %v1564_v4, %v3662_v13 }
0x27b8   : > { %v1570_v7 = vpop.permute.xlu1 %1569 }
0x27b9   : > { %v1572_v12 = vmul.f32 %v1570_v7, %v3655_v9 }
0x27bb   : > { %v1573_v14 = vadd.f32 %v1572_v12, %v1566_v8 }
0x27bd   : > { %v1574_v15 = vadd.f32 %v1573_v14, %v1560_v11 }
0x27bf   : > { %3408 = vtanh.f32 %v1574_v15 }
0x27c9   : > { %v3409_v17 = vpop.eup %3408 }
0x27ca   : > { %v1583_v18 = vmul.f32 %v3409_v17, %v3676_v24  ;;  %v1577_v19 = vmul.f32 %v3409_v17, %v3678_v25 }
0x27cc   : > { %v1584_v20 = vsel %vm349_vm0, %v1583_v18, 0.0  ;;  %v1578_v21 = vsel %vm349_vm0, %v1577_v19, 0.0 }
0x27cd   : > { %1585 = vadd.xlane.f32.xlu0 %v1584_v20  ;;  %1579 = vadd.xlane.f32.xlu1 %v1578_v21 }
0x27de   : > { %1592 = vperm.xlu1 %3255, %v4198_v5  }
0x27e2   : > { %3257 = vset.pattern.permute.xlu1 %v3502_v1 }
0x285a   : > { %v1586_v23 = vpop.xlane.xlu0 %1585  ;;  %v1580_v26 = vpop.xlane.xlu1 %1579 }
0x285b   : > { %v1587_v27 = vadd.f32 %v1586_v23, %v1582_v22  ;;  %v1581_v28 = vadd.f32 %v1580_v26, %v1576_v2 }
0x285d   : > { %v1588_v29 = vsel %vm363_vm1, %v1581_v28, %v1587_v27  ;;  %1605 = vperm.xlu1 %3257, %v1587_v27   ;;  %1599 = vperm.xlu0 %3256, %v1581_v28   ;;  %v1618_v44 = vadd.f32 %v1587_v27, %v3689_v33  ;;  %v1612_v46 = vadd.f32 %v1581_v28, %v3689_v33 }
0x285e   : > { %3033 = vst.msk [vmem:[%s3694_s13 + $0x110] sm:$0xff] %vm365_vm2, %v1588_v29  ;;  %v1593_v47 = vpop.permute.xlu1 %1592 }
0x285f   : > { %v1595_v31 = vmul.f32 %v4226_v40, %v1593_v47 }
0x2861   : > { %3258 = vset.pattern.permute.xlu1 %v3537_v30  ;;  %v1596_v10 = vadd.f32 %v4234_v45, %v1595_v31  ;;  %3261 = vset.pattern.permute.xlu0 %v3538_v53 }
0x28dc   : > { %v1606_v52 = vpop.permute.xlu1 %1605  ;;  %v1600_v32 = vpop.permute.xlu0 %1599 }
0x28dd   : > { %v1608_v34 = vmul.f32 %v1606_v52, %v3655_v9  ;;  %v1602_v35 = vmul.f32 %v1600_v32, %v3662_v13  ;;  %v3539_v32 = vmov 38  }
0x28df   : > { %v1609_v36 = vadd.f32 %v1608_v34, %v1602_v35 }
0x28e1   : > { %v1610_v16 = vadd.f32 %v1609_v36, %v1596_v10 }
0x28e3   : > { %3410 = vtanh.f32 %v1610_v16 }
0x28ed   : > { %v3411_v38 = vpop.eup %3410 }
0x28ee   : > { %v1619_v39 = vmul.f32 %v3411_v38, %v3676_v24  ;;  %v1613_v41 = vmul.f32 %v3411_v38, %v3678_v25 }
0x28f0   : > { %v1620_v42 = vsel %vm349_vm0, %v1619_v39, 0.0  ;;  %v1614_v43 = vsel %vm349_vm0, %v1613_v41, 0.0  ;;  %v3540_v41 = vmov 39  }
0x28f1   : > { %1621 = vadd.xlane.f32.xlu0 %v1620_v42  ;;  %1615 = vadd.xlane.f32.xlu1 %v1614_v43 }
0x2902   : > { %1628 = vperm.xlu1 %3258, %v4198_v5  }
0x2906   : > { %3259 = vset.pattern.permute.xlu1 %v3501_v0 }
0x297e   : > { %v1622_v48 = vpop.xlane.xlu0 %1621  ;;  %v1616_v49 = vpop.xlane.xlu1 %1615 }
0x297f   : > { %v1623_v50 = vadd.f32 %v1622_v48, %v1618_v44  ;;  %v1617_v51 = vadd.f32 %v1616_v49, %v1612_v46 }
0x2981   : > { %v1624_v37 = vsel %vm363_vm1, %v1617_v51, %v1623_v50  ;;  %1635 = vperm.xlu1 %3259, %v1617_v51   ;;  %v1654_v8 = vadd.f32 %v1623_v50, %v3689_v33  ;;  %v1648_v11 = vadd.f32 %v1617_v51, %v3689_v33 }
0x2982   : > { %3034 = vst.msk [vmem:[%s3694_s13 + $0x118] sm:$0xff] %vm365_vm2, %v1624_v37  ;;  %v1629_v54 = vpop.permute.xlu1 %1628 }
0x2983   : > { %v1631_v56 = vmul.f32 %v4226_v40, %v1629_v54 }
0x2985   : > { %3260 = vset.pattern.permute.xlu1 %v3502_v1  ;;  %v1632_v60 = vadd.f32 %v4234_v45, %v1631_v56 }
0x2986   : > { %1641 = vperm.xlu1 %3260, %v1623_v50  }
0x298a   : > { %3262 = vset.pattern.permute.xlu1 %v3501_v0 }
0x2a00   : > { %v1636_v55 = vpop.permute.xlu1 %1635 }
0x2a01   : > { %v1638_v58 = vmul.f32 %v1636_v55, %v3662_v13 }
0x2a05   : > { %v1642_v57 = vpop.permute.xlu1 %1641 }
0x2a06   : > { %v1644_v59 = vmul.f32 %v1642_v57, %v3655_v9 }
0x2a08   : > { %v1645_v61 = vadd.f32 %v1644_v59, %v1638_v58 }
0x2a0a   : > { %v1646_v62 = vadd.f32 %v1645_v61, %v1632_v60 }
0x2a0c   : > { %3412 = vtanh.f32 %v1646_v62 }
0x2a16   : > { %v3413_v63 = vpop.eup %3412 }
0x2a17   : > { %v1655_v3 = vmul.f32 %v3413_v63, %v3676_v24  ;;  %v1649_v4 = vmul.f32 %v3413_v63, %v3678_v25 }
0x2a19   : > { %v1656_v6 = vsel %vm349_vm0, %v1655_v3, 0.0  ;;  %v1650_v7 = vsel %vm349_vm0, %v1649_v4, 0.0 }
0x2a1a   : > { %1657 = vadd.xlane.f32.xlu0 %v1656_v6  ;;  %1651 = vadd.xlane.f32.xlu1 %v1650_v7 }
0x2a30   : > { %1664 = vperm.xlu0 %3261, %v4198_v5  }
0x2a34   : > { %3263 = vset.pattern.permute.xlu0 %v3502_v1 }
0x2aa7   : > { %v1658_v12 = vpop.xlane.xlu0 %1657  ;;  %v1652_v14 = vpop.xlane.xlu1 %1651 }
0x2aa8   : > { %v1659_v15 = vadd.f32 %v1658_v12, %v1654_v8  ;;  %v1653_v17 = vadd.f32 %v1652_v14, %v1648_v11 }
0x2aaa   : > { %v1660_v18 = vsel %vm363_vm1, %v1653_v17, %v1659_v15  ;;  %1677 = vperm.xlu0 %3263, %v1659_v15   ;;  %1671 = vperm.xlu1 %3262, %v1653_v17   ;;  %v1690_v34 = vadd.f32 %v1659_v15, %v3689_v33  ;;  %v1684_v35 = vadd.f32 %v1653_v17, %v3689_v33 }
0x2aab   : > { %3035 = vst.msk [vmem:[%s3694_s13 + $0x120] sm:$0xff] %vm365_vm2, %v1660_v18 }
0x2aae   : > { %3264 = vset.pattern.permute.xlu0 %v3539_v32 }
0x2aaf   : > { %v1665_v19 = vpop.permute.xlu0 %1664 }
0x2ab0   : > { %v1667_v20 = vmul.f32 %v4226_v40, %v1665_v19 }
0x2ab2   : > { %v1668_v26 = vadd.f32 %v4234_v45, %v1667_v20 }
0x2b29   : > { %v1678_v21 = vpop.permute.xlu0 %1677  ;;  %v1672_v22 = vpop.permute.xlu1 %1671 }
0x2b2a   : > { %v1680_v2 = vmul.f32 %v1678_v21, %v3655_v9  ;;  %v1674_v23 = vmul.f32 %v1672_v22, %v3662_v13 }
0x2b2c   : > { %v1681_v27 = vadd.f32 %v1680_v2, %v1674_v23  ;;  %v3541_v2 = vmov 40  }
0x2b2e   : > { %v1682_v28 = vadd.f32 %v1681_v27, %v1668_v26 }
0x2b30   : > { %3414 = vtanh.f32 %v1682_v28 }
0x2b3a   : > { %v3415_v29 = vpop.eup %3414 }
0x2b3b   : > { %v1691_v30 = vmul.f32 %v3415_v29, %v3676_v24  ;;  %v1685_v47 = vmul.f32 %v3415_v29, %v3678_v25 }
0x2b3d   : > { %v1692_v31 = vsel %vm349_vm0, %v1691_v30, 0.0  ;;  %v1686_v52 = vsel %vm349_vm0, %v1685_v47, 0.0 }
0x2b3e   : > { %1693 = vadd.xlane.f32.xlu0 %v1692_v31  ;;  %1687 = vadd.xlane.f32.xlu1 %v1686_v52 }
0x2b54   : > { %1700 = vperm.xlu0 %3264, %v4198_v5  }
0x2b58   : > { %3268 = vset.pattern.permute.xlu0 %v3502_v1 }
0x2bcb   : > { %v1694_v10 = vpop.xlane.xlu0 %1693  ;;  %v1688_v36 = vpop.xlane.xlu1 %1687 }
0x2bcc   : > { %v1695_v16 = vadd.f32 %v1694_v10, %v1690_v34  ;;  %v1689_v38 = vadd.f32 %v1688_v36, %v1684_v35 }
0x2bce   : > { %v1696_v39 = vsel %vm363_vm1, %v1689_v38, %v1695_v16  ;;  %1707 = vperm.xlu1 %3262, %v1689_v38   ;;  %v1726_v58 = vadd.f32 %v1695_v16, %v3689_v33  ;;  %v1720_v59 = vadd.f32 %v1689_v38, %v3689_v33 }
0x2bcf   : > { %3036 = vst.msk [vmem:[%s3694_s13 + $0x128] sm:$0xff] %vm365_vm2, %v1696_v39 }
0x2bd2   : > { %3265 = vset.pattern.permute.xlu1 %v3502_v1 }
0x2bd3   : > { %1713 = vperm.xlu1 %3265, %v1695_v16   ;;  %v1701_v42 = vpop.permute.xlu0 %1700 }
0x2bd4   : > { %v1703_v44 = vmul.f32 %v4226_v40, %v1701_v42 }
0x2bd6   : > { %v1704_v49 = vadd.f32 %v4234_v45, %v1703_v44 }
0x2bd7   : > { %3266 = vset.pattern.permute.xlu1 %v3540_v41 }
0x2c4d   : > { %v1708_v43 = vpop.permute.xlu1 %1707 }
0x2c4e   : > { %v1710_v48 = vmul.f32 %v1708_v43, %v3662_v13 }
0x2c52   : > { %v1714_v46 = vpop.permute.xlu1 %1713 }
0x2c53   : > { %v1716_v50 = vmul.f32 %v1714_v46, %v3655_v9  ;;  %v3542_v46 = vmov 41  }
0x2c55   : > { %v1717_v51 = vadd.f32 %v1716_v50, %v1710_v48 }
0x2c57   : > { %v1718_v37 = vadd.f32 %v1717_v51, %v1704_v49 }
0x2c59   : > { %3416 = vtanh.f32 %v1718_v37 }
0x2c63   : > { %v3417_v53 = vpop.eup %3416 }
0x2c64   : > { %v1727_v54 = vmul.f32 %v3417_v53, %v3676_v24  ;;  %v1721_v55 = vmul.f32 %v3417_v53, %v3678_v25 }
0x2c66   : > { %v1728_v56 = vsel %vm349_vm0, %v1727_v54, 0.0  ;;  %v1722_v57 = vsel %vm349_vm0, %v1721_v55, 0.0  ;;  %v3543_v55 = vmov 42  }
0x2c67   : > { %1729 = vadd.xlane.f32.xlu0 %v1728_v56  ;;  %1723 = vadd.xlane.f32.xlu1 %v1722_v57 }
0x2c78   : > { %1736 = vperm.xlu1 %3266, %v4198_v5  }
0x2c7c   : > { %3267 = vset.pattern.permute.xlu1 %v3501_v0 }
0x2cf4   : > { %v1730_v60 = vpop.xlane.xlu0 %1729  ;;  %v1724_v61 = vpop.xlane.xlu1 %1723 }
0x2cf5   : > { %v1731_v62 = vadd.f32 %v1730_v60, %v1726_v58  ;;  %v1725_v63 = vadd.f32 %v1724_v61, %v1720_v59 }
0x2cf7   : > { %v1732_v3 = vsel %vm363_vm1, %v1725_v63, %v1731_v62  ;;  %1749 = vperm.xlu0 %3268, %v1731_v62   ;;  %1743 = vperm.xlu1 %3267, %v1725_v63   ;;  %v1756_v23 = vadd.f32 %v1725_v63, %v3689_v33  ;;  %v1762_v28 = vadd.f32 %v1731_v62, %v3689_v33 }
0x2cf8   : > { %3037 = vst.msk [vmem:[%s3694_s13 + $0x130] sm:$0xff] %vm365_vm2, %v1732_v3  ;;  %v1737_v4 = vpop.permute.xlu1 %1736 }
0x2cf9   : > { %v1739_v6 = vmul.f32 %v4226_v40, %v1737_v4 }
0x2cfb   : > { %3270 = vset.pattern.permute.xlu0 %v3501_v0  ;;  %v1740_v14 = vadd.f32 %v4234_v45, %v1739_v6  ;;  %3269 = vset.pattern.permute.xlu1 %v3541_v2 }
0x2d76   : > { %v1750_v7 = vpop.permute.xlu0 %1749  ;;  %v1744_v8 = vpop.permute.xlu1 %1743 }
0x2d77   : > { %v1752_v11 = vmul.f32 %v1750_v7, %v3655_v9  ;;  %v1746_v12 = vmul.f32 %v1744_v8, %v3662_v13 }
0x2d79   : > { %v1753_v15 = vadd.f32 %v1752_v11, %v1746_v12 }
0x2d7b   : > { %v1754_v17 = vadd.f32 %v1753_v15, %v1740_v14 }
0x2d7d   : > { %3418 = vtanh.f32 %v1754_v17 }
0x2d87   : > { %v3419_v18 = vpop.eup %3418 }
0x2d88   : > { %v1757_v19 = vmul.f32 %v3419_v18, %v3678_v25  ;;  %v1763_v21 = vmul.f32 %v3419_v18, %v3676_v24 }
0x2d8a   : > { %v1758_v20 = vsel %vm349_vm0, %v1757_v19, 0.0  ;;  %v1764_v22 = vsel %vm349_vm0, %v1763_v21, 0.0  ;;  %v3544_v21 = vmov 43  }
0x2d8b   : > { %1759 = vadd.xlane.f32.xlu1 %v1758_v20 }
0x2d8f   : > { %1765 = vadd.xlane.f32.xlu1 %v1764_v22 }
0x2da0   : > { %1772 = vperm.xlu1 %3269, %v4198_v5  }
0x2da4   : > { %3273 = vset.pattern.permute.xlu1 %v3501_v0 }
0x2e18   : > { %v1760_v26 = vpop.xlane.xlu1 %1759 }
0x2e19   : > { %v1761_v27 = vadd.f32 %v1760_v26, %v1756_v23 }
0x2e1b   : > { %1779 = vperm.xlu0 %3270, %v1761_v27   ;;  %v1792_v49 = vadd.f32 %v1761_v27, %v3689_v33 }
0x2e1c   : > { %v1766_v29 = vpop.xlane.xlu1 %1765 }
0x2e1d   : > { %v1767_v30 = vadd.f32 %v1766_v29, %v1762_v28 }
0x2e1f   : > { %v1768_v47 = vsel %vm363_vm1, %v1761_v27, %v1767_v30  ;;  %3271 = vset.pattern.permute.xlu0 %v3502_v1  ;;  %v1798_v48 = vadd.f32 %v1767_v30, %v3689_v33 }
0x2e20   : > { %3038 = vst.msk [vmem:[%s3694_s13 + $0x138] sm:$0xff] %vm365_vm2, %v1768_v47  ;;  %1785 = vperm.xlu0 %3271, %v1767_v30   ;;  %v1773_v31 = vpop.permute.xlu1 %1772 }
0x2e21   : > { %v1775_v32 = vmul.f32 %v4226_v40, %v1773_v31 }
0x2e23   : > { %v1776_v10 = vadd.f32 %v4234_v45, %v1775_v32 }
0x2e24   : > { %3272 = vset.pattern.permute.xlu0 %v3542_v46 }
0x2e9a   : > { %v1780_v52 = vpop.permute.xlu0 %1779 }
0x2e9b   : > { %v1782_v35 = vmul.f32 %v1780_v52, %v3662_v13 }
0x2e9f   : > { %v1786_v34 = vpop.permute.xlu0 %1785 }
0x2ea0   : > { %v1788_v36 = vmul.f32 %v1786_v34, %v3655_v9 }
0x2ea2   : > { %v1789_v16 = vadd.f32 %v1788_v36, %v1782_v35 }
0x2ea4   : > { %v1790_v38 = vadd.f32 %v1789_v16, %v1776_v10 }
0x2ea6   : > { %3420 = vtanh.f32 %v1790_v38 }
0x2eb0   : > { %v3421_v39 = vpop.eup %3420 }
0x2eb1   : > { %v1799_v41 = vmul.f32 %v3421_v39, %v3676_v24  ;;  %v1793_v42 = vmul.f32 %v3421_v39, %v3678_v25 }
0x2eb3   : > { %v1800_v43 = vsel %vm349_vm0, %v1799_v41, 0.0  ;;  %v1794_v44 = vsel %vm349_vm0, %v1793_v42, 0.0 }
0x2eb4   : > { %1801 = vadd.xlane.f32.xlu1 %v1800_v43  ;;  %1795 = vadd.xlane.f32.xlu0 %v1794_v44 }
0x2eca   : > { %1808 = vperm.xlu0 %3272, %v4198_v5  }
0x2ece   : > { %3276 = vset.pattern.permute.xlu0 %v3501_v0 }
0x2f41   : > { %v1802_v50 = vpop.xlane.xlu1 %1801  ;;  %v1796_v51 = vpop.xlane.xlu0 %1795 }
0x2f42   : > { %v1803_v37 = vadd.f32 %v1802_v50, %v1798_v48  ;;  %v1797_v53 = vadd.f32 %v1796_v51, %v1792_v49 }
0x2f44   : > { %v1804_v54 = vsel %vm363_vm1, %v1797_v53, %v1803_v37  ;;  %1815 = vperm.xlu1 %3273, %v1797_v53   ;;  %v1834_v12 = vadd.f32 %v1803_v37, %v3689_v33  ;;  %v1828_v14 = vadd.f32 %v1797_v53, %v3689_v33 }
0x2f45   : > { %3039 = vst.msk [vmem:[%s3694_s13 + $0x140] sm:$0xff] %vm365_vm2, %v1804_v54 }
0x2f48   : > { %3274 = vset.pattern.permute.xlu1 %v3502_v1 }
0x2f49   : > { %1821 = vperm.xlu1 %3274, %v1803_v37   ;;  %v1809_v56 = vpop.permute.xlu0 %1808 }
0x2f4a   : > { %v1811_v58 = vmul.f32 %v4226_v40, %v1809_v56 }
0x2f4c   : > { %v1812_v61 = vadd.f32 %v4234_v45, %v1811_v58 }
0x2f4d   : > { %3275 = vset.pattern.permute.xlu1 %v3543_v55 }
0x2fc3   : > { %v1816_v57 = vpop.permute.xlu1 %1815 }
0x2fc4   : > { %v1818_v60 = vmul.f32 %v1816_v57, %v3662_v13 }
0x2fc8   : > { %v1822_v59 = vpop.permute.xlu1 %1821 }
0x2fc9   : > { %v1824_v62 = vmul.f32 %v1822_v59, %v3655_v9  ;;  %v3545_v59 = vmov 44  }
0x2fcb   : > { %v1825_v63 = vadd.f32 %v1824_v62, %v1818_v60 }
0x2fcd   : > { %v1826_v3 = vadd.f32 %v1825_v63, %v1812_v61 }
0x2fcf   : > { %3422 = vtanh.f32 %v1826_v3 }
0x2fd9   : > { %v3423_v4 = vpop.eup %3422 }
0x2fda   : > { %v1835_v6 = vmul.f32 %v3423_v4, %v3676_v24  ;;  %v1829_v7 = vmul.f32 %v3423_v4, %v3678_v25 }
0x2fdc   : > { %v1836_v8 = vsel %vm349_vm0, %v1835_v6, 0.0  ;;  %v1830_v11 = vsel %vm349_vm0, %v1829_v7, 0.0 }
0x2fdd   : > { %1837 = vadd.xlane.f32.xlu0 %v1836_v8  ;;  %1831 = vadd.xlane.f32.xlu1 %v1830_v11 }
0x2fee   : > { %1844 = vperm.xlu1 %3275, %v4198_v5  }
0x2ff2   : > { %3277 = vset.pattern.permute.xlu1 %v3502_v1 }
0x306a   : > { %v1838_v15 = vpop.xlane.xlu0 %1837  ;;  %v1832_v17 = vpop.xlane.xlu1 %1831 }
0x306b   : > { %v1839_v18 = vadd.f32 %v1838_v15, %v1834_v12  ;;  %v1833_v19 = vadd.f32 %v1832_v17, %v1828_v14 }
0x306d   : > { %v1840_v20 = vsel %vm363_vm1, %v1833_v19, %v1839_v18  ;;  %1857 = vperm.xlu1 %3277, %v1839_v18   ;;  %1851 = vperm.xlu0 %3276, %v1833_v19   ;;  %v1870_v10 = vadd.f32 %v1839_v18, %v3689_v33  ;;  %v1864_v36 = vadd.f32 %v1833_v19, %v3689_v33 }
0x306e   : > { %3040 = vst.msk [vmem:[%s3694_s13 + $0x148] sm:$0xff] %vm365_vm2, %v1840_v20  ;;  %v1845_v22 = vpop.permute.xlu1 %1844 }
0x306f   : > { %v1847_v2 = vmul.f32 %v4226_v40, %v1845_v22 }
0x3071   : > { %3278 = vset.pattern.permute.xlu1 %v3544_v21  ;;  %v1848_v29 = vadd.f32 %v4234_v45, %v1847_v2  ;;  %3281 = vset.pattern.permute.xlu0 %v3545_v59 }
0x30ec   : > { %v1858_v23 = vpop.permute.xlu1 %1857  ;;  %v1852_v26 = vpop.permute.xlu0 %1851 }
0x30ed   : > { %v1860_v27 = vmul.f32 %v1858_v23, %v3655_v9  ;;  %v1854_v28 = vmul.f32 %v1852_v26, %v3662_v13  ;;  %v3546_v26 = vmov 45  }
0x30ef   : > { %v1861_v30 = vadd.f32 %v1860_v27, %v1854_v28 }
0x30f1   : > { %v1862_v47 = vadd.f32 %v1861_v30, %v1848_v29 }
0x30f3   : > { %3424 = vtanh.f32 %v1862_v47 }
0x30fd   : > { %v3425_v31 = vpop.eup %3424 }
0x30fe   : > { %v1871_v52 = vmul.f32 %v3425_v31, %v3676_v24  ;;  %v1865_v32 = vmul.f32 %v3425_v31, %v3678_v25 }
0x3100   : > { %v1872_v34 = vsel %vm349_vm0, %v1871_v52, 0.0  ;;  %v1866_v35 = vsel %vm349_vm0, %v1865_v32, 0.0  ;;  %v3547_v32 = vmov 46  }
0x3101   : > { %1873 = vadd.xlane.f32.xlu0 %v1872_v34  ;;  %1867 = vadd.xlane.f32.xlu1 %v1866_v35 }
0x3112   : > { %1880 = vperm.xlu1 %3278, %v4198_v5  }
0x3116   : > { %3279 = vset.pattern.permute.xlu1 %v3501_v0 }
0x318e   : > { %v1874_v16 = vpop.xlane.xlu0 %1873  ;;  %v1868_v38 = vpop.xlane.xlu1 %1867 }
0x318f   : > { %v1875_v39 = vadd.f32 %v1874_v16, %v1870_v10  ;;  %v1869_v41 = vadd.f32 %v1868_v38, %v1864_v36 }
0x3191   : > { %v1876_v42 = vsel %vm363_vm1, %v1869_v41, %v1875_v39  ;;  %1887 = vperm.xlu1 %3279, %v1869_v41   ;;  %v1906_v60 = vadd.f32 %v1875_v39, %v3689_v33  ;;  %v1900_v61 = vadd.f32 %v1869_v41, %v3689_v33 }
0x3192   : > { %3041 = vst.msk [vmem:[%s3694_s13 + $0x150] sm:$0xff] %vm365_vm2, %v1876_v42  ;;  %v1881_v43 = vpop.permute.xlu1 %1880 }
0x3193   : > { %v1883_v46 = vmul.f32 %v4226_v40, %v1881_v43 }
0x3195   : > { %3280 = vset.pattern.permute.xlu1 %v3502_v1  ;;  %v1884_v51 = vadd.f32 %v4234_v45, %v1883_v46 }
0x3196   : > { %1893 = vperm.xlu1 %3280, %v1875_v39  }
0x319a   : > { %3282 = vset.pattern.permute.xlu1 %v3501_v0 }
0x3210   : > { %v1888_v44 = vpop.permute.xlu1 %1887 }
0x3211   : > { %v1890_v49 = vmul.f32 %v1888_v44, %v3662_v13 }
0x3215   : > { %v1894_v48 = vpop.permute.xlu1 %1893 }
0x3216   : > { %v1896_v50 = vmul.f32 %v1894_v48, %v3655_v9 }
0x3218   : > { %v1897_v37 = vadd.f32 %v1896_v50, %v1890_v49 }
0x321a   : > { %v1898_v53 = vadd.f32 %v1897_v37, %v1884_v51 }
0x321c   : > { %3426 = vtanh.f32 %v1898_v53 }
0x3226   : > { %v3427_v54 = vpop.eup %3426 }
0x3227   : > { %v1907_v55 = vmul.f32 %v3427_v54, %v3676_v24  ;;  %v1901_v56 = vmul.f32 %v3427_v54, %v3678_v25 }
0x3229   : > { %v1908_v57 = vsel %vm349_vm0, %v1907_v55, 0.0  ;;  %v1902_v58 = vsel %vm349_vm0, %v1901_v56, 0.0 }
0x322a   : > { %1909 = vadd.xlane.f32.xlu0 %v1908_v57  ;;  %1903 = vadd.xlane.f32.xlu1 %v1902_v58  ;;  %v3548_v57 = vmov 47  }
0x3240   : > { %1916 = vperm.xlu0 %3281, %v4198_v5  }
0x3244   : > { %3284 = vset.pattern.permute.xlu0 %v3546_v26 }
0x32b7   : > { %v1910_v62 = vpop.xlane.xlu0 %1909  ;;  %v1904_v63 = vpop.xlane.xlu1 %1903 }
0x32b8   : > { %v1911_v3 = vadd.f32 %v1910_v62, %v1906_v60  ;;  %v1905_v4 = vadd.f32 %v1904_v63, %v1900_v61 }
0x32ba   : > { %v1912_v6 = vsel %vm363_vm1, %v1905_v4, %v1911_v3  ;;  %1923 = vperm.xlu1 %3282, %v1905_v4   ;;  %v1942_v27 = vadd.f32 %v1911_v3, %v3689_v33  ;;  %v1936_v28 = vadd.f32 %v1905_v4, %v3689_v33 }
0x32bb   : > { %3042 = vst.msk [vmem:[%s3694_s13 + $0x158] sm:$0xff] %vm365_vm2, %v1912_v6 }
0x32be   : > { %3283 = vset.pattern.permute.xlu1 %v3502_v1 }
0x32bf   : > { %1929 = vperm.xlu1 %3283, %v1911_v3   ;;  %v1917_v7 = vpop.permute.xlu0 %1916 }
0x32c0   : > { %v1919_v11 = vmul.f32 %v4226_v40, %v1917_v7 }
0x32c2   : > { %v1920_v15 = vadd.f32 %v4234_v45, %v1919_v11 }
0x32c3   : > { %3285 = vset.pattern.permute.xlu1 %v3501_v0 }
0x3339   : > { %v1924_v8 = vpop.permute.xlu1 %1923 }
0x333a   : > { %v1926_v14 = vmul.f32 %v1924_v8, %v3662_v13 }
0x333e   : > { %v1930_v12 = vpop.permute.xlu1 %1929 }
0x333f   : > { %v1932_v17 = vmul.f32 %v1930_v12, %v3655_v9 }
0x3341   : > { %v1933_v18 = vadd.f32 %v1932_v17, %v1926_v14 }
0x3343   : > { %v1934_v19 = vadd.f32 %v1933_v18, %v1920_v15 }
0x3345   : > { %3428 = vtanh.f32 %v1934_v19 }
0x334f   : > { %v3429_v20 = vpop.eup %3428 }
0x3350   : > { %v1943_v21 = vmul.f32 %v3429_v20, %v3676_v24  ;;  %v1937_v22 = vmul.f32 %v3429_v20, %v3678_v25 }
0x3352   : > { %v1944_v2 = vsel %vm349_vm0, %v1943_v21, 0.0  ;;  %v1938_v23 = vsel %vm349_vm0, %v1937_v22, 0.0 }
0x3353   : > { %1945 = vadd.xlane.f32.xlu1 %v1944_v2  ;;  %1939 = vadd.xlane.f32.xlu0 %v1938_v23  ;;  %v3549_v2 = vmov 48  }
0x3369   : > { %1952 = vperm.xlu0 %3284, %v4198_v5  }
0x336d   : > { %3288 = vset.pattern.permute.xlu0 %v3501_v0 }
0x33e0   : > { %v1946_v29 = vpop.xlane.xlu1 %1945  ;;  %v1940_v30 = vpop.xlane.xlu0 %1939 }
0x33e1   : > { %v1947_v47 = vadd.f32 %v1946_v29, %v1942_v27  ;;  %v1941_v31 = vadd.f32 %v1940_v30, %v1936_v28 }
0x33e3   : > { %v1948_v52 = vsel %vm363_vm1, %v1941_v31, %v1947_v47  ;;  %1959 = vperm.xlu1 %3285, %v1941_v31   ;;  %v1978_v50 = vadd.f32 %v1947_v47, %v3689_v33  ;;  %v1972_v51 = vadd.f32 %v1941_v31, %v3689_v33 }
0x33e4   : > { %3043 = vst.msk [vmem:[%s3694_s13 + $0x160] sm:$0xff] %vm365_vm2, %v1948_v52 }
0x33e7   : > { %3286 = vset.pattern.permute.xlu1 %v3502_v1 }
0x33e8   : > { %1965 = vperm.xlu1 %3286, %v1947_v47   ;;  %v1953_v34 = vpop.permute.xlu0 %1952 }
0x33e9   : > { %v1955_v10 = vmul.f32 %v4226_v40, %v1953_v34 }
0x33eb   : > { %v1956_v38 = vadd.f32 %v4234_v45, %v1955_v10 }
0x33ec   : > { %3287 = vset.pattern.permute.xlu1 %v3547_v32 }
0x3462   : > { %v1960_v35 = vpop.permute.xlu1 %1959 }
0x3463   : > { %v1962_v16 = vmul.f32 %v1960_v35, %v3662_v13 }
0x3467   : > { %v1966_v36 = vpop.permute.xlu1 %1965 }
0x3468   : > { %v1968_v39 = vmul.f32 %v1966_v36, %v3655_v9 }
0x346a   : > { %v1969_v41 = vadd.f32 %v1968_v39, %v1962_v16 }
0x346c   : > { %v1970_v42 = vadd.f32 %v1969_v41, %v1956_v38 }
0x346e   : > { %3430 = vtanh.f32 %v1970_v42 }
0x3478   : > { %v3431_v43 = vpop.eup %3430 }
0x3479   : > { %v1979_v44 = vmul.f32 %v3431_v43, %v3676_v24  ;;  %v1973_v46 = vmul.f32 %v3431_v43, %v3678_v25 }
0x347b   : > { %v1980_v48 = vsel %vm349_vm0, %v1979_v44, 0.0  ;;  %v1974_v49 = vsel %vm349_vm0, %v1973_v46, 0.0  ;;  %v3550_v46 = vmov 49  }
0x347c   : > { %1981 = vadd.xlane.f32.xlu0 %v1980_v48  ;;  %1975 = vadd.xlane.f32.xlu1 %v1974_v49 }
0x348d   : > { %1988 = vperm.xlu1 %3287, %v4198_v5  }
0x3491   : > { %3289 = vset.pattern.permute.xlu1 %v3502_v1 }
0x3509   : > { %v1982_v37 = vpop.xlane.xlu0 %1981  ;;  %v1976_v53 = vpop.xlane.xlu1 %1975 }
0x350a   : > { %v1983_v54 = vadd.f32 %v1982_v37, %v1978_v50  ;;  %v1977_v55 = vadd.f32 %v1976_v53, %v1972_v51 }
0x350c   : > { %v1984_v56 = vsel %vm363_vm1, %v1977_v55, %v1983_v54  ;;  %2001 = vperm.xlu1 %3289, %v1983_v54   ;;  %1995 = vperm.xlu0 %3288, %v1977_v55   ;;  %v2014_v15 = vadd.f32 %v1983_v54, %v3689_v33  ;;  %v2008_v17 = vadd.f32 %v1977_v55, %v3689_v33 }
0x350d   : > { %3044 = vst.msk [vmem:[%s3694_s13 + $0x168] sm:$0xff] %vm365_vm2, %v1984_v56  ;;  %v1989_v58 = vpop.permute.xlu1 %1988 }
0x350e   : > { %v1991_v59 = vmul.f32 %v4226_v40, %v1989_v58 }
0x3510   : > { %3290 = vset.pattern.permute.xlu1 %v3548_v57  ;;  %v1992_v3 = vadd.f32 %v4234_v45, %v1991_v59  ;;  %3293 = vset.pattern.permute.xlu0 %v3549_v2 }
0x358b   : > { %v2002_v60 = vpop.permute.xlu1 %2001  ;;  %v1996_v61 = vpop.permute.xlu0 %1995 }
0x358c   : > { %v2004_v62 = vmul.f32 %v2002_v60, %v3655_v9  ;;  %v1998_v63 = vmul.f32 %v1996_v61, %v3662_v13  ;;  %v4481_v60 = vld [vmem:[%s3641_s14] sm:$0xff] }
0x358e   : > { %v2005_v4 = vadd.f32 %v2004_v62, %v1998_v63 }
0x3590   : > { %v2006_v6 = vadd.f32 %v2005_v4, %v1992_v3 }
0x3592   : > { %3432 = vtanh.f32 %v2006_v6 }
0x359c   : > { %v3433_v7 = vpop.eup %3432 }
0x359d   : > { %v2015_v8 = vmul.f32 %v3433_v7, %v3676_v24  ;;  %v2009_v11 = vmul.f32 %v3433_v7, %v3678_v25  ;;  %v3551_v7 = vmov 50  }
0x359f   : > { %v2016_v12 = vsel %vm349_vm0, %v2015_v8, 0.0  ;;  %v2010_v14 = vsel %vm349_vm0, %v2009_v11, 0.0  ;;  %v4494_v11 = vld [vmem:[%s4885_s3] ss:$0 sm:$0xff] }
0x35a0   : > { %2017 = vadd.xlane.f32.xlu0 %v2016_v12  ;;  %2011 = vadd.xlane.f32.xlu1 %v2010_v14 }
0x35b1   : > { %2024 = vperm.xlu1 %3290, %v4198_v5  }
0x35b5   : > { %3291 = vset.pattern.permute.xlu1 %v3501_v0 }
0x362d   : > { %v2018_v18 = vpop.xlane.xlu0 %2017  ;;  %v2012_v19 = vpop.xlane.xlu1 %2011 }
0x362e   : > { %v2019_v20 = vadd.f32 %v2018_v18, %v2014_v15  ;;  %v2013_v21 = vadd.f32 %v2012_v19, %v2008_v17  ;;  %v4502_v19 = vld [vmem:[%s4886_s4] ss:$0 sm:$0xff] }
0x3630   : > { %v2020_v22 = vsel %vm363_vm1, %v2013_v21, %v2019_v20  ;;  %2031 = vperm.xlu1 %3291, %v2013_v21   ;;  %v2050_v16 = vadd.f32 %v2019_v20, %v3689_v33  ;;  %v2044_v38 = vadd.f32 %v2013_v21, %v3689_v33 }
0x3631   : > { %3045 = vst.msk [vmem:[%s3694_s13 + $0x170] sm:$0xff] %vm365_vm2, %v2020_v22  ;;  %v2025_v23 = vpop.permute.xlu1 %2024 }
0x3632   : > { %v2027_v27 = vmul.f32 %v4226_v40, %v2025_v23 }
0x3634   : > { %3292 = vset.pattern.permute.xlu1 %v3502_v1  ;;  %v2028_v47 = vadd.f32 %v4234_v45, %v2027_v27 }
0x3635   : > { %2037 = vperm.xlu1 %3292, %v2019_v20  }
0x3639   : > { %3294 = vset.pattern.permute.xlu1 %v3501_v0 }
0x36af   : > { %v2032_v26 = vpop.permute.xlu1 %2031 }
0x36b0   : > { %v2034_v29 = vmul.f32 %v2032_v26, %v3662_v13 }
0x36b4   : > { %v2038_v28 = vpop.permute.xlu1 %2037 }
0x36b5   : > { %v2040_v30 = vmul.f32 %v2038_v28, %v3655_v9 }
0x36b7   : > { %v2041_v31 = vadd.f32 %v2040_v30, %v2034_v29 }
0x36b9   : > { %v2042_v52 = vadd.f32 %v2041_v31, %v2028_v47 }
0x36bb   : > { %3434 = vtanh.f32 %v2042_v52 }
0x36c5   : > { %v3435_v32 = vpop.eup %3434 }
0x36c6   : > { %v2051_v34 = vmul.f32 %v3435_v32, %v3676_v24  ;;  %v2045_v35 = vmul.f32 %v3435_v32, %v3678_v25 }
0x36c8   : > { %v2052_v10 = vsel %vm349_vm0, %v2051_v34, 0.0  ;;  %v2046_v36 = vsel %vm349_vm0, %v2045_v35, 0.0 }
0x36c9   : > { %2053 = vadd.xlane.f32.xlu0 %v2052_v10  ;;  %2047 = vadd.xlane.f32.xlu1 %v2046_v36 }
0x36df   : > { %2060 = vperm.xlu0 %3293, %v4198_v5  }
0x36e3   : > { %3295 = vset.pattern.permute.xlu0 %v3502_v1 }
0x3756   : > { %v2054_v39 = vpop.xlane.xlu0 %2053  ;;  %v2048_v41 = vpop.xlane.xlu1 %2047 }
0x3757   : > { %v2055_v42 = vadd.f32 %v2054_v39, %v2050_v16  ;;  %v2049_v43 = vadd.f32 %v2048_v41, %v2044_v38 }
0x3759   : > { %v2056_v44 = vsel %vm363_vm1, %v2049_v43, %v2055_v42  ;;  %2073 = vperm.xlu0 %3295, %v2055_v42   ;;  %2067 = vperm.xlu1 %3294, %v2049_v43   ;;  %v2080_v61 = vadd.f32 %v2049_v43, %v3689_v33 }
0x375a   : > { %3046 = vst.msk [vmem:[%s3694_s13 + $0x178] sm:$0xff] %vm365_vm2, %v2056_v44 }
0x375d   : > { %3297 = vset.pattern.permute.xlu0 %v3501_v0  ;;  %3296 = vset.pattern.permute.xlu1 %v3550_v46 }
0x375e   : > { %v2061_v5 = vpop.permute.xlu0 %2060 }
0x375f   : > { %v2063_v48 = vmul.f32 %v4226_v40, %v2061_v5 }
0x3761   : > { %v2064_v53 = vadd.f32 %v4234_v45, %v2063_v48  ;;  %v2086_v45 = vadd.f32 %v2055_v42, %v3689_v33 }
0x37d8   : > { %v2074_v49 = vpop.permute.xlu0 %2073  ;;  %v2068_v50 = vpop.permute.xlu1 %2067 }
0x37d9   : > { %v2076_v51 = vmul.f32 %v2074_v49, %v3655_v9  ;;  %v2070_v37 = vmul.f32 %v2068_v50, %v3662_v13  ;;  %v3552_v50 = vmov 51  }
0x37db   : > { %v2077_v54 = vadd.f32 %v2076_v51, %v2070_v37 }
0x37dd   : > { %v2078_v55 = vadd.f32 %v2077_v54, %v2064_v53 }
0x37df   : > { %3436 = vtanh.f32 %v2078_v55 }
0x37e9   : > { %v3437_v56 = vpop.eup %3436 }
0x37ea   : > { %v2087_v57 = vmul.f32 %v3437_v56, %v3676_v24  ;;  %v2081_v58 = vmul.f32 %v3437_v56, %v3678_v25 }
0x37ec   : > { %v2088_v59 = vsel %vm349_vm0, %v2087_v57, 0.0  ;;  %v2082_v40 = vsel %vm349_vm0, %v2081_v58, 0.0 }
0x37ed   : > { %2089 = vadd.xlane.f32.xlu0 %v2088_v59  ;;  %2083 = vadd.xlane.f32.xlu1 %v2082_v40 }
0x37fe   : > { %2096 = vperm.xlu1 %3296, %v4481_v60  }
0x3802   : > { %3298 = vset.pattern.permute.xlu1 %v3502_v1 }
0x387a   : > { %v2090_v62 = vpop.xlane.xlu0 %2089  ;;  %v2084_v63 = vpop.xlane.xlu1 %2083 }
0x387b   : > { %v2091_v3 = vadd.f32 %v2090_v62, %v2086_v45  ;;  %v2085_v4 = vadd.f32 %v2084_v63, %v2080_v61 }
0x387d   : > { %v2092_v6 = vsel %vm363_vm1, %v2085_v4, %v2091_v3  ;;  %2109 = vperm.xlu1 %3298, %v2091_v3   ;;  %2103 = vperm.xlu0 %3297, %v2085_v4   ;;  %v2122_v29 = vadd.f32 %v2091_v3, %v3689_v33  ;;  %v2116_v30 = vadd.f32 %v2085_v4, %v3689_v33 }
0x387e   : > { %3047 = vst.msk [vmem:[%s3694_s13 + $0x180] sm:$0xff] %vm365_vm2, %v2092_v6  ;;  %v2097_v8 = vpop.permute.xlu1 %2096 }
0x387f   : > { %v2099_v12 = vmul.f32 %v4494_v11, %v2097_v8 }
0x3881   : > { %3301 = vset.pattern.permute.xlu0 %v3502_v1  ;;  %3299 = vset.pattern.permute.xlu1 %v3551_v7  ;;  %v2100_v20 = vadd.f32 %v4502_v19, %v2099_v12 }
0x38fc   : > { %v2110_v14 = vpop.permute.xlu1 %2109  ;;  %v2104_v15 = vpop.permute.xlu0 %2103 }
0x38fd   : > { %v2112_v17 = vmul.f32 %v2110_v14, %v3655_v9  ;;  %v2106_v18 = vmul.f32 %v2104_v15, %v3662_v13  ;;  %v3553_v15 = vmov 52  }
0x38ff   : > { %v2113_v21 = vadd.f32 %v2112_v17, %v2106_v18 }
0x3901   : > { %v2114_v22 = vadd.f32 %v2113_v21, %v2100_v20 }
0x3903   : > { %3438 = vtanh.f32 %v2114_v22 }
0x390d   : > { %v3439_v2 = vpop.eup %3438 }
0x390e   : > { %v2123_v23 = vmul.f32 %v3439_v2, %v3676_v24  ;;  %v2117_v26 = vmul.f32 %v3439_v2, %v3678_v25 }
0x3910   : > { %v2124_v27 = vsel %vm349_vm0, %v2123_v23, 0.0  ;;  %v2118_v28 = vsel %vm349_vm0, %v2117_v26, 0.0  ;;  %v3554_v26 = vmov 53  }
0x3911   : > { %2125 = vadd.xlane.f32.xlu0 %v2124_v27  ;;  %2119 = vadd.xlane.f32.xlu1 %v2118_v28 }
0x3922   : > { %2132 = vperm.xlu1 %3299, %v4481_v60  }
0x3926   : > { %3300 = vset.pattern.permute.xlu1 %v3501_v0 }
0x399e   : > { %v2126_v47 = vpop.xlane.xlu0 %2125  ;;  %v2120_v31 = vpop.xlane.xlu1 %2119 }
0x399f   : > { %v2127_v52 = vadd.f32 %v2126_v47, %v2122_v29  ;;  %v2121_v32 = vadd.f32 %v2120_v31, %v2116_v30 }
0x39a1   : > { %v2128_v34 = vsel %vm363_vm1, %v2121_v32, %v2127_v52  ;;  %2145 = vperm.xlu0 %3301, %v2127_v52   ;;  %2139 = vperm.xlu1 %3300, %v2121_v32   ;;  %v2152_v51 = vadd.f32 %v2121_v32, %v3689_v33  ;;  %v2158_v54 = vadd.f32 %v2127_v52, %v3689_v33 }
0x39a2   : > { %3048 = vst.msk [vmem:[%s3694_s13 + $0x188] sm:$0xff] %vm365_vm2, %v2128_v34  ;;  %v2133_v35 = vpop.permute.xlu1 %2132 }
0x39a3   : > { %v2135_v10 = vmul.f32 %v4494_v11, %v2133_v35 }
0x39a5   : > { %3303 = vset.pattern.permute.xlu0 %v3501_v0  ;;  %v2136_v41 = vadd.f32 %v4502_v19, %v2135_v10  ;;  %3302 = vset.pattern.permute.xlu1 %v3552_v50 }
0x3a20   : > { %v2146_v36 = vpop.permute.xlu0 %2145  ;;  %v2140_v16 = vpop.permute.xlu1 %2139 }
0x3a21   : > { %v2148_v38 = vmul.f32 %v2146_v36, %v3655_v9  ;;  %v2142_v39 = vmul.f32 %v2140_v16, %v3662_v13 }
0x3a23   : > { %v2149_v42 = vadd.f32 %v2148_v38, %v2142_v39 }
0x3a25   : > { %v2150_v43 = vadd.f32 %v2149_v42, %v2136_v41 }
0x3a27   : > { %3440 = vtanh.f32 %v2150_v43 }
0x3a31   : > { %v3441_v44 = vpop.eup %3440 }
0x3a32   : > { %v2153_v46 = vmul.f32 %v3441_v44, %v3678_v25  ;;  %v2159_v48 = vmul.f32 %v3441_v44, %v3676_v24 }
0x3a34   : > { %v2154_v5 = vsel %vm349_vm0, %v2153_v46, 0.0  ;;  %v2160_v49 = vsel %vm349_vm0, %v2159_v48, 0.0 }
0x3a35   : > { %2155 = vadd.xlane.f32.xlu1 %v2154_v5 }
0x3a39   : > { %2161 = vadd.xlane.f32.xlu1 %v2160_v49 }
0x3a4a   : > { %2168 = vperm.xlu1 %3302, %v4481_v60  }
0x3a4e   : > { %3306 = vset.pattern.permute.xlu1 %v3501_v0 }
0x3ac2   : > { %v2156_v37 = vpop.xlane.xlu1 %2155 }
0x3ac3   : > { %v2157_v53 = vadd.f32 %v2156_v37, %v2152_v51 }
0x3ac5   : > { %2175 = vperm.xlu0 %3303, %v2157_v53   ;;  %v2188_v18 = vadd.f32 %v2157_v53, %v3689_v33 }
0x3ac6   : > { %v2162_v55 = vpop.xlane.xlu1 %2161 }
0x3ac7   : > { %v2163_v56 = vadd.f32 %v2162_v55, %v2158_v54 }
0x3ac9   : > { %v2164_v57 = vsel %vm363_vm1, %v2157_v53, %v2163_v56  ;;  %3304 = vset.pattern.permute.xlu0 %v3502_v1  ;;  %v2194_v17 = vadd.f32 %v2163_v56, %v3689_v33 }
0x3aca   : > { %3049 = vst.msk [vmem:[%s3694_s13 + $0x190] sm:$0xff] %vm365_vm2, %v2164_v57  ;;  %2181 = vperm.xlu0 %3304, %v2163_v56   ;;  %v2169_v58 = vpop.permute.xlu1 %2168 }
0x3acb   : > { %v2171_v40 = vmul.f32 %v4494_v11, %v2169_v58 }
0x3acd   : > { %v2172_v62 = vadd.f32 %v4502_v19, %v2171_v40 }
0x3ace   : > { %3305 = vset.pattern.permute.xlu0 %v3553_v15 }
0x3b44   : > { %v2176_v59 = vpop.permute.xlu0 %2175 }
0x3b45   : > { %v2178_v61 = vmul.f32 %v2176_v59, %v3662_v13 }
0x3b49   : > { %v2182_v45 = vpop.permute.xlu0 %2181 }
0x3b4a   : > { %v2184_v63 = vmul.f32 %v2182_v45, %v3655_v9 }
0x3b4c   : > { %v2185_v3 = vadd.f32 %v2184_v63, %v2178_v61  ;;  %v3555_v61 = vmov 54  }
0x3b4e   : > { %v2186_v4 = vadd.f32 %v2185_v3, %v2172_v62 }
0x3b50   : > { %3442 = vtanh.f32 %v2186_v4 }
0x3b5a   : > { %v3443_v6 = vpop.eup %3442 }
0x3b5b   : > { %v2195_v7 = vmul.f32 %v3443_v6, %v3676_v24  ;;  %v2189_v8 = vmul.f32 %v3443_v6, %v3678_v25 }
0x3b5d   : > { %v2196_v12 = vsel %vm349_vm0, %v2195_v7, 0.0  ;;  %v2190_v14 = vsel %vm349_vm0, %v2189_v8, 0.0 }
0x3b5e   : > { %2197 = vadd.xlane.f32.xlu0 %v2196_v12  ;;  %2191 = vadd.xlane.f32.xlu1 %v2190_v14 }
0x3b74   : > { %2204 = vperm.xlu0 %3305, %v4481_v60  }
0x3b78   : > { %3309 = vset.pattern.permute.xlu0 %v3501_v0 }
0x3beb   : > { %v2198_v20 = vpop.xlane.xlu0 %2197  ;;  %v2192_v21 = vpop.xlane.xlu1 %2191 }
0x3bec   : > { %v2199_v22 = vadd.f32 %v2198_v20, %v2194_v17  ;;  %v2193_v2 = vadd.f32 %v2192_v21, %v2188_v18 }
0x3bee   : > { %v2200_v23 = vsel %vm363_vm1, %v2193_v2, %v2199_v22  ;;  %2211 = vperm.xlu1 %3306, %v2193_v2   ;;  %v2230_v39 = vadd.f32 %v2199_v22, %v3689_v33  ;;  %v2224_v41 = vadd.f32 %v2193_v2, %v3689_v33 }
0x3bef   : > { %3050 = vst.msk [vmem:[%s3694_s13 + $0x198] sm:$0xff] %vm365_vm2, %v2200_v23 }
0x3bf2   : > { %3307 = vset.pattern.permute.xlu1 %v3502_v1 }
0x3bf3   : > { %2217 = vperm.xlu1 %3307, %v2199_v22   ;;  %v2205_v27 = vpop.permute.xlu0 %2204 }
0x3bf4   : > { %v2207_v29 = vmul.f32 %v4494_v11, %v2205_v27 }
0x3bf6   : > { %v2208_v31 = vadd.f32 %v4502_v19, %v2207_v29 }
0x3bf7   : > { %3308 = vset.pattern.permute.xlu1 %v3554_v26 }
0x3c6d   : > { %v2212_v28 = vpop.permute.xlu1 %2211 }
0x3c6e   : > { %v2214_v47 = vmul.f32 %v2212_v28, %v3662_v13 }
0x3c72   : > { %v2218_v30 = vpop.permute.xlu1 %2217 }
0x3c73   : > { %v2220_v52 = vmul.f32 %v2218_v30, %v3655_v9  ;;  %v3556_v30 = vmov 55  }
0x3c75   : > { %v2221_v32 = vadd.f32 %v2220_v52, %v2214_v47 }
0x3c77   : > { %v2222_v34 = vadd.f32 %v2221_v32, %v2208_v31 }
0x3c79   : > { %3444 = vtanh.f32 %v2222_v34 }
0x3c83   : > { %v3445_v35 = vpop.eup %3444 }
0x3c84   : > { %v2231_v10 = vmul.f32 %v3445_v35, %v3676_v24  ;;  %v2225_v36 = vmul.f32 %v3445_v35, %v3678_v25 }
0x3c86   : > { %v2232_v16 = vsel %vm349_vm0, %v2231_v10, 0.0  ;;  %v2226_v38 = vsel %vm349_vm0, %v2225_v36, 0.0  ;;  %v3557_v36 = vmov 56  }
0x3c87   : > { %2233 = vadd.xlane.f32.xlu0 %v2232_v16  ;;  %2227 = vadd.xlane.f32.xlu1 %v2226_v38 }
0x3c98   : > { %2240 = vperm.xlu1 %3308, %v4481_v60  }
0x3c9c   : > { %3310 = vset.pattern.permute.xlu1 %v3502_v1 }
0x3d14   : > { %v2234_v42 = vpop.xlane.xlu0 %2233  ;;  %v2228_v43 = vpop.xlane.xlu1 %2227 }
0x3d15   : > { %v2235_v44 = vadd.f32 %v2234_v42, %v2230_v39  ;;  %v2229_v46 = vadd.f32 %v2228_v43, %v2224_v41 }
0x3d17   : > { %v2236_v5 = vsel %vm363_vm1, %v2229_v46, %v2235_v44  ;;  %2253 = vperm.xlu1 %3310, %v2235_v44   ;;  %2247 = vperm.xlu0 %3309, %v2229_v46   ;;  %v2260_v62 = vadd.f32 %v2229_v46, %v3689_v33  ;;  %v2266_v4 = vadd.f32 %v2235_v44, %v3689_v33 }
0x3d18   : > { %3051 = vst.msk [vmem:[%s3694_s13 + $0x1a0] sm:$0xff] %vm365_vm2, %v2236_v5  ;;  %v2241_v48 = vpop.permute.xlu1 %2240 }
0x3d19   : > { %v2243_v49 = vmul.f32 %v4494_v11, %v2241_v48 }
0x3d1b   : > { %3312 = vset.pattern.permute.xlu1 %v3501_v0  ;;  %v2244_v54 = vadd.f32 %v4502_v19, %v2243_v49  ;;  %3311 = vset.pattern.permute.xlu0 %v3555_v61 }
0x3d1c   : > { %2276 = vperm.xlu0 %3311, %v4481_v60  }
0x3d20   : > { %3313 = vset.pattern.permute.xlu0 %v3502_v1 }
0x3d96   : > { %v2254_v50 = vpop.permute.xlu1 %2253  ;;  %v2248_v51 = vpop.permute.xlu0 %2247 }
0x3d97   : > { %v2256_v37 = vmul.f32 %v2254_v50, %v3655_v9  ;;  %v2250_v53 = vmul.f32 %v2248_v51, %v3662_v13 }
0x3d99   : > { %v2257_v55 = vadd.f32 %v2256_v37, %v2250_v53 }
0x3d9b   : > { %v2258_v56 = vadd.f32 %v2257_v55, %v2244_v54  ;;  %v2277_v12 = vpop.permute.xlu0 %2276 }
0x3d9c   : > { %v2279_v15 = vmul.f32 %v4494_v11, %v2277_v12 }
0x3d9d   : > { %3446 = vtanh.f32 %v2258_v56 }
0x3d9e   : > { %v2280_v21 = vadd.f32 %v4502_v19, %v2279_v15 }
0x3da7   : > { %v3447_v57 = vpop.eup %3446 }
0x3da8   : > { %v2261_v58 = vmul.f32 %v3447_v57, %v3678_v25  ;;  %v2267_v40 = vmul.f32 %v3447_v57, %v3676_v24 }
0x3daa   : > { %v2262_v59 = vsel %vm349_vm0, %v2261_v58, 0.0  ;;  %v2268_v45 = vsel %vm349_vm0, %v2267_v40, 0.0  ;;  %v3558_v40 = vmov 57  }
0x3dab   : > { %2263 = vadd.xlane.f32.xlu1 %v2262_v59 }
0x3daf   : > { %2269 = vadd.xlane.f32.xlu1 %v2268_v45 }
0x3e38   : > { %v2264_v63 = vpop.xlane.xlu1 %2263 }
0x3e39   : > { %v2265_v3 = vadd.f32 %v2264_v63, %v2260_v62 }
0x3e3b   : > { %2283 = vperm.xlu1 %3312, %v2265_v3   ;;  %v2296_v31 = vadd.f32 %v2265_v3, %v3689_v33 }
0x3e3c   : > { %v2270_v6 = vpop.xlane.xlu1 %2269 }
0x3e3d   : > { %v2271_v7 = vadd.f32 %v2270_v6, %v2266_v4 }
0x3e3f   : > { %v2272_v8 = vsel %vm363_vm1, %v2265_v3, %v2271_v7  ;;  %2289 = vperm.xlu0 %3313, %v2271_v7   ;;  %v2302_v47 = vadd.f32 %v2271_v7, %v3689_v33 }
0x3e40   : > { %3052 = vst.msk [vmem:[%s3694_s13 + $0x1a8] sm:$0xff] %vm365_vm2, %v2272_v8 }
0x3e43   : > { %3314 = vset.pattern.permute.xlu0 %v3556_v30 }
0x3eba   : > { %v2284_v14 = vpop.permute.xlu1 %2283 }
0x3ebb   : > { %v2286_v18 = vmul.f32 %v2284_v14, %v3662_v13 }
0x3ebe   : > { %v2290_v17 = vpop.permute.xlu0 %2289 }
0x3ebf   : > { %v2292_v20 = vmul.f32 %v2290_v17, %v3655_v9 }
0x3ec1   : > { %v2293_v22 = vadd.f32 %v2292_v20, %v2286_v18 }
0x3ec3   : > { %v2294_v2 = vadd.f32 %v2293_v22, %v2280_v21 }
0x3ec5   : > { %3448 = vtanh.f32 %v2294_v2 }
0x3ecf   : > { %v3449_v23 = vpop.eup %3448 }
0x3ed0   : > { %v2303_v26 = vmul.f32 %v3449_v23, %v3676_v24  ;;  %v2297_v27 = vmul.f32 %v3449_v23, %v3678_v25 }
0x3ed2   : > { %v2304_v28 = vsel %vm349_vm0, %v2303_v26, 0.0  ;;  %v2298_v29 = vsel %vm349_vm0, %v2297_v27, 0.0 }
0x3ed3   : > { %2305 = vadd.xlane.f32.xlu1 %v2304_v28  ;;  %2299 = vadd.xlane.f32.xlu0 %v2298_v29  ;;  %v3559_v28 = vmov 58  }
0x3ee9   : > { %2312 = vperm.xlu0 %3314, %v4481_v60  }
0x3eed   : > { %3317 = vset.pattern.permute.xlu0 %v3501_v0 }
0x3f60   : > { %v2306_v52 = vpop.xlane.xlu1 %2305  ;;  %v2300_v32 = vpop.xlane.xlu0 %2299 }
0x3f61   : > { %v2307_v34 = vadd.f32 %v2306_v52, %v2302_v47  ;;  %v2301_v35 = vadd.f32 %v2300_v32, %v2296_v31 }
0x3f63   : > { %v2308_v10 = vsel %vm363_vm1, %v2301_v35, %v2307_v34  ;;  %2319 = vperm.xlu1 %3312, %v2301_v35   ;;  %v2338_v53 = vadd.f32 %v2307_v34, %v3689_v33  ;;  %v2332_v54 = vadd.f32 %v2301_v35, %v3689_v33 }
0x3f64   : > { %3053 = vst.msk [vmem:[%s3694_s13 + $0x1b0] sm:$0xff] %vm365_vm2, %v2308_v10 }
0x3f67   : > { %3315 = vset.pattern.permute.xlu1 %v3502_v1 }
0x3f68   : > { %2325 = vperm.xlu1 %3315, %v2307_v34   ;;  %v2313_v16 = vpop.permute.xlu0 %2312 }
0x3f69   : > { %v2315_v39 = vmul.f32 %v4494_v11, %v2313_v16 }
0x3f6b   : > { %v2316_v43 = vadd.f32 %v4502_v19, %v2315_v39 }
0x3f6c   : > { %3316 = vset.pattern.permute.xlu1 %v3557_v36 }
0x3fe2   : > { %v2320_v38 = vpop.permute.xlu1 %2319 }
0x3fe3   : > { %v2322_v42 = vmul.f32 %v2320_v38, %v3662_v13 }
0x3fe7   : > { %v2326_v41 = vpop.permute.xlu1 %2325 }
0x3fe8   : > { %v2328_v44 = vmul.f32 %v2326_v41, %v3655_v9 }
0x3fea   : > { %v2329_v46 = vadd.f32 %v2328_v44, %v2322_v42 }
0x3fec   : > { %v2330_v5 = vadd.f32 %v2329_v46, %v2316_v43 }
0x3fee   : > { %3450 = vtanh.f32 %v2330_v5 }
0x3ff8   : > { %v3451_v48 = vpop.eup %3450 }
0x3ff9   : > { %v2339_v49 = vmul.f32 %v3451_v48, %v3676_v24  ;;  %v2333_v50 = vmul.f32 %v3451_v48, %v3678_v25 }
0x3ffb   : > { %v2340_v51 = vsel %vm349_vm0, %v2339_v49, 0.0  ;;  %v2334_v37 = vsel %vm349_vm0, %v2333_v50, 0.0 }
0x3ffc   : > { %2341 = vadd.xlane.f32.xlu0 %v2340_v51  ;;  %2335 = vadd.xlane.f32.xlu1 %v2334_v37 }
0x400d   : > { %2348 = vperm.xlu1 %3316, %v4481_v60  }
0x4011   : > { %3318 = vset.pattern.permute.xlu1 %v3502_v1 }
0x4089   : > { %v2342_v55 = vpop.xlane.xlu0 %2341  ;;  %v2336_v56 = vpop.xlane.xlu1 %2335 }
0x408a   : > { %v2343_v57 = vadd.f32 %v2342_v55, %v2338_v53  ;;  %v2337_v58 = vadd.f32 %v2336_v56, %v2332_v54 }
0x408c   : > { %v2344_v59 = vsel %vm363_vm1, %v2337_v58, %v2343_v57  ;;  %2361 = vperm.xlu1 %3318, %v2343_v57   ;;  %2355 = vperm.xlu0 %3317, %v2337_v58   ;;  %v2374_v20 = vadd.f32 %v2343_v57, %v3689_v33  ;;  %v2368_v21 = vadd.f32 %v2337_v58, %v3689_v33 }
0x408d   : > { %3054 = vst.msk [vmem:[%s3694_s13 + $0x1b8] sm:$0xff] %vm365_vm2, %v2344_v59  ;;  %v2349_v45 = vpop.permute.xlu1 %2348 }
0x408e   : > { %v2351_v61 = vmul.f32 %v4494_v11, %v2349_v45 }
0x4090   : > { %3319 = vset.pattern.permute.xlu1 %v3558_v40  ;;  %v2352_v6 = vadd.f32 %v4502_v19, %v2351_v61  ;;  %3322 = vset.pattern.permute.xlu0 %v3559_v28 }
0x410b   : > { %v2362_v62 = vpop.permute.xlu1 %2361  ;;  %v2356_v63 = vpop.permute.xlu0 %2355 }
0x410c   : > { %v2364_v3 = vmul.f32 %v2362_v62, %v3655_v9  ;;  %v2358_v4 = vmul.f32 %v2356_v63, %v3662_v13  ;;  %v3560_v63 = vmov 59  }
0x410e   : > { %v2365_v7 = vadd.f32 %v2364_v3, %v2358_v4 }
0x4110   : > { %v2366_v8 = vadd.f32 %v2365_v7, %v2352_v6 }
0x4112   : > { %3452 = vtanh.f32 %v2366_v8 }
0x411c   : > { %v3453_v12 = vpop.eup %3452 }
0x411d   : > { %v2375_v14 = vmul.f32 %v3453_v12, %v3676_v24  ;;  %v2369_v15 = vmul.f32 %v3453_v12, %v3678_v25 }
0x411f   : > { %v2376_v17 = vsel %vm349_vm0, %v2375_v14, 0.0  ;;  %v2370_v18 = vsel %vm349_vm0, %v2369_v15, 0.0  ;;  %v3561_v15 = vmov 60  }
0x4120   : > { %2377 = vadd.xlane.f32.xlu0 %v2376_v17  ;;  %2371 = vadd.xlane.f32.xlu1 %v2370_v18 }
0x4131   : > { %2384 = vperm.xlu1 %3319, %v4481_v60  }
0x4135   : > { %3320 = vset.pattern.permute.xlu1 %v3501_v0 }
0x41ad   : > { %v2378_v22 = vpop.xlane.xlu0 %2377  ;;  %v2372_v2 = vpop.xlane.xlu1 %2371 }
0x41ae   : > { %v2379_v23 = vadd.f32 %v2378_v22, %v2374_v20  ;;  %v2373_v26 = vadd.f32 %v2372_v2, %v2368_v21 }
0x41b0   : > { %v2380_v27 = vsel %vm363_vm1, %v2373_v26, %v2379_v23  ;;  %2391 = vperm.xlu1 %3320, %v2373_v26   ;;  %v2410_v42 = vadd.f32 %v2379_v23, %v3689_v33  ;;  %v2404_v43 = vadd.f32 %v2373_v26, %v3689_v33 }
0x41b1   : > { %3055 = vst.msk [vmem:[%s3694_s13 + $0x1c0] sm:$0xff] %vm365_vm2, %v2380_v27  ;;  %v2385_v29 = vpop.permute.xlu1 %2384 }
0x41b2   : > { %v2387_v47 = vmul.f32 %v4494_v11, %v2385_v29 }
0x41b4   : > { %3321 = vset.pattern.permute.xlu1 %v3502_v1  ;;  %v2388_v34 = vadd.f32 %v4502_v19, %v2387_v47 }
0x41b5   : > { %2397 = vperm.xlu1 %3321, %v2379_v23  }
0x41b9   : > { %3323 = vset.pattern.permute.xlu1 %v3501_v0 }
0x422f   : > { %v2392_v30 = vpop.permute.xlu1 %2391 }
0x4230   : > { %v2394_v52 = vmul.f32 %v2392_v30, %v3662_v13 }
0x4234   : > { %v2398_v31 = vpop.permute.xlu1 %2397 }
0x4235   : > { %v2400_v32 = vmul.f32 %v2398_v31, %v3655_v9 }
0x4237   : > { %v2401_v35 = vadd.f32 %v2400_v32, %v2394_v52 }
0x4239   : > { %v2402_v10 = vadd.f32 %v2401_v35, %v2388_v34 }
0x423b   : > { %3454 = vtanh.f32 %v2402_v10 }
0x4245   : > { %v3455_v36 = vpop.eup %3454 }
0x4246   : > { %v2411_v16 = vmul.f32 %v3455_v36, %v3676_v24  ;;  %v2405_v38 = vmul.f32 %v3455_v36, %v3678_v25 }
0x4248   : > { %v2412_v39 = vsel %vm349_vm0, %v2411_v16, 0.0  ;;  %v2406_v41 = vsel %vm349_vm0, %v2405_v38, 0.0 }
0x4249   : > { %2413 = vadd.xlane.f32.xlu0 %v2412_v39  ;;  %2407 = vadd.xlane.f32.xlu1 %v2406_v41 }
0x425f   : > { %2420 = vperm.xlu0 %3322, %v4481_v60  }
0x4263   : > { %3324 = vset.pattern.permute.xlu0 %v3502_v1 }
0x42d6   : > { %v2414_v44 = vpop.xlane.xlu0 %2413  ;;  %v2408_v46 = vpop.xlane.xlu1 %2407 }
0x42d7   : > { %v2415_v5 = vadd.f32 %v2414_v44, %v2410_v42  ;;  %v2409_v48 = vadd.f32 %v2408_v46, %v2404_v43 }
0x42d9   : > { %v2416_v49 = vsel %vm363_vm1, %v2409_v48, %v2415_v5  ;;  %2433 = vperm.xlu0 %3324, %v2415_v5   ;;  %2427 = vperm.xlu1 %3323, %v2409_v48   ;;  %v2446_v3 = vadd.f32 %v2415_v5, %v3689_v33  ;;  %v2440_v4 = vadd.f32 %v2409_v48, %v3689_v33 }
0x42da   : > { %3056 = vst.msk [vmem:[%s3694_s13 + $0x1c8] sm:$0xff] %vm365_vm2, %v2416_v49 }
0x42dd   : > { %3325 = vset.pattern.permute.xlu0 %v3560_v63 }
0x42de   : > { %v2421_v50 = vpop.permute.xlu0 %2420 }
0x42df   : > { %v2423_v51 = vmul.f32 %v4494_v11, %v2421_v50 }
0x42e1   : > { %v2424_v56 = vadd.f32 %v4502_v19, %v2423_v51 }
0x4358   : > { %v2434_v37 = vpop.permute.xlu0 %2433  ;;  %v2428_v53 = vpop.permute.xlu1 %2427 }
0x4359   : > { %v2436_v54 = vmul.f32 %v2434_v37, %v3655_v9  ;;  %v2430_v55 = vmul.f32 %v2428_v53, %v3662_v13 }
0x435b   : > { %v2437_v57 = vadd.f32 %v2436_v54, %v2430_v55  ;;  %v3562_v54 = vmov 61  }
0x435d   : > { %v2438_v58 = vadd.f32 %v2437_v57, %v2424_v56 }
0x435f   : > { %3456 = vtanh.f32 %v2438_v58 }
0x4369   : > { %v3457_v59 = vpop.eup %3456 }
0x436a   : > { %v2447_v40 = vmul.f32 %v3457_v59, %v3676_v24  ;;  %v2441_v45 = vmul.f32 %v3457_v59, %v3678_v25 }
0x436c   : > { %v2448_v61 = vsel %vm349_vm0, %v2447_v40, 0.0  ;;  %v2442_v62 = vsel %vm349_vm0, %v2441_v45, 0.0 }
0x436d   : > { %2449 = vadd.xlane.f32.xlu0 %v2448_v61  ;;  %2443 = vadd.xlane.f32.xlu1 %v2442_v62 }
0x4383   : > { %2456 = vperm.xlu0 %3325, %v4481_v60  }
0x4387   : > { %3329 = vset.pattern.permute.xlu0 %v3502_v1 }
0x43fa   : > { %v2450_v6 = vpop.xlane.xlu0 %2449  ;;  %v2444_v7 = vpop.xlane.xlu1 %2443 }
0x43fb   : > { %v2451_v8 = vadd.f32 %v2450_v6, %v2446_v3  ;;  %v2445_v12 = vadd.f32 %v2444_v7, %v2440_v4 }
0x43fd   : > { %v2452_v14 = vsel %vm363_vm1, %v2445_v12, %v2451_v8  ;;  %2463 = vperm.xlu1 %3323, %v2445_v12   ;;  %v2482_v52 = vadd.f32 %v2451_v8, %v3689_v33  ;;  %v2476_v32 = vadd.f32 %v2445_v12, %v3689_v33 }
0x43fe   : > { %3057 = vst.msk [vmem:[%s3694_s13 + $0x1d0] sm:$0xff] %vm365_vm2, %v2452_v14 }
0x4401   : > { %3326 = vset.pattern.permute.xlu1 %v3502_v1 }
0x4402   : > { %2469 = vperm.xlu1 %3326, %v2451_v8   ;;  %v2457_v17 = vpop.permute.xlu0 %2456 }
0x4403   : > { %v2459_v20 = vmul.f32 %v4494_v11, %v2457_v17 }
0x4405   : > { %v2460_v2 = vadd.f32 %v4502_v19, %v2459_v20 }
0x4406   : > { %3327 = vset.pattern.permute.xlu1 %v3561_v15 }
0x447c   : > { %v2464_v18 = vpop.permute.xlu1 %2463 }
0x447d   : > { %v2466_v22 = vmul.f32 %v2464_v18, %v3662_v13 }
0x4481   : > { %v2470_v21 = vpop.permute.xlu1 %2469 }
0x4482   : > { %v2472_v23 = vmul.f32 %v2470_v21, %v3655_v9  ;;  %v3563_v21 = vmov 62  }
0x4484   : > { %v2473_v26 = vadd.f32 %v2472_v23, %v2466_v22 }
0x4486   : > { %v2474_v27 = vadd.f32 %v2473_v26, %v2460_v2 }
0x4488   : > { %3458 = vtanh.f32 %v2474_v27 }
0x4492   : > { %v3459_v28 = vpop.eup %3458 }
0x4493   : > { %v2483_v29 = vmul.f32 %v3459_v28, %v3676_v24  ;;  %v2477_v30 = vmul.f32 %v3459_v28, %v3678_v25 }
0x4495   : > { %v2484_v47 = vsel %vm349_vm0, %v2483_v29, 0.0  ;;  %v2478_v31 = vsel %vm349_vm0, %v2477_v30, 0.0  ;;  %v3564_v30 = vmov 63  }
0x4496   : > { %2485 = vadd.xlane.f32.xlu0 %v2484_v47  ;;  %2479 = vadd.xlane.f32.xlu1 %v2478_v31 }
0x44a7   : > { %2492 = vperm.xlu1 %3327, %v4481_v60  }
0x44ab   : > { %3328 = vset.pattern.permute.xlu1 %v3501_v0 }
0x4523   : > { %v2486_v34 = vpop.xlane.xlu0 %2485  ;;  %v2480_v35 = vpop.xlane.xlu1 %2479 }
0x4524   : > { %v2487_v10 = vadd.f32 %v2486_v34, %v2482_v52  ;;  %v2481_v36 = vadd.f32 %v2480_v35, %v2476_v32 }
0x4526   : > { %v2488_v16 = vsel %vm363_vm1, %v2481_v36, %v2487_v10  ;;  %2505 = vperm.xlu0 %3329, %v2487_v10   ;;  %2499 = vperm.xlu1 %3328, %v2481_v36   ;;  %v2512_v55 = vadd.f32 %v2481_v36, %v3689_v33  ;;  %v2518_v58 = vadd.f32 %v2487_v10, %v3689_v33 }
0x4527   : > { %3058 = vst.msk [vmem:[%s3694_s13 + $0x1d8] sm:$0xff] %vm365_vm2, %v2488_v16  ;;  %v2493_v38 = vpop.permute.xlu1 %2492 }
0x4528   : > { %v2495_v39 = vmul.f32 %v4494_v11, %v2493_v38 }
0x452a   : > { %3331 = vset.pattern.permute.xlu0 %v3501_v0  ;;  %v2496_v46 = vadd.f32 %v4502_v19, %v2495_v39  ;;  %3330 = vset.pattern.permute.xlu1 %v3562_v54 }
0x45a5   : > { %v2506_v41 = vpop.permute.xlu0 %2505  ;;  %v2500_v42 = vpop.permute.xlu1 %2499 }
0x45a6   : > { %v2508_v43 = vmul.f32 %v2506_v41, %v3655_v9  ;;  %v2502_v44 = vmul.f32 %v2500_v42, %v3662_v13 }
0x45a8   : > { %v2509_v5 = vadd.f32 %v2508_v43, %v2502_v44 }
0x45aa   : > { %v2510_v48 = vadd.f32 %v2509_v5, %v2496_v46 }
0x45ac   : > { %3460 = vtanh.f32 %v2510_v48 }
0x45b6   : > { %v3461_v49 = vpop.eup %3460 }
0x45b7   : > { %v2513_v50 = vmul.f32 %v3461_v49, %v3678_v25  ;;  %v2519_v37 = vmul.f32 %v3461_v49, %v3676_v24 }
0x45b9   : > { %v2514_v51 = vsel %vm349_vm0, %v2513_v50, 0.0  ;;  %v2520_v53 = vsel %vm349_vm0, %v2519_v37, 0.0 }
0x45ba   : > { %2515 = vadd.xlane.f32.xlu1 %v2514_v51 }
0x45be   : > { %2521 = vadd.xlane.f32.xlu1 %v2520_v53 }
0x45cf   : > { %2528 = vperm.xlu1 %3330, %v4481_v60  }
0x45d3   : > { %3334 = vset.pattern.permute.xlu1 %v3501_v0 }
0x4647   : > { %v2516_v56 = vpop.xlane.xlu1 %2515 }
0x4648   : > { %v2517_v57 = vadd.f32 %v2516_v56, %v2512_v55 }
0x464a   : > { %2535 = vperm.xlu0 %3331, %v2517_v57   ;;  %v2548_v2 = vadd.f32 %v2517_v57, %v3689_v33 }
0x464b   : > { %v2522_v59 = vpop.xlane.xlu1 %2521 }
0x464c   : > { %v2523_v40 = vadd.f32 %v2522_v59, %v2518_v58 }
0x464e   : > { %v2524_v45 = vsel %vm363_vm1, %v2517_v57, %v2523_v40  ;;  %3332 = vset.pattern.permute.xlu0 %v3502_v1  ;;  %v2554_v22 = vadd.f32 %v2523_v40, %v3689_v33 }
0x464f   : > { %3059 = vst.msk [vmem:[%s3694_s13 + $0x1e0] sm:$0xff] %vm365_vm2, %v2524_v45  ;;  %2541 = vperm.xlu0 %3332, %v2523_v40   ;;  %v2529_v61 = vpop.permute.xlu1 %2528 }
0x4650   : > { %v2531_v63 = vmul.f32 %v4494_v11, %v2529_v61 }
0x4652   : > { %v2532_v6 = vadd.f32 %v4502_v19, %v2531_v63 }
0x4653   : > { %3333 = vset.pattern.permute.xlu0 %v3563_v21  ;;  %v2823_v21 = vld [vmem:[%s3694_s13 + $0x68] sm:$0xff] (%p3630_p4) }
0x4654   : > { %2824 = vst [vmem:[%s4745_s11 + $0xd0] sm:$0xff] (%p3630_p4), %v2823_v21 }
0x46c9   : > { %v2536_v62 = vpop.permute.xlu0 %2535 }
0x46ca   : > { %v2538_v4 = vmul.f32 %v2536_v62, %v3662_v13 }
0x46ce   : > { %v2542_v3 = vpop.permute.xlu0 %2541 }
0x46cf   : > { %v2544_v7 = vmul.f32 %v2542_v3, %v3655_v9 }
0x46d1   : > { %v2545_v8 = vadd.f32 %v2544_v7, %v2538_v4  ;;  %v2803_v4 = vld [vmem:[%s3694_s13 + $0x18] sm:$0xff] (%p3630_p4)  ;;  %v2807_v7 = vld [vmem:[%s3694_s13 + $0x28] sm:$0xff] (%p3630_p4) }
0x46d2   : > { %2804 = vst [vmem:[%s4745_s11 + $0x30] sm:$0xff] (%p3630_p4), %v2803_v4  ;;  %2808 = vst [vmem:[%s4745_s11 + $0x50] sm:$0xff] (%p3630_p4), %v2807_v7 }
0x46d3   : > { %v2546_v12 = vadd.f32 %v2545_v8, %v2532_v6  ;;  %v2805_v6 = vld [vmem:[%s3694_s13 + $0x20] sm:$0xff] (%p3630_p4)  ;;  %v2809_v8 = vld [vmem:[%s3694_s13 + $0x30] sm:$0xff] (%p3630_p4) }
0x46d4   : > { %2806 = vst [vmem:[%s4745_s11 + $0x40] sm:$0xff] (%p3630_p4), %v2805_v6  ;;  %2810 = vst [vmem:[%s4745_s11 + $0x60] sm:$0xff] (%p3630_p4), %v2809_v8 }
0x46d5   : > { %3462 = vtanh.f32 %v2546_v12  ;;  %v2811_v12 = vld [vmem:[%s3694_s13 + $0x38] sm:$0xff] (%p3630_p4) }
0x46d6   : > { %2812 = vst [vmem:[%s4745_s11 + $0x70] sm:$0xff] (%p3630_p4), %v2811_v12 }
0x46df   : > { %v3463_v14 = vpop.eup %3462 }
0x46e0   : > { %v2555_v15 = vmul.f32 %v3463_v14, %v3676_v24  ;;  %v2549_v17 = vmul.f32 %v3463_v14, %v3678_v25  ;;  %v2813_v14 = vld [vmem:[%s3694_s13 + $0x40] sm:$0xff] (%p3630_p4) }
0x46e1   : > { %2814 = vst [vmem:[%s4745_s11 + $0x80] sm:$0xff] (%p3630_p4), %v2813_v14 }
0x46e2   : > { %v2556_v18 = vsel %vm349_vm0, %v2555_v15, 0.0  ;;  %v2550_v20 = vsel %vm349_vm0, %v2549_v17, 0.0  ;;  %v2815_v15 = vld [vmem:[%s3694_s13 + $0x48] sm:$0xff] (%p3630_p4)  ;;  %v2817_v17 = vld [vmem:[%s3694_s13 + $0x50] sm:$0xff] (%p3630_p4) }
0x46e3   : > { %2557 = vadd.xlane.f32.xlu1 %v2556_v18  ;;  %2551 = vadd.xlane.f32.xlu0 %v2550_v20  ;;  %v2819_v18 = vld [vmem:[%s3694_s13 + $0x58] sm:$0xff] (%p3630_p4)  ;;  %2816 = vst [vmem:[%s4745_s11 + $0x90] sm:$0xff] (%p3630_p4), %v2815_v15  ;;  %2818 = vst [vmem:[%s4745_s11 + $0xa0] sm:$0xff] (%p3630_p4), %v2817_v17  ;;  %v2821_v20 = vld [vmem:[%s3694_s13 + $0x60] sm:$0xff] (%p3630_p4) }
0x46e4   : > { %2820 = vst [vmem:[%s4745_s11 + $0xb0] sm:$0xff] (%p3630_p4), %v2819_v18  ;;  %2822 = vst [vmem:[%s4745_s11 + $0xc0] sm:$0xff] (%p3630_p4), %v2821_v20 }
0x46f9   : > { %2564 = vperm.xlu0 %3333, %v4481_v60  }
0x46fd   : > { %3337 = vset.pattern.permute.xlu0 %v3501_v0 }
0x4770   : > { %v2558_v23 = vpop.xlane.xlu1 %2557  ;;  %v2552_v26 = vpop.xlane.xlu0 %2551 }
0x4771   : > { %v2559_v27 = vadd.f32 %v2558_v23, %v2554_v22  ;;  %v2553_v28 = vadd.f32 %v2552_v26, %v2548_v2  ;;  %v2825_v22 = vld [vmem:[%s3694_s13 + $0x70] sm:$0xff] (%p3630_p4)  ;;  %v2827_v2 = vld [vmem:[%s3694_s13 + $0x78] sm:$0xff] (%p3630_p4)  ;;  %v2829_v23 = vld [vmem:[%s3694_s13 + $0x80] sm:$0xff] (%p3630_p4) }
0x4772   : > { %2826 = vst [vmem:[%s4745_s11 + $0xe0] sm:$0xff] (%p3630_p4), %v2825_v22  ;;  %v2831_v26 = vld [vmem:[%s3694_s13 + $0x88] sm:$0xff] (%p3630_p4)  ;;  %2828 = vst [vmem:[%s4745_s11 + $0xf0] sm:$0xff] (%p3630_p4), %v2827_v2 }
0x4773   : > { %v2560_v29 = vsel %vm363_vm1, %v2553_v28, %v2559_v27  ;;  %2571 = vperm.xlu1 %3334, %v2553_v28   ;;  %v2590_v43 = vadd.f32 %v2559_v27, %v3689_v33  ;;  %v2584_v44 = vadd.f32 %v2553_v28, %v3689_v33  ;;  %2830 = vst [vmem:[%s4745_s11 + $0x100] sm:$0xff] (%p3630_p4), %v2829_v23  ;;  %2832 = vst [vmem:[%s4745_s11 + $0x110] sm:$0xff] (%p3630_p4), %v2831_v26  ;;  %v2835_v28 = vld [vmem:[%s3694_s13 + $0x98] sm:$0xff] (%p3630_p4) }
0x4774   : > { %3060 = vst.msk [vmem:[%s3694_s13 + $0x1e8] sm:$0xff] %vm365_vm2, %v2560_v29  ;;  %v2837_v29 = vld [vmem:[%s3694_s13 + $0xa0] sm:$0xff] (%p3630_p4)  ;;  %2836 = vst [vmem:[%s4745_s11 + $0x130] sm:$0xff] (%p3630_p4), %v2835_v28 }
0x4775   : > { %2838 = vst [vmem:[%s4745_s11 + $0x140] sm:$0xff] (%p3630_p4), %v2837_v29 }
0x4777   : > { %3335 = vset.pattern.permute.xlu1 %v3502_v1 }
0x4778   : > { %2577 = vperm.xlu1 %3335, %v2559_v27   ;;  %v2565_v47 = vpop.permute.xlu0 %2564  ;;  %v2833_v27 = vld [vmem:[%s3694_s13 + $0x90] sm:$0xff] (%p3630_p4) }
0x4779   : > { %v2567_v31 = vmul.f32 %v4494_v11, %v2565_v47  ;;  %2834 = vst [vmem:[%s4745_s11 + $0x120] sm:$0xff] (%p3630_p4), %v2833_v27  ;;  %v2841_v47 = vld [vmem:[%s3694_s13 + $0xb0] sm:$0xff] (%p3630_p4) }
0x477a   : > { %2842 = vst [vmem:[%s4745_s11 + $0x160] sm:$0xff] (%p3630_p4), %v2841_v47 }
0x477b   : > { %v2568_v34 = vadd.f32 %v4502_v19, %v2567_v31  ;;  %v2845_v31 = vld [vmem:[%s3694_s13 + $0xc0] sm:$0xff] (%p3630_p4) }
0x477c   : > { %3336 = vset.pattern.permute.xlu1 %v3564_v30  ;;  %v2839_v30 = vld [vmem:[%s3694_s13 + $0xa8] sm:$0xff] (%p3630_p4)  ;;  %2846 = vst [vmem:[%s4745_s11 + $0x180] sm:$0xff] (%p3630_p4), %v2845_v31 }
0x477d   : > { %2840 = vst [vmem:[%s4745_s11 + $0x150] sm:$0xff] (%p3630_p4), %v2839_v30 }
0x47f2   : > { %v2572_v0 = vpop.permute.xlu1 %2571 }
0x47f3   : > { %v2574_v32 = vmul.f32 %v2572_v0, %v3662_v13  ;;  %v2843_v0 = vld [vmem:[%s3694_s13 + $0xb8] sm:$0xff] (%p3630_p4) }
0x47f4   : > { %2844 = vst [vmem:[%s4745_s11 + $0x170] sm:$0xff] (%p3630_p4), %v2843_v0 }
0x47f7   : > { %v2578_v52 = vpop.permute.xlu1 %2577 }
0x47f8   : > { %v2580_v35 = vmul.f32 %v2578_v52, %v3655_v9  ;;  %v2847_v52 = vld [vmem:[%s3694_s13 + $0xc8] sm:$0xff] (%p3630_p4) }
0x47f9   : > { %2848 = vst [vmem:[%s4745_s11 + $0x190] sm:$0xff] (%p3630_p4), %v2847_v52 }
0x47fa   : > { %v2581_v10 = vadd.f32 %v2580_v35, %v2574_v32  ;;  %v2849_v32 = vld [vmem:[%s3694_s13 + $0xd0] sm:$0xff] (%p3630_p4)  ;;  %v2853_v35 = vld [vmem:[%s3694_s13 + $0xe0] sm:$0xff] (%p3630_p4) }
0x47fb   : > { %2850 = vst [vmem:[%s4745_s11 + $0x1a0] sm:$0xff] (%p3630_p4), %v2849_v32  ;;  %2854 = vst [vmem:[%s4745_s11 + $0x1c0] sm:$0xff] (%p3630_p4), %v2853_v35 }
0x47fc   : > { %v2582_v36 = vadd.f32 %v2581_v10, %v2568_v34  ;;  %v2851_v34 = vld [vmem:[%s3694_s13 + $0xd8] sm:$0xff] (%p3630_p4)  ;;  %v2855_v10 = vld [vmem:[%s3694_s13 + $0xe8] sm:$0xff] (%p3630_p4) }
0x47fd   : > { %2852 = vst [vmem:[%s4745_s11 + $0x1b0] sm:$0xff] (%p3630_p4), %v2851_v34  ;;  %2856 = vst [vmem:[%s4745_s11 + $0x1d0] sm:$0xff] (%p3630_p4), %v2855_v10 }
0x47fe   : > { %3464 = vtanh.f32 %v2582_v36  ;;  %v2857_v36 = vld [vmem:[%s3694_s13 + $0xf0] sm:$0xff] (%p3630_p4) }
0x47ff   : > { %2858 = vst [vmem:[%s4745_s11 + $0x1e0] sm:$0xff] (%p3630_p4), %v2857_v36 }
0x4808   : > { %v3465_v16 = vpop.eup %3464 }
0x4809   : > { %v2591_v38 = vmul.f32 %v3465_v16, %v3676_v24  ;;  %v2585_v39 = vmul.f32 %v3465_v16, %v3678_v25  ;;  %v2859_v16 = vld [vmem:[%s3694_s13 + $0xf8] sm:$0xff] (%p3630_p4) }
0x480a   : > { %2860 = vst [vmem:[%s4745_s11 + $0x1f0] sm:$0xff] (%p3630_p4), %v2859_v16 }
0x480b   : > { %v2592_v41 = vsel %vm349_vm0, %v2591_v38, 0.0  ;;  %v2586_v42 = vsel %vm349_vm0, %v2585_v39, 0.0  ;;  %v2861_v38 = vld [vmem:[%s3694_s13 + $0x100] sm:$0xff] (%p3630_p4)  ;;  %v2863_v39 = vld [vmem:[%s3694_s13 + $0x108] sm:$0xff] (%p3630_p4) }
0x480c   : > { %2593 = vadd.xlane.f32.xlu0 %v2592_v41  ;;  %2587 = vadd.xlane.f32.xlu1 %v2586_v42  ;;  %2862 = vst [vmem:[%s4745_s11 + $0x200] sm:$0xff] (%p3630_p4), %v2861_v38  ;;  %v2865_v41 = vld [vmem:[%s3694_s13 + $0x110] sm:$0xff] (%p3630_p4)  ;;  %v2867_v42 = vld [vmem:[%s3694_s13 + $0x118] sm:$0xff] (%p3630_p4)  ;;  %2864 = vst [vmem:[%s4745_s11 + $0x210] sm:$0xff] (%p3630_p4), %v2863_v39 }
0x480d   : > { %2866 = vst [vmem:[%s4745_s11 + $0x220] sm:$0xff] (%p3630_p4), %v2865_v41  ;;  %2868 = vst [vmem:[%s4745_s11 + $0x230] sm:$0xff] (%p3630_p4), %v2867_v42 }
0x481d   : > { %2600 = vperm.xlu1 %3336, %v4481_v60  }
0x4821   : > { %3338 = vset.pattern.permute.xlu1 %v3502_v1 }
0x4899   : > { %v2594_v46 = vpop.xlane.xlu0 %2593  ;;  %v2588_v5 = vpop.xlane.xlu1 %2587 }
0x489a   : > { %v2595_v48 = vadd.f32 %v2594_v46, %v2590_v43  ;;  %v2589_v49 = vadd.f32 %v2588_v5, %v2584_v44  ;;  %v2869_v43 = vld [vmem:[%s3694_s13 + $0x120] sm:$0xff] (%p3630_p4)  ;;  %v2871_v44 = vld [vmem:[%s3694_s13 + $0x128] sm:$0xff] (%p3630_p4)  ;;  %v2873_v46 = vld [vmem:[%s3694_s13 + $0x130] sm:$0xff] (%p3630_p4) }
0x489b   : > { %2870 = vst [vmem:[%s4745_s11 + $0x240] sm:$0xff] (%p3630_p4), %v2869_v43  ;;  %2872 = vst [vmem:[%s4745_s11 + $0x250] sm:$0xff] (%p3630_p4), %v2871_v44  ;;  %v2875_v5 = vld [vmem:[%s3694_s13 + $0x138] sm:$0xff] (%p3630_p4) }
0x489c   : > { %v2596_v50 = vsel %vm363_vm1, %v2589_v49, %v2595_v48  ;;  %2613 = vperm.xlu1 %3338, %v2595_v48   ;;  %2607 = vperm.xlu0 %3337, %v2589_v49   ;;  %2874 = vst [vmem:[%s4745_s11 + $0x260] sm:$0xff] (%p3630_p4), %v2873_v46  ;;  %2876 = vst [vmem:[%s4745_s11 + $0x270] sm:$0xff] (%p3630_p4), %v2875_v5 }
0x489d   : > { %3061 = vst.msk [vmem:[%s3694_s13 + $0x1f0] sm:$0xff] %vm365_vm2, %v2596_v50  ;;  %v2601_v51 = vpop.permute.xlu1 %2600  ;;  %v2881_v50 = vld [vmem:[%s3694_s13 + $0x150] sm:$0xff] (%p3630_p4) }
0x489e   : > { %v2603_v60 = vmul.f32 %v4494_v11, %v2601_v51  ;;  %v2883_v51 = vld [vmem:[%s3694_s13 + $0x158] sm:$0xff] (%p3630_p4)  ;;  %2882 = vst [vmem:[%s4745_s11 + $0x2a0] sm:$0xff] (%p3630_p4), %v2881_v50 }
0x489f   : > { %2884 = vst [vmem:[%s4745_s11 + $0x2b0] sm:$0xff] (%p3630_p4), %v2883_v51 }
0x48a0   : > { %3339 = vset.pattern.permute.xlu0 %v3502_v1  ;;  %v2604_v56 = vadd.f32 %v4502_v19, %v2603_v60  ;;  %v2885_v60 = vld [vmem:[%s3694_s13 + $0x160] sm:$0xff] (%p3630_p4) }
0x48a1   : > { %2886 = vst [vmem:[%s4745_s11 + $0x2c0] sm:$0xff] (%p3630_p4), %v2885_v60 }
0x491b   : > { %v2614_v37 = vpop.permute.xlu1 %2613  ;;  %v2608_v53 = vpop.permute.xlu0 %2607 }
0x491c   : > { %v2616_v54 = vmul.f32 %v2614_v37, %v3655_v9  ;;  %v2610_v55 = vmul.f32 %v2608_v53, %v3662_v13  ;;  %v2626_v9 = vadd.f32 %v2595_v48, %v3689_v33  ;;  %v2620_v13 = vadd.f32 %v2589_v49, %v3689_v33  ;;  %v2801_v33 = vld [vmem:[%s3694_s13 + $0x10] sm:$0xff] (%p3630_p4)  ;;  %v2877_v48 = vld [vmem:[%s3694_s13 + $0x140] sm:$0xff] (%p3630_p4)  ;;  %v2879_v49 = vld [vmem:[%s3694_s13 + $0x148] sm:$0xff] (%p3630_p4) }
0x491d   : > { %2802 = vst [vmem:[%s4745_s11 + $0x20] sm:$0xff] (%p3630_p4), %v2801_v33  ;;  %2878 = vst [vmem:[%s4745_s11 + $0x280] sm:$0xff] (%p3630_p4), %v2877_v48  ;;  %v2887_v37 = vld [vmem:[%s3694_s13 + $0x168] sm:$0xff] (%p3630_p4)  ;;  %v2889_v53 = vld [vmem:[%s3694_s13 + $0x170] sm:$0xff] (%p3630_p4) }
0x491e   : > { %v2617_v57 = vadd.f32 %v2616_v54, %v2610_v55  ;;  %2880 = vst [vmem:[%s4745_s11 + $0x290] sm:$0xff] (%p3630_p4), %v2879_v49  ;;  %v2891_v54 = vld [vmem:[%s3694_s13 + $0x178] sm:$0xff] (%p3630_p4)  ;;  %2888 = vst [vmem:[%s4745_s11 + $0x2d0] sm:$0xff] (%p3630_p4), %v2887_v37  ;;  %v2893_v55 = vld [vmem:[%s3694_s13 + $0x180] sm:$0xff] (%p3630_p4) }
0x491f   : > { %2890 = vst [vmem:[%s4745_s11 + $0x2e0] sm:$0xff] (%p3630_p4), %v2889_v53  ;;  %2892 = vst [vmem:[%s4745_s11 + $0x2f0] sm:$0xff] (%p3630_p4), %v2891_v54 }
0x4920   : > { %v2618_v58 = vadd.f32 %v2617_v57, %v2604_v56  ;;  %v2895_v56 = vld [vmem:[%s3694_s13 + $0x188] sm:$0xff] (%p3630_p4)  ;;  %v2897_v57 = vld [vmem:[%s3694_s13 + $0x190] sm:$0xff] (%p3630_p4)  ;;  %2894 = vst [vmem:[%s4745_s11 + $0x300] sm:$0xff] (%p3630_p4), %v2893_v55 }
0x4921   : > { %2896 = vst [vmem:[%s4745_s11 + $0x310] sm:$0xff] (%p3630_p4), %v2895_v56  ;;  %2898 = vst [vmem:[%s4745_s11 + $0x320] sm:$0xff] (%p3630_p4), %v2897_v57 }
0x4922   : > { %3466 = vtanh.f32 %v2618_v58  ;;  %v2899_v58 = vld [vmem:[%s3694_s13 + $0x198] sm:$0xff] (%p3630_p4) }
0x4923   : > { %2900 = vst [vmem:[%s4745_s11 + $0x330] sm:$0xff] (%p3630_p4), %v2899_v58 }
0x492c   : > { %v3467_v59 = vpop.eup %3466 }
0x492d   : > { %v2627_v40 = vmul.f32 %v3467_v59, %v3676_v24  ;;  %v2621_v1 = vmul.f32 %v3467_v59, %v3678_v25  ;;  %v2797_v24 = vld [vmem:[%s3694_s13] sm:$0xff] (%p3630_p4)  ;;  %v2799_v25 = vld [vmem:[%s3694_s13 + $0x8] sm:$0xff] (%p3630_p4) }
0x492e   : > { %2798 = vst [vmem:[%s4745_s11] sm:$0xff] (%p3630_p4), %v2797_v24  ;;  %2800 = vst [vmem:[%s4745_s11 + $0x10] sm:$0xff] (%p3630_p4), %v2799_v25  ;;  %v2901_v59 = vld [vmem:[%s3694_s13 + $0x1a0] sm:$0xff] (%p3630_p4) }
0x492f   : > { %v2628_v45 = vsel %vm349_vm0, %v2627_v40, 0.0  ;;  %v2622_v11 = vsel %vm349_vm0, %v2621_v1, 0.0  ;;  %v2903_v40 = vld [vmem:[%s3694_s13 + $0x1a8] sm:$0xff] (%p3630_p4)  ;;  %2902 = vst [vmem:[%s4745_s11 + $0x340] sm:$0xff] (%p3630_p4), %v2901_v59  ;;  %v2905_v1 = vld [vmem:[%s3694_s13 + $0x1b0] sm:$0xff] (%p3630_p4) }
0x4930   : > { %2629 = vadd.xlane.f32.xlu0 %v2628_v45  ;;  %2623 = vadd.xlane.f32.xlu1 %v2622_v11  ;;  %2904 = vst [vmem:[%s4745_s11 + $0x350] sm:$0xff] (%p3630_p4), %v2903_v40  ;;  %v2907_v45 = vld [vmem:[%s3694_s13 + $0x1b8] sm:$0xff] (%p3630_p4)  ;;  %v2909_v11 = vld [vmem:[%s3694_s13 + $0x1c0] sm:$0xff] (%p3630_p4)  ;;  %2906 = vst [vmem:[%s4745_s11 + $0x360] sm:$0xff] (%p3630_p4), %v2905_v1 }
0x4931   : > { %2908 = vst [vmem:[%s4745_s11 + $0x370] sm:$0xff] (%p3630_p4), %v2907_v45  ;;  %2910 = vst [vmem:[%s4745_s11 + $0x380] sm:$0xff] (%p3630_p4), %v2909_v11 }
0x49bb   : > { %2641 = sbr.rel (!%p3630_p4) target bundleno = 18890 (0x49ca), region = 52 }
0x49bd   : > { %v2630_v19 = vpop.xlane.xlu0 %2629  ;;  %v2624_v61 = vpop.xlane.xlu1 %2623 }
0x49be   : > { %v2631_v62 = vadd.f32 %v2630_v19, %v2626_v9  ;;  %v2625_v63 = vadd.f32 %v2624_v61, %v2620_v13  ;;  %v2911_v9 = vld [vmem:[%s3694_s13 + $0x1c8] sm:$0xff] (%p3630_p4)  ;;  %v2913_v13 = vld [vmem:[%s3694_s13 + $0x1d0] sm:$0xff] (%p3630_p4)  ;;  %v2915_v19 = vld [vmem:[%s3694_s13 + $0x1d8] sm:$0xff] (%p3630_p4) }
0x49bf   : > { %2912 = vst [vmem:[%s4745_s11 + $0x390] sm:$0xff] (%p3630_p4), %v2911_v9  ;;  %2914 = vst [vmem:[%s4745_s11 + $0x3a0] sm:$0xff] (%p3630_p4), %v2913_v13  ;;  %v2917_v61 = vld [vmem:[%s3694_s13 + $0x1e0] sm:$0xff] (%p3630_p4) }
0x49c0   : > { %v2632_v3 = vsel %vm363_vm1, %v2625_v63, %v2631_v62  ;;  %2916 = vst [vmem:[%s4745_s11 + $0x3b0] sm:$0xff] (%p3630_p4), %v2915_v19  ;;  %v2919_v62 = vld [vmem:[%s3694_s13 + $0x1e8] sm:$0xff] (%p3630_p4)  ;;  %v2921_v63 = vld [vmem:[%s3694_s13 + $0x1f0] sm:$0xff] (%p3630_p4)  ;;  %2918 = vst [vmem:[%s4745_s11 + $0x3c0] sm:$0xff] (%p3630_p4), %v2917_v61 }
0x49c1   : > { %3062 = vst.msk [vmem:[%s3694_s13 + $0x1f8] sm:$0xff] %vm365_vm2, %v2632_v3  ;;  %2920 = vst [vmem:[%s4745_s11 + $0x3d0] sm:$0xff] (%p3630_p4), %v2919_v62 }
0x49c2   : > { %2922 = vst [vmem:[%s4745_s11 + $0x3e0] sm:$0xff] %v2921_v63 }
0x49c8   : > { %v2923_v3 = vld [vmem:[%s3694_s13 + $0x1f8] sm:$0xff] }
0x49c9   : > { %2924 = vst [vmem:[%s4745_s11 + $0x3f0] sm:$0xff] %v2923_v3 }
0x49ca PF: > { %p14_p8 = scmp.ge.s32.totalorder %s3620_s28, 4   ;;  %s4891_s24 = smov %s3495_s25 }
0x49cb   : > { %s4892_s25 = smov %s3628_s8  ;;  %s4893_s26 = smov %s3620_s28 }
0x49cc   :  { %16 = sbr.rel (!%p14_p8) target bundleno = 2 (0x2), region = 182 }

</bundles_post_ra>
